<compile_context>
chip_gen: v6e
topology: v6e:2x2x1
jax: 0.10.0
libtpu: 0.0.40
codegen_flags: <defaults>
</compile_context>

<pallas_src>
import functools
from typing import Any, NamedTuple

import jax
import jax.numpy as jnp
from jax.experimental import pallas as pl
from jax.experimental.pallas import tpu as pltpu


def _round_up(x, m):
    return (x + m - 1) // m * m


class TuckerParams(NamedTuple):
    w_flat: jax.Array      # (d2p * d1p, d1p) compute_dtype, kk-major flattening
    g0: jax.Array          # (1, d1p) f32
    b0: jax.Array          # (1, d1p) f32
    g1: jax.Array          # (1, d1p) f32
    b1: jax.Array          # (1, d1p) f32
    d1: int
    d2: int
    d1p: int
    d2p: int
    tile_k: int
    tile_n: int
    compute_dtype: Any


def prepare_tucker_params(W, gamma0, beta0, gamma1, beta1, *,
                          compute_dtype=jnp.bfloat16, tile_k=None, tile_n=None):
    """One-time weight preparation (pad + flatten + cast). Cache the result."""
    d2, d1, d1b = W.shape
    assert d1 == d1b, "core tensor must be (d2, d1, d1)"
    f32 = jnp.float32
    itemsize = jnp.dtype(compute_dtype).itemsize

    d1p = _round_up(d1, 128)
    if tile_n is None:
        # nj >= 2 when d1p == 256 so both v7x TensorCores stream W; wider (256)
        # N tiles once d1p >= 512 (matches v6e MXU native tile).
        tile_n = 256 if (d1p % 256 == 0 and d1p >= 512) else 128
    assert tile_n % 128 == 0 and d1p % tile_n == 0

    if tile_k is None:
        # Target ~4 MiB streamed W block per buffer: large enough that the
        # per-grid-step fixed overhead (~0.35 us) is negligible, small enough
        # that the double buffer fits v7x's 64 MiB VMEM.
        target = 4 * (1 << 20)
        tk = max(8, (target // (d1p * tile_n * itemsize)) // 8 * 8)
        tile_k = int(min(_round_up(d2, 8), tk))
    d2p = _round_up(d2, tile_k)

    # Zero padding is transparent: padded relations carry zero W slices (and
    # zero r), padded d1 rows/cols of W are zero, padded gamma/beta are zero.
    w_p = jnp.zeros((d2p, d1p, d1p), compute_dtype)
    w_p = w_p.at[:d2, :d1, :d1].set(W.astype(compute_dtype))
    w_flat = w_p.reshape(d2p * d1p, d1p)

    g0 = jnp.zeros((1, d1p), f32).at[0, :d1].set(gamma0.astype(f32))
    b0 = jnp.zeros((1, d1p), f32).at[0, :d1].set(beta0.astype(f32))
    g1 = jnp.zeros((1, d1p), f32).at[0, :d1].set(gamma1.astype(f32))
    b1 = jnp.zeros((1, d1p), f32).at[0, :d1].set(beta1.astype(f32))

    return TuckerParams(w_flat, g0, b0, g1, b1, d1, d2, d1p, d2p,
                        int(tile_k), int(tile_n), compute_dtype)


def _tucker_kernel(e1_ref, r_ref, g0_ref, b0_ref, g1_ref, b1_ref, w_ref,
                   y_ref, xr_sc, *, b_real, tile_k, nk, d1p, compute_dtype):
    """Grid step (j, k): j = output column tile (parallel), k = d2 tile (reduction)."""
    eps = 1e-5
    k = pl.program_id(1)
    inv_b = 1.0 / b_real
    prec = (jax.lax.Precision.HIGHEST
            if jnp.dtype(compute_dtype) == jnp.dtype(jnp.float32) else None)

    # ---- k == 0: bn0(e1), assemble the fused r (x) x LHS for all k tiles, zero acc ----
    @pl.when(k == 0)
    def _():
        e1 = e1_ref[...]                                            # (Bp, d1p) f32
        row = jax.lax.broadcasted_iota(jnp.int32, e1.shape, 0)
        mu0 = jnp.sum(e1, axis=0, keepdims=True) * inv_b            # padded rows are 0
        d = jnp.where(row < b_real, e1 - mu0, 0.0)
        var0 = jnp.sum(d * d, axis=0, keepdims=True) * inv_b
        x = d * (g0_ref[...] * jax.lax.rsqrt(var0 + eps)) + b0_ref[...]
        # Explicitly zero padded batch rows so they can never leak into y / bn1 stats.
        x = jnp.where(row < b_real, x, 0.0)
        # TODO(synk): input_dropout / hidden_dropout1 treated as identity.
        # Fused LHS: xr_sc[t][b, kk*d1p + i] = r[b, t*tile_k + kk] * x[b, i].
        # r scaling in f32 first, single cast to the compute dtype afterwards.
        for t in range(nk):
            for kk in range(tile_k):
                col = r_ref[t * tile_k + kk]                        # (Bp, 1) f32
                xr_sc[t, :, kk * d1p:(kk + 1) * d1p] = (x * col).astype(compute_dtype)
        y_ref[...] = jnp.zeros_like(y_ref)

    # ---- every step: one long-K MXU matmul against the streamed W block ----
    acc = y_ref[...] + jnp.dot(xr_sc[k], w_ref[...],
                               preferred_element_type=jnp.float32, precision=prec)
    y_ref[...] = acc

    # ---- last k: bn1 over the fully accumulated column tile (batch statistics) ----
    @pl.when(k == nk - 1)
    def _():
        row = jax.lax.broadcasted_iota(jnp.int32, acc.shape, 0)
        mu1 = jnp.sum(acc, axis=0, keepdims=True) * inv_b           # padded rows are 0
        dy = jnp.where(row < b_real, acc - mu1, 0.0)
        var1 = jnp.sum(dy * dy, axis=0, keepdims=True) * inv_b
        scale1 = g1_ref[...] * jax.lax.rsqrt(var1 + eps)
        # TODO(synk): hidden_dropout2 treated as identity.
        y_ref[...] = dy * scale1 + b1_ref[...]


def tucker_forward(e1, r, e2p, e2n, params: TuckerParams):
    """TuckER.forward with prepared (cached) weights. Wrap in jax.jit for repeated use."""
    B, d1 = e1.shape
    d2 = r.shape[1]
    assert d1 == params.d1 and d2 == params.d2
    f32 = jnp.float32
    cdt = params.compute_dtype
    d1p, d2p = params.d1p, params.d2p
    tile_k, tile_n = params.tile_k, params.tile_n
    nk = d2p // tile_k
    nj = d1p // tile_n
    Bp = _round_up(B, 8)
    itemsize = jnp.dtype(cdt).itemsize

    # Small per-call activation padding (weights are already prepared/cached).
    e1_p = jnp.zeros((Bp, d1p), f32).at[:B, :d1].set(e1.astype(f32))
    r_p = jnp.zeros((d2p, Bp, 1), f32).at[:d2, :B, 0].set(r.astype(f32).T)

    kernel = functools.partial(_tucker_kernel, b_real=B, tile_k=tile_k, nk=nk,
                               d1p=d1p, compute_dtype=cdt)

    w_block_bytes = tile_k * d1p * tile_n * itemsize
    vmem_need = (2 * w_block_bytes                       # W stream (double buffered)
                 + Bp * d2p * d1p * itemsize             # fused-LHS scratch
                 + 2 * Bp * d1p * 4                      # e1 block
                 + 2 * d2p * 8 * 128 * 4                 # r block (padded layout)
                 + 4 * Bp * max(tile_n, 128) * 4         # output block (double buffered)
                 + 8 * d1p * 4)                          # bn params
    vmem_limit = int(min(48 * (1 << 20), max(2 * vmem_need, 16 * (1 << 20))))

    cost = pl.CostEstimate(
        flops=int(2 * Bp * d2p * d1p * d1p),
        transcendentals=0,
        bytes_accessed=int(params.w_flat.size * itemsize
                           + 4 * (e1_p.size + r_p.size + Bp * d1p + 4 * d1p)))

    y_p = pl.pallas_call(
        kernel,
        out_shape=jax.ShapeDtypeStruct((Bp, d1p), f32),
        grid=(nj, nk),
        in_specs=[
            pl.BlockSpec((Bp, d1p), lambda j, k: (0, 0)),               # e1 (resident)
            pl.BlockSpec((d2p, Bp, 1), lambda j, k: (0, 0, 0)),         # r (resident)
            pl.BlockSpec((1, d1p), lambda j, k: (0, 0)),                # gamma0
            pl.BlockSpec((1, d1p), lambda j, k: (0, 0)),                # beta0
            pl.BlockSpec((1, tile_n), lambda j, k: (0, j)),             # gamma1
            pl.BlockSpec((1, tile_n), lambda j, k: (0, j)),             # beta1
            pl.BlockSpec((tile_k * d1p, tile_n), lambda j, k: (k, j)),  # W (streamed)
        ],
        out_specs=pl.BlockSpec((Bp, tile_n), lambda j, k: (0, j)),
        scratch_shapes=[pltpu.VMEM((nk, Bp, tile_k * d1p), cdt)],
        compiler_params=pltpu.CompilerParams(
            dimension_semantics=("parallel", "arbitrary"),
            vmem_limit_bytes=vmem_limit),
        cost_estimate=cost,
    )(e1_p, r_p, params.g0, params.b0, params.g1, params.b1, params.w_flat)

    # Lane-dense kernel output; tiny scoring epilogue in plain JAX.
    y = y_p[:B, :d1]
    pred_p = jax.nn.sigmoid(jnp.sum(y * e2p.astype(f32), axis=1))
    pred_n = jax.nn.sigmoid(jnp.sum(y * e2n.astype(f32), axis=1))
    return pred_p, pred_n


def tucker_forward_ref(e1, r, W, gamma0, beta0, gamma1, beta1, e2p, e2n):
    # Pure-JAX reference mirroring the torch forward (dropout = identity, batch-stat BN).
    eps = 1e-5
    B, d1 = e1.shape
    d2 = r.shape[1]
    hi = jax.lax.Precision.HIGHEST
    mu0 = e1.mean(0)
    var0 = ((e1 - mu0) ** 2).mean(0)
    x = (e1 - mu0) / jnp.sqrt(var0 + eps) * gamma0 + beta0
    W_mat = jnp.dot(r, W.reshape(d2, d1 * d1), precision=hi).reshape(B, d1, d1)
    y = jnp.einsum('bi,bij->bj', x, W_mat, precision=hi)
    mu1 = y.mean(0)
    var1 = ((y - mu1) ** 2).mean(0)
    y = (y - mu1) / jnp.sqrt(var1 + eps) * gamma1 + beta1
    return (jax.nn.sigmoid((y * e2p).sum(1)),
            jax.nn.sigmoid((y * e2n).sum(1)))


if __name__ == "__main__":
    # Small shapes that still exercise padding/tiling: B=6 (-> 8 rows),
    # d1=200 (-> 256, two 128-wide N tiles), d2=12 (-> padded relation tiles).
    B, d1, d2 = 6, 200, 12

    key = jax.random.PRNGKey(0)
    k_e1, k_r, k_p, k_n, k_w, k_g0, k_b0, k_g1, k_b1 = jax.random.split(key, 9)

    e1 = jax.random.normal(k_e1, (B, d1), jnp.float32)          # head-entity embeddings
    r = jax.random.normal(k_r, (B, d2), jnp.float32)            # relation embeddings
    # Small-scale tails keep the sigmoid out of saturation so the checks are meaningful.
    e2p = 0.05 * jax.random.normal(k_p, (B, d1), jnp.float32)
    e2n = 0.05 * jax.random.normal(k_n, (B, d1), jnp.float32)

    W = jax.random.uniform(k_w, (d2, d1, d1), jnp.float32, -1.0, 1.0)
    gamma0 = 1.0 + 0.1 * jax.random.normal(k_g0, (d1,), jnp.float32)
    beta0 = 0.1 * jax.random.normal(k_b0, (d1,), jnp.float32)
    gamma1 = 1.0 + 0.1 * jax.random.normal(k_g1, (d1,), jnp.float32)
    beta1 = 0.1 * jax.random.normal(k_b1, (d1,), jnp.float32)

    ref_p, ref_n = tucker_forward_ref(e1, r, W, gamma0, beta0, gamma1, beta1, e2p, e2n)

    # f32 MXU path with small explicit tiles (exercises nj=2 x nk=2): tight check.
    prep32 = prepare_tucker_params(W, gamma0, beta0, gamma1, beta1,
                                   compute_dtype=jnp.float32, tile_k=8, tile_n=128)
    p32, n32 = tucker_forward(e1, r, e2p, e2n, prep32)
    jax.block_until_ready((p32, n32))
    assert p32.shape == (B,) and n32.shape == (B,)
    assert jnp.allclose(p32, ref_p, atol=2e-4, rtol=2e-4)
    assert jnp.allclose(n32, ref_n, atol=2e-4, rtol=2e-4)

    # bf16-W production path (auto tile sizing, f32 accumulate): loose check.
    prepbf = prepare_tucker_params(W, gamma0, beta0, gamma1, beta1,
                                   compute_dtype=jnp.bfloat16)
    pbf, nbf = tucker_forward(e1, r, e2p, e2n, prepbf)
    jax.block_until_ready((pbf, nbf))
    assert pbf.shape == (B,) and nbf.shape == (B,)
    assert jnp.allclose(pbf, ref_p, atol=5e-2, rtol=5e-2)
    assert jnp.allclose(nbf, ref_n, atol=5e-2, rtol=5e-2)

    print("KERNEL_OK")
</pallas_src>

<mosaic_0001>
module attributes {stable_mosaic.version = 11 : i64} {
  func.func @_tucker_kernel(%arg0: i32, %arg1: i32, %arg2: memref<8x256xf32, #tpu.memory_space<vmem>>, %arg3: memref<16x8x1xf32, #tpu.memory_space<vmem>>, %arg4: memref<1x256xf32, #tpu.memory_space<vmem>>, %arg5: memref<1x256xf32, #tpu.memory_space<vmem>>, %arg6: memref<1x128xf32, #tpu.memory_space<vmem>>, %arg7: memref<1x128xf32, #tpu.memory_space<vmem>>, %arg8: memref<2048x128xf32, #tpu.memory_space<vmem>>, %arg9: memref<8x128xf32, #tpu.memory_space<vmem>>, %arg10: memref<2x8x2048xf32, #tpu.memory_space<vmem>>) attributes {dimension_semantics = [#tpu.dimension_semantics<parallel>, #tpu.dimension_semantics<arbitrary>], iteration_bounds = array<i64: 2, 2>, scalar_prefetch = 0 : i64, scratch_operands = 1 : i64, tpu.core_type = #tpu.core_type<tc>, window_params = [{pipeline_mode = #tpu.pipeline_mode<synchronous>, transform_indices = @transform_0, window_bounds = array<i64: 8, 256>}, {pipeline_mode = #tpu.pipeline_mode<synchronous>, transform_indices = @transform_1, window_bounds = array<i64: 16, 8, 1>}, {pipeline_mode = #tpu.pipeline_mode<synchronous>, transform_indices = @transform_2, window_bounds = array<i64: 1, 256>}, {pipeline_mode = #tpu.pipeline_mode<synchronous>, transform_indices = @transform_3, window_bounds = array<i64: 1, 256>}, {transform_indices = @transform_4, window_bounds = array<i64: 1, 128>}, {transform_indices = @transform_5, window_bounds = array<i64: 1, 128>}, {transform_indices = @transform_6, window_bounds = array<i64: 2048, 128>}, {transform_indices = @transform_7, window_bounds = array<i64: 8, 128>}]} {
    %c0_i32 = arith.constant 0 : i32
    %0 = arith.cmpi eq, %arg1, %c0_i32 : i32
    %1 = arith.extui %0 : i1 to i32
    %c0_i32_0 = arith.constant 0 : i32
    %2 = arith.cmpi ne, %1, %c0_i32_0 : i32
    scf.if %2 {
      %c0_9 = arith.constant 0 : index
      %c0_10 = arith.constant 0 : index
      %14 = vector.load %arg2[%c0_9, %c0_10] : memref<8x256xf32, #tpu.memory_space<vmem>>, vector<8x256xf32>
      %15 = tpu.iota {dimensions = array<i32: 0>} : vector<8x256xi32>
      %cst_11 = arith.constant dense<0.000000e+00> : vector<256xf32>
      %16 = vector.multi_reduction <add>, %14, %cst_11 [0] : vector<8x256xf32> to vector<256xf32>
      %17 = vector.shape_cast %16 : vector<256xf32> to vector<1x256xf32>
      %cst_12 = arith.constant 0.166666672 : f32
      %18 = vector.broadcast %cst_12 : f32 to vector<1x256xf32>
      %19 = arith.mulf %17, %18 : vector<1x256xf32>
      %c6_i32 = arith.constant 6 : i32
      %20 = vector.broadcast %c6_i32 : i32 to vector<8x256xi32>
      %21 = arith.cmpi slt, %15, %20 : vector<8x256xi32>
      %22 = vector.broadcast %19 : vector<1x256xf32> to vector<8x256xf32>
      %23 = arith.subf %14, %22 : vector<8x256xf32>
      %cst_13 = arith.constant 0.000000e+00 : f32
      %24 = vector.broadcast %cst_13 : f32 to vector<8x256xf32>
      %25 = arith.select %21, %23, %24 : vector<8x256xi1>, vector<8x256xf32>
      %26 = arith.mulf %25, %25 : vector<8x256xf32>
      %cst_14 = arith.constant dense<0.000000e+00> : vector<256xf32>
      %27 = vector.multi_reduction <add>, %26, %cst_14 [0] : vector<8x256xf32> to vector<256xf32>
      %28 = vector.shape_cast %27 : vector<256xf32> to vector<1x256xf32>
      %cst_15 = arith.constant 0.166666672 : f32
      %29 = vector.broadcast %cst_15 : f32 to vector<1x256xf32>
      %30 = arith.mulf %28, %29 : vector<1x256xf32>
      %c0_16 = arith.constant 0 : index
      %c0_17 = arith.constant 0 : index
      %31 = vector.load %arg4[%c0_16, %c0_17] : memref<1x256xf32, #tpu.memory_space<vmem>>, vector<1x256xf32>
      %cst_18 = arith.constant 9.99999974E-6 : f32
      %32 = vector.broadcast %cst_18 : f32 to vector<1x256xf32>
      %33 = arith.addf %30, %32 : vector<1x256xf32>
      %34 = math.rsqrt %33 : vector<1x256xf32>
      %35 = arith.mulf %31, %34 : vector<1x256xf32>
      %36 = vector.broadcast %35 : vector<1x256xf32> to vector<8x256xf32>
      %37 = arith.mulf %25, %36 : vector<8x256xf32>
      %c0_19 = arith.constant 0 : index
      %c0_20 = arith.constant 0 : index
      %38 = vector.load %arg5[%c0_19, %c0_20] : memref<1x256xf32, #tpu.memory_space<vmem>>, vector<1x256xf32>
      %39 = vector.broadcast %38 : vector<1x256xf32> to vector<8x256xf32>
      %40 = arith.addf %37, %39 : vector<8x256xf32>
      %c6_i32_21 = arith.constant 6 : i32
      %41 = vector.broadcast %c6_i32_21 : i32 to vector<8x256xi32>
      %42 = arith.cmpi slt, %15, %41 : vector<8x256xi32>
      %cst_22 = arith.constant 0.000000e+00 : f32
      %43 = vector.broadcast %cst_22 : f32 to vector<8x256xf32>
      %44 = arith.select %42, %40, %43 : vector<8x256xi1>, vector<8x256xf32>
      %c0_23 = arith.constant 0 : index
      %c0_24 = arith.constant 0 : index
      %c0_25 = arith.constant 0 : index
      %45 = vector.load %arg3[%c0_23, %c0_24, %c0_25] : memref<16x8x1xf32, #tpu.memory_space<vmem>>, vector<1x8x1xf32>
      %46 = vector.shape_cast %45 : vector<1x8x1xf32> to vector<8x1xf32>
      %47 = vector.broadcast %46 : vector<8x1xf32> to vector<8x256xf32>
      %48 = arith.mulf %44, %47 : vector<8x256xf32>
      %c0_26 = arith.constant 0 : index
      %c0_27 = arith.constant 0 : index
      %c0_28 = arith.constant 0 : index
      %49 = vector.load %arg10[%c0_26, %c0_27, %c0_28] : memref<2x8x2048xf32, #tpu.memory_space<vmem>>, vector<1x8x256xf32>
      %50 = vector.shape_cast %49 : vector<1x8x256xf32> to vector<8x256xf32>
      %51 = vector.shape_cast %48 : vector<8x256xf32> to vector<1x8x256xf32>
      tpu.vector_store %arg10[%c0_26, %c0_27, %c0_28], %51 {strides = array<i32>} : memref<2x8x2048xf32, #tpu.memory_space<vmem>>, vector<1x8x256xf32>,
      %c1 = arith.constant 1 : index
      %c0_29 = arith.constant 0 : index
      %c0_30 = arith.constant 0 : index
      %52 = vector.load %arg3[%c1, %c0_29, %c0_30] : memref<16x8x1xf32, #tpu.memory_space<vmem>>, vector<1x8x1xf32>
      %53 = vector.shape_cast %52 : vector<1x8x1xf32> to vector<8x1xf32>
      %54 = vector.broadcast %53 : vector<8x1xf32> to vector<8x256xf32>
      %55 = arith.mulf %44, %54 : vector<8x256xf32>
      %c0_31 = arith.constant 0 : index
      %c0_32 = arith.constant 0 : index
      %c256 = arith.constant 256 : index
      %56 = vector.load %arg10[%c0_31, %c0_32, %c256] : memref<2x8x2048xf32, #tpu.memory_space<vmem>>, vector<1x8x256xf32>
      %57 = vector.shape_cast %56 : vector<1x8x256xf32> to vector<8x256xf32>
      %58 = vector.shape_cast %55 : vector<8x256xf32> to vector<1x8x256xf32>
      tpu.vector_store %arg10[%c0_31, %c0_32, %c256], %58 {strides = array<i32>} : memref<2x8x2048xf32, #tpu.memory_space<vmem>>, vector<1x8x256xf32>,
      %c2 = arith.constant 2 : index
      %c0_33 = arith.constant 0 : index
      %c0_34 = arith.constant 0 : index
      %59 = vector.load %arg3[%c2, %c0_33, %c0_34] : memref<16x8x1xf32, #tpu.memory_space<vmem>>, vector<1x8x1xf32>
      %60 = vector.shape_cast %59 : vector<1x8x1xf32> to vector<8x1xf32>
      %61 = vector.broadcast %60 : vector<8x1xf32> to vector<8x256xf32>
      %62 = arith.mulf %44, %61 : vector<8x256xf32>
      %c0_35 = arith.constant 0 : index
      %c0_36 = arith.constant 0 : index
      %c512 = arith.constant 512 : index
      %63 = vector.load %arg10[%c0_35, %c0_36, %c512] : memref<2x8x2048xf32, #tpu.memory_space<vmem>>, vector<1x8x256xf32>
      %64 = vector.shape_cast %63 : vector<1x8x256xf32> to vector<8x256xf32>
      %65 = vector.shape_cast %62 : vector<8x256xf32> to vector<1x8x256xf32>
      tpu.vector_store %arg10[%c0_35, %c0_36, %c512], %65 {strides = array<i32>} : memref<2x8x2048xf32, #tpu.memory_space<vmem>>, vector<1x8x256xf32>,
      %c3 = arith.constant 3 : index
      %c0_37 = arith.constant 0 : index
      %c0_38 = arith.constant 0 : index
      %66 = vector.load %arg3[%c3, %c0_37, %c0_38] : memref<16x8x1xf32, #tpu.memory_space<vmem>>, vector<1x8x1xf32>
      %67 = vector.shape_cast %66 : vector<1x8x1xf32> to vector<8x1xf32>
      %68 = vector.broadcast %67 : vector<8x1xf32> to vector<8x256xf32>
      %69 = arith.mulf %44, %68 : vector<8x256xf32>
      %c0_39 = arith.constant 0 : index
      %c0_40 = arith.constant 0 : index
      %c768 = arith.constant 768 : index
      %70 = vector.load %arg10[%c0_39, %c0_40, %c768] : memref<2x8x2048xf32, #tpu.memory_space<vmem>>, vector<1x8x256xf32>
      %71 = vector.shape_cast %70 : vector<1x8x256xf32> to vector<8x256xf32>
      %72 = vector.shape_cast %69 : vector<8x256xf32> to vector<1x8x256xf32>
      tpu.vector_store %arg10[%c0_39, %c0_40, %c768], %72 {strides = array<i32>} : memref<2x8x2048xf32, #tpu.memory_space<vmem>>, vector<1x8x256xf32>,
      %c4 = arith.constant 4 : index
      %c0_41 = arith.constant 0 : index
      %c0_42 = arith.constant 0 : index
      %73 = vector.load %arg3[%c4, %c0_41, %c0_42] : memref<16x8x1xf32, #tpu.memory_space<vmem>>, vector<1x8x1xf32>
      %74 = vector.shape_cast %73 : vector<1x8x1xf32> to vector<8x1xf32>
      %75 = vector.broadcast %74 : vector<8x1xf32> to vector<8x256xf32>
      %76 = arith.mulf %44, %75 : vector<8x256xf32>
      %c0_43 = arith.constant 0 : index
      %c0_44 = arith.constant 0 : index
      %c1024 = arith.constant 1024 : index
      %77 = vector.load %arg10[%c0_43, %c0_44, %c1024] : memref<2x8x2048xf32, #tpu.memory_space<vmem>>, vector<1x8x256xf32>
      %78 = vector.shape_cast %77 : vector<1x8x256xf32> to vector<8x256xf32>
      %79 = vector.shape_cast %76 : vector<8x256xf32> to vector<1x8x256xf32>
      tpu.vector_store %arg10[%c0_43, %c0_44, %c1024], %79 {strides = array<i32>} : memref<2x8x2048xf32, #tpu.memory_space<vmem>>, vector<1x8x256xf32>,
      %c5 = arith.constant 5 : index
      %c0_45 = arith.constant 0 : index
      %c0_46 = arith.constant 0 : index
      %80 = vector.load %arg3[%c5, %c0_45, %c0_46] : memref<16x8x1xf32, #tpu.memory_space<vmem>>, vector<1x8x1xf32>
      %81 = vector.shape_cast %80 : vector<1x8x1xf32> to vector<8x1xf32>
      %82 = vector.broadcast %81 : vector<8x1xf32> to vector<8x256xf32>
      %83 = arith.mulf %44, %82 : vector<8x256xf32>
      %c0_47 = arith.constant 0 : index
      %c0_48 = arith.constant 0 : index
      %c1280 = arith.constant 1280 : index
      %84 = vector.load %arg10[%c0_47, %c0_48, %c1280] : memref<2x8x2048xf32, #tpu.memory_space<vmem>>, vector<1x8x256xf32>
      %85 = vector.shape_cast %84 : vector<1x8x256xf32> to vector<8x256xf32>
      %86 = vector.shape_cast %83 : vector<8x256xf32> to vector<1x8x256xf32>
      tpu.vector_store %arg10[%c0_47, %c0_48, %c1280], %86 {strides = array<i32>} : memref<2x8x2048xf32, #tpu.memory_space<vmem>>, vector<1x8x256xf32>,
      %c6 = arith.constant 6 : index
      %c0_49 = arith.constant 0 : index
      %c0_50 = arith.constant 0 : index
      %87 = vector.load %arg3[%c6, %c0_49, %c0_50] : memref<16x8x1xf32, #tpu.memory_space<vmem>>, vector<1x8x1xf32>
      %88 = vector.shape_cast %87 : vector<1x8x1xf32> to vector<8x1xf32>
      %89 = vector.broadcast %88 : vector<8x1xf32> to vector<8x256xf32>
      %90 = arith.mulf %44, %89 : vector<8x256xf32>
      %c0_51 = arith.constant 0 : index
      %c0_52 = arith.constant 0 : index
      %c1536 = arith.constant 1536 : index
      %91 = vector.load %arg10[%c0_51, %c0_52, %c1536] : memref<2x8x2048xf32, #tpu.memory_space<vmem>>, vector<1x8x256xf32>
      %92 = vector.shape_cast %91 : vector<1x8x256xf32> to vector<8x256xf32>
      %93 = vector.shape_cast %90 : vector<8x256xf32> to vector<1x8x256xf32>
      tpu.vector_store %arg10[%c0_51, %c0_52, %c1536], %93 {strides = array<i32>} : memref<2x8x2048xf32, #tpu.memory_space<vmem>>, vector<1x8x256xf32>,
      %c7 = arith.constant 7 : index
      %c0_53 = arith.constant 0 : index
      %c0_54 = arith.constant 0 : index
      %94 = vector.load %arg3[%c7, %c0_53, %c0_54] : memref<16x8x1xf32, #tpu.memory_space<vmem>>, vector<1x8x1xf32>
      %95 = vector.shape_cast %94 : vector<1x8x1xf32> to vector<8x1xf32>
      %96 = vector.broadcast %95 : vector<8x1xf32> to vector<8x256xf32>
      %97 = arith.mulf %44, %96 : vector<8x256xf32>
      %c0_55 = arith.constant 0 : index
      %c0_56 = arith.constant 0 : index
      %c1792 = arith.constant 1792 : index
      %98 = vector.load %arg10[%c0_55, %c0_56, %c1792] : memref<2x8x2048xf32, #tpu.memory_space<vmem>>, vector<1x8x256xf32>
      %99 = vector.shape_cast %98 : vector<1x8x256xf32> to vector<8x256xf32>
      %100 = vector.shape_cast %97 : vector<8x256xf32> to vector<1x8x256xf32>
      tpu.vector_store %arg10[%c0_55, %c0_56, %c1792], %100 {strides = array<i32>} : memref<2x8x2048xf32, #tpu.memory_space<vmem>>, vector<1x8x256xf32>,
      %c8 = arith.constant 8 : index
      %c0_57 = arith.constant 0 : index
      %c0_58 = arith.constant 0 : index
      %101 = vector.load %arg3[%c8, %c0_57, %c0_58] : memref<16x8x1xf32, #tpu.memory_space<vmem>>, vector<1x8x1xf32>
      %102 = vector.shape_cast %101 : vector<1x8x1xf32> to vector<8x1xf32>
      %103 = vector.broadcast %102 : vector<8x1xf32> to vector<8x256xf32>
      %104 = arith.mulf %44, %103 : vector<8x256xf32>
      %c1_59 = arith.constant 1 : index
      %c0_60 = arith.constant 0 : index
      %c0_61 = arith.constant 0 : index
      %105 = vector.load %arg10[%c1_59, %c0_60, %c0_61] : memref<2x8x2048xf32, #tpu.memory_space<vmem>>, vector<1x8x256xf32>
      %106 = vector.shape_cast %105 : vector<1x8x256xf32> to vector<8x256xf32>
      %107 = vector.shape_cast %104 : vector<8x256xf32> to vector<1x8x256xf32>
      tpu.vector_store %arg10[%c1_59, %c0_60, %c0_61], %107 {strides = array<i32>} : memref<2x8x2048xf32, #tpu.memory_space<vmem>>, vector<1x8x256xf32>,
      %c9 = arith.constant 9 : index
      %c0_62 = arith.constant 0 : index
      %c0_63 = arith.constant 0 : index
      %108 = vector.load %arg3[%c9, %c0_62, %c0_63] : memref<16x8x1xf32, #tpu.memory_space<vmem>>, vector<1x8x1xf32>
      %109 = vector.shape_cast %108 : vector<1x8x1xf32> to vector<8x1xf32>
      %110 = vector.broadcast %109 : vector<8x1xf32> to vector<8x256xf32>
      %111 = arith.mulf %44, %110 : vector<8x256xf32>
      %c1_64 = arith.constant 1 : index
      %c0_65 = arith.constant 0 : index
      %c256_66 = arith.constant 256 : index
      %112 = vector.load %arg10[%c1_64, %c0_65, %c256_66] : memref<2x8x2048xf32, #tpu.memory_space<vmem>>, vector<1x8x256xf32>
      %113 = vector.shape_cast %112 : vector<1x8x256xf32> to vector<8x256xf32>
      %114 = vector.shape_cast %111 : vector<8x256xf32> to vector<1x8x256xf32>
      tpu.vector_store %arg10[%c1_64, %c0_65, %c256_66], %114 {strides = array<i32>} : memref<2x8x2048xf32, #tpu.memory_space<vmem>>, vector<1x8x256xf32>,
      %c10 = arith.constant 10 : index
      %c0_67 = arith.constant 0 : index
      %c0_68 = arith.constant 0 : index
      %115 = vector.load %arg3[%c10, %c0_67, %c0_68] : memref<16x8x1xf32, #tpu.memory_space<vmem>>, vector<1x8x1xf32>
      %116 = vector.shape_cast %115 : vector<1x8x1xf32> to vector<8x1xf32>
      %117 = vector.broadcast %116 : vector<8x1xf32> to vector<8x256xf32>
      %118 = arith.mulf %44, %117 : vector<8x256xf32>
      %c1_69 = arith.constant 1 : index
      %c0_70 = arith.constant 0 : index
      %c512_71 = arith.constant 512 : index
      %119 = vector.load %arg10[%c1_69, %c0_70, %c512_71] : memref<2x8x2048xf32, #tpu.memory_space<vmem>>, vector<1x8x256xf32>
      %120 = vector.shape_cast %119 : vector<1x8x256xf32> to vector<8x256xf32>
      %121 = vector.shape_cast %118 : vector<8x256xf32> to vector<1x8x256xf32>
      tpu.vector_store %arg10[%c1_69, %c0_70, %c512_71], %121 {strides = array<i32>} : memref<2x8x2048xf32, #tpu.memory_space<vmem>>, vector<1x8x256xf32>,
      %c11 = arith.constant 11 : index
      %c0_72 = arith.constant 0 : index
      %c0_73 = arith.constant 0 : index
      %122 = vector.load %arg3[%c11, %c0_72, %c0_73] : memref<16x8x1xf32, #tpu.memory_space<vmem>>, vector<1x8x1xf32>
      %123 = vector.shape_cast %122 : vector<1x8x1xf32> to vector<8x1xf32>
      %124 = vector.broadcast %123 : vector<8x1xf32> to vector<8x256xf32>
      %125 = arith.mulf %44, %124 : vector<8x256xf32>
      %c1_74 = arith.constant 1 : index
      %c0_75 = arith.constant 0 : index
      %c768_76 = arith.constant 768 : index
      %126 = vector.load %arg10[%c1_74, %c0_75, %c768_76] : memref<2x8x2048xf32, #tpu.memory_space<vmem>>, vector<1x8x256xf32>
      %127 = vector.shape_cast %126 : vector<1x8x256xf32> to vector<8x256xf32>
      %128 = vector.shape_cast %125 : vector<8x256xf32> to vector<1x8x256xf32>
      tpu.vector_store %arg10[%c1_74, %c0_75, %c768_76], %128 {strides = array<i32>} : memref<2x8x2048xf32, #tpu.memory_space<vmem>>, vector<1x8x256xf32>,
      %c12 = arith.constant 12 : index
      %c0_77 = arith.constant 0 : index
      %c0_78 = arith.constant 0 : index
      %129 = vector.load %arg3[%c12, %c0_77, %c0_78] : memref<16x8x1xf32, #tpu.memory_space<vmem>>, vector<1x8x1xf32>
      %130 = vector.shape_cast %129 : vector<1x8x1xf32> to vector<8x1xf32>
      %131 = vector.broadcast %130 : vector<8x1xf32> to vector<8x256xf32>
      %132 = arith.mulf %44, %131 : vector<8x256xf32>
      %c1_79 = arith.constant 1 : index
      %c0_80 = arith.constant 0 : index
      %c1024_81 = arith.constant 1024 : index
      %133 = vector.load %arg10[%c1_79, %c0_80, %c1024_81] : memref<2x8x2048xf32, #tpu.memory_space<vmem>>, vector<1x8x256xf32>
      %134 = vector.shape_cast %133 : vector<1x8x256xf32> to vector<8x256xf32>
      %135 = vector.shape_cast %132 : vector<8x256xf32> to vector<1x8x256xf32>
      tpu.vector_store %arg10[%c1_79, %c0_80, %c1024_81], %135 {strides = array<i32>} : memref<2x8x2048xf32, #tpu.memory_space<vmem>>, vector<1x8x256xf32>,
      %c13 = arith.constant 13 : index
      %c0_82 = arith.constant 0 : index
      %c0_83 = arith.constant 0 : index
      %136 = vector.load %arg3[%c13, %c0_82, %c0_83] : memref<16x8x1xf32, #tpu.memory_space<vmem>>, vector<1x8x1xf32>
      %137 = vector.shape_cast %136 : vector<1x8x1xf32> to vector<8x1xf32>
      %138 = vector.broadcast %137 : vector<8x1xf32> to vector<8x256xf32>
      %139 = arith.mulf %44, %138 : vector<8x256xf32>
      %c1_84 = arith.constant 1 : index
      %c0_85 = arith.constant 0 : index
      %c1280_86 = arith.constant 1280 : index
      %140 = vector.load %arg10[%c1_84, %c0_85, %c1280_86] : memref<2x8x2048xf32, #tpu.memory_space<vmem>>, vector<1x8x256xf32>
      %141 = vector.shape_cast %140 : vector<1x8x256xf32> to vector<8x256xf32>
      %142 = vector.shape_cast %139 : vector<8x256xf32> to vector<1x8x256xf32>
      tpu.vector_store %arg10[%c1_84, %c0_85, %c1280_86], %142 {strides = array<i32>} : memref<2x8x2048xf32, #tpu.memory_space<vmem>>, vector<1x8x256xf32>,
      %c14 = arith.constant 14 : index
      %c0_87 = arith.constant 0 : index
      %c0_88 = arith.constant 0 : index
      %143 = vector.load %arg3[%c14, %c0_87, %c0_88] : memref<16x8x1xf32, #tpu.memory_space<vmem>>, vector<1x8x1xf32>
      %144 = vector.shape_cast %143 : vector<1x8x1xf32> to vector<8x1xf32>
      %145 = vector.broadcast %144 : vector<8x1xf32> to vector<8x256xf32>
      %146 = arith.mulf %44, %145 : vector<8x256xf32>
      %c1_89 = arith.constant 1 : index
      %c0_90 = arith.constant 0 : index
      %c1536_91 = arith.constant 1536 : index
      %147 = vector.load %arg10[%c1_89, %c0_90, %c1536_91] : memref<2x8x2048xf32, #tpu.memory_space<vmem>>, vector<1x8x256xf32>
      %148 = vector.shape_cast %147 : vector<1x8x256xf32> to vector<8x256xf32>
      %149 = vector.shape_cast %146 : vector<8x256xf32> to vector<1x8x256xf32>
      tpu.vector_store %arg10[%c1_89, %c0_90, %c1536_91], %149 {strides = array<i32>} : memref<2x8x2048xf32, #tpu.memory_space<vmem>>, vector<1x8x256xf32>,
      %c15 = arith.constant 15 : index
      %c0_92 = arith.constant 0 : index
      %c0_93 = arith.constant 0 : index
      %150 = vector.load %arg3[%c15, %c0_92, %c0_93] : memref<16x8x1xf32, #tpu.memory_space<vmem>>, vector<1x8x1xf32>
      %151 = vector.shape_cast %150 : vector<1x8x1xf32> to vector<8x1xf32>
      %152 = vector.broadcast %151 : vector<8x1xf32> to vector<8x256xf32>
      %153 = arith.mulf %44, %152 : vector<8x256xf32>
      %c1_94 = arith.constant 1 : index
      %c0_95 = arith.constant 0 : index
      %c1792_96 = arith.constant 1792 : index
      %154 = vector.load %arg10[%c1_94, %c0_95, %c1792_96] : memref<2x8x2048xf32, #tpu.memory_space<vmem>>, vector<1x8x256xf32>
      %155 = vector.shape_cast %154 : vector<1x8x256xf32> to vector<8x256xf32>
      %156 = vector.shape_cast %153 : vector<8x256xf32> to vector<1x8x256xf32>
      tpu.vector_store %arg10[%c1_94, %c0_95, %c1792_96], %156 {strides = array<i32>} : memref<2x8x2048xf32, #tpu.memory_space<vmem>>, vector<1x8x256xf32>,
      %cst_97 = arith.constant 0.000000e+00 : f32
      %157 = vector.broadcast %cst_97 : f32 to vector<8x128xf32>
      %c0_98 = arith.constant 0 : index
      %c0_99 = arith.constant 0 : index
      %158 = vector.load %arg9[%c0_98, %c0_99] : memref<8x128xf32, #tpu.memory_space<vmem>>, vector<8x128xf32>
      tpu.vector_store %arg9[%c0_98, %c0_99], %157 {strides = array<i32>} : memref<8x128xf32, #tpu.memory_space<vmem>>, vector<8x128xf32>,
    } else {
    }
    %c0 = arith.constant 0 : index
    %c0_1 = arith.constant 0 : index
    %3 = vector.load %arg9[%c0, %c0_1] : memref<8x128xf32, #tpu.memory_space<vmem>>, vector<8x128xf32>
    %4 = arith.index_cast %arg1 : i32 to index
    %c0_2 = arith.constant 0 : index
    %c0_3 = arith.constant 0 : index
    %5 = vector.load %arg10[%4, %c0_2, %c0_3] : memref<2x8x2048xf32, #tpu.memory_space<vmem>>, vector<1x8x2048xf32>
    %6 = vector.shape_cast %5 : vector<1x8x2048xf32> to vector<8x2048xf32>
    %c0_4 = arith.constant 0 : index
    %c0_5 = arith.constant 0 : index
    %7 = vector.load %arg8[%c0_4, %c0_5] : memref<2048x128xf32, #tpu.memory_space<vmem>>, vector<2048x128xf32>
    %cst = arith.constant dense<0.000000e+00> : vector<8x128xf32>
    %8 = tpu.matmul %6, %7, %cst {dimension_numbers = #tpu.dot_dimension_numbers<[1], [0], [0], [1], [0, 0, 1, 1], [], []>, precision = #tpu.contract_precision<fp32>} : vector<8x2048xf32>, vector<2048x128xf32>, vector<8x128xf32> -> vector<8x128xf32>
    %9 = arith.addf %3, %8 : vector<8x128xf32>
    %c0_6 = arith.constant 0 : index
    %c0_7 = arith.constant 0 : index
    %10 = vector.load %arg9[%c0_6, %c0_7] : memref<8x128xf32, #tpu.memory_space<vmem>>, vector<8x128xf32>
    tpu.vector_store %arg9[%c0_6, %c0_7], %9 {strides = array<i32>} : memref<8x128xf32, #tpu.memory_space<vmem>>, vector<8x128xf32>,
    %c1_i32 = arith.constant 1 : i32
    %11 = arith.cmpi eq, %arg1, %c1_i32 : i32
    %12 = arith.extui %11 : i1 to i32
    %c0_i32_8 = arith.constant 0 : i32
    %13 = arith.cmpi ne, %12, %c0_i32_8 : i32
    scf.if %13 {
      %14 = tpu.iota {dimensions = array<i32: 0>} : vector<8x128xi32>
      %cst_9 = arith.constant dense<0.000000e+00> : vector<128xf32>
      %15 = vector.multi_reduction <add>, %9, %cst_9 [0] : vector<8x128xf32> to vector<128xf32>
      %16 = vector.shape_cast %15 : vector<128xf32> to vector<1x128xf32>
      %cst_10 = arith.constant 0.166666672 : f32
      %17 = vector.broadcast %cst_10 : f32 to vector<1x128xf32>
      %18 = arith.mulf %16, %17 : vector<1x128xf32>
      %c6_i32 = arith.constant 6 : i32
      %19 = vector.broadcast %c6_i32 : i32 to vector<8x128xi32>
      %20 = arith.cmpi slt, %14, %19 : vector<8x128xi32>
      %21 = vector.broadcast %18 : vector<1x128xf32> to vector<8x128xf32>
      %22 = arith.subf %9, %21 : vector<8x128xf32>
      %cst_11 = arith.constant 0.000000e+00 : f32
      %23 = vector.broadcast %cst_11 : f32 to vector<8x128xf32>
      %24 = arith.select %20, %22, %23 : vector<8x128xi1>, vector<8x128xf32>
      %25 = arith.mulf %24, %24 : vector<8x128xf32>
      %cst_12 = arith.constant dense<0.000000e+00> : vector<128xf32>
      %26 = vector.multi_reduction <add>, %25, %cst_12 [0] : vector<8x128xf32> to vector<128xf32>
      %27 = vector.shape_cast %26 : vector<128xf32> to vector<1x128xf32>
      %cst_13 = arith.constant 0.166666672 : f32
      %28 = vector.broadcast %cst_13 : f32 to vector<1x128xf32>
      %29 = arith.mulf %27, %28 : vector<1x128xf32>
      %c0_14 = arith.constant 0 : index
      %c0_15 = arith.constant 0 : index
      %30 = vector.load %arg6[%c0_14, %c0_15] : memref<1x128xf32, #tpu.memory_space<vmem>>, vector<1x128xf32>
      %cst_16 = arith.constant 9.99999974E-6 : f32
      %31 = vector.broadcast %cst_16 : f32 to vector<1x128xf32>
      %32 = arith.addf %29, %31 : vector<1x128xf32>
      %33 = math.rsqrt %32 : vector<1x128xf32>
      %34 = arith.mulf %30, %33 : vector<1x128xf32>
      %35 = vector.broadcast %34 : vector<1x128xf32> to vector<8x128xf32>
      %36 = arith.mulf %24, %35 : vector<8x128xf32>
      %c0_17 = arith.constant 0 : index
      %c0_18 = arith.constant 0 : index
      %37 = vector.load %arg7[%c0_17, %c0_18] : memref<1x128xf32, #tpu.memory_space<vmem>>, vector<1x128xf32>
      %38 = vector.broadcast %37 : vector<1x128xf32> to vector<8x128xf32>
      %39 = arith.addf %36, %38 : vector<8x128xf32>
      %c0_19 = arith.constant 0 : index
      %c0_20 = arith.constant 0 : index
      %40 = vector.load %arg9[%c0_19, %c0_20] : memref<8x128xf32, #tpu.memory_space<vmem>>, vector<8x128xf32>
      tpu.vector_store %arg9[%c0_19, %c0_20], %39 {strides = array<i32>} : memref<8x128xf32, #tpu.memory_space<vmem>>, vector<8x128xf32>,
    } else {
    }
    return
  }
  func.func @transform_0(%arg0: i32, %arg1: i32) -> (i32, i32) {
    %c0_i32 = arith.constant 0 : i32
    %c0_i32_0 = arith.constant 0 : i32
    %c0_i32_1 = arith.constant 0 : i32
    return %c0_i32, %c0_i32_0 : i32, i32
  }
  func.func @transform_1(%arg0: i32, %arg1: i32) -> (i32, i32, i32) {
    %c0_i32 = arith.constant 0 : i32
    %c0_i32_0 = arith.constant 0 : i32
    %c0_i32_1 = arith.constant 0 : i32
    %c0_i32_2 = arith.constant 0 : i32
    return %c0_i32, %c0_i32_0, %c0_i32_1 : i32, i32, i32
  }
  func.func @transform_2(%arg0: i32, %arg1: i32) -> (i32, i32) {
    %c0_i32 = arith.constant 0 : i32
    %c0_i32_0 = arith.constant 0 : i32
    %c0_i32_1 = arith.constant 0 : i32
    return %c0_i32, %c0_i32_0 : i32, i32
  }
  func.func @transform_3(%arg0: i32, %arg1: i32) -> (i32, i32) {
    %c0_i32 = arith.constant 0 : i32
    %c0_i32_0 = arith.constant 0 : i32
    %c0_i32_1 = arith.constant 0 : i32
    return %c0_i32, %c0_i32_0 : i32, i32
  }
  func.func @transform_4(%arg0: i32, %arg1: i32) -> (i32, i32) {
    %c0_i32 = arith.constant 0 : i32
    %c0_i32_0 = arith.constant 0 : i32
    return %c0_i32, %arg0 : i32, i32
  }
  func.func @transform_5(%arg0: i32, %arg1: i32) -> (i32, i32) {
    %c0_i32 = arith.constant 0 : i32
    %c0_i32_0 = arith.constant 0 : i32
    return %c0_i32, %arg0 : i32, i32
  }
  func.func @transform_6(%arg0: i32, %arg1: i32) -> (i32, i32) {
    %c0_i32 = arith.constant 0 : i32
    return %arg1, %arg0 : i32, i32
  }
  func.func @transform_7(%arg0: i32, %arg1: i32) -> (i32, i32) {
    %c0_i32 = arith.constant 0 : i32
    %c0_i32_0 = arith.constant 0 : i32
    return %c0_i32, %arg0 : i32, i32
  }
}

</mosaic_0001>

<bundles_post_ra>
// kernel: tpu_custom_call.1
= control target key start
LH: loop header
LB: loop body
LE: loop exit
PB: predicated region body
PF: predicated region fallthrough
CT: control target
= control target key end

     0   :  { %s15624_s0 = inlined_call_operand.hbm [shape: f32[8,256], index: 0, kind: input, shape index: {}]   ;;  %s15625_s1 = inlined_call_operand.vmem [shape: f32[16,8,1], index: 1, kind: input, shape index: {}]   ;;  %s15626_s2 = inlined_call_operand.hbm [shape: f32[1,256], index: 2, kind: input, shape index: {}]   ;;  %s15627_s3 = inlined_call_operand.hbm [shape: f32[1,256], index: 3, kind: input, shape index: {}]   ;;  %s15628_s4 = inlined_call_operand.hbm [shape: f32[1,256], index: 4, kind: input, shape index: {}]   ;;  %s15629_s5 = inlined_call_operand.hbm [shape: f32[1,256], index: 5, kind: input, shape index: {}]   ;;  %s15630_s6 = inlined_call_operand.hbm [shape: f32[4096,256], index: 6, kind: input, shape index: {}]   ;;  %s15631_s7 = inlined_call_operand.hbm [shape: f32[8,256], index: 7, kind: output, shape index: {}]  }
   0x1   :  { %16181 = sst [smem:[#allocation58_spill]] %s15624_s0 }
   0x2   :  { %16182 = sst [smem:[#allocation59_spill]] %s15625_s1 }
   0x3   :  { %16183 = sst [smem:[#allocation60_spill]] %s15626_s2 }
   0x4   :  { %16184 = sst [smem:[#allocation61_spill]] %s15628_s4 }
   0x5   :  { %16185 = sst [smem:[#allocation62_spill]] %s15631_s7 }
   0x6   :  { %12 = vsyncpa [#allocation4], 0 }
   0x7   :  { %13 = vsyncpa [#allocation7], 0 }
   0x8   :  { %14 = vsyncpa [#allocation10], 0 }
   0x9   :  { %16 = vsyncpa [#allocation10 + $0x1], 0 }
   0xa   :  { %17 = vsyncpa [#allocation13], 0 }
   0xb   :  { %19 = vsyncpa [#allocation13 + $0x1], 0 }
   0xc   :  { %20 = vsyncpa [#allocation5], 0 }
   0xd   :  { %22 = vsyncpa [#allocation5 + $0x1], 0  ;;  %s10306_s24 = smov 0   ;;  %s10308_s25 = smov 0  }
   0xe   :  { %s10310_s26 = smov 0   ;;  %s10312_s27 = smov 0  }
   0xf   :  { %s10314_s28 = smov 0   ;;  %s10316_s29 = smov 0  }
  0x10   :  { %s10318_s30 = smov 0   ;;  %s10320_s8 = smov 0  }
  0x11   :  { %s10322_s9 = smov 0   ;;  %s10324_s10 = smov 0  }
  0x12   :  { %s10326_s11 = smov 0  }
  0x13 LB: > { %16186 = sst [smem:[#allocation20_spill]] %s10223_s27  ;;  %s10360_s12 = sadd.s32 4294967295, %s10251_s11   ;;  %s10251_s11 = sphi %s10326_s11, %s28_s11   ;;  %s10247_s10 = sphi %s10324_s10, %s17157_s10   ;;  %s10243_s9 = sphi %s10322_s9, %s17156_s9   ;;  %s10239_s8 = sphi %s10320_s8, %s17155_s8   ;;  %s10235_s30 = sphi %s10318_s30, %s17154_s30   ;;  %s10231_s29 = sphi %s10316_s29, %s17153_s29   ;;  %s10227_s28 = sphi %s10314_s28, %s17152_s28   ;;  %s10223_s27 = sphi %s10312_s27, %s17151_s27   ;;  %s10219_s26 = sphi %s10310_s26, %s17150_s26   ;;  %s10215_s25 = sphi %s10308_s25, %s17149_s25   ;;  %s10211_s24 = sphi %s10306_s24, %s17148_s24  }
  0x14   : > { %16187 = sst [smem:[#allocation21_spill]] %s10235_s30  ;;  %p198_p0 = scmp.ne.s32.totalorder %s10215_s25, %s10211_s24 }
  0x15   : > { %16188 = sst [smem:[#allocation22_spill]] %s10239_s8  ;;  %p15634_p1 = scmp.eq.s32.totalorder %s10360_s12, 0 }
  0x16   : > { %p8077_p2 = scmp.ge.s32.totalorder %s10251_s11, 1  ;;  %p235_p3 = scmp.lt.s32.totalorder %s10251_s11, 5 }
  0x17   : > { %p10368_p4 = por %p198_p0, %p15634_p1  ;;  %s10253_s15 = smov [#allocation6]  }
  0x18   : > { %p10372_p5 = pnand %p8077_p2, %p235_p3  ;;  %s262_s16 = sshll.u32 %s10253_s15, 4  ;;  %s263_s16 = int_to_ptr.vmem [resolvable:$true] %s262_s16 }
  0x19   : > { %s16189_s13 = scalar_select %p10368_p4, 1, 0 }
  0x1a   : > { %s16190_s14 = scalar_select %p10372_p5, 1, 0 }
  0x1b   : > { %p9820_p6 = pneg %p10372_p5  ;;  %s9968_s18 = scalar_lea.vmem %s263_s16, 32 }
  0x1c   : > { %p9969_p9 = scmp.ne.s32.totalorder %s263_s16, %s9968_s18  ;;  %p9976_p12 = scmp.lt.s32.totalorder %s263_s16, %s263_s16 }
  0x1d   : > { %p10380_p7 = pnand %p9820_p6, %p15634_p1  ;;  %p9977_p13 = scmp.lt.s32.totalorder %s9968_s18, %s9968_s18 }
  0x1f   : > { %p15632_p8 = pneg %p10380_p7  ;;  %p9978_p0 = por %p9977_p13, %p9976_p12 }
  0x21   : > { %p9971_p10 = pnand %p9969_p9, %p15632_p8 }
  0x23   : > { %p9972_p11 = pneg %p9971_p10 }
  0x25   : > { %p9979_p2 = pnand %p9978_p0, %p9972_p11 }
  0x27   : > { %9982 = shalt.err (!%p9979_p2)
}
  0x28   : > { %s16192_s2 = sld [smem:[#allocation60_spill]]  ;;  %s8076_s21 = sadd.s32 4294967294, %s10251_s11  }
  0x29   : > { %s37_s22 = sadd.s32 1, %s10243_s9  ;;  %s40_s23 = sadd.s32 1, %s10247_s10 }
  0x2a   : > { %p38_p3 = scmp.ge.s32.totalorder %s37_s22, 2  ;;  %s131_s24 = sadd.s32 1, %s10231_s29 }
  0x2b   : > { %p15633_p6 = scmp.ne.s32.totalorder %s10231_s29, %s10227_s28  ;;  %p139_p9 = scmp.eq.s32.totalorder %s10251_s11, 0 }
  0x2c   : > { %s17159_s22 = smov (%p38_p3, %s37_s22), 0  ;;  %s17161_s23 = smov (!%p38_p3, %s40_s23), %s10247_s10 }
  0x2d   : > { %16193 = sst [smem:[#allocation23_spill]] %s17159_s22  ;;  %p10409_p10 = por %p139_p9, %p15633_p6 }
  0x2e   : > { %9826 = dma.hbm_to_vmem [thread:$0]  (!%p10380_p7), %s16192_s2, 32, %s263_s16, [#allocation7]  }
  0x2f   : > { %p15637_p11 = scmp.ne.s32.totalorder %s10227_s28, %s10223_s27  ;;  %p42_p12 = scmp.ge.s32.totalorder %s17161_s23, 2 }
  0x30   : > { %s180_s16 = ssub.s32 %s10243_s9, %s17159_s22  ;;  %s185_s19 = sadd.s32 1, %s10219_s26 }
  0x31   : > { %p10422_p13 = por %p15634_p1, %p15637_p11  ;;  %s17163_s23 = smov (%p42_p12, %s17161_s23), 0 }
  0x32   : > { %16196 = sst [smem:[#allocation24_spill]] %s17163_s23  ;;  %p192_p0 = scmp.ne.s32.totalorder %s10219_s26, %s10215_s25 }
  0x33   : > { %s16195_s18 = scalar_select %p10422_p13, 1, 0 }
  0x34   : > { %p222_p2 = scmp.eq.s32.totalorder %s10360_s12, 3  ;;  %s128_s20 = ssub.s32 %s10247_s10, %s17163_s23 }
  0x35   : > { %p228_p3 = scmp.eq.s32.totalorder %s8076_s21, 3  ;;  %p129_p8 = scmp.eq.s32.totalorder %s128_s20, 0 }
  0x36   : > { %s182_s2 = sor.u32 %s180_s16, %s128_s20  ;;  %p10436_p1 = por %p192_p0, %p139_p9 }
  0x37   : > { %p183_p6 = scmp.eq.s32.totalorder %s182_s2, 0  ;;  %p16200_p12 = scmp.ne.s32.totalorder %s10231_s29, %s10227_s28 }
  0x38   : > { %s10441_s7 = scalar_select %p129_p8, %s10231_s29, %s131_s24  }
  0x39   : > { %s10444_s8 = scalar_select %p183_p6, %s10219_s26, %s185_s19  }
  0x3a   : > { %16198 = sst [smem:[#allocation25_spill]] %s10441_s7  ;;  %p10449_p11 = por %p222_p2, %p16200_p12 }
  0x3b   : > { %16199 = sst [smem:[#allocation26_spill]] %s10444_s8  ;;  %p16203_p4 = scmp.ne.s32.totalorder %s10227_s28, %s10223_s27 }
  0x3c   : > { %s16201_s1 = scalar_select %p10449_p11, 1, 0 }
  0x3d   : > { %p10456_p13 = por %p228_p3, %p16203_p4  ;;  %p9847_p5 = scmp.lt.s32.totalorder %s10251_s11, 4 }
  0x3e   : > { %16202 = sst [smem:[#allocation27_spill]] %s16201_s1  ;;  %s284_s2 = sand.u32 1, %s10251_s11  }
  0x3f   : > { %s16204_s21 = scalar_select %p10456_p13, 1, 0 }
  0x40   : > { %s15648_s16 = sand.u32 1, %s10231_s29   ;;  %s8082_s20 = sshll.u32 %s10247_s10, 4 }
  0x41   : > { %16205 = sst [smem:[#allocation28_spill]] %s16204_s21  ;;  %s287_s19 = scalar_lea.vmem [#allocation9], %s15648_s16 }
  0x42   : > { %s16206_s4 = sld [smem:[#allocation61_spill]]  ;;  %s294_s7 = sshll.u32 %s287_s19, 4  ;;  %s295_s7 = int_to_ptr.vmem [resolvable:$true] %s294_s7 }
  0x43   : > { %p10471_p8 = pnand %p9847_p5, %p10409_p10  ;;  %s10478_s21 = scalar_lea.hbm %s15629_s5, %s8082_s20 }
  0x44   : > { %p10482_p4 = pnand %p9847_p5, %p10436_p1  ;;  %s10486_s23 = scalar_lea.sflag [#allocation10], %s284_s2 }
  0x45   : > { %p15649_p6 = pneg %p10471_p8  ;;  %s9996_s15 = scalar_lea.vmem %s295_s7, 16 }
  0x46   : > { %p9997_p9 = scmp.ne.s32.totalorder %s295_s7, %s9996_s15  ;;  %s10254_s1 = smov [#allocation9]  }
  0x47   : > { %s10001_s27 = sshll.u32 %s10254_s1, 4  ;;  %s10002_s27 = int_to_ptr.vmem [resolvable:$false] %s10001_s27 }
  0x48   : > { %s292_s24 = scalar_lea.hbm %s16206_s4, %s8082_s20  ;;  %p9999_p10 = pnand %p9997_p9, %p15649_p6 }
  0x49   : > { %s10003_s20 = scalar_lea.vmem %s10002_s27, 32  ;;  %p10004_p2 = scmp.lt.s32.totalorder %s295_s7, %s10002_s27 }
  0x4a   : > { %p10000_p0 = pneg %p9999_p10  ;;  %p10005_p3 = scmp.lt.s32.totalorder %s10003_s20, %s9996_s15 }
  0x4c   : > { %p10006_p1 = por %p10005_p3, %p10004_p2 }
  0x4e   : > { %p10007_p5 = pnand %p10006_p1, %p10000_p0 }
  0x50   : > { %10010 = shalt.err (!%p10007_p5)
}
  0x51   : > { %9833 = dma.hbm_to_vmem [thread:$0]  (!%p10471_p8), %s292_s24, 16, %s295_s7, %s10486_s23  }
  0x52   : > { %s10255_s22 = smov [#allocation3]   ;;  %s10256_s19 = smov [#allocation8]  }
  0x53   : > { %s248_s2 = sshll.u32 %s10255_s22, 4  ;;  %s273_s16 = sshll.u32 %s10256_s19, 4  ;;  %s249_s2 = int_to_ptr.vmem [resolvable:$true] %s248_s2  ;;  %s274_s16 = int_to_ptr.vmem [resolvable:$true] %s273_s16 }
  0x54   : > { %s10022_s4 = scalar_lea.vmem %s249_s2, 256  ;;  %p16209_p9 = pneg %p10380_p7 }
  0x55   : > { %p10023_p12 = scmp.ne.s32.totalorder %s249_s2, %s10022_s4  ;;  %p10030_p13 = scmp.lt.s32.totalorder %s249_s2, %s249_s2 }
  0x56   : > { %p10031_p2 = scmp.lt.s32.totalorder %s10022_s4, %s10022_s4 }
  0x57   : > { %p10025_p10 = pnand %p10023_p12, %p16209_p9 }
  0x58   : > { %p10032_p0 = por %p10031_p2, %p10030_p13 }
  0x59   : > { %p10026_p6 = pneg %p10025_p10 }
  0x5b   : > { %p10033_p3 = pnand %p10032_p0, %p10026_p6 }
  0x5d   : > { %10036 = shalt.err (!%p10033_p3)
}
  0x5e   : > { %s16210_s0 = sld [smem:[#allocation58_spill]]  ;;  %s16211_s24 = sand.u32 1, %s10231_s29  }
  0x5f   : > { %s304_s1 = scalar_lea.vmem [#allocation11], %s16211_s24  ;;  %s10048_s20 = scalar_lea.vmem %s274_s16, 32 }
  0x60   : > { %s311_s27 = sshll.u32 %s304_s1, 4  ;;  %p10049_p1 = scmp.ne.s32.totalorder %s274_s16, %s10048_s20  ;;  %s312_s27 = int_to_ptr.vmem [resolvable:$true] %s311_s27 }
  0x61   : > { %p16212_p5 = pmov %p16209_p9  ;;  %p10056_p6 = scmp.lt.s32.totalorder %s274_s16, %s274_s16 }
  0x62   : > { %p10057_p9 = scmp.lt.s32.totalorder %s10048_s20, %s10048_s20 }
  0x63   : > { %p10051_p12 = pnand %p10049_p1, %p16212_p5 }
  0x64   : > { %9823 = dma.hbm_to_vmem [thread:$0]  (!%p10380_p7), %s16210_s0, 256, %s249_s2, [#allocation4]  }
  0x65   : > { %p10052_p13 = pneg %p10051_p12  ;;  %p10058_p10 = por %p10057_p9, %p10056_p6 }
  0x67   : > { %p10059_p2 = pnand %p10058_p10, %p10052_p13 }
  0x69   : > { %10062 = shalt.err (!%p10059_p2)
}
  0x6a   : > { %9829 = dma.hbm_to_vmem [thread:$0]  (!%p10380_p7), %s15627_s3, 32, %s274_s16, [#allocation7]  }
  0x6b   : > { %s318_s2 = sand.u32 1, %s10219_s26   ;;  %s10076_s19 = scalar_lea.vmem %s312_s27, 16 }
  0x6c   : > { %p10077_p0 = scmp.ne.s32.totalorder %s312_s27, %s10076_s19  ;;  %p16213_p3 = pneg %p10471_p8 }
  0x6d   : > { %s10257_s15 = smov [#allocation11]  }
  0x6e   : > { %p10079_p1 = pnand %p10077_p0, %p16213_p3  ;;  %s10081_s7 = sshll.u32 %s10257_s15, 4  ;;  %s10082_s7 = int_to_ptr.vmem [resolvable:$false] %s10081_s7 }
  0x6f   : > { %s10083_s24 = scalar_lea.vmem %s10082_s7, 32  ;;  %p10084_p12 = scmp.lt.s32.totalorder %s312_s27, %s10082_s7 }
  0x70   : > { %p10080_p5 = pneg %p10079_p1  ;;  %p10085_p13 = scmp.lt.s32.totalorder %s10083_s24, %s10076_s19 }
  0x72   : > { %p10086_p6 = por %p10085_p13, %p10084_p12 }
  0x74   : > { %p10087_p9 = pnand %p10086_p6, %p10080_p5 }
  0x76   : > { %10090 = shalt.err (!%p10087_p9)
}
  0x77   : > { %9836 = dma.hbm_to_vmem [thread:$0]  (!%p10471_p8), %s10478_s21, 16, %s312_s27, %s10486_s23  }
  0x78   : > { %s8084_s17 = sshll.u32 %s318_s2, 11  ;;  %s8118_s16 = sshll.u32 %s10243_s9, 9 }
  0x79   : > { %s328_s1 = sadd.s32 %s10247_s10, %s8118_s16  ;;  %s322_s20 = scalar_lea.vmem [#allocation12], %s8084_s17 }
  0x7a   : > { %s331_s4 = sshll.u32 %s322_s20, 4  ;;  %s8087_s22 = sshll.u32 %s328_s1, 7  ;;  %s332_s4 = int_to_ptr.vmem [resolvable:$true] %s331_s4 }
  0x7b   : > { %s330_s7 = scalar_lea.hbm %s15630_s6, %s8087_s22  ;;  %s319_s24 = scalar_lea.sflag [#allocation13], %s318_s2 }
  0x7c   : > { %p10093_p7 = pneg %p10482_p4  ;;  %s10104_s8 = scalar_lea.vmem %s332_s4, 32768 }
  0x7d   : > { %p10105_p10 = scmp.ne.s32.totalorder %s332_s4, %s10104_s8  ;;  %s10258_s0 = smov [#allocation12]  }
  0x7e   : > { %s10109_s21 = sshll.u32 %s10258_s0, 4  ;;  %s10110_s21 = int_to_ptr.vmem [resolvable:$false] %s10109_s21 }
  0x7f   : > { %p10107_p2 = pnand %p10105_p10, %p10093_p7  ;;  %s10111_s23 = scalar_lea.vmem %s10110_s21, 65536 }
  0x80   : > { %p10112_p8 = scmp.lt.s32.totalorder %s332_s4, %s10110_s21  ;;  %p10113_p3 = scmp.lt.s32.totalorder %s10111_s23, %s10104_s8 }
  0x81   : > { %p10108_p0 = pneg %p10107_p2 }
  0x82   : > { %p10114_p1 = por %p10113_p3, %p10112_p8 }
  0x84   : > { %p10115_p5 = pnand %p10114_p1, %p10108_p0 }
  0x86   : > { %10118 = shalt.err (!%p10115_p5)
}
  0x87   : > { %s10259_s27 = smov 256   ;;  %s10260_s17 = smov 128  }
  0x88   : > { %s10261_s16 = smov 8   ;;  %p16214_p12 = scmp.ne.s32.totalorder %s16190_s14, 0 }
  0x89   : > { %9839 = dma.hbm_to_vmem [thread:$0]  (!%p10482_p4), %s330_s7, 32768, %s332_s4, %s319_s24, %s10259_s27, %s10260_s17, %s10261_s16  }
  0x8a   : > { %343 = sbr.rel (%p16214_p12) target bundleno = 1447 (0x5a7), region = 48 }
  0x8f   : > { %p16215_p13 = scmp.eq.s32.totalorder %s10360_s12, 0 }
  0x91   : > { %10190 = dma.done.wait (%p16215_p13), [#allocation4], 256   ;;  %p16216_p6 = pmov %p16215_p13 }
  0x93   : > { %10192 = vsyncadd (%p16216_p6), [#allocation4], 4294967040  ;;  %p16217_p9 = pmov %p16216_p6 }
  0x94   : > { %p16218_p7 = pmov %p16216_p6 }
  0x95   : > { %10194 = dma.done.wait (%p16217_p9), [#allocation7], 64  }
  0x96   : > { %10196 = vsyncadd (%p16218_p7), [#allocation7], 4294967232  ;;  %s357_s0 = sand.u32 1, %s10360_s12   ;;  %s10543_s30 = sand.u32 1, %s10227_s28  }
  0x97   : > { %s358_s14 = scalar_lea.sflag [#allocation10], %s357_s0  ;;  %s360_s2 = scalar_lea.vmem [#allocation9], %s10543_s30 }
  0x98   : > { %p16219_p4 = scmp.ne.s32.totalorder %s16195_s18, 0 }
  0x9a   : > { %10198 = dma.done.wait (%p16219_p4), %s358_s14, 32  }
  0x9b   : > { %10200 = vsyncadd (%p16219_p4), %s358_s14, 4294967264  ;;  %s373_s1 = sand.u32 1, %s10215_s25   ;;  %s368_s4 = scalar_lea.vmem [#allocation11], %s10543_s30 }
  0x9c   : > { %s8092_s20 = sshll.u32 %s373_s1, 11  ;;  %s374_s22 = scalar_lea.sflag [#allocation13], %s373_s1 }
  0x9d   : > { %s10552_s15 = scalar_lea.vmem [#allocation12], %s8092_s20  ;;  %p16220_p10 = scmp.ne.s32.totalorder %s16189_s13, 0 }
  0x9f   : > { %10202 = dma.done.wait (%p16220_p10), %s374_s22, 32768  }
  0xa0   : > { %10204 = vsyncadd (%p16220_p10), %s374_s22, 4294934528  ;;  %s8093_s12 = sshll.u32 %s10543_s30, 3  ;;  %s16221_s18 = sld [smem:[#allocation21_spill]] }
  0xa1   : > { %s10559_s19 = scalar_lea.vmem [#allocation14], %s8093_s12 }
  0xa6   : > { %p8094_p2 = scmp.ne.s32.totalorder %s16221_s18, 0 }
  0xa7   : > { %s16222_s8 = sld [smem:[#allocation59_spill]] (!%p8094_p2) }
  0xa8   : > { %420 = sbr.rel (%p8094_p2) target bundleno = 331 (0x14b), region = 76 }
  0xad   : > { %s16223_s21 = smov %s16222_s8  ;;  %v8096_v0 = vld [vmem:[%s16222_s8 + $0x10] sm:$0xff]  ;;  %v10262_v2 = vmov 0   ;;  %v421_v5 = vld [vmem:[#allocation3] sm:$0xff]  ;;  %v422_v6 = vld [vmem:[#allocation3 + $0x8] sm:$0xff]  ;;  %v423_v30 = vlaneseq  ;;  %v10263_v32 = vmov 0.0  }
  0xae   : > { %v513_v1 = vld [vmem:[%s16223_s21] sm:$0xff]  ;;  %9950 = vset.pattern.permute.xlu1 %v10262_v2  ;;  %9949 = vset.pattern.permute.xlu0 %v10262_v2  ;;  %v8097_v3 = vld [vmem:[%s16223_s21 + $0x18] sm:$0xff]  ;;  %v8095_v4 = vld [vmem:[%s16223_s21 + $0x8] sm:$0xff]  ;;  %v425_v9 = vrot.slane %v421_v5, 4  ;;  %v431_v10 = vrot.slane %v422_v6, 4  ;;  %689 = vst [vmem:[%s10559_s19] sm:$0xff] %v10263_v32 }
  0xaf   : > { %538 = vperm.xlu1 %9950, %v8096_v0   ;;  %516 = vperm.xlu0 %9949, %v513_v1   ;;  %v8099_v7 = vld [vmem:[%s16223_s21 + $0x28] sm:$0xff]  ;;  %v8098_v8 = vld [vmem:[%s16223_s21 + $0x20] sm:$0xff]  ;;  %v8101_v11 = vld [vmem:[%s16223_s21 + $0x38] sm:$0xff]  ;;  %v424_v34 = vshrl.u32 %v423_v30, 7  ;;  %v10264_v58 = vmov 1966171168  }
  0xb0   : > { %v8100_v12 = vld [vmem:[%s16223_s21 + $0x30] sm:$0xff]  ;;  %v426_v13 = vadd.f32 %v425_v9, %v421_v5  ;;  %v432_v14 = vadd.f32 %v431_v10, %v422_v6  ;;  %v8103_v15 = vld [vmem:[%s16223_s21 + $0x48] sm:$0xff]  ;;  %v8102_v16 = vld [vmem:[%s16223_s21 + $0x40] sm:$0xff]  ;;  %v469_v59 = vunpack.c.l.s4 %v10264_v58 }
  0xb1   : > { %v8105_v19 = vld [vmem:[%s16223_s21 + $0x58] sm:$0xff]  ;;  %v8104_v20 = vld [vmem:[%s16223_s21 + $0x50] sm:$0xff]  ;;  %v8107_v23 = vld [vmem:[%s16223_s21 + $0x68] sm:$0xff]  ;;  %vm439_vm0 = vcmp.lt.s32.totalorder %v424_v34, 6 }
  0xb2   : > { %v427_v17 = vrot.slane %v426_v13, 2  ;;  %v433_v18 = vrot.slane %v432_v14, 2  ;;  %v8106_v24 = vld [vmem:[%s16223_s21 + $0x60] sm:$0xff]  ;;  %v8109_v27 = vld [vmem:[%s16223_s21 + $0x78] sm:$0xff]  ;;  %v8108_v28 = vld [vmem:[%s16223_s21 + $0x70] sm:$0xff]  ;;  %v470_v61 = vunpack.c.0.s8 %v469_v59 }
  0xb3   : > { %549 = vperm.xlu1 %9950, %v8097_v3   ;;  %527 = vperm.xlu0 %9949, %v8095_v4   ;;  %v460_v3 = vld [vmem:[#allocation6] sm:$0x3]  ;;  %v497_v9 = vld [vmem:[#allocation8] sm:$0x3] }
  0xb4   : > { %v428_v21 = vadd.f32 %v427_v17, %v426_v13  ;;  %v434_v22 = vadd.f32 %v433_v18, %v432_v14  ;;  %v473_v0 = vsub.s32 %v470_v61, %v424_v34 }
  0xb6   : > { %v429_v25 = vrot.slane %v428_v21, 1  ;;  %v435_v26 = vrot.slane %v434_v22, 1 }
  0xb7   : > { %571 = vperm.xlu1 %9950, %v8099_v7   ;;  %560 = vperm.xlu0 %9949, %v8098_v8  }
  0xb8   : > { %v430_v29 = vadd.f32 %v429_v25, %v428_v21  ;;  %v436_v31 = vadd.f32 %v435_v26, %v434_v22 }
  0xba   : > { %v437_v33 = vmul.f32 0.16666667, %v430_v29  ;;  %v438_v35 = vmul.f32 0.16666667, %v436_v31 }
  0xbb   : > { %593 = vperm.xlu1 %9950, %v8101_v11   ;;  %582 = vperm.xlu0 %9949, %v8100_v12  }
  0xbc   : > { %v440_v36 = vsub.f32 %v421_v5, %v437_v33  ;;  %v441_v37 = vsub.f32 %v422_v6, %v438_v35  ;;  %v487_v5 = vsub.s32 0, %v424_v34  ;;  %v491_v6 = vsub.s32 1, %v424_v34 }
  0xbe   : > { %v442_v38 = vsel %vm439_vm0, %v440_v36, 0.0  ;;  %v443_v39 = vsel %vm439_vm0, %v441_v37, 0.0  ;;  %v502_v12 = vrot.slane %v497_v9, %v487_v5  ;;  %v506_v13 = vrot.slane %v497_v9, %v491_v6 }
  0xbf   : > { %616 = vperm.xlu1 %9950, %v8103_v15   ;;  %604 = vperm.xlu0 %9949, %v8102_v16   ;;  %v444_v40 = vmul.f32 %v442_v38, %v442_v38  ;;  %v445_v41 = vmul.f32 %v443_v39, %v443_v39 }
  0xc1   : > { %v446_v42 = vrot.slane %v444_v40, 4  ;;  %v452_v43 = vrot.slane %v445_v41, 4 }
  0xc3   : > { %638 = vperm.xlu1 %9950, %v8105_v19   ;;  %627 = vperm.xlu0 %9949, %v8104_v20   ;;  %v447_v44 = vadd.f32 %v446_v42, %v444_v40  ;;  %v453_v45 = vadd.f32 %v452_v43, %v445_v41 }
  0xc5   : > { %v448_v46 = vrot.slane %v447_v44, 2  ;;  %v454_v47 = vrot.slane %v453_v45, 2 }
  0xc7   : > { %660 = vperm.xlu1 %9950, %v8107_v23   ;;  %649 = vperm.xlu0 %9949, %v8106_v24   ;;  %v449_v48 = vadd.f32 %v448_v46, %v447_v44  ;;  %v455_v49 = vadd.f32 %v454_v47, %v453_v45 }
  0xc9   : > { %v450_v50 = vrot.slane %v449_v48, 1  ;;  %v456_v51 = vrot.slane %v455_v49, 1 }
  0xcb   : > { %682 = vperm.xlu1 %9950, %v8109_v27   ;;  %671 = vperm.xlu0 %9949, %v8108_v28   ;;  %v451_v52 = vadd.f32 %v450_v50, %v449_v48  ;;  %v457_v53 = vadd.f32 %v456_v51, %v455_v49 }
  0xcd   : > { %v458_v54 = vmul.f32 0.16666667, %v451_v52  ;;  %v459_v55 = vmul.f32 0.16666667, %v457_v53 }
  0xcf   : > { %v461_v56 = vadd.f32 1e-05, %v458_v54  ;;  %v462_v57 = vadd.f32 1e-05, %v459_v55 }
  0xd1   : > { %9951 = vrsqrt.f32 %v461_v56 }
  0xd2   : > { %9953 = vrsqrt.f32 %v462_v57 }
  0xde   : > { %v9952_v60 = vpop.eup %9951 }
  0xdf   : > { %v9954_v62 = vpop.eup %9953 }
  0xe0   : > { %v467_v63 = vcombine.low %v9952_v60, %v9954_v62 }
  0xe2   : > { %v474_v1 = vrot.slane %v467_v63, %v473_v0 }
  0xe4   : > { %v481_v2 = vrot.slane %v474_v1, %v473_v0 }
  0xe6   : > { %v483_v4 = vmul.f32 %v481_v2, %v460_v3 }
  0xe8   : > { %v488_v7 = vrot.slane %v483_v4, %v487_v5  ;;  %v492_v8 = vrot.slane %v483_v4, %v491_v6 }
  0xea   : > { %v495_v10 = vmul.f32 %v488_v7, %v442_v38  ;;  %v496_v11 = vmul.f32 %v492_v8, %v443_v39 }
  0xec   : > { %v509_v14 = vadd.f32 %v502_v12, %v495_v10  ;;  %v510_v15 = vadd.f32 %v506_v13, %v496_v11 }
  0xee   : > { %v10614_v16 = vsel %vm439_vm0, %v509_v14, 0.0  ;;  %v10617_v17 = vsel %vm439_vm0, %v510_v15, 0.0 }
 0x12a   : > { %v539_v18 = vpop.permute.xlu1 %538  ;;  %v517_v19 = vpop.permute.xlu0 %516 }
 0x12b   : > { %v541_v20 = vmul.f32 %v539_v18, %v10614_v16  ;;  %v542_v21 = vmul.f32 %v539_v18, %v10617_v17  ;;  %v519_v22 = vmul.f32 %v517_v19, %v10614_v16  ;;  %v520_v23 = vmul.f32 %v517_v19, %v10617_v17 }
 0x12d   : > { %543 = vst [vmem:[#allocation2 + $0x20] sm:$0xff] %v541_v20  ;;  %544 = vst [vmem:[#allocation2 + $0x28] sm:$0xff] %v542_v21 }
 0x12e   : > { %521 = vst [vmem:[#allocation2] sm:$0xff] %v519_v22  ;;  %522 = vst [vmem:[#allocation2 + $0x8] sm:$0xff] %v520_v23  ;;  %v550_v24 = vpop.permute.xlu1 %549  ;;  %v528_v25 = vpop.permute.xlu0 %527 }
 0x12f   : > { %v552_v26 = vmul.f32 %v550_v24, %v10614_v16  ;;  %v553_v27 = vmul.f32 %v550_v24, %v10617_v17  ;;  %v530_v28 = vmul.f32 %v528_v25, %v10614_v16  ;;  %v531_v29 = vmul.f32 %v528_v25, %v10617_v17 }
 0x131   : > { %554 = vst [vmem:[#allocation2 + $0x30] sm:$0xff] %v552_v26  ;;  %555 = vst [vmem:[#allocation2 + $0x38] sm:$0xff] %v553_v27 }
 0x132   : > { %532 = vst [vmem:[#allocation2 + $0x10] sm:$0xff] %v530_v28  ;;  %533 = vst [vmem:[#allocation2 + $0x18] sm:$0xff] %v531_v29  ;;  %v572_v30 = vpop.permute.xlu1 %571  ;;  %v561_v31 = vpop.permute.xlu0 %560 }
 0x133   : > { %v574_v32 = vmul.f32 %v572_v30, %v10614_v16  ;;  %v575_v33 = vmul.f32 %v572_v30, %v10617_v17  ;;  %v563_v34 = vmul.f32 %v561_v31, %v10614_v16  ;;  %v564_v35 = vmul.f32 %v561_v31, %v10617_v17 }
 0x135   : > { %576 = vst [vmem:[#allocation2 + $0x50] sm:$0xff] %v574_v32  ;;  %577 = vst [vmem:[#allocation2 + $0x58] sm:$0xff] %v575_v33 }
 0x136   : > { %565 = vst [vmem:[#allocation2 + $0x40] sm:$0xff] %v563_v34  ;;  %566 = vst [vmem:[#allocation2 + $0x48] sm:$0xff] %v564_v35  ;;  %v594_v36 = vpop.permute.xlu1 %593  ;;  %v583_v37 = vpop.permute.xlu0 %582 }
 0x137   : > { %v596_v38 = vmul.f32 %v594_v36, %v10614_v16  ;;  %v597_v39 = vmul.f32 %v594_v36, %v10617_v17  ;;  %v585_v40 = vmul.f32 %v583_v37, %v10614_v16  ;;  %v586_v41 = vmul.f32 %v583_v37, %v10617_v17 }
 0x139   : > { %598 = vst [vmem:[#allocation2 + $0x70] sm:$0xff] %v596_v38  ;;  %599 = vst [vmem:[#allocation2 + $0x78] sm:$0xff] %v597_v39 }
 0x13a   : > { %587 = vst [vmem:[#allocation2 + $0x60] sm:$0xff] %v585_v40  ;;  %588 = vst [vmem:[#allocation2 + $0x68] sm:$0xff] %v586_v41  ;;  %v617_v42 = vpop.permute.xlu1 %616  ;;  %v605_v43 = vpop.permute.xlu0 %604 }
 0x13b   : > { %v619_v44 = vmul.f32 %v617_v42, %v10614_v16  ;;  %v620_v45 = vmul.f32 %v617_v42, %v10617_v17  ;;  %v607_v46 = vmul.f32 %v605_v43, %v10614_v16  ;;  %v608_v47 = vmul.f32 %v605_v43, %v10617_v17 }
 0x13d   : > { %621 = vst [vmem:[#allocation2 + $0x90] sm:$0xff] %v619_v44  ;;  %622 = vst [vmem:[#allocation2 + $0x98] sm:$0xff] %v620_v45 }
 0x13e   : > { %610 = vst [vmem:[#allocation2 + $0x80] sm:$0xff] %v607_v46  ;;  %611 = vst [vmem:[#allocation2 + $0x88] sm:$0xff] %v608_v47  ;;  %v639_v48 = vpop.permute.xlu1 %638  ;;  %v628_v49 = vpop.permute.xlu0 %627 }
 0x13f   : > { %v641_v50 = vmul.f32 %v639_v48, %v10614_v16  ;;  %v642_v51 = vmul.f32 %v639_v48, %v10617_v17  ;;  %v630_v52 = vmul.f32 %v628_v49, %v10614_v16  ;;  %v631_v53 = vmul.f32 %v628_v49, %v10617_v17 }
 0x141   : > { %643 = vst [vmem:[#allocation2 + $0xb0] sm:$0xff] %v641_v50  ;;  %644 = vst [vmem:[#allocation2 + $0xb8] sm:$0xff] %v642_v51 }
 0x142   : > { %632 = vst [vmem:[#allocation2 + $0xa0] sm:$0xff] %v630_v52  ;;  %633 = vst [vmem:[#allocation2 + $0xa8] sm:$0xff] %v631_v53  ;;  %v661_v54 = vpop.permute.xlu1 %660  ;;  %v650_v55 = vpop.permute.xlu0 %649 }
 0x143   : > { %v663_v56 = vmul.f32 %v661_v54, %v10614_v16  ;;  %v664_v57 = vmul.f32 %v661_v54, %v10617_v17  ;;  %v652_v58 = vmul.f32 %v650_v55, %v10614_v16  ;;  %v653_v59 = vmul.f32 %v650_v55, %v10617_v17 }
 0x145   : > { %665 = vst [vmem:[#allocation2 + $0xd0] sm:$0xff] %v663_v56  ;;  %666 = vst [vmem:[#allocation2 + $0xd8] sm:$0xff] %v664_v57 }
 0x146   : > { %654 = vst [vmem:[#allocation2 + $0xc0] sm:$0xff] %v652_v58  ;;  %655 = vst [vmem:[#allocation2 + $0xc8] sm:$0xff] %v653_v59  ;;  %v683_v60 = vpop.permute.xlu1 %682  ;;  %v672_v61 = vpop.permute.xlu0 %671 }
 0x147   : > { %v685_v62 = vmul.f32 %v683_v60, %v10614_v16  ;;  %v686_v63 = vmul.f32 %v683_v60, %v10617_v17  ;;  %v674_v0 = vmul.f32 %v672_v61, %v10614_v16  ;;  %v675_v1 = vmul.f32 %v672_v61, %v10617_v17 }
 0x149   : > { %687 = vst [vmem:[#allocation2 + $0xf0] sm:$0xff] %v685_v62  ;;  %688 = vst [vmem:[#allocation2 + $0xf8] sm:$0xff] %v686_v63 }
 0x14a   : > { %676 = vst [vmem:[#allocation2 + $0xe0] sm:$0xff] %v674_v0  ;;  %677 = vst [vmem:[#allocation2 + $0xe8] sm:$0xff] %v675_v1 }
 0x14b PF: > { %v741_v2 = vld [vmem:[%s10552_s15 + $0xf8] sm:$0xff]  ;;  %v740_v4 = vld [vmem:[%s10552_s15 + $0xf0] sm:$0xff]  ;;  %v739_v9 = vld [vmem:[%s10552_s15 + $0xe8] sm:$0xff]  ;;  %s16238_s23 = sld [smem:[#allocation21_spill]] }
 0x14c   : > { %v725_v3 = vld [vmem:[%s10552_s15 + $0x78] sm:$0xff]  ;;  %v10654_v5 = vand.u32 4294901760, %v741_v2  ;;  %v10658_v7 = vand.u32 4294901760, %v740_v4  ;;  %v724_v8 = vld [vmem:[%s10552_s15 + $0x70] sm:$0xff]  ;;  %v723_v10 = vld [vmem:[%s10552_s15 + $0x68] sm:$0xff]  ;;  %v10665_v12 = vand.u32 4294901760, %v739_v9 }
 0x14d   : > { %v10656_v6 = vand.u32 4294901760, %v725_v3  ;;  %v10663_v11 = vand.u32 4294901760, %v724_v8  ;;  %v10667_v13 = vand.u32 4294901760, %v723_v10  ;;  %v738_v14 = vld [vmem:[%s10552_s15 + $0xe0] sm:$0xff]  ;;  %v737_v16 = vld [vmem:[%s10552_s15 + $0xd8] sm:$0xff]  ;;  %v10686_v22 = vld [vmem:[%s10552_s15 + $0xd0] sm:$0xff] }
 0x14e   : > { %v722_v15 = vld [vmem:[%s10552_s15 + $0x60] sm:$0xff]  ;;  %8120 = vmatprep.subr.mxu0 %v10654_v5  ;;  %v10673_v17 = vand.u32 4294901760, %v738_v14  ;;  %v10677_v19 = vand.u32 4294901760, %v737_v16  ;;  %v10680_v20 = vsub.f32 %v741_v2, %v10654_v5  ;;  %v10683_v21 = vld [vmem:[%s10552_s15 + $0x58] sm:$0xff]  ;;  %v10689_v23 = vld [vmem:[%s10552_s15 + $0x50] sm:$0xff]  ;;  %v10699_v26 = vand.u32 4294901760, %v10686_v22 }
 0x14f   : > { %v10675_v18 = vand.u32 4294901760, %v722_v15  ;;  %8121 = vmatpush3.msra.mxu0 %v10656_v6  ;;  %v10693_v24 = vand.u32 4294901760, %v10683_v21  ;;  %v10696_v25 = vsub.f32 %v725_v3, %v10656_v6  ;;  %v10702_v27 = vsub.f32 %v740_v4, %v10658_v7  ;;  %v10705_v28 = vld [vmem:[%s10552_s15 + $0xc8] sm:$0xff]  ;;  %v10711_v30 = vld [vmem:[%s10552_s15 + $0xc0] sm:$0xff]  ;;  %v10759_v48 = vld [vmem:[%s10552_s15 + $0xb8] sm:$0xff] }
 0x150   : > { %16224 = vst [vmem:[#allocation29_spill] sm:$0xff] %v10699_v26  ;;  %v10708_v29 = vld [vmem:[%s10552_s15 + $0x48] sm:$0xff]  ;;  %8122 = vmatprep.subr.mxu0 %v10658_v7  ;;  %v15663_v31 = vand.u32 4294901760, %v10680_v20  ;;  %v10716_v32 = vand.u32 4294901760, %v10689_v23  ;;  %v10719_v33 = vsub.f32 %v724_v8, %v10663_v11  ;;  %v10722_v34 = vand.u32 4294901760, %v10705_v28  ;;  %v10734_v39 = vld [vmem:[%s10552_s15 + $0x40] sm:$0xff] }
 0x151   : > { %8123 = vmatpush3.msra.mxu0 %v10663_v11  ;;  %v15662_v35 = vand.u32 4294901760, %v10696_v25  ;;  %v15660_v36 = vand.u32 4294901760, %v10702_v27  ;;  %v10728_v37 = vsub.f32 %v739_v9, %v10665_v12  ;;  %v10731_v38 = vand.u32 4294901760, %v10708_v29  ;;  %v10770_v53 = vld [vmem:[%s10552_s15 + $0x38] sm:$0xff]  ;;  %v10778_v58 = vld [vmem:[%s10552_s15 + $0xb0] sm:$0xff]  ;;  %v10804_v4 = vld [vmem:[%s10552_s15 + $0xa8] sm:$0xff] }
 0x152   : > { %16225 = vst [vmem:[#allocation30_spill] sm:$0xff] %v10716_v32  ;;  %16226 = vst [vmem:[#allocation31_spill] sm:$0xff] %v10722_v34  ;;  %8124 = vmatprep.subr.mxu0 %v10665_v12  ;;  %v1194_v40 = vsub.f32 %v10680_v20, %v15663_v31  ;;  %v15659_v41 = vand.u32 4294901760, %v10719_v33  ;;  %v10742_v42 = vsub.f32 %v723_v10, %v10667_v13  ;;  %v10745_v43 = vand.u32 4294901760, %v10711_v30  ;;  %v10791_v63 = vld [vmem:[%s10552_s15 + $0x30] sm:$0xff]  ;;  %s8119_s27 = sshll.u32 %s16238_s23, 7 }
 0x153   : > { %16227 = vst [vmem:[#allocation32_spill] sm:$0xff] %v10731_v38  ;;  %8125 = vmatpush3.msra.mxu0 %v10667_v13  ;;  %v1082_v44 = vsub.f32 %v10696_v25, %v15662_v35  ;;  %v1201_v45 = vsub.f32 %v10702_v27, %v15660_v36  ;;  %v15656_v46 = vand.u32 4294901760, %v10728_v37  ;;  %v10756_v47 = vsub.f32 %v738_v14, %v10673_v17  ;;  %v10912_v36 = vld [vmem:[%s10552_s15 + $0x10] sm:$0xff]  ;;  %v10924_v35 = vld [vmem:[%s10552_s15 + $0x88] sm:$0xff]  ;;  %s10999_s13 = scalar_lea.vmem [#allocation2], %s8119_s27  ;;  %p8112_p0 = scmp.ne.s32.totalorder %s16238_s23, 1 }
 0x154   : > { %16228 = vst [vmem:[#allocation33_spill] sm:$0xff] %v10745_v43  ;;  %8126 = vmatprep.subr.mxu0 %v10673_v17  ;;  %v1195_v49 = vand.u32 4294901760, %v1194_v40  ;;  %v1089_v50 = vsub.f32 %v10719_v33, %v15659_v41  ;;  %v15655_v51 = vand.u32 4294901760, %v10742_v42  ;;  %v10767_v52 = vand.u32 4294901760, %v10734_v39 }
 0x155   : > { %8127 = vmatpush3.msra.mxu0 %v10675_v18  ;;  %v1083_v54 = vand.u32 4294901760, %v1082_v44  ;;  %v1202_v55 = vand.u32 4294901760, %v1201_v45  ;;  %v1208_v56 = vsub.f32 %v10728_v37, %v15656_v46  ;;  %v15653_v57 = vand.u32 4294901760, %v10756_v47 }
 0x156   : > { %16229 = vst [vmem:[#allocation34_spill] sm:$0xff] %v10767_v52  ;;  %8128 = vmatprep.subr.mxu0 %v10677_v19  ;;  %8155 = vmatprep.subr.mxu1 %v1195_v49  ;;  %v1090_v59 = vand.u32 4294901760, %v1089_v50  ;;  %v1096_v60 = vsub.f32 %v10742_v42, %v15655_v51  ;;  %v10785_v61 = vsub.f32 %v722_v15, %v10675_v18  ;;  %v10788_v62 = vand.u32 4294901760, %v10759_v48  ;;  %v10816_v15 = vld [vmem:[%s10552_s15 + $0x28] sm:$0xff]  ;;  %v10887_v51 = vld [vmem:[%s10552_s15 + $0x18] sm:$0xff] }
 0x157   : > { %8129 = vmatpush3.msra.mxu0 %v10693_v24  ;;  %8156 = vmatpush3.msra.mxu1 %v1083_v54  ;;  %v1209_v0 = vand.u32 4294901760, %v1208_v56  ;;  %v1215_v1 = vsub.f32 %v10756_v47, %v15653_v57  ;;  %v10798_v2 = vsub.f32 %v737_v16, %v10677_v19  ;;  %v10801_v3 = vand.u32 4294901760, %v10770_v53  ;;  %v10840_v54 = vld [vmem:[%s10552_s15 + $0xa0] sm:$0xff] }
 0x158   : > { %16230 = vst [vmem:[#allocation35_spill] sm:$0xff] %v10788_v62  ;;  %8130 = vmatprep.subr.mxu0 %v10699_v26  ;;  %8157 = vmatprep.subr.mxu1 %v1202_v55  ;;  %v1097_v8 = vand.u32 4294901760, %v1096_v60  ;;  %v15652_v9 = vand.u32 4294901760, %v10785_v61  ;;  %v10810_v10 = vsub.f32 %v10683_v21, %v10693_v24  ;;  %v10813_v14 = vand.u32 4294901760, %v10778_v58 }
 0x159   : > { %16231 = vst [vmem:[#allocation36_spill] sm:$0xff] %v10801_v3  ;;  %8131 = vmatpush3.msra.mxu0 %v10716_v32  ;;  %8158 = vmatpush3.msra.mxu1 %v1090_v59  ;;  %v1216_v16 = vand.u32 4294901760, %v1215_v1  ;;  %v15650_v40 = vand.u32 4294901760, %v10798_v2  ;;  %v10822_v44 = vsub.f32 %v10686_v22, %v10699_v26  ;;  %v10825_v45 = vand.u32 4294901760, %v10791_v63 }
 0x15a   : > { %16232 = vst [vmem:[#allocation37_spill] sm:$0xff] %v10813_v14  ;;  %8132 = vmatprep.subr.mxu0 %v10722_v34  ;;  %8159 = vmatprep.subr.mxu1 %v1209_v0  ;;  %v1103_v21 = vsub.f32 %v10785_v61, %v15652_v9  ;;  %v15651_v49 = vand.u32 4294901760, %v10810_v10  ;;  %v10834_v50 = vsub.f32 %v10689_v23, %v10716_v32  ;;  %v10837_v22 = vand.u32 4294901760, %v10804_v4  ;;  %v10875_v9 = vld [vmem:[%s10552_s15 + $0x98] sm:$0xff] }
 0x15b   : > { %16233 = vst [vmem:[#allocation38_spill] sm:$0xff] %v10825_v45  ;;  %8133 = vmatpush3.msra.mxu0 %v10731_v38  ;;  %8160 = vmatpush3.msra.mxu1 %v1097_v8  ;;  %v1222_v55 = vsub.f32 %v10798_v2, %v15650_v40  ;;  %v15654_v56 = vand.u32 4294901760, %v10822_v44  ;;  %v10849_v59 = vsub.f32 %v10705_v28, %v10722_v34  ;;  %v10852_v23 = vand.u32 4294901760, %v10816_v15  ;;  %v10864_v28 = vld [vmem:[%s10552_s15 + $0x20] sm:$0xff] }
 0x15c   : > { %16234 = vst [vmem:[#allocation39_spill] sm:$0xff] %v10837_v22  ;;  %8134 = vmatprep.subr.mxu0 %v10745_v43  ;;  %8161 = vmatprep.subr.mxu1 %v1216_v16  ;;  %v1104_v60 = vand.u32 4294901760, %v1103_v21  ;;  %v1110_v0 = vsub.f32 %v10810_v10, %v15651_v49  ;;  %v15657_v1 = vand.u32 4294901760, %v10834_v50  ;;  %v10861_v8 = vsub.f32 %v10708_v29, %v10731_v38  ;;  %v694_v38 = vld [vmem:[%s10999_s13] sm:$0xff] }
 0x15d   : > { %16235 = vst [vmem:[#allocation40_spill] sm:$0xff] %v10852_v23  ;;  %8135 = vmatpush3.msra.mxu0 %v10767_v52  ;;  %v1223_v40 = vand.u32 4294901760, %v1222_v55  ;;  %v1229_v16 = vsub.f32 %v10822_v44, %v15654_v56  ;;  %v15658_v21 = vand.u32 4294901760, %v10849_v59  ;;  %v10872_v49 = vand.u32 4294901760, %v10840_v54 }
 0x15e   : > { %8162 = vmatpush3.msra.mxu1 %v1104_v60  ;;  %8136 = vmatprep.subr.mxu0 %v10788_v62  ;;  %v1111_v29 = vand.u32 4294901760, %v1110_v0  ;;  %v1117_v55 = vsub.f32 %v10834_v50, %v15657_v1  ;;  %v15661_v57 = vand.u32 4294901760, %v10861_v8  ;;  %v10884_v56 = vsub.f32 %v10711_v30, %v10745_v43  ;;  %v10901_v30 = vld [vmem:[%s10552_s15 + $0x90] sm:$0xff] }
 0x15f   : > { %16236 = vst [vmem:[#allocation41_spill] sm:$0xff] %v10872_v49  ;;  %8163 = vmatprep.subr.mxu1 %v1223_v40  ;;  %8137 = vmatpush3.msra.mxu0 %v10801_v3  ;;  %v1230_v60 = vand.u32 4294901760, %v1229_v16  ;;  %v1236_v0 = vsub.f32 %v10849_v59, %v15658_v21  ;;  %v10894_v46 = vand.u32 4294901760, %v10864_v28  ;;  %v10898_v1 = vsub.f32 %v10734_v39, %v10767_v52 }
 0x160   : > { %8164 = vmatpush3.msra.mxu1 %v1111_v29  ;;  %8138 = vmatprep.subr.mxu0 %v10813_v14  ;;  %v1118_v40 = vand.u32 4294901760, %v1117_v55  ;;  %v1124_v16 = vsub.f32 %v10861_v8, %v15661_v57  ;;  %v15664_v21 = vand.u32 4294901760, %v10884_v56  ;;  %v10909_v41 = vand.u32 4294901760, %v10875_v9 }
 0x161   : > { %16237 = vst [vmem:[#allocation42_spill] sm:$0xff] %v10894_v46  ;;  %8165 = vmatprep.subr.mxu1 %v1230_v60  ;;  %8139 = vmatpush3.msra.mxu0 %v10825_v45  ;;  %v1237_v39 = vand.u32 4294901760, %v1236_v0  ;;  %v15669_v29 = vand.u32 4294901760, %v10898_v1  ;;  %v10918_v55 = vsub.f32 %v10759_v48, %v10788_v62  ;;  %v10921_v57 = vand.u32 4294901760, %v10887_v51 }
 0x162   : > { %8166 = vmatpush3.msra.mxu1 %v1118_v40  ;;  %8140 = vmatprep.subr.mxu0 %v10837_v22  ;;  %v1125_v60 = vand.u32 4294901760, %v1124_v16  ;;  %v1243_v0 = vsub.f32 %v10884_v56, %v15664_v21  ;;  %v10933_v48 = vsub.f32 %v10770_v53, %v10801_v3  ;;  %v10936_v31 = vand.u32 4294901760, %v10901_v30  ;;  %v10951_v53 = vld [vmem:[%s10552_s15 + $0x8] sm:$0xff] }
 0x163   : > { %16239 = vst [vmem:[#allocation43_spill] sm:$0xff] %v10921_v57  ;;  %8167 = vmatprep.subr.mxu1 %v1237_v39  ;;  %8141 = vmatpush3.msra.mxu0 %v10852_v23  ;;  %v1131_v40 = vsub.f32 %v10898_v1, %v15669_v29  ;;  %v10945_v21 = vsub.f32 %v10778_v58, %v10813_v14  ;;  %v10948_v62 = vand.u32 4294901760, %v10912_v36  ;;  %v10960_v16 = vand.u32 4294901760, %v10924_v35  ;;  %v10963_v58 = vld [vmem:[%s10552_s15 + $0x80] sm:$0xff] }
 0x164   : > { %16240 = vst [vmem:[#allocation44_spill] sm:$0xff] %v10936_v31  ;;  %8168 = vmatpush3.msra.mxu1 %v1125_v60  ;;  %8142 = vmatprep.subr.mxu0 %v10872_v49  ;;  %v1244_v39 = vand.u32 4294901760, %v1243_v0  ;;  %v10957_v29 = vsub.f32 %v10791_v63, %v10825_v45  ;;  %v16243_v60 = vand.u32 4294901760, %v10918_v55  ;;  %v10972_v3 = vsub.f32 %v10804_v4, %v10837_v22  ;;  %v10987_v0 = vld [vmem:[%s10552_s15] sm:$0xff] }
 0x165   : > { %16241 = vst [vmem:[#allocation45_spill] sm:$0xff] %v10948_v62  ;;  %16242 = vst [vmem:[#allocation46_spill] sm:$0xff] %v10960_v16  ;;  %8143 = vmatpush3.msra.mxu0 %v10894_v46  ;;  %v1132_v14 = vand.u32 4294901760, %v1131_v40  ;;  %v16245_v63 = vand.u32 4294901760, %v10933_v48  ;;  %v10980_v43 = vand.u32 4294901760, %v10951_v53  ;;  %v10995_v40 = vand.u32 4294901760, %v10963_v58 }
 0x166   : > { %v1250_v52 = vsub.f32 %v10918_v55, %v16243_v60  ;;  %16244 = vst [vmem:[#allocation47_spill] sm:$0xff] %v10972_v3  ;;  %8169 = vmatprep.subr.mxu1 %v1244_v39  ;;  %8144 = vmatprep.subr.mxu0 %v10909_v41  ;;  %v10984_v60 = vsub.f32 %v10816_v15, %v10852_v23  ;;  %v16246_v39 = vand.u32 4294901760, %v10945_v21  ;;  %v695_v15 = vld [vmem:[%s10999_s13 + $0x8] sm:$0xff]  ;;  %v16248_v32 = vand.u32 4294901760, %v10972_v3 }
 0x167   : > { %v1138_v45 = vsub.f32 %v10933_v48, %v16245_v63  ;;  %8170 = vmatpush3.msra.mxu1 %v1132_v14  ;;  %8145 = vmatpush3.msra.mxu0 %v10921_v57  ;;  %v11009_v63 = vsub.f32 %v10840_v54, %v10872_v49  ;;  %v11017_v26 = vand.u32 4294901760, %v10987_v0  ;;  %v11028_v49 = vand.u32 4294901760, %v695_v15 }
 0x168   : > { %v1251_v4 = vand.u32 4294901760, %v1250_v52  ;;  %v1257_v22 = vsub.f32 %v10945_v21, %v16246_v39  ;;  %8146 = vmatprep.subr.mxu0 %v10936_v31  ;;  %v16247_v52 = vand.u32 4294901760, %v10957_v29  ;;  %v16249_v54 = vand.u32 4294901760, %v10984_v60 }
 0x169   : > { %v1139_v23 = vand.u32 4294901760, %v1138_v45  ;;  %8147 = vmatpush3.msra.mxu0 %v10948_v62  ;;  %v1264_v45 = vsub.f32 %v10972_v3, %v16248_v32  ;;  %16250 = vst [vmem:[#allocation48_spill] sm:$0xff] %v11028_v49  ;;  %1303 = vmatprep.mubr.f32.mxu1 %v11028_v49 }
 0x16a   : > { %v1145_v14 = vsub.f32 %v10957_v29, %v16247_v52  ;;  %8171 = vmatprep.subr.mxu1 %v1251_v4  ;;  %v1258_v34 = vand.u32 4294901760, %v1257_v22  ;;  %v11021_v52 = vsub.f32 %v10864_v28, %v10894_v46  ;;  %8148 = vmatprep.subr.mxu0 %v10960_v16  ;;  %v1152_v22 = vsub.f32 %v10984_v60, %v16249_v54 }
 0x16b   : > { %8172 = vmatpush3.msra.mxu1 %v1139_v23  ;;  %v15694_v4 = vand.u32 4294901760, %v11009_v63  ;;  %v1265_v32 = vand.u32 4294901760, %v1264_v45  ;;  %8149 = vmatpush3.msra.mxu0 %v10980_v43  ;;  %v11034_v23 = vsub.f32 %v10875_v9, %v10909_v41  ;;  %v11036_v28 = vand.u32 4294901760, %v694_v38 }
 0x16c   : > { %v1146_v39 = vand.u32 4294901760, %v1145_v14  ;;  %8173 = vmatprep.subr.mxu1 %v1258_v34  ;;  %v15695_v3 = vand.u32 4294901760, %v11021_v52  ;;  %v1153_v14 = vand.u32 4294901760, %v1152_v22  ;;  %8150 = vmatprep.subr.mxu0 %v10995_v40  ;;  %v11043_v34 = vsub.f32 %v695_v15, %v11028_v49 }
 0x16d   : > { %16251 = vst [vmem:[#allocation49_spill] sm:$0xff] %v11036_v28  ;;  %v1271_v54 = vsub.f32 %v11009_v63, %v15694_v4  ;;  %v11047_v45 = vsub.f32 %v10887_v51, %v10921_v57  ;;  %8151 = vmatpush3.msra.mxu0 %v11017_v26  ;;  %v11055_v22 = vsub.f32 %v694_v38, %v11036_v28  ;;  %v16252_v38 = vand.u32 4294901760, %v11034_v23 }
 0x16e   : > { %8174 = vmatpush3.msra.mxu1 %v1146_v39  ;;  %v1159_v9 = vsub.f32 %v11021_v52, %v15695_v3  ;;  %v11059_v15 = vsub.f32 %v10901_v30, %v10936_v31  ;;  %v15700_v51 = vand.u32 4294901760, %v11043_v34  ;;  %8190 = vmatprep.subr.mxu0 %v10680_v20  ;;  %v11066_v3 = vsub.f32 %v10912_v36, %v10948_v62 }
 0x16f   : > { %8175 = vmatprep.subr.mxu1 %v1265_v32  ;;  %v1272_v4 = vand.u32 4294901760, %v1271_v54  ;;  %v15703_v32 = vand.u32 4294901760, %v11047_v45  ;;  %v1278_v57 = vsub.f32 %v11034_v23, %v16252_v38  ;;  %v11083_v38 = vsub.f32 %v10924_v35, %v10960_v16 }
 0x170   : > { %8176 = vmatpush3.msra.mxu1 %v1153_v14  ;;  %v1160_v39 = vand.u32 4294901760, %v1159_v9  ;;  %v1065_v54 = vsub.f32 %v11043_v34, %v15700_v51  ;;  %v16253_v14 = vand.u32 4294901760, %v11055_v22  ;;  %v16254_v49 = vand.u32 4294901760, %v11059_v15 }
 0x171   : > { %8177 = vmatprep.subr.mxu1 %v1272_v4  ;;  %v1166_v36 = vsub.f32 %v11047_v45, %v15703_v32  ;;  %v1279_v30 = vand.u32 4294901760, %v1278_v57  ;;  %v11093_v62 = vsub.f32 %v10951_v53, %v10980_v43  ;;  %v16256_v31 = vand.u32 4294901760, %v11066_v3 }
 0x172   : > { %8178 = vmatpush3.msra.mxu1 %v1160_v39  ;;  %v1071_v4 = vsub.f32 %v11055_v22, %v16253_v14  ;;  %v1285_v51 = vsub.f32 %v11059_v15, %v16254_v49  ;;  %v1066_v32 = vand.u32 4294901760, %v1065_v54  ;;  %v15711_v57 = vand.u32 4294901760, %v11083_v38 }
 0x173   : > { %16255 = vst [vmem:[#allocation50_spill] sm:$0xff] %v11093_v62  ;;  %v1167_v9 = vand.u32 4294901760, %v1166_v36  ;;  %v1173_v35 = vsub.f32 %v11066_v3, %v16256_v31  ;;  %8179 = vmatprep.subr.mxu1 %v1279_v30  ;;  %v15710_v14 = vand.u32 4294901760, %v11093_v62  ;;  %v11102_v49 = vsub.f32 %v10963_v58, %v10995_v40 }
 0x174   : > { %v1072_v39 = vand.u32 4294901760, %v1071_v4  ;;  %v1286_v16 = vand.u32 4294901760, %v1285_v51  ;;  %1067 = vmatprep.mubr.f32.mxu0 %v1066_v32  ;;  %v1292_v54 = vsub.f32 %v11083_v38, %v15711_v57  ;;  %v11109_v31 = vsub.f32 %v10987_v0, %v11017_v26 }
 0x175   : > { %16257 = vst [vmem:[#allocation51_spill] sm:$0xff] %v11102_v49  ;;  %8180 = vmatpush3.msra.mxu1 %v1167_v9  ;;  %v1174_v53 = vand.u32 4294901760, %v1173_v35  ;;  %v1180_v51 = vsub.f32 %v11093_v62, %v15710_v14  ;;  %v15709_v58 = vand.u32 4294901760, %v11102_v49  ;;  %v16259_v35 = vld [vmem:[#allocation29_spill] sm:$0xff]  ;;  %v16273_v57 = vand.u32 4294901760, %v10680_v20 }
 0x176   : > { %16258 = vst [vmem:[#allocation52_spill] sm:$0xff] %v11109_v31  ;;  %1073 = vmatmul.mubr.f32.vlgmr.msra.gmra.mxu0 %v1072_v39  ;;  %8181 = vmatprep.subr.mxu1 %v1286_v16  ;;  %v1293_v32 = vand.u32 4294901760, %v1292_v54  ;;  %v15708_v30 = vand.u32 4294901760, %v11109_v31  ;;  %v16260_v39 = vld [vmem:[#allocation30_spill] sm:$0xff]  ;;  %v16262_v54 = vld [vmem:[#allocation31_spill] sm:$0xff]  ;;  %v16272_v14 = vld [vmem:[#allocation41_spill] sm:$0xff] }
 0x177   : > { %8191 = vmatpush3.msra.mxu0 %v10696_v25  ;;  %8182 = vmatpush3.msra.mxu1 %v1174_v53  ;;  %v1181_v36 = vand.u32 4294901760, %v1180_v51  ;;  %v1299_v0 = vsub.f32 %v11102_v49, %v15709_v58  ;;  %v16261_v53 = vld [vmem:[#allocation47_spill] sm:$0xff]  ;;  %v16263_v51 = vld [vmem:[#allocation32_spill] sm:$0xff]  ;;  %v16281_v20 = vand.u32 4294901760, %v10728_v37 }
 0x178   : > { %8192 = vmatprep.subr.mxu0 %v10702_v27  ;;  %1440 = vmatprep.mubr.f32.mxu0 %v11043_v34  ;;  %v1187_v16 = vsub.f32 %v11109_v31, %v15708_v30  ;;  %v16270_v30 = vld [vmem:[#allocation39_spill] sm:$0xff]  ;;  %v16271_v58 = vld [vmem:[#allocation40_spill] sm:$0xff] }
 0x179   : > { %8193 = vmatpush3.msra.mxu0 %v10719_v33  ;;  %8183 = vmatprep.subr.mxu1 %v1293_v32  ;;  %v1300_v9 = vand.u32 4294901760, %v1299_v0  ;;  %v16264_v32 = vld [vmem:[#allocation33_spill] sm:$0xff]  ;;  %v16266_v0 = vld [vmem:[#allocation35_spill] sm:$0xff] }
 0x17a   : > { %8194 = vmatprep.subr.mxu0 %v10728_v37  ;;  %8184 = vmatpush3.msra.mxu1 %v1181_v36  ;;  %v1188_v4 = vand.u32 4294901760, %v1187_v16  ;;  %v16265_v36 = vld [vmem:[#allocation34_spill] sm:$0xff]  ;;  %v16267_v16 = vld [vmem:[#allocation36_spill] sm:$0xff]  ;;  %v16286_v37 = vand.u32 4294901760, %v11055_v22 }
 0x17b   : > { %8195 = vmatpush3.msra.mxu0 %v10742_v42  ;;  %8185 = vmatprep.subr.mxu1 %v1300_v9  ;;  %v16268_v9 = vld [vmem:[#allocation37_spill] sm:$0xff] }
 0x17c   : > { %8196 = vmatprep.subr.mxu0 %v10756_v47  ;;  %8186 = vmatpush3.msra.mxu1 %v1188_v4  ;;  %v16269_v4 = vld [vmem:[#allocation38_spill] sm:$0xff] }
 0x17d   : > { %8197 = vmatpush3.msra.mxu0 %v10785_v61  ;;  %1305 = vmatmul.mubr.f32.vlgmr.msra.gmra.mxu1 %v11036_v28  ;;  %v16274_v28 = vld [vmem:[#allocation43_spill] sm:$0xff] }
 0x17e   : > { %8198 = vmatprep.subr.mxu0 %v10798_v2  ;;  %8225 = vmatprep.subr.mxu1 %v10654_v5 }
 0x17f   : > { %8199 = vmatpush3.msra.mxu0 %v10810_v10  ;;  %8226 = vmatpush3.msra.mxu1 %v10656_v6 }
 0x180   : > { %8200 = vmatprep.subr.mxu0 %v10822_v44  ;;  %8227 = vmatprep.subr.mxu1 %v10658_v7 }
 0x181   : > { %8201 = vmatpush3.msra.mxu0 %v10834_v50  ;;  %8228 = vmatpush3.msra.mxu1 %v10663_v11 }
 0x182   : > { %8202 = vmatprep.subr.mxu0 %v10849_v59  ;;  %8229 = vmatprep.subr.mxu1 %v10665_v12 }
 0x183   : > { %8203 = vmatpush3.msra.mxu0 %v10861_v8  ;;  %8230 = vmatpush3.msra.mxu1 %v10667_v13 }
 0x184   : > { %8204 = vmatprep.subr.mxu0 %v10884_v56  ;;  %8231 = vmatprep.subr.mxu1 %v10673_v17 }
 0x185   : > { %8205 = vmatpush3.msra.mxu0 %v10898_v1  ;;  %8232 = vmatpush3.msra.mxu1 %v10675_v18 }
 0x186   : > { %8206 = vmatprep.subr.mxu0 %v10918_v55  ;;  %8233 = vmatprep.subr.mxu1 %v10677_v19 }
 0x187   : > { %8207 = vmatpush3.msra.mxu0 %v10933_v48  ;;  %8234 = vmatpush3.msra.mxu1 %v10693_v24 }
 0x188   : > { %8208 = vmatprep.subr.mxu0 %v10945_v21  ;;  %8235 = vmatprep.subr.mxu1 %v16259_v35 }
 0x189   : > { %8209 = vmatpush3.msra.mxu0 %v10957_v29  ;;  %8236 = vmatpush3.msra.mxu1 %v16260_v39 }
 0x18a   : > { %8210 = vmatprep.subr.mxu0 %v16261_v53  ;;  %8237 = vmatprep.subr.mxu1 %v16262_v54 }
 0x18b   : > { %8211 = vmatpush3.msra.mxu0 %v10984_v60  ;;  %8238 = vmatpush3.msra.mxu1 %v16263_v51 }
 0x18c   : > { %8212 = vmatprep.subr.mxu0 %v11009_v63  ;;  %8239 = vmatprep.subr.mxu1 %v16264_v32 }
 0x18d   : > { %8213 = vmatpush3.msra.mxu0 %v11021_v52  ;;  %8240 = vmatpush3.msra.mxu1 %v16265_v36 }
 0x18e   : > { %8214 = vmatprep.subr.mxu0 %v11034_v23  ;;  %8241 = vmatprep.subr.mxu1 %v16266_v0 }
 0x18f   : > { %8215 = vmatpush3.msra.mxu0 %v11047_v45  ;;  %8242 = vmatpush3.msra.mxu1 %v16267_v16 }
 0x190   : > { %8216 = vmatprep.subr.mxu0 %v11059_v15  ;;  %8243 = vmatprep.subr.mxu1 %v16268_v9 }
 0x191   : > { %8217 = vmatpush3.msra.mxu0 %v11066_v3  ;;  %8244 = vmatpush3.msra.mxu1 %v16269_v4 }
 0x192   : > { %8218 = vmatprep.subr.mxu0 %v11083_v38  ;;  %8245 = vmatprep.subr.mxu1 %v16270_v30 }
 0x193   : > { %8219 = vmatpush3.msra.mxu0 %v11093_v62  ;;  %8246 = vmatpush3.msra.mxu1 %v16271_v58  ;;  %v16275_v62 = vand.u32 4294901760, %v10696_v25  ;;  %v16276_v58 = vld [vmem:[#allocation44_spill] sm:$0xff]  ;;  %v16282_v25 = vand.u32 4294901760, %v10742_v42  ;;  %v16287_v42 = vand.u32 4294901760, %v10798_v2  ;;  %v16291_v2 = vand.u32 4294901760, %v10849_v59 }
 0x194   : > { %8220 = vmatprep.subr.mxu0 %v11102_v49  ;;  %8247 = vmatprep.subr.mxu1 %v16272_v14  ;;  %v16277_v14 = vand.u32 4294901760, %v10702_v27  ;;  %v16280_v49 = vld [vmem:[#allocation46_spill] sm:$0xff]  ;;  %v16283_v27 = vand.u32 4294901760, %v10756_v47  ;;  %v16288_v47 = vand.u32 4294901760, %v10810_v10  ;;  %v16293_v10 = vand.u32 4294901760, %v10884_v56  ;;  %v772_v56 = vld [vmem:[%s10552_s15 + $0x1f0] sm:$0xff] }
 0x195   : > { %8221 = vmatpush3.msra.mxu0 %v11109_v31  ;;  %8248 = vmatpush3.msra.mxu1 %v10894_v46  ;;  %v16278_v31 = vld [vmem:[#allocation45_spill] sm:$0xff]  ;;  %v16279_v46 = vand.u32 4294901760, %v10719_v33  ;;  %v16284_v33 = vand.u32 4294901760, %v11043_v34  ;;  %v755_v59 = vld [vmem:[%s10552_s15 + $0x168] sm:$0xff]  ;;  %v754_v34 = vld [vmem:[%s10552_s15 + $0x160] sm:$0xff] }
 0x196   : > { %1443 = vmatmul.mubr.f32.vlgmr.msra.gmra.mxu0 %v11055_v22  ;;  %8249 = vmatprep.subr.mxu1 %v10909_v41 }
 0x197   : > { %8260 = vmatprep.subr.mxu0 %v16273_v57  ;;  %8250 = vmatpush3.msra.mxu1 %v16274_v28  ;;  %v16302_v57 = vand.u32 4294901760, %v10984_v60 }
 0x198   : > { %8261 = vmatpush3.msra.mxu0 %v16275_v62  ;;  %8251 = vmatprep.subr.mxu1 %v16276_v58  ;;  %v16289_v62 = vand.u32 4294901760, %v10822_v44  ;;  %v16294_v44 = vand.u32 4294901760, %v10898_v1 }
 0x199   : > { %8262 = vmatprep.subr.mxu0 %v16277_v14  ;;  %8252 = vmatpush3.msra.mxu1 %v16278_v31 }
 0x19a   : > { %8263 = vmatpush3.msra.mxu0 %v16279_v46  ;;  %8253 = vmatprep.subr.mxu1 %v16280_v49  ;;  %v16285_v46 = vand.u32 4294901760, %v10785_v61  ;;  %v16290_v61 = vand.u32 4294901760, %v10834_v50 }
 0x19b   : > { %8264 = vmatprep.subr.mxu0 %v16281_v20  ;;  %8254 = vmatpush3.msra.mxu1 %v10980_v43  ;;  %v753_v20 = vld [vmem:[%s10552_s15 + $0x158] sm:$0xff] }
 0x19c   : > { %8265 = vmatpush3.msra.mxu0 %v16282_v25  ;;  %8255 = vmatprep.subr.mxu1 %v10995_v40 }
 0x19d   : > { %8266 = vmatprep.subr.mxu0 %v16283_v27  ;;  %8256 = vmatpush3.msra.mxu1 %v11017_v26  ;;  %v752_v27 = vld [vmem:[%s10552_s15 + $0x150] sm:$0xff] }
 0x19e   : > { %1547 = vmatprep.mubr.f32.mxu1 %v16284_v33  ;;  %8267 = vmatpush3.msra.mxu0 %v16285_v46  ;;  %v16307_v33 = vand.u32 4294901760, %v11047_v45  ;;  %v11319_v45 = vand.u32 4294901760, %v753_v20 }
 0x19f   : > { %1551 = vmatmul.mubr.f32.vlgmr.msra.gmra.mxu1 %v16286_v37  ;;  %8268 = vmatprep.subr.mxu0 %v16287_v42 }
 0x1a0   : > { %8295 = vmatprep.subr.mxu1 %v10654_v5  ;;  %8269 = vmatpush3.msra.mxu0 %v16288_v47  ;;  %v16292_v5 = vand.u32 4294901760, %v10861_v8  ;;  %v16297_v8 = vand.u32 4294901760, %v10945_v21  ;;  %16311 = vst [vmem:[#allocation33_spill] sm:$0xff] %v11319_v45 }
 0x1a1   : > { %8296 = vmatpush3.msra.mxu1 %v10656_v6  ;;  %8270 = vmatprep.subr.mxu0 %v16289_v62  ;;  %v773_v6 = vld [vmem:[%s10552_s15 + $0x1f8] sm:$0xff] }
 0x1a2   : > { %8297 = vmatprep.subr.mxu1 %v10658_v7  ;;  %8271 = vmatpush3.msra.mxu0 %v16290_v61  ;;  %v757_v7 = vld [vmem:[%s10552_s15 + $0x178] sm:$0xff]  ;;  %v11325_v61 = vand.u32 4294901760, %v752_v27 }
 0x1a3   : > { %8298 = vmatpush3.msra.mxu1 %v10663_v11  ;;  %8272 = vmatprep.subr.mxu0 %v16291_v2  ;;  %v756_v11 = vld [vmem:[%s10552_s15 + $0x170] sm:$0xff]  ;;  %v11240_v50 = vand.u32 4294901760, %v757_v7 }
 0x1a4   : > { %8299 = vmatprep.subr.mxu1 %v10665_v12  ;;  %8273 = vmatpush3.msra.mxu0 %v16292_v5  ;;  %v16295_v12 = vand.u32 4294901760, %v10918_v55  ;;  %v11247_v1 = vand.u32 4294901760, %v756_v11  ;;  %v11256_v55 = vand.u32 4294901760, %v772_v56  ;;  %16313 = vst [vmem:[#allocation34_spill] sm:$0xff] %v11325_v61 }
 0x1a5   : > { %8300 = vmatpush3.msra.mxu1 %v10667_v13  ;;  %8274 = vmatprep.subr.mxu0 %v16293_v10  ;;  %v11238_v13 = vand.u32 4294901760, %v773_v6  ;;  %v11265_v21 = vsub.f32 %v757_v7, %v11240_v50  ;;  %v16316_v7 = vld [vmem:[#allocation50_spill] sm:$0xff] }
 0x1a6   : > { %8301 = vmatprep.subr.mxu1 %v10673_v17  ;;  %8275 = vmatpush3.msra.mxu0 %v16294_v44  ;;  %v16296_v17 = vand.u32 4294901760, %v10933_v48  ;;  %v11258_v48 = vand.u32 4294901760, %v755_v59  ;;  %v11276_v14 = vsub.f32 %v756_v11, %v11247_v1  ;;  %v11293_v25 = vsub.f32 %v772_v56, %v11256_v55  ;;  %v16318_v11 = vld [vmem:[#allocation40_spill] sm:$0xff] }
 0x1a7   : > { %8302 = vmatpush3.msra.mxu1 %v10675_v18  ;;  %8276 = vmatprep.subr.mxu0 %v16295_v12  ;;  %v771_v18 = vld [vmem:[%s10552_s15 + $0x1e8] sm:$0xff]  ;;  %v11270_v22 = vsub.f32 %v773_v6, %v11238_v13  ;;  %v16317_v10 = vand.u32 4294901760, %v16316_v7  ;;  %v16319_v12 = vld [vmem:[#allocation51_spill] sm:$0xff] }
 0x1a8   : > { %8303 = vmatprep.subr.mxu1 %v10677_v19  ;;  %8277 = vmatpush3.msra.mxu0 %v16296_v17  ;;  %v16298_v19 = vand.u32 4294901760, %v10957_v29  ;;  %16299 = vst [vmem:[#allocation29_spill] sm:$0xff] %v11258_v48  ;;  %v11267_v29 = vand.u32 4294901760, %v771_v18  ;;  %v11288_v60 = vsub.f32 %v755_v59, %v11258_v48  ;;  %v15721_v37 = vand.u32 4294901760, %v11276_v14  ;;  %v767_v6 = vld [vmem:[%s10552_s15 + $0x1c8] sm:$0xff]  ;;  %v16321_v59 = vld [vmem:[#allocation41_spill] sm:$0xff] }
 0x1a9   : > { %8304 = vmatpush3.msra.mxu1 %v10693_v24  ;;  %8278 = vmatprep.subr.mxu0 %v16297_v8  ;;  %v16300_v24 = vand.u32 4294901760, %v16261_v53  ;;  %v11282_v53 = vand.u32 4294901760, %v754_v34  ;;  %v15722_v62 = vand.u32 4294901760, %v11293_v25  ;;  %v16320_v56 = vand.u32 4294901760, %v16319_v12  ;;  %v766_v8 = vld [vmem:[%s10552_s15 + $0x1c0] sm:$0xff] }
 0x1aa   : > { %8305 = vmatprep.subr.mxu1 %v16259_v35  ;;  %8279 = vmatpush3.msra.mxu0 %v16298_v19  ;;  %16301 = vst [vmem:[#allocation30_spill] sm:$0xff] %v11267_v29  ;;  %v16303_v35 = vand.u32 4294901760, %v11009_v63  ;;  %v16306_v63 = vand.u32 4294901760, %v11034_v23  ;;  %v768_v23 = vld [vmem:[%s10552_s15 + $0x1d0] sm:$0xff]  ;;  %v15718_v2 = vand.u32 4294901760, %v11288_v60  ;;  %v11361_v17 = vsub.f32 %v753_v20, %v11319_v45  ;;  %v750_v19 = vld [vmem:[%s10552_s15 + $0x140] sm:$0xff] }
 0x1ab   : > { %8306 = vmatpush3.msra.mxu1 %v16260_v39  ;;  %8280 = vmatprep.subr.mxu0 %v16300_v24  ;;  %v770_v39 = vld [vmem:[%s10552_s15 + $0x1e0] sm:$0xff]  ;;  %16304 = vst [vmem:[#allocation47_spill] sm:$0xff] %v11282_v53  ;;  %v11315_v42 = vsub.f32 %v754_v34, %v11282_v53  ;;  %v11342_v5 = vand.u32 4294901760, %v768_v23  ;;  %v11380_v20 = vsub.f32 %v752_v27, %v11325_v61 }
 0x1ac   : > { %8307 = vmatprep.subr.mxu1 %v16262_v54  ;;  %8281 = vmatpush3.msra.mxu0 %v16302_v57  ;;  %v16305_v54 = vand.u32 4294901760, %v11021_v52  ;;  %v15723_v52 = vand.u32 4294901760, %v11265_v21  ;;  %v11307_v46 = vand.u32 4294901760, %v770_v39  ;;  %v16323_v57 = vld [vmem:[#allocation52_spill] sm:$0xff] }
 0x1ad   : > { %8308 = vmatpush3.msra.mxu1 %v16263_v51  ;;  %8282 = vmatprep.subr.mxu0 %v16303_v35  ;;  %v769_v51 = vld [vmem:[%s10552_s15 + $0x1d8] sm:$0xff]  ;;  %16315 = vst [vmem:[#allocation35_spill] sm:$0xff] %v11342_v5  ;;  %v15720_v34 = vand.u32 4294901760, %v11315_v42  ;;  %v16324_v35 = vand.u32 4294901760, %v16323_v57  ;;  %v11399_v7 = vsub.f32 %v768_v23, %v11342_v5 }
 0x1ae   : > { %8309 = vmatprep.subr.mxu1 %v16264_v32  ;;  %8283 = vmatpush3.msra.mxu0 %v16305_v54  ;;  %v15724_v32 = vand.u32 4294901760, %v11270_v22  ;;  %16308 = vst [vmem:[#allocation31_spill] sm:$0xff] %v11307_v46  ;;  %v11317_v47 = vand.u32 4294901760, %v769_v51  ;;  %v11355_v44 = vsub.f32 %v770_v39, %v11307_v46  ;;  %v16325_v39 = vld [vmem:[#allocation48_spill] sm:$0xff]  ;;  %v11377_v54 = vsub.f32 %v11293_v25, %v15722_v62  ;;  %v749_v57 = vld [vmem:[%s10552_s15 + $0x138] sm:$0xff] }
 0x1af   : > { %8310 = vmatpush3.msra.mxu1 %v16265_v36  ;;  %8284 = vmatprep.subr.mxu0 %v16306_v63  ;;  %v11302_v36 = vsub.f32 %v771_v18, %v11267_v29  ;;  %v11382_v63 = vand.u32 4294901760, %v767_v6 }
 0x1b0   : > { %8311 = vmatprep.subr.mxu1 %v16266_v0  ;;  %8285 = vmatpush3.msra.mxu0 %v16307_v33  ;;  %v16309_v0 = vand.u32 4294901760, %v11059_v15  ;;  %16310 = vst [vmem:[#allocation32_spill] sm:$0xff] %v11317_v47  ;;  %v751_v15 = vld [vmem:[%s10552_s15 + $0x148] sm:$0xff]  ;;  %v11369_v24 = vsub.f32 %v769_v51, %v11317_v47  ;;  %v11387_v51 = vsub.f32 %v11288_v60, %v15718_v2  ;;  %v16327_v33 = vld [vmem:[#allocation42_spill] sm:$0xff]  ;;  %v15725_v12 = vand.u32 4294901760, %v11355_v44  ;;  %v748_v2 = vld [vmem:[%s10552_s15 + $0x130] sm:$0xff] }
 0x1b1   : > { %8312 = vmatpush3.msra.mxu1 %v16267_v16  ;;  %v16312_v16 = vand.u32 4294901760, %v11066_v3  ;;  %v11335_v3 = vsub.f32 %v11270_v22, %v15724_v32  ;;  %v11363_v18 = vand.u32 4294901760, %v751_v15  ;;  %1717 = vmatprep.mubr.f32.mxu0 %v16325_v39  ;;  %16326 = vst [vmem:[#allocation37_spill] sm:$0xff] %v11382_v63  ;;  %v747_v32 = vld [vmem:[%s10552_s15 + $0x128] sm:$0xff] }
 0x1b2   : > { %8286 = vmatprep.subr.mxu0 %v16309_v0  ;;  %8313 = vmatprep.subr.mxu1 %v16268_v9  ;;  %v16314_v9 = vand.u32 4294901760, %v11083_v38  ;;  %v15719_v38 = vand.u32 4294901760, %v11302_v36  ;;  %v16328_v0 = vld [vmem:[#allocation49_spill] sm:$0xff] }
 0x1b3   : > { %8287 = vmatpush3.msra.mxu0 %v16312_v16  ;;  %8314 = vmatpush3.msra.mxu1 %v16269_v4  ;;  %v11340_v4 = vsub.f32 %v11265_v21, %v15723_v52  ;;  %16322 = vst [vmem:[#allocation36_spill] sm:$0xff] %v11363_v18  ;;  %v11414_v23 = vsub.f32 %v751_v15, %v11363_v18  ;;  %v11440_v52 = vand.u32 4294901760, %v749_v57  ;;  %v11454_v15 = vand.u32 4294901760, %v748_v2  ;;  %v762_v16 = vld [vmem:[%s10552_s15 + $0x1a0] sm:$0xff] }
 0x1b4   : > { %8288 = vmatprep.subr.mxu0 %v16314_v9  ;;  %8315 = vmatprep.subr.mxu1 %v16270_v30  ;;  %v11352_v30 = vsub.f32 %v11276_v14, %v15721_v37  ;;  %v11396_v27 = vsub.f32 %v11302_v36, %v15719_v38  ;;  %v11429_v38 = vld [vmem:[%s10552_s15 + $0x1b0] sm:$0xff]  ;;  %v11433_v37 = vsub.f32 %v767_v6, %v11382_v63  ;;  %v11485_v9 = vand.u32 4294901760, %v747_v32 }
 0x1b5   : > { %8289 = vmatpush3.msra.mxu0 %v16317_v10  ;;  %8316 = vmatpush3.msra.mxu1 %v16318_v11  ;;  %v11404_v11 = vand.u32 4294901760, %v766_v8  ;;  %16331 = vst [vmem:[#allocation43_spill] sm:$0xff] %v11414_v23  ;;  %16333 = vst [vmem:[#allocation45_spill] sm:$0xff] %v11440_v52  ;;  %v746_v10 = vld [vmem:[%s10552_s15 + $0x120] sm:$0xff] }
 0x1b6   : > { %8290 = vmatprep.subr.mxu0 %v16320_v56  ;;  %8317 = vmatprep.subr.mxu1 %v16321_v59  ;;  %v11407_v56 = vand.u32 4294901760, %v750_v19  ;;  %v765_v59 = vld [vmem:[%s10552_s15 + $0x1b8] sm:$0xff]  ;;  %16335 = vst [vmem:[#allocation50_spill] sm:$0xff] %v11454_v15  ;;  %16338 = vst [vmem:[#allocation41_spill] sm:$0xff] %v11485_v9 }
 0x1b7   : > { %8291 = vmatpush3.msra.mxu0 %v16324_v35  ;;  %8318 = vmatpush3.msra.mxu1 %v16327_v33  ;;  %16329 = vst [vmem:[#allocation38_spill] sm:$0xff] %v11404_v11  ;;  %v15726_v35 = vand.u32 4294901760, %v11369_v24  ;;  %v15727_v33 = vand.u32 4294901760, %v11361_v17  ;;  %v11438_v62 = vand.u32 4294901760, %v765_v59 }
 0x1b8   : > { %1719 = vmatmul.mubr.f32.vlgmr.msra.gmra.mxu0 %v16328_v0  ;;  %8319 = vmatprep.subr.mxu1 %v10909_v41  ;;  %16330 = vst [vmem:[#allocation39_spill] sm:$0xff] %v11407_v56  ;;  %v11419_v41 = vsub.f32 %v11315_v42, %v15720_v34  ;;  %v15728_v34 = vand.u32 4294901760, %v11380_v20  ;;  %v11452_v6 = vsub.f32 %v750_v19, %v11407_v56 }
 0x1b9   : > { %8330 = vmatprep.subr.mxu0 %v11238_v13  ;;  %8320 = vmatpush3.msra.mxu1 %v16274_v28  ;;  %v2064_v28 = vand.u32 4294901760, %v11377_v54  ;;  %16332 = vst [vmem:[#allocation44_spill] sm:$0xff] %v11438_v62  ;;  %v15731_v54 = vand.u32 4294901760, %v11399_v7  ;;  %v11471_v19 = vsub.f32 %v11361_v17, %v15727_v33 }
 0x1ba   : > { %8331 = vmatpush3.msra.mxu0 %v11240_v50  ;;  %8321 = vmatprep.subr.mxu1 %v16276_v58  ;;  %16334 = vst [vmem:[#allocation46_spill] sm:$0xff] %v11452_v6  ;;  %v11457_v58 = vsub.f32 %v766_v8, %v11404_v11  ;;  %v11474_v8 = vand.u32 4294901760, %v11429_v38 }
 0x1bb   : > { %8332 = vmatprep.subr.mxu0 %v11256_v55  ;;  %8322 = vmatpush3.msra.mxu1 %v16278_v31  ;;  %v11449_v31 = vsub.f32 %v11355_v44, %v15725_v12  ;;  %v11466_v12 = vsub.f32 %v11369_v24, %v15726_v35  ;;  %v11499_v35 = vand.u32 4294901760, %v746_v10 }
 0x1bc   : > { %8333 = vmatpush3.msra.mxu0 %v11247_v1  ;;  %8323 = vmatprep.subr.mxu1 %v16280_v49  ;;  %16336 = vst [vmem:[#allocation40_spill] sm:$0xff] %v11457_v58  ;;  %16337 = vst [vmem:[#allocation51_spill] sm:$0xff] %v11474_v8  ;;  %v763_v49 = vld [vmem:[%s10552_s15 + $0x1a8] sm:$0xff] }
 0x1bd   : > { %8334 = vmatprep.subr.mxu0 %v11267_v29  ;;  %8324 = vmatpush3.msra.mxu1 %v10980_v43  ;;  %v11481_v43 = vsub.f32 %v11380_v20, %v15728_v34  ;;  %v11497_v34 = vsub.f32 %v11399_v7, %v15731_v54  ;;  %16339 = vst [vmem:[#allocation52_spill] sm:$0xff] %v11499_v35  ;;  %v2085_v33 = vand.u32 4294901760, %v11466_v12  ;;  %v16343_v54 = vand.u32 4294901760, %v11340_v4  ;;  %v696_v29 = vld [vmem:[%s10999_s13 + $0x10] sm:$0xff] }
 0x1be   : > { %8335 = vmatpush3.msra.mxu0 %v11258_v48  ;;  %8325 = vmatprep.subr.mxu1 %v10995_v40  ;;  %v11492_v40 = vsub.f32 %v749_v57, %v11440_v52  ;;  %v697_v57 = vld [vmem:[%s10999_s13 + $0x18] sm:$0xff] }
 0x1bf   : > { %8336 = vmatprep.subr.mxu0 %v11307_v46  ;;  %8326 = vmatpush3.msra.mxu1 %v11017_v26  ;;  %v11502_v46 = vsub.f32 %v765_v59, %v11438_v62  ;;  %v2078_v26 = vand.u32 4294901760, %v11449_v31  ;;  %v16341_v59 = vand.u32 4294901760, %v11335_v3  ;;  %v745_v31 = vld [vmem:[%s10552_s15 + $0x118] sm:$0xff]  ;;  %v16344_v3 = vand.u32 4294901760, %v11433_v37 }
 0x1c0   : > { %1821 = vmatprep.mubr.f32.mxu1 %v16325_v39  ;;  %8337 = vmatpush3.msra.mxu0 %v11282_v53  ;;  %v11508_v39 = vsub.f32 %v748_v2, %v11454_v15  ;;  %v11517_v53 = vand.u32 4294901760, %v763_v49  ;;  %v11519_v2 = vand.u32 4294901760, %v762_v16  ;;  %v2092_v4 = vand.u32 4294901760, %v11497_v34 }
 0x1c1   : > { %1823 = vmatmul.mubr.f32.vlgmr.msra.gmra.mxu1 %v16328_v0  ;;  %8338 = vmatprep.subr.mxu0 %v11317_v47  ;;  %v1973_v0 = vand.u32 4294901760, %v11471_v19  ;;  %v11530_v12 = vsub.f32 %v11433_v37, %v16344_v3  ;;  %v11533_v19 = vsub.f32 %v747_v32, %v11485_v9  ;;  %v761_v3 = vld [vmem:[%s10552_s15 + $0x198] sm:$0xff]  ;;  %v11551_v47 = vsub.f32 %v11429_v38, %v11474_v8 }
 0x1c2   : > { %16340 = vst [vmem:[#allocation48_spill] sm:$0xff] %v11508_v39  ;;  %8365 = vmatprep.subr.mxu1 %v16341_v59  ;;  %16342 = vst [vmem:[#allocation42_spill] sm:$0xff] %v11517_v53  ;;  %8339 = vmatpush3.msra.mxu0 %v11319_v45  ;;  %v16345_v59 = vand.u32 4294901760, %v11414_v23  ;;  %v744_v45 = vld [vmem:[%s10552_s15 + $0x110] sm:$0xff]  ;;  %v16349_v34 = vand.u32 4294901760, %v11452_v6  ;;  %v11566_v32 = vand.u32 4294901760, %v745_v31 }
 0x1c3   : > { %8366 = vmatpush3.msra.mxu1 %v16343_v54  ;;  %8340 = vmatprep.subr.mxu0 %v11342_v5  ;;  %v11545_v54 = vsub.f32 %v746_v10, %v11499_v35  ;;  %v16348_v5 = vand.u32 4294901760, %v11457_v58  ;;  %v11569_v38 = vand.u32 4294901760, %v697_v57 }
 0x1c4   : > { %v11538_v48 = vsub.f32 %v11414_v23, %v16345_v59  ;;  %8367 = vmatprep.subr.mxu1 %v2064_v28  ;;  %8341 = vmatpush3.msra.mxu0 %v11325_v61  ;;  %v16347_v59 = vand.u32 4294901760, %v11352_v30  ;;  %v11564_v10 = vsub.f32 %v11452_v6, %v16349_v34  ;;  %v760_v23 = vld [vmem:[%s10552_s15 + $0x190] sm:$0xff]  ;;  %v16351_v30 = vand.u32 4294901760, %v11396_v27 }
 0x1c5   : > { %16346 = vst [vmem:[#allocation49_spill] sm:$0xff] %v11545_v54  ;;  %v11559_v28 = vsub.f32 %v11457_v58, %v16348_v5  ;;  %16350 = vst [vmem:[#allocation53_spill] sm:$0xff] %v11569_v38  ;;  %8342 = vmatprep.subr.mxu0 %v11382_v63  ;;  %v11575_v5 = vand.u32 4294901760, %v744_v45  ;;  %v11578_v61 = vsub.f32 %v763_v49, %v11517_v53  ;;  %v11580_v34 = vand.u32 4294901760, %v696_v29 }
 0x1c6   : > { %8368 = vmatpush3.msra.mxu1 %v16347_v59  ;;  %8343 = vmatpush3.msra.mxu0 %v11363_v18  ;;  %v16353_v6 = vand.u32 4294901760, %v11387_v51  ;;  %v2099_v63 = vand.u32 4294901760, %v11530_v12  ;;  %v1987_v27 = vand.u32 4294901760, %v11538_v48  ;;  %v16354_v49 = vand.u32 4294901760, %v11502_v46 }
 0x1c7   : > { %8369 = vmatprep.subr.mxu1 %v16351_v30  ;;  %16352 = vst [vmem:[#allocation54_spill] sm:$0xff] %v11580_v34  ;;  %v11587_v30 = vand.u32 4294901760, %v761_v3  ;;  %8344 = vmatprep.subr.mxu0 %v11404_v11  ;;  %v11596_v18 = vand.u32 4294901760, %v760_v23  ;;  %v11601_v48 = vsub.f32 %v762_v16, %v11519_v2  ;;  %v16356_v12 = vand.u32 4294901760, %v11419_v41  ;;  %v743_v11 = vld [vmem:[%s10552_s15 + $0x108] sm:$0xff] }
 0x1c8   : > { %8370 = vmatpush3.msra.mxu1 %v16353_v6  ;;  %v11594_v58 = vsub.f32 %v11502_v46, %v16354_v49  ;;  %v759_v6 = vld [vmem:[%s10552_s15 + $0x188] sm:$0xff]  ;;  %8345 = vmatpush3.msra.mxu0 %v11407_v56  ;;  %v1994_v49 = vand.u32 4294901760, %v11564_v10  ;;  %v11609_v59 = vsub.f32 %v745_v31, %v11566_v32  ;;  %v11613_v51 = vsub.f32 %v697_v57, %v11569_v38  ;;  %v758_v10 = vld [vmem:[%s10552_s15 + $0x180] sm:$0xff] }
 0x1c9   : > { %8371 = vmatprep.subr.mxu1 %v2078_v26  ;;  %16355 = vst [vmem:[#allocation55_spill] sm:$0xff] %v11596_v18  ;;  %v2106_v26 = vand.u32 4294901760, %v11559_v28  ;;  %8346 = vmatprep.subr.mxu0 %v11438_v62  ;;  %v16357_v16 = vand.u32 4294901760, %v11492_v40  ;;  %v11620_v41 = vsub.f32 %v744_v45, %v11575_v5  ;;  %v11626_v31 = vsub.f32 %v696_v29, %v11580_v34 }
 0x1ca   : > { %8372 = vmatpush3.msra.mxu1 %v16356_v12  ;;  %v742_v12 = vld [vmem:[%s10552_s15 + $0x100] sm:$0xff]  ;;  %8347 = vmatpush3.msra.mxu0 %v11440_v52  ;;  %v16358_v57 = vand.u32 4294901760, %v11508_v39  ;;  %v11632_v62 = vand.u32 4294901760, %v759_v6  ;;  %v11636_v45 = vsub.f32 %v761_v3, %v11587_v30  ;;  %v2113_v29 = vand.u32 4294901760, %v11594_v58 }
 0x1cb   : > { %8373 = vmatprep.subr.mxu1 %v2085_v33  ;;  %v2000_v56 = vsub.f32 %v11492_v40, %v16357_v16  ;;  %8348 = vmatprep.subr.mxu0 %v11474_v8  ;;  %v16359_v28 = vand.u32 4294901760, %v11551_v47  ;;  %v11643_v52 = vand.u32 4294901760, %v743_v11  ;;  %v16360_v16 = vand.u32 4294901760, %v11481_v43 }
 0x1cc   : > { %8374 = vmatpush3.msra.mxu1 %v1973_v0  ;;  %v2007_v33 = vsub.f32 %v11508_v39, %v16358_v57  ;;  %8349 = vmatpush3.msra.mxu0 %v11454_v15  ;;  %v11649_v3 = vand.u32 4294901760, %v758_v10  ;;  %v11651_v39 = vand.u32 4294901760, %v742_v12  ;;  %v11655_v58 = vsub.f32 %v760_v23, %v11596_v18 }
 0x1cd   : > { %8375 = vmatprep.subr.mxu1 %v2092_v4  ;;  %v2119_v0 = vsub.f32 %v11551_v47, %v16359_v28  ;;  %8350 = vmatprep.subr.mxu0 %v11517_v53  ;;  %v2001_v28 = vand.u32 4294901760, %v2000_v56  ;;  %v16361_v57 = vand.u32 4294901760, %v11578_v61  ;;  %v15772_v43 = vand.u32 4294901760, %v11545_v54 }
 0x1ce   : > { %8376 = vmatpush3.msra.mxu1 %v16360_v16  ;;  %8351 = vmatpush3.msra.mxu0 %v11485_v9  ;;  %v2008_v8 = vand.u32 4294901760, %v2007_v33  ;;  %v16362_v4 = vand.u32 4294901760, %v11533_v19  ;;  %v16363_v16 = vand.u32 4294901760, %v11601_v48 }
 0x1cf   : > { %8377 = vmatprep.subr.mxu1 %v2099_v63  ;;  %v2126_v15 = vsub.f32 %v11578_v61, %v16361_v57  ;;  %v11669_v63 = vsub.f32 %v759_v6, %v11632_v62  ;;  %8352 = vmatprep.subr.mxu0 %v11519_v2  ;;  %v2120_v56 = vand.u32 4294901760, %v2119_v0  ;;  %v11673_v57 = vsub.f32 %v743_v11, %v11643_v52 }
 0x1d0   : > { %8378 = vmatpush3.msra.mxu1 %v1987_v27  ;;  %v2014_v23 = vsub.f32 %v11533_v19, %v16362_v4  ;;  %v2133_v27 = vsub.f32 %v11601_v48, %v16363_v16  ;;  %8353 = vmatpush3.msra.mxu0 %v11499_v35  ;;  %v11681_v4 = vsub.f32 %v742_v12, %v11651_v39  ;;  %v16365_v6 = vand.u32 4294901760, %v11613_v51 }
 0x1d1   : > { %8379 = vmatprep.subr.mxu1 %v2106_v26  ;;  %v11688_v11 = vsub.f32 %v758_v10, %v11649_v3  ;;  %8354 = vmatprep.subr.mxu0 %v11587_v30  ;;  %v2127_v16 = vand.u32 4294901760, %v2126_v15  ;;  %v16367_v12 = vand.u32 4294901760, %v11626_v31  ;;  %v16368_v10 = vand.u32 4294901760, %v11636_v45 }
 0x1d2   : > { %8380 = vmatpush3.msra.mxu1 %v1994_v49  ;;  %16364 = vst [vmem:[#allocation56_spill] sm:$0xff] %v11681_v4  ;;  %v1927_v26 = vsub.f32 %v11613_v51, %v16365_v6  ;;  %v2021_v49 = vsub.f32 %v11545_v54, %v15772_v43  ;;  %8355 = vmatpush3.msra.mxu0 %v11566_v32  ;;  %v2015_v6 = vand.u32 4294901760, %v2014_v23  ;;  %v16369_v43 = vand.u32 4294901760, %v11609_v59 }
 0x1d3   : > { %16366 = vst [vmem:[#allocation57_spill] sm:$0xff] %v11688_v11  ;;  %8381 = vmatprep.subr.mxu1 %v2113_v29  ;;  %v1933_v33 = vsub.f32 %v11626_v31, %v16367_v12  ;;  %v2140_v0 = vsub.f32 %v11636_v45, %v16368_v10  ;;  %8356 = vmatprep.subr.mxu0 %v11596_v18  ;;  %v2134_v29 = vand.u32 4294901760, %v2133_v27  ;;  %v16370_v23 = vand.u32 4294901760, %v11655_v58 }
 0x1d4   : > { %8382 = vmatpush3.msra.mxu1 %v2001_v28  ;;  %v2028_v12 = vsub.f32 %v11609_v59, %v16369_v43  ;;  %8357 = vmatpush3.msra.mxu0 %v11575_v5  ;;  %v1928_v28 = vand.u32 4294901760, %v1927_v26  ;;  %v15776_v15 = vand.u32 4294901760, %v11688_v11  ;;  %v16371_v18 = vand.u32 4294901760, %v11620_v41 }
 0x1d5   : > { %8383 = vmatprep.subr.mxu1 %v2120_v56  ;;  %v2147_v10 = vsub.f32 %v11655_v58, %v16370_v23  ;;  %8358 = vmatprep.subr.mxu0 %v11632_v62  ;;  %v2022_v56 = vand.u32 4294901760, %v2021_v49  ;;  %v1934_v27 = vand.u32 4294901760, %v1933_v33  ;;  %v15775_v53 = vand.u32 4294901760, %v11681_v4 }
 0x1d6   : > { %8384 = vmatpush3.msra.mxu1 %v2008_v8  ;;  %v2035_v43 = vsub.f32 %v11620_v41, %v16371_v18  ;;  %8359 = vmatpush3.msra.mxu0 %v11643_v52  ;;  %v2141_v8 = vand.u32 4294901760, %v2140_v0  ;;  %v16372_v26 = vand.u32 4294901760, %v11669_v63  ;;  %v16373_v33 = vand.u32 4294901760, %v11673_v57 }
 0x1d7   : > { %8385 = vmatprep.subr.mxu1 %v2127_v16  ;;  %8360 = vmatprep.subr.mxu0 %v11649_v3  ;;  %v2029_v16 = vand.u32 4294901760, %v2028_v12  ;;  %v2148_v18 = vand.u32 4294901760, %v2147_v10  ;;  %v2161_v0 = vsub.f32 %v11688_v11, %v15776_v15  ;;  %v16391_v15 = vld [vmem:[#allocation45_spill] sm:$0xff] }
 0x1d8   : > { %8386 = vmatpush3.msra.mxu1 %v2015_v6  ;;  %v2154_v23 = vsub.f32 %v11669_v63, %v16372_v26  ;;  %v2042_v49 = vsub.f32 %v11673_v57, %v16373_v33  ;;  %8361 = vmatpush3.msra.mxu0 %v11651_v39  ;;  %v2036_v6 = vand.u32 4294901760, %v2035_v43  ;;  %v16375_v43 = vld [vmem:[#allocation43_spill] sm:$0xff]  ;;  %v16377_v26 = vld [vmem:[#allocation40_spill] sm:$0xff] }
 0x1d9   : > { %8387 = vmatprep.subr.mxu1 %v2134_v29  ;;  %1929 = vmatprep.mubr.f32.mxu0 %v1928_v28  ;;  %v2049_v29 = vsub.f32 %v11681_v4, %v15775_v53  ;;  %v2162_v10 = vand.u32 4294901760, %v2161_v0  ;;  %v16380_v33 = vld [vmem:[#allocation47_spill] sm:$0xff]  ;;  %v16390_v53 = vld [vmem:[#allocation44_spill] sm:$0xff] }
 0x1da   : > { %8388 = vmatpush3.msra.mxu1 %v2022_v56  ;;  %1935 = vmatmul.mubr.f32.vlgmr.msra.gmra.mxu0 %v1934_v27  ;;  %v2155_v12 = vand.u32 4294901760, %v2154_v23  ;;  %v2043_v28 = vand.u32 4294901760, %v2042_v49  ;;  %v16374_v27 = vld [vmem:[#allocation30_spill] sm:$0xff]  ;;  %v16378_v23 = vld [vmem:[#allocation31_spill] sm:$0xff]  ;;  %v16381_v49 = vld [vmem:[#allocation32_spill] sm:$0xff] }
 0x1db   : > { %8389 = vmatprep.subr.mxu1 %v2141_v8  ;;  %8400 = vmatprep.subr.mxu0 %v11270_v22  ;;  %v2050_v56 = vand.u32 4294901760, %v2049_v29  ;;  %v16376_v8 = vld [vmem:[#allocation29_spill] sm:$0xff]  ;;  %v16383_v0 = vld [vmem:[#allocation35_spill] sm:$0xff]  ;;  %v16385_v29 = vld [vmem:[#allocation34_spill] sm:$0xff] }
 0x1dc   : > { %8390 = vmatpush3.msra.mxu1 %v2029_v16  ;;  %8401 = vmatpush3.msra.mxu0 %v11265_v21  ;;  %v16379_v16 = vld [vmem:[#allocation46_spill] sm:$0xff] }
 0x1dd   : > { %8391 = vmatprep.subr.mxu1 %v2148_v18  ;;  %8402 = vmatprep.subr.mxu0 %v11293_v25  ;;  %v16382_v18 = vld [vmem:[#allocation33_spill] sm:$0xff] }
 0x1de   : > { %8392 = vmatpush3.msra.mxu1 %v2036_v6  ;;  %8403 = vmatpush3.msra.mxu0 %v11276_v14  ;;  %v16384_v6 = vld [vmem:[#allocation48_spill] sm:$0xff] }
 0x1df   : > { %8393 = vmatprep.subr.mxu1 %v2155_v12  ;;  %8404 = vmatprep.subr.mxu0 %v11302_v36  ;;  %v16386_v12 = vld [vmem:[#allocation37_spill] sm:$0xff] }
 0x1e0   : > { %8394 = vmatpush3.msra.mxu1 %v2043_v28  ;;  %8405 = vmatpush3.msra.mxu0 %v11288_v60  ;;  %v16387_v28 = vld [vmem:[#allocation36_spill] sm:$0xff] }
 0x1e1   : > { %8395 = vmatprep.subr.mxu1 %v2162_v10  ;;  %8406 = vmatprep.subr.mxu0 %v11355_v44  ;;  %v16388_v10 = vld [vmem:[#allocation38_spill] sm:$0xff] }
 0x1e2   : > { %8396 = vmatpush3.msra.mxu1 %v2050_v56  ;;  %2165 = vmatprep.mubr.f32.mxu1 %v11569_v38  ;;  %v16389_v56 = vld [vmem:[#allocation39_spill] sm:$0xff]  ;;  %v16393_v38 = vld [vmem:[#allocation50_spill] sm:$0xff] }
 0x1e3   : > { %8407 = vmatpush3.msra.mxu0 %v11315_v42  ;;  %2167 = vmatmul.mubr.f32.vlgmr.msra.gmra.mxu1 %v11580_v34  ;;  %v16392_v34 = vld [vmem:[#allocation51_spill] sm:$0xff] }
 0x1e4   : > { %8408 = vmatprep.subr.mxu0 %v11369_v24  ;;  %8435 = vmatprep.subr.mxu1 %v11238_v13 }
 0x1e5   : > { %8409 = vmatpush3.msra.mxu0 %v11361_v17  ;;  %8436 = vmatpush3.msra.mxu1 %v11240_v50 }
 0x1e6   : > { %8410 = vmatprep.subr.mxu0 %v11399_v7  ;;  %8437 = vmatprep.subr.mxu1 %v11256_v55 }
 0x1e7   : > { %8411 = vmatpush3.msra.mxu0 %v11380_v20  ;;  %8438 = vmatpush3.msra.mxu1 %v11247_v1 }
 0x1e8   : > { %8412 = vmatprep.subr.mxu0 %v11433_v37  ;;  %8439 = vmatprep.subr.mxu1 %v16374_v27 }
 0x1e9   : > { %8413 = vmatpush3.msra.mxu0 %v16375_v43  ;;  %8440 = vmatpush3.msra.mxu1 %v16376_v8 }
 0x1ea   : > { %8414 = vmatprep.subr.mxu0 %v16377_v26  ;;  %8441 = vmatprep.subr.mxu1 %v16378_v23 }
 0x1eb   : > { %8415 = vmatpush3.msra.mxu0 %v16379_v16  ;;  %8442 = vmatpush3.msra.mxu1 %v16380_v33 }
 0x1ec   : > { %8416 = vmatprep.subr.mxu0 %v11502_v46  ;;  %8443 = vmatprep.subr.mxu1 %v16381_v49 }
 0x1ed   : > { %8417 = vmatpush3.msra.mxu0 %v11492_v40  ;;  %8444 = vmatpush3.msra.mxu1 %v16382_v18 }
 0x1ee   : > { %8418 = vmatprep.subr.mxu0 %v11551_v47  ;;  %8445 = vmatprep.subr.mxu1 %v16383_v0 }
 0x1ef   : > { %8419 = vmatpush3.msra.mxu0 %v16384_v6  ;;  %8446 = vmatpush3.msra.mxu1 %v16385_v29 }
 0x1f0   : > { %8420 = vmatprep.subr.mxu0 %v11578_v61  ;;  %8447 = vmatprep.subr.mxu1 %v16386_v12 }
 0x1f1   : > { %8421 = vmatpush3.msra.mxu0 %v11533_v19  ;;  %8448 = vmatpush3.msra.mxu1 %v16387_v28 }
 0x1f2   : > { %8422 = vmatprep.subr.mxu0 %v11601_v48  ;;  %8449 = vmatprep.subr.mxu1 %v16388_v10 }
 0x1f3   : > { %8423 = vmatpush3.msra.mxu0 %v11545_v54  ;;  %8450 = vmatpush3.msra.mxu1 %v16389_v56  ;;  %v16394_v54 = vld [vmem:[#allocation42_spill] sm:$0xff] }
 0x1f4   : > { %8424 = vmatprep.subr.mxu0 %v11636_v45  ;;  %8451 = vmatprep.subr.mxu1 %v16390_v53 }
 0x1f5   : > { %8425 = vmatpush3.msra.mxu0 %v11609_v59  ;;  %8452 = vmatpush3.msra.mxu1 %v16391_v15 }
 0x1f6   : > { %8426 = vmatprep.subr.mxu0 %v11655_v58  ;;  %8453 = vmatprep.subr.mxu1 %v16392_v34 }
 0x1f7   : > { %8427 = vmatpush3.msra.mxu0 %v11620_v41  ;;  %8454 = vmatpush3.msra.mxu1 %v16393_v38 }
 0x1f8   : > { %8428 = vmatprep.subr.mxu0 %v11669_v63  ;;  %8455 = vmatprep.subr.mxu1 %v16394_v54  ;;  %v16395_v54 = vand.u32 4294901760, %v11270_v22  ;;  %v16400_v22 = vand.u32 4294901760, %v11302_v36  ;;  %v16405_v36 = vand.u32 4294901760, %v11626_v31 }
 0x1f9   : > { %8429 = vmatpush3.msra.mxu0 %v11673_v57  ;;  %8456 = vmatpush3.msra.mxu1 %v11485_v9  ;;  %v16396_v9 = vand.u32 4294901760, %v11265_v21  ;;  %v16401_v21 = vand.u32 4294901760, %v11288_v60  ;;  %v16406_v60 = vand.u32 4294901760, %v11369_v24  ;;  %v16410_v24 = vand.u32 4294901760, %v11433_v37 }
 0x1fa   : > { %8430 = vmatprep.subr.mxu0 %v11688_v11  ;;  %8457 = vmatprep.subr.mxu1 %v11519_v2  ;;  %v16397_v11 = vld [vmem:[#allocation55_spill] sm:$0xff] }
 0x1fb   : > { %8431 = vmatpush3.msra.mxu0 %v11681_v4  ;;  %2302 = vmatprep.mubr.f32.mxu0 %v11613_v51  ;;  %v16398_v4 = vand.u32 4294901760, %v11293_v25  ;;  %v16402_v25 = vand.u32 4294901760, %v11355_v44  ;;  %v16407_v44 = vand.u32 4294901760, %v11361_v17  ;;  %v805_v17 = vld [vmem:[%s10552_s15 + $0x2f8] sm:$0xff] }
 0x1fc   : > { %8458 = vmatpush3.msra.mxu1 %v11499_v35  ;;  %2305 = vmatmul.mubr.f32.vlgmr.msra.gmra.mxu0 %v11626_v31  ;;  %v16399_v35 = vand.u32 4294901760, %v11276_v14  ;;  %v16403_v14 = vand.u32 4294901760, %v11613_v51  ;;  %v16415_v51 = vand.u32 4294901760, %v11492_v40  ;;  %v11857_v31 = vand.u32 4294901760, %v805_v17 }
 0x1fd   : > { %8459 = vmatprep.subr.mxu1 %v11587_v30  ;;  %8470 = vmatprep.subr.mxu0 %v16395_v54  ;;  %v804_v54 = vld [vmem:[%s10552_s15 + $0x2f0] sm:$0xff] }
 0x1fe   : > { %8460 = vmatpush3.msra.mxu1 %v11566_v32  ;;  %8471 = vmatpush3.msra.mxu0 %v16396_v9  ;;  %v16404_v9 = vand.u32 4294901760, %v11315_v42  ;;  %v16409_v42 = vand.u32 4294901760, %v11380_v20  ;;  %v788_v20 = vld [vmem:[%s10552_s15 + $0x270] sm:$0xff] }
 0x1ff   : > { %8461 = vmatprep.subr.mxu1 %v16397_v11  ;;  %8472 = vmatprep.subr.mxu0 %v16398_v4  ;;  %v803_v4 = vld [vmem:[%s10552_s15 + $0x2e8] sm:$0xff] }
 0x200   : > { %8462 = vmatpush3.msra.mxu1 %v11575_v5  ;;  %8473 = vmatpush3.msra.mxu0 %v16399_v35  ;;  %v16408_v35 = vand.u32 4294901760, %v11399_v7  ;;  %v16414_v7 = vand.u32 4294901760, %v11502_v46  ;;  %v11863_v46 = vand.u32 4294901760, %v788_v20 }
 0x201   : > { %8463 = vmatprep.subr.mxu1 %v11632_v62  ;;  %8474 = vmatprep.subr.mxu0 %v16400_v22  ;;  %v801_v22 = vld [vmem:[%s10552_s15 + $0x2d8] sm:$0xff] }
 0x202   : > { %8464 = vmatpush3.msra.mxu1 %v11643_v52  ;;  %8475 = vmatpush3.msra.mxu0 %v16401_v21 }
 0x203   : > { %8465 = vmatprep.subr.mxu1 %v11649_v3  ;;  %8476 = vmatprep.subr.mxu0 %v16402_v25 }
 0x204   : > { %8466 = vmatpush3.msra.mxu1 %v11651_v39  ;;  %2409 = vmatprep.mubr.f32.mxu1 %v16403_v14 }
 0x205   : > { %8477 = vmatpush3.msra.mxu0 %v16404_v9  ;;  %2413 = vmatmul.mubr.f32.vlgmr.msra.gmra.mxu1 %v16405_v36  ;;  %v16428_v9 = vand.u32 4294901760, %v11609_v59 }
 0x206   : > { %8478 = vmatprep.subr.mxu0 %v16406_v60  ;;  %8505 = vmatprep.subr.mxu1 %v11238_v13  ;;  %v789_v13 = vld [vmem:[%s10552_s15 + $0x278] sm:$0xff]  ;;  %v800_v60 = vld [vmem:[%s10552_s15 + $0x2d0] sm:$0xff] }
 0x207   : > { %8479 = vmatpush3.msra.mxu0 %v16407_v44  ;;  %8506 = vmatpush3.msra.mxu1 %v11240_v50  ;;  %v16411_v50 = vand.u32 4294901760, %v16375_v43  ;;  %v11847_v37 = vand.u32 4294901760, %v789_v13  ;;  %v787_v43 = vld [vmem:[%s10552_s15 + $0x268] sm:$0xff]  ;;  %v16430_v44 = vand.u32 4294901760, %v11655_v58 }
 0x208   : > { %8480 = vmatprep.subr.mxu0 %v16408_v35  ;;  %8507 = vmatprep.subr.mxu1 %v11256_v55  ;;  %v16412_v55 = vand.u32 4294901760, %v16377_v26  ;;  %v11872_v26 = vand.u32 4294901760, %v804_v54 }
 0x209   : > { %8481 = vmatpush3.msra.mxu0 %v16409_v42  ;;  %8508 = vmatpush3.msra.mxu1 %v11247_v1  ;;  %v16413_v1 = vand.u32 4294901760, %v16379_v16  ;;  %v11870_v40 = vsub.f32 %v789_v13, %v11847_v37  ;;  %v11878_v16 = vand.u32 4294901760, %v803_v4  ;;  %v16432_v42 = vand.u32 4294901760, %v11620_v41 }
 0x20a   : > { %8482 = vmatprep.subr.mxu0 %v16410_v24  ;;  %8509 = vmatprep.subr.mxu1 %v16374_v27  ;;  %v16416_v27 = vand.u32 4294901760, %v11551_v47  ;;  %v16418_v47 = vand.u32 4294901760, %v11578_v61  ;;  %v11893_v61 = vsub.f32 %v788_v20, %v11863_v46  ;;  %v783_v24 = vld [vmem:[%s10552_s15 + $0x248] sm:$0xff]  ;;  %v16433_v13 = vand.u32 4294901760, %v11669_v63  ;;  %v782_v20 = vld [vmem:[%s10552_s15 + $0x240] sm:$0xff] }
 0x20b   : > { %8483 = vmatpush3.msra.mxu0 %v16411_v50  ;;  %8510 = vmatpush3.msra.mxu1 %v16376_v8  ;;  %v16417_v8 = vand.u32 4294901760, %v16384_v6  ;;  %16419 = vst [vmem:[#allocation30_spill] sm:$0xff] %v11878_v16  ;;  %v16422_v6 = vand.u32 4294901760, %v11601_v48  ;;  %v15792_v21 = vand.u32 4294901760, %v11870_v40  ;;  %v11904_v48 = vsub.f32 %v804_v54, %v11872_v26  ;;  %v16434_v50 = vld [vmem:[#allocation42_spill] sm:$0xff]  ;;  %v16438_v54 = vld [vmem:[#allocation41_spill] sm:$0xff] }
 0x20c   : > { %8484 = vmatprep.subr.mxu0 %v16412_v55  ;;  %8511 = vmatprep.subr.mxu1 %v16378_v23  ;;  %v786_v23 = vld [vmem:[%s10552_s15 + $0x260] sm:$0xff]  ;;  %v11912_v14 = vsub.f32 %v803_v4, %v11878_v16  ;;  %v15789_v35 = vand.u32 4294901760, %v11893_v61  ;;  %v11947_v55 = vand.u32 4294901760, %v800_v60 }
 0x20d   : > { %8485 = vmatpush3.msra.mxu0 %v16413_v1  ;;  %8512 = vmatpush3.msra.mxu1 %v16380_v33  ;;  %v16420_v33 = vand.u32 4294901760, %v11533_v19  ;;  %v785_v19 = vld [vmem:[%s10552_s15 + $0x258] sm:$0xff]  ;;  %v11940_v58 = vsub.f32 %v11870_v40, %v15792_v21 }
 0x20e   : > { %8486 = vmatprep.subr.mxu0 %v16414_v7  ;;  %8513 = vmatprep.subr.mxu1 %v16381_v49  ;;  %v11883_v49 = vand.u32 4294901760, %v787_v43  ;;  %16435 = vst [vmem:[#allocation47_spill] sm:$0xff] %v11947_v55  ;;  %v16437_v7 = vand.u32 4294901760, %v11673_v57  ;;  %v11975_v57 = vsub.f32 %v11893_v61, %v15789_v35 }
 0x20f   : > { %8487 = vmatpush3.msra.mxu0 %v16415_v51  ;;  %8514 = vmatpush3.msra.mxu1 %v16382_v18  ;;  %v802_v18 = vld [vmem:[%s10552_s15 + $0x2e0] sm:$0xff] }
 0x210   : > { %8488 = vmatprep.subr.mxu0 %v16416_v27  ;;  %8515 = vmatprep.subr.mxu1 %v16383_v0  ;;  %16421 = vst [vmem:[#allocation43_spill] sm:$0xff] %v11883_v49  ;;  %v11887_v0 = vsub.f32 %v805_v17, %v11857_v31  ;;  %v11909_v25 = vand.u32 4294901760, %v802_v18  ;;  %v799_v17 = vld [vmem:[%s10552_s15 + $0x2c8] sm:$0xff]  ;;  %v16439_v27 = vld [vmem:[#allocation57_spill] sm:$0xff] }
 0x211   : > { %8489 = vmatpush3.msra.mxu0 %v16417_v8  ;;  %8516 = vmatpush3.msra.mxu1 %v16385_v29  ;;  %v11895_v29 = vand.u32 4294901760, %v786_v23  ;;  %v11977_v8 = vand.u32 4294901760, %v783_v24 }
 0x212   : > { %8490 = vmatprep.subr.mxu0 %v16418_v47  ;;  %8517 = vmatprep.subr.mxu1 %v16386_v12  ;;  %v16424_v12 = vld [vmem:[#allocation49_spill] sm:$0xff]  ;;  %16427 = vst [vmem:[#allocation40_spill] sm:$0xff] %v11909_v25  ;;  %v15793_v36 = vand.u32 4294901760, %v11887_v0  ;;  %v11954_v1 = vsub.f32 %v802_v18, %v11909_v25  ;;  %v16442_v18 = vld [vmem:[#allocation56_spill] sm:$0xff] }
 0x213   : > { %8491 = vmatpush3.msra.mxu0 %v16420_v33  ;;  %8518 = vmatpush3.msra.mxu1 %v16387_v28  ;;  %16423 = vst [vmem:[#allocation29_spill] sm:$0xff] %v11895_v29  ;;  %v16425_v28 = vand.u32 4294901760, %v16424_v12  ;;  %v11929_v59 = vsub.f32 %v786_v23, %v11895_v29  ;;  %16441 = vst [vmem:[#allocation33_spill] sm:$0xff] %v11977_v8  ;;  %v798_v23 = vld [vmem:[%s10552_s15 + $0x2c0] sm:$0xff] }
 0x214   : > { %8492 = vmatprep.subr.mxu0 %v16422_v6  ;;  %8519 = vmatprep.subr.mxu1 %v16388_v10  ;;  %v16426_v10 = vand.u32 4294901760, %v11636_v45  ;;  %v11921_v45 = vand.u32 4294901760, %v785_v19  ;;  %v11963_v63 = vsub.f32 %v11887_v0, %v15793_v36  ;;  %v16443_v6 = vand.u32 4294901760, %v16442_v18  ;;  %v797_v18 = vld [vmem:[%s10552_s15 + $0x2b8] sm:$0xff] }
 0x215   : > { %8493 = vmatpush3.msra.mxu0 %v16425_v28  ;;  %8520 = vmatpush3.msra.mxu1 %v16389_v56  ;;  %v11918_v56 = vsub.f32 %v787_v43, %v11883_v49  ;;  %v16440_v43 = vand.u32 4294901760, %v16439_v27  ;;  %v15788_v47 = vand.u32 4294901760, %v11929_v59  ;;  %v11993_v28 = vand.u32 4294901760, %v799_v17 }
 0x216   : > { %8494 = vmatprep.subr.mxu0 %v16426_v10  ;;  %8521 = vmatprep.subr.mxu1 %v16390_v53  ;;  %16429 = vst [vmem:[#allocation31_spill] sm:$0xff] %v11921_v45  ;;  %v784_v53 = vld [vmem:[%s10552_s15 + $0x250] sm:$0xff]  ;;  %v11966_v51 = vsub.f32 %v785_v19, %v11921_v45  ;;  %v11995_v10 = vand.u32 4294901760, %v782_v20  ;;  %v12020_v27 = vand.u32 4294901760, %v798_v23 }
 0x217   : > { %8495 = vmatpush3.msra.mxu0 %v16428_v9  ;;  %8522 = vmatpush3.msra.mxu1 %v16391_v15  ;;  %v11931_v15 = vand.u32 4294901760, %v801_v22  ;;  %v11949_v41 = vand.u32 4294901760, %v784_v53  ;;  %v15786_v4 = vand.u32 4294901760, %v11918_v56  ;;  %v16444_v19 = vld [vmem:[#allocation53_spill] sm:$0xff]  ;;  %16445 = vst [vmem:[#allocation35_spill] sm:$0xff] %v11993_v28  ;;  %v16447_v9 = vld [vmem:[#allocation52_spill] sm:$0xff] }
 0x218   : > { %8496 = vmatprep.subr.mxu0 %v16430_v44  ;;  %8523 = vmatprep.subr.mxu1 %v16392_v34  ;;  %v15791_v34 = vand.u32 4294901760, %v11904_v48  ;;  %16446 = vst [vmem:[#allocation48_spill] sm:$0xff] %v11995_v10  ;;  %16449 = vst [vmem:[#allocation34_spill] sm:$0xff] %v12020_v27  ;;  %v12071_v21 = vsub.f32 %v798_v23, %v12020_v27 }
 0x219   : > { %16431 = vst [vmem:[#allocation46_spill] sm:$0xff] %v11931_v15  ;;  %8497 = vmatpush3.msra.mxu0 %v16432_v42  ;;  %8524 = vmatpush3.msra.mxu1 %v16393_v38  ;;  %16436 = vst [vmem:[#allocation32_spill] sm:$0xff] %v11949_v41  ;;  %v15787_v38 = vand.u32 4294901760, %v11912_v14  ;;  %v11982_v33 = vsub.f32 %v801_v22, %v11931_v15  ;;  %v16448_v22 = vld [vmem:[#allocation54_spill] sm:$0xff]  ;;  %v12000_v44 = vsub.f32 %v784_v53, %v11949_v41 }
 0x21a   : > { %8498 = vmatprep.subr.mxu0 %v16433_v13  ;;  %8525 = vmatprep.subr.mxu1 %v16434_v50  ;;  %v11991_v12 = vsub.f32 %v11904_v48, %v15791_v34  ;;  %v15790_v13 = vand.u32 4294901760, %v11954_v1  ;;  %v781_v50 = vld [vmem:[%s10552_s15 + $0x238] sm:$0xff]  ;;  %v12018_v53 = vsub.f32 %v11918_v56, %v15786_v4  ;;  %v780_v4 = vld [vmem:[%s10552_s15 + $0x230] sm:$0xff]  ;;  %v779_v34 = vld [vmem:[%s10552_s15 + $0x228] sm:$0xff] }
 0x21b   : > { %8499 = vmatpush3.msra.mxu0 %v16437_v7  ;;  %8526 = vmatpush3.msra.mxu1 %v16438_v54  ;;  %v12005_v42 = vsub.f32 %v11912_v14, %v15787_v38  ;;  %v12010_v7 = vsub.f32 %v800_v60, %v11947_v55  ;;  %v2919_v54 = vand.u32 4294901760, %v11963_v63  ;;  %v12027_v60 = vsub.f32 %v783_v24, %v11977_v8 }
 0x21c   : > { %8500 = vmatprep.subr.mxu0 %v16440_v43  ;;  %8527 = vmatprep.subr.mxu1 %v11519_v2  ;;  %v15794_v43 = vand.u32 4294901760, %v11966_v51  ;;  %v12032_v63 = vsub.f32 %v11929_v59, %v15788_v47  ;;  %v12042_v24 = vand.u32 4294901760, %v781_v50  ;;  %v12046_v38 = vsub.f32 %v799_v17, %v11993_v28 }
 0x21d   : > { %8501 = vmatpush3.msra.mxu0 %v16443_v6  ;;  %2579 = vmatprep.mubr.f32.mxu0 %v16444_v19  ;;  %16450 = vst [vmem:[#allocation37_spill] sm:$0xff] %v12027_v60  ;;  %v15795_v6 = vand.u32 4294901760, %v11982_v33  ;;  %v15796_v47 = vand.u32 4294901760, %v12010_v7  ;;  %v15797_v35 = vand.u32 4294901760, %v12000_v44  ;;  %v12062_v17 = vand.u32 4294901760, %v797_v18 }
 0x21e   : > { %8528 = vmatpush3.msra.mxu1 %v16447_v9  ;;  %2581 = vmatmul.mubr.f32.vlgmr.msra.gmra.mxu0 %v16448_v22  ;;  %v12040_v9 = vsub.f32 %v782_v20, %v11995_v10  ;;  %16452 = vst [vmem:[#allocation38_spill] sm:$0xff] %v12042_v24  ;;  %v796_v20 = vld [vmem:[%s10552_s15 + $0x2b0] sm:$0xff] }
 0x21f   : > { %8529 = vmatprep.subr.mxu1 %v11587_v30  ;;  %8540 = vmatprep.subr.mxu0 %v11857_v31  ;;  %16453 = vst [vmem:[#allocation39_spill] sm:$0xff] %v12062_v17  ;;  %v12079_v36 = vsub.f32 %v11982_v33, %v15795_v6  ;;  %v778_v30 = vld [vmem:[%s10552_s15 + $0x220] sm:$0xff]  ;;  %v12091_v23 = vand.u32 4294901760, %v796_v20 }
 0x220   : > { %8530 = vmatpush3.msra.mxu1 %v11566_v32  ;;  %8541 = vmatpush3.msra.mxu0 %v11847_v37  ;;  %v2926_v32 = vand.u32 4294901760, %v11991_v12  ;;  %16451 = vst [vmem:[#allocation36_spill] sm:$0xff] %v12040_v9  ;;  %v12054_v12 = vsub.f32 %v11954_v1, %v15790_v13  ;;  %v12067_v13 = vsub.f32 %v11966_v51, %v15794_v43  ;;  %v795_v43 = vld [vmem:[%s10552_s15 + $0x2a8] sm:$0xff]  ;;  %v794_v6 = vld [vmem:[%s10552_s15 + $0x2a0] sm:$0xff] }
 0x221   : > { %8531 = vmatprep.subr.mxu1 %v16397_v11  ;;  %8542 = vmatprep.subr.mxu0 %v11872_v26  ;;  %16456 = vst [vmem:[#allocation51_spill] sm:$0xff] %v12091_v23 }
 0x222   : > { %8532 = vmatpush3.msra.mxu1 %v11575_v5  ;;  %8543 = vmatpush3.msra.mxu0 %v11863_v46  ;;  %v12081_v5 = vand.u32 4294901760, %v780_v4  ;;  %v2940_v2 = vand.u32 4294901760, %v12054_v12  ;;  %v777_v12 = vld [vmem:[%s10552_s15 + $0x218] sm:$0xff] }
 0x223   : > { %8533 = vmatprep.subr.mxu1 %v11632_v62  ;;  %8544 = vmatprep.subr.mxu0 %v11878_v16  ;;  %v12108_v62 = vand.u32 4294901760, %v779_v34  ;;  %v12159_v16 = vsub.f32 %v796_v20, %v12091_v23  ;;  %v16468_v20 = vand.u32 4294901760, %v12005_v42 }
 0x224   : > { %8534 = vmatpush3.msra.mxu1 %v11643_v52  ;;  %8545 = vmatpush3.msra.mxu0 %v11883_v49  ;;  %16454 = vst [vmem:[#allocation44_spill] sm:$0xff] %v12081_v5  ;;  %v12089_v52 = vsub.f32 %v781_v50, %v12042_v24  ;;  %v12106_v50 = vsub.f32 %v12000_v44, %v15797_v35  ;;  %v2947_v35 = vand.u32 4294901760, %v12079_v36  ;;  %v16463_v36 = vand.u32 4294901760, %v12046_v38 }
 0x225   : > { %8535 = vmatprep.subr.mxu1 %v11649_v3  ;;  %8546 = vmatprep.subr.mxu0 %v11909_v25  ;;  %v12101_v3 = vsub.f32 %v12010_v7, %v15796_v47  ;;  %16457 = vst [vmem:[#allocation50_spill] sm:$0xff] %v12108_v62  ;;  %v12117_v47 = vand.u32 4294901760, %v778_v30  ;;  %v12122_v11 = vsub.f32 %v780_v4, %v12081_v5  ;;  %v699_v25 = vld [vmem:[%s10999_s13 + $0x28] sm:$0xff]  ;;  %v16466_v49 = vand.u32 4294901760, %v12071_v21 }
 0x226   : > { %16455 = vst [vmem:[#allocation45_spill] sm:$0xff] %v12089_v52  ;;  %8536 = vmatpush3.msra.mxu1 %v11651_v39  ;;  %2683 = vmatprep.mubr.f32.mxu1 %v16444_v19  ;;  %v12114_v19 = vand.u32 4294901760, %v795_v43  ;;  %v12130_v39 = vsub.f32 %v797_v18, %v12062_v17  ;;  %v12140_v4 = vsub.f32 %v12046_v38, %v16463_v36 }
 0x227   : > { %8547 = vmatpush3.msra.mxu0 %v11895_v29  ;;  %2685 = vmatmul.mubr.f32.vlgmr.msra.gmra.mxu1 %v16448_v22  ;;  %16459 = vst [vmem:[#allocation49_spill] sm:$0xff] %v12117_v47  ;;  %v16460_v29 = vand.u32 4294901760, %v12027_v60  ;;  %v12155_v36 = vsub.f32 %v779_v34, %v12108_v62  ;;  %v776_v34 = vld [vmem:[%s10552_s15 + $0x210] sm:$0xff] }
 0x228   : > { %16458 = vst [vmem:[#allocation55_spill] sm:$0xff] %v12114_v19  ;;  %8548 = vmatprep.subr.mxu0 %v11931_v15  ;;  %8575 = vmatprep.subr.mxu1 %v2919_v54  ;;  %16461 = vst [vmem:[#allocation42_spill] sm:$0xff] %v12130_v39  ;;  %v16462_v54 = vand.u32 4294901760, %v11940_v58  ;;  %v12142_v15 = vand.u32 4294901760, %v794_v6  ;;  %v2954_v58 = vand.u32 4294901760, %v12101_v3  ;;  %v12170_v3 = vsub.f32 %v778_v30, %v12117_v47 }
 0x229   : > { %v12127_v22 = vsub.f32 %v12027_v60, %v16460_v29  ;;  %8549 = vmatpush3.msra.mxu0 %v11921_v45  ;;  %v16464_v29 = vand.u32 4294901760, %v12040_v9  ;;  %v698_v60 = vld [vmem:[%s10999_s13 + $0x20] sm:$0xff]  ;;  %v793_v45 = vld [vmem:[%s10552_s15 + $0x298] sm:$0xff]  ;;  %v12184_v30 = vsub.f32 %v795_v43, %v12114_v19 }
 0x22a   : > { %8576 = vmatpush3.msra.mxu1 %v16462_v54  ;;  %8550 = vmatprep.subr.mxu0 %v11947_v55  ;;  %v2842_v54 = vand.u32 4294901760, %v12106_v50  ;;  %v12172_v50 = vand.u32 4294901760, %v777_v12  ;;  %v12175_v55 = vand.u32 4294901760, %v699_v25  ;;  %v791_v43 = vld [vmem:[%s10552_s15 + $0x288] sm:$0xff] }
 0x22b   : > { %v12147_v18 = vsub.f32 %v12040_v9, %v16464_v29  ;;  %8577 = vmatprep.subr.mxu1 %v2926_v32  ;;  %8551 = vmatpush3.msra.mxu0 %v11949_v41  ;;  %v16465_v29 = vand.u32 4294901760, %v11975_v57  ;;  %v12167_v32 = vsub.f32 %v12071_v21, %v16466_v49  ;;  %v2849_v57 = vand.u32 4294901760, %v12127_v22  ;;  %v792_v49 = vld [vmem:[%s10552_s15 + $0x290] sm:$0xff] }
 0x22c   : > { %16467 = vst [vmem:[#allocation41_spill] sm:$0xff] %v12175_v55  ;;  %8552 = vmatprep.subr.mxu0 %v11993_v28  ;;  %v12186_v41 = vand.u32 4294901760, %v698_v60  ;;  %v16470_v9 = vand.u32 4294901760, %v12018_v53  ;;  %v2961_v28 = vand.u32 4294901760, %v12140_v4  ;;  %v16471_v22 = vand.u32 4294901760, %v12089_v52  ;;  %v775_v4 = vld [vmem:[%s10552_s15 + $0x208] sm:$0xff]  ;;  %3027 = vmatprep.mubr.f32.mxu1 %v12175_v55 }
 0x22d   : > { %8578 = vmatpush3.msra.mxu1 %v16465_v29  ;;  %8553 = vmatpush3.msra.mxu0 %v11977_v8  ;;  %v2856_v42 = vand.u32 4294901760, %v12147_v18  ;;  %v12203_v53 = vand.u32 4294901760, %v776_v34  ;;  %v12208_v18 = vsub.f32 %v794_v6, %v12142_v15  ;;  %v12217_v8 = vand.u32 4294901760, %v792_v49 }
 0x22e   : > { %8579 = vmatprep.subr.mxu1 %v16468_v20  ;;  %16469 = vst [vmem:[#allocation57_spill] sm:$0xff] %v12186_v41  ;;  %v12193_v20 = vand.u32 4294901760, %v793_v45  ;;  %v12198_v29 = vsub.f32 %v12089_v52, %v16471_v22  ;;  %8554 = vmatprep.subr.mxu0 %v12020_v27  ;;  %v16472_v22 = vand.u32 4294901760, %v12032_v63  ;;  %v2968_v27 = vand.u32 4294901760, %v12167_v32  ;;  %v790_v32 = vld [vmem:[%s10552_s15 + $0x280] sm:$0xff] }
 0x22f   : > { %8580 = vmatpush3.msra.mxu1 %v16470_v9  ;;  %8555 = vmatpush3.msra.mxu0 %v11995_v10  ;;  %16473 = vst [vmem:[#allocation56_spill] sm:$0xff] %v12217_v8  ;;  %v12220_v52 = vsub.f32 %v699_v25, %v12175_v55  ;;  %v16474_v6 = vand.u32 4294901760, %v12130_v39  ;;  %v12226_v10 = vand.u32 4294901760, %v791_v43  ;;  %v16475_v25 = vand.u32 4294901760, %v12067_v13  ;;  %v16511_v55 = vld [vmem:[#allocation55_spill] sm:$0xff] }
 0x230   : > { %8581 = vmatprep.subr.mxu1 %v2940_v2  ;;  %v12215_v2 = vsub.f32 %v777_v12, %v12172_v50  ;;  %8556 = vmatprep.subr.mxu0 %v12062_v17  ;;  %v12232_v12 = vsub.f32 %v698_v60, %v12186_v41  ;;  %v12238_v17 = vand.u32 4294901760, %v775_v4  ;;  %v16476_v60 = vand.u32 4294901760, %v12159_v16 }
 0x231   : > { %8582 = vmatpush3.msra.mxu1 %v16472_v22  ;;  %v2974_v9 = vsub.f32 %v12130_v39, %v16474_v6  ;;  %v774_v22 = vld [vmem:[%s10552_s15 + $0x200] sm:$0xff]  ;;  %8557 = vmatpush3.msra.mxu0 %v12042_v24  ;;  %v12242_v39 = vsub.f32 %v793_v45, %v12193_v20  ;;  %v12249_v24 = vsub.f32 %v776_v34, %v12203_v53  ;;  %v16477_v13 = vand.u32 4294901760, %v12122_v11 }
 0x232   : > { %8583 = vmatprep.subr.mxu1 %v2947_v35  ;;  %v2863_v35 = vand.u32 4294901760, %v12198_v29  ;;  %8558 = vmatprep.subr.mxu0 %v12091_v23  ;;  %v2981_v63 = vsub.f32 %v12159_v16, %v16476_v60  ;;  %v12256_v45 = vand.u32 4294901760, %v790_v32  ;;  %v12258_v6 = vand.u32 4294901760, %v774_v22 }
 0x233   : > { %8584 = vmatpush3.msra.mxu1 %v16475_v25  ;;  %v2869_v29 = vsub.f32 %v12122_v11, %v16477_v13  ;;  %8559 = vmatpush3.msra.mxu0 %v12081_v5  ;;  %v12262_v60 = vsub.f32 %v792_v49, %v12217_v8  ;;  %v2975_v34 = vand.u32 4294901760, %v2974_v9  ;;  %v16478_v13 = vand.u32 4294901760, %v12184_v30 }
 0x234   : > { %8585 = vmatprep.subr.mxu1 %v2954_v58  ;;  %8560 = vmatprep.subr.mxu0 %v12114_v19  ;;  %v12272_v58 = vsub.f32 %v775_v4, %v12238_v17  ;;  %v16479_v49 = vand.u32 4294901760, %v12155_v36  ;;  %v12279_v9 = vsub.f32 %v791_v43, %v12226_v10  ;;  %v16480_v5 = vand.u32 4294901760, %v12208_v18 }
 0x235   : > { %8586 = vmatpush3.msra.mxu1 %v2842_v54  ;;  %v2988_v25 = vsub.f32 %v12184_v30, %v16478_v13  ;;  %8561 = vmatpush3.msra.mxu0 %v12108_v62  ;;  %v2982_v13 = vand.u32 4294901760, %v2981_v63  ;;  %v2870_v54 = vand.u32 4294901760, %v2869_v29  ;;  %v16482_v43 = vand.u32 4294901760, %v12220_v52 }
 0x236   : > { %8587 = vmatprep.subr.mxu1 %v2961_v28  ;;  %v2876_v19 = vsub.f32 %v12155_v36, %v16479_v49  ;;  %8562 = vmatprep.subr.mxu0 %v12142_v15  ;;  %v12288_v49 = vsub.f32 %v774_v22, %v12258_v6  ;;  %v12295_v63 = vsub.f32 %v790_v32, %v12256_v45  ;;  %v16484_v29 = vand.u32 4294901760, %v12170_v3 }
 0x237   : > { %8588 = vmatpush3.msra.mxu1 %v2849_v57  ;;  %v2995_v57 = vsub.f32 %v12208_v18, %v16480_v5  ;;  %8563 = vmatpush3.msra.mxu0 %v12117_v47  ;;  %v2789_v28 = vsub.f32 %v12220_v52, %v16482_v43  ;;  %v2989_v5 = vand.u32 4294901760, %v2988_v25  ;;  %v16485_v22 = vand.u32 4294901760, %v12232_v12 }
 0x238   : > { %8589 = vmatprep.subr.mxu1 %v2968_v27  ;;  %16481 = vst [vmem:[#allocation53_spill] sm:$0xff] %v12288_v49  ;;  %16483 = vst [vmem:[#allocation52_spill] sm:$0xff] %v12295_v63  ;;  %8564 = vmatprep.subr.mxu0 %v12193_v20  ;;  %v2877_v43 = vand.u32 4294901760, %v2876_v19  ;;  %v16486_v32 = vand.u32 4294901760, %v12242_v39  ;;  %v15843_v25 = vand.u32 4294901760, %v12295_v63  ;;  %v15842_v47 = vand.u32 4294901760, %v12288_v49 }
 0x239   : > { %8590 = vmatpush3.msra.mxu1 %v2856_v42  ;;  %v2883_v42 = vsub.f32 %v12170_v3, %v16484_v29  ;;  %v2795_v4 = vsub.f32 %v12232_v12, %v16485_v22  ;;  %8565 = vmatpush3.msra.mxu0 %v12172_v50  ;;  %v16487_v29 = vand.u32 4294901760, %v12215_v2  ;;  %v2790_v19 = vand.u32 4294901760, %v2789_v28 }
 0x23a   : > { %8591 = vmatprep.subr.mxu1 %v2975_v34  ;;  %v3002_v27 = vsub.f32 %v12242_v39, %v16486_v32  ;;  %8566 = vmatprep.subr.mxu0 %v12217_v8  ;;  %v2996_v34 = vand.u32 4294901760, %v2995_v57  ;;  %v16489_v8 = vand.u32 4294901760, %v12249_v24  ;;  %v16490_v28 = vand.u32 4294901760, %v12279_v9 }
 0x23b   : > { %8592 = vmatpush3.msra.mxu1 %v2863_v35  ;;  %v2890_v22 = vsub.f32 %v12215_v2, %v16487_v29  ;;  %8567 = vmatpush3.msra.mxu0 %v12203_v53  ;;  %v16488_v35 = vand.u32 4294901760, %v12262_v60  ;;  %v2796_v57 = vand.u32 4294901760, %v2795_v4  ;;  %v16491_v4 = vand.u32 4294901760, %v12272_v58 }
 0x23c   : > { %8593 = vmatprep.subr.mxu1 %v2982_v13  ;;  %8568 = vmatprep.subr.mxu0 %v12226_v10  ;;  %v2884_v13 = vand.u32 4294901760, %v2883_v42  ;;  %v2897_v29 = vsub.f32 %v12249_v24, %v16489_v8 }
 0x23d   : > { %8594 = vmatpush3.msra.mxu1 %v2870_v54  ;;  %v3009_v32 = vsub.f32 %v12262_v60, %v16488_v35  ;;  %8569 = vmatpush3.msra.mxu0 %v12238_v17  ;;  %v3003_v54 = vand.u32 4294901760, %v3002_v27  ;;  %v3016_v35 = vsub.f32 %v12279_v9, %v16490_v28  ;;  %v2904_v42 = vsub.f32 %v12272_v58, %v16491_v4  ;;  %v16495_v28 = vld [vmem:[#allocation40_spill] sm:$0xff]  ;;  %v16498_v4 = vld [vmem:[#allocation42_spill] sm:$0xff] }
 0x23e   : > { %8595 = vmatprep.subr.mxu1 %v2989_v5  ;;  %8570 = vmatprep.subr.mxu0 %v12256_v45  ;;  %v2891_v5 = vand.u32 4294901760, %v2890_v22  ;;  %v3023_v27 = vsub.f32 %v12295_v63, %v15843_v25  ;;  %v16509_v25 = vld [vmem:[#allocation38_spill] sm:$0xff] }
 0x23f   : > { %8596 = vmatpush3.msra.mxu1 %v2877_v43  ;;  %8571 = vmatpush3.msra.mxu0 %v12258_v6  ;;  %v3010_v8 = vand.u32 4294901760, %v3009_v32  ;;  %v2898_v43 = vand.u32 4294901760, %v2897_v29  ;;  %v3017_v22 = vand.u32 4294901760, %v3016_v35  ;;  %v16493_v29 = vld [vmem:[#allocation37_spill] sm:$0xff]  ;;  %v16496_v35 = vld [vmem:[#allocation36_spill] sm:$0xff] }
 0x240   : > { %8597 = vmatprep.subr.mxu1 %v2996_v34  ;;  %2791 = vmatprep.mubr.f32.mxu0 %v2790_v19  ;;  %v2911_v34 = vsub.f32 %v12288_v49, %v15842_v47  ;;  %v2905_v19 = vand.u32 4294901760, %v2904_v42  ;;  %v3024_v32 = vand.u32 4294901760, %v3023_v27  ;;  %v16499_v42 = vld [vmem:[#allocation46_spill] sm:$0xff]  ;;  %v16501_v27 = vld [vmem:[#allocation31_spill] sm:$0xff] }
 0x241   : > { %8598 = vmatpush3.msra.mxu1 %v2884_v13  ;;  %2797 = vmatmul.mubr.f32.vlgmr.msra.gmra.mxu0 %v2796_v57  ;;  %v16492_v57 = vld [vmem:[#allocation30_spill] sm:$0xff]  ;;  %v16508_v47 = vld [vmem:[#allocation39_spill] sm:$0xff] }
 0x242   : > { %8599 = vmatprep.subr.mxu1 %v3003_v54  ;;  %8610 = vmatprep.subr.mxu0 %v11887_v0  ;;  %v2912_v13 = vand.u32 4294901760, %v2911_v34  ;;  %v16494_v54 = vld [vmem:[#allocation43_spill] sm:$0xff]  ;;  %v16503_v34 = vld [vmem:[#allocation32_spill] sm:$0xff] }
 0x243   : > { %8600 = vmatpush3.msra.mxu1 %v2891_v5  ;;  %8611 = vmatpush3.msra.mxu0 %v11870_v40  ;;  %v16497_v5 = vld [vmem:[#allocation29_spill] sm:$0xff] }
 0x244   : > { %8601 = vmatprep.subr.mxu1 %v3010_v8  ;;  %8612 = vmatprep.subr.mxu0 %v11904_v48  ;;  %v16500_v8 = vld [vmem:[#allocation45_spill] sm:$0xff] }
 0x245   : > { %8602 = vmatpush3.msra.mxu1 %v2898_v43  ;;  %8613 = vmatpush3.msra.mxu0 %v11893_v61  ;;  %v16502_v43 = vld [vmem:[#allocation47_spill] sm:$0xff] }
 0x246   : > { %8603 = vmatprep.subr.mxu1 %v3017_v22  ;;  %8614 = vmatprep.subr.mxu0 %v11912_v14  ;;  %v16504_v22 = vld [vmem:[#allocation35_spill] sm:$0xff] }
 0x247   : > { %8604 = vmatpush3.msra.mxu1 %v2905_v19  ;;  %8615 = vmatpush3.msra.mxu0 %v11918_v56  ;;  %v16505_v19 = vld [vmem:[#allocation33_spill] sm:$0xff] }
 0x248   : > { %8605 = vmatprep.subr.mxu1 %v3024_v32  ;;  %8616 = vmatprep.subr.mxu0 %v11954_v1  ;;  %v16506_v32 = vld [vmem:[#allocation34_spill] sm:$0xff] }
 0x249   : > { %8606 = vmatpush3.msra.mxu1 %v2912_v13  ;;  %8617 = vmatpush3.msra.mxu0 %v11929_v59  ;;  %v16507_v13 = vld [vmem:[#allocation48_spill] sm:$0xff] }
 0x24a   : > { %3029 = vmatmul.mubr.f32.vlgmr.msra.gmra.mxu1 %v12186_v41  ;;  %8618 = vmatprep.subr.mxu0 %v11982_v33  ;;  %v16510_v41 = vld [vmem:[#allocation44_spill] sm:$0xff] }
 0x24b   : > { %8645 = vmatprep.subr.mxu1 %v11857_v31  ;;  %8619 = vmatpush3.msra.mxu0 %v11966_v51 }
 0x24c   : > { %8646 = vmatpush3.msra.mxu1 %v11847_v37  ;;  %8620 = vmatprep.subr.mxu0 %v12010_v7 }
 0x24d   : > { %8647 = vmatprep.subr.mxu1 %v11872_v26  ;;  %8621 = vmatpush3.msra.mxu0 %v12000_v44 }
 0x24e   : > { %8648 = vmatpush3.msra.mxu1 %v11863_v46  ;;  %8622 = vmatprep.subr.mxu0 %v12046_v38 }
 0x24f   : > { %8649 = vmatprep.subr.mxu1 %v16492_v57  ;;  %8623 = vmatpush3.msra.mxu0 %v16493_v29 }
 0x250   : > { %8650 = vmatpush3.msra.mxu1 %v16494_v54  ;;  %8624 = vmatprep.subr.mxu0 %v12071_v21 }
 0x251   : > { %8651 = vmatprep.subr.mxu1 %v16495_v28  ;;  %8625 = vmatpush3.msra.mxu0 %v16496_v35 }
 0x252   : > { %8652 = vmatpush3.msra.mxu1 %v16497_v5  ;;  %8626 = vmatprep.subr.mxu0 %v16498_v4 }
 0x253   : > { %8653 = vmatprep.subr.mxu1 %v16499_v42  ;;  %8627 = vmatpush3.msra.mxu0 %v16500_v8 }
 0x254   : > { %8654 = vmatpush3.msra.mxu1 %v16501_v27  ;;  %8628 = vmatprep.subr.mxu0 %v12159_v16 }
 0x255   : > { %8655 = vmatprep.subr.mxu1 %v16502_v43  ;;  %8629 = vmatpush3.msra.mxu0 %v12122_v11 }
 0x256   : > { %8656 = vmatpush3.msra.mxu1 %v16503_v34  ;;  %8630 = vmatprep.subr.mxu0 %v12184_v30 }
 0x257   : > { %8657 = vmatprep.subr.mxu1 %v16504_v22  ;;  %8631 = vmatpush3.msra.mxu0 %v12155_v36 }
 0x258   : > { %8658 = vmatpush3.msra.mxu1 %v16505_v19  ;;  %8632 = vmatprep.subr.mxu0 %v12208_v18 }
 0x259   : > { %8659 = vmatprep.subr.mxu1 %v16506_v32  ;;  %8633 = vmatpush3.msra.mxu0 %v12170_v3 }
 0x25a   : > { %8660 = vmatpush3.msra.mxu1 %v16507_v13  ;;  %8634 = vmatprep.subr.mxu0 %v12242_v39 }
 0x25b   : > { %8661 = vmatprep.subr.mxu1 %v16508_v47  ;;  %8635 = vmatpush3.msra.mxu0 %v12215_v2 }
 0x25c   : > { %8662 = vmatpush3.msra.mxu1 %v16509_v25  ;;  %8636 = vmatprep.subr.mxu0 %v12262_v60 }
 0x25d   : > { %8663 = vmatprep.subr.mxu1 %v12091_v23  ;;  %8637 = vmatpush3.msra.mxu0 %v12249_v24  ;;  %v16512_v23 = vld [vmem:[#allocation49_spill] sm:$0xff] }
 0x25e   : > { %8664 = vmatpush3.msra.mxu1 %v16510_v41  ;;  %8638 = vmatprep.subr.mxu0 %v12279_v9 }
 0x25f   : > { %8665 = vmatprep.subr.mxu1 %v16511_v55  ;;  %8639 = vmatpush3.msra.mxu0 %v12272_v58  ;;  %v16513_v55 = vand.u32 4294901760, %v11887_v0  ;;  %v16518_v0 = vand.u32 4294901760, %v11912_v14  ;;  %v16523_v14 = vand.u32 4294901760, %v12232_v12 }
 0x260   : > { %8666 = vmatpush3.msra.mxu1 %v12108_v62  ;;  %8640 = vmatprep.subr.mxu0 %v12295_v63  ;;  %v16514_v62 = vand.u32 4294901760, %v11870_v40  ;;  %v16515_v63 = vld [vmem:[#allocation56_spill] sm:$0xff]  ;;  %v16519_v40 = vand.u32 4294901760, %v11918_v56  ;;  %v16524_v56 = vand.u32 4294901760, %v11982_v33  ;;  %v16528_v33 = vand.u32 4294901760, %v12046_v38  ;;  %v836_v38 = vld [vmem:[%s10552_s15 + $0x3f0] sm:$0xff] }
 0x261   : > { %8667 = vmatprep.subr.mxu1 %v12142_v15  ;;  %8641 = vmatpush3.msra.mxu0 %v12288_v49  ;;  %v16516_v49 = vand.u32 4294901760, %v11904_v48  ;;  %v16520_v48 = vand.u32 4294901760, %v11954_v1  ;;  %v16525_v1 = vand.u32 4294901760, %v11966_v51  ;;  %v821_v51 = vld [vmem:[%s10552_s15 + $0x378] sm:$0xff] }
 0x262   : > { %3164 = vmatprep.mubr.f32.mxu0 %v12220_v52  ;;  %8668 = vmatpush3.msra.mxu1 %v16512_v23  ;;  %v16517_v23 = vand.u32 4294901760, %v11893_v61  ;;  %v16521_v61 = vand.u32 4294901760, %v12220_v52  ;;  %v12463_v52 = vand.u32 4294901760, %v821_v51 }
 0x263   : > { %3167 = vmatmul.mubr.f32.vlgmr.msra.gmra.mxu0 %v12232_v12  ;;  %8669 = vmatprep.subr.mxu1 %v12193_v20  ;;  %v835_v12 = vld [vmem:[%s10552_s15 + $0x3e8] sm:$0xff] }
 0x264   : > { %8680 = vmatprep.subr.mxu0 %v16513_v55  ;;  %8670 = vmatpush3.msra.mxu1 %v12172_v50  ;;  %v16522_v55 = vand.u32 4294901760, %v11929_v59  ;;  %v16527_v59 = vand.u32 4294901760, %v12000_v44  ;;  %v16532_v44 = vand.u32 4294901760, %v16498_v4  ;;  %v818_v4 = vld [vmem:[%s10552_s15 + $0x360] sm:$0xff] }
 0x265   : > { %8681 = vmatpush3.msra.mxu0 %v16514_v62  ;;  %8671 = vmatprep.subr.mxu1 %v16515_v63  ;;  %v16526_v62 = vand.u32 4294901760, %v12010_v7 }
 0x266   : > { %8682 = vmatprep.subr.mxu0 %v16516_v49  ;;  %8672 = vmatpush3.msra.mxu1 %v12203_v53  ;;  %v16534_v49 = vand.u32 4294901760, %v12159_v16  ;;  %v12481_v16 = vand.u32 4294901760, %v835_v12 }
 0x267   : > { %8683 = vmatpush3.msra.mxu0 %v16517_v23  ;;  %8673 = vmatprep.subr.mxu1 %v12226_v10  ;;  %v820_v23 = vld [vmem:[%s10552_s15 + $0x370] sm:$0xff] }
 0x268   : > { %8684 = vmatprep.subr.mxu0 %v16518_v0  ;;  %8674 = vmatpush3.msra.mxu1 %v12238_v17  ;;  %16537 = vst [vmem:[#allocation54_spill] sm:$0xff] %v12481_v16  ;;  %v816_v0 = vld [vmem:[%s10552_s15 + $0x350] sm:$0xff] }
 0x269   : > { %8685 = vmatpush3.msra.mxu0 %v16519_v40  ;;  %8675 = vmatprep.subr.mxu1 %v12256_v45 }
 0x26a   : > { %8686 = vmatprep.subr.mxu0 %v16520_v48  ;;  %8676 = vmatpush3.msra.mxu1 %v12258_v6  ;;  %v832_v48 = vld [vmem:[%s10552_s15 + $0x3d0] sm:$0xff] }
 0x26b   : > { %3271 = vmatprep.mubr.f32.mxu1 %v16521_v61  ;;  %8687 = vmatpush3.msra.mxu0 %v16522_v55  ;;  %v12521_v61 = vsub.f32 %v835_v12, %v12481_v16  ;;  %v16558_v12 = vld [vmem:[#allocation52_spill] sm:$0xff] }
 0x26c   : > { %3275 = vmatmul.mubr.f32.vlgmr.msra.gmra.mxu1 %v16523_v14  ;;  %8688 = vmatprep.subr.mxu0 %v16524_v56  ;;  %v831_v14 = vld [vmem:[%s10552_s15 + $0x3c8] sm:$0xff]  ;;  %v16548_v56 = vld [vmem:[#allocation51_spill] sm:$0xff] }
 0x26d   : > { %8715 = vmatprep.subr.mxu1 %v11857_v31  ;;  %8689 = vmatpush3.msra.mxu0 %v16525_v1  ;;  %v16529_v31 = vand.u32 4294901760, %v16493_v29  ;;  %v16535_v29 = vand.u32 4294901760, %v12122_v11 }
 0x26e   : > { %8716 = vmatpush3.msra.mxu1 %v11847_v37  ;;  %8690 = vmatprep.subr.mxu0 %v16526_v62  ;;  %v837_v37 = vld [vmem:[%s10552_s15 + $0x3f8] sm:$0xff] }
 0x26f   : > { %8717 = vmatprep.subr.mxu1 %v11872_v26  ;;  %8691 = vmatpush3.msra.mxu0 %v16527_v59  ;;  %v16530_v26 = vand.u32 4294901760, %v12071_v21  ;;  %v12458_v7 = vand.u32 4294901760, %v837_v37  ;;  %v16533_v21 = vand.u32 4294901760, %v16500_v8  ;;  %v16539_v8 = vand.u32 4294901760, %v12208_v18  ;;  %v817_v18 = vld [vmem:[%s10552_s15 + $0x358] sm:$0xff] }
 0x270   : > { %8718 = vmatpush3.msra.mxu1 %v11863_v46  ;;  %8692 = vmatprep.subr.mxu0 %v16528_v33  ;;  %v16531_v46 = vand.u32 4294901760, %v16496_v35  ;;  %v12479_v35 = vand.u32 4294901760, %v820_v23  ;;  %v12536_v62 = vand.u32 4294901760, %v817_v18  ;;  %v12539_v59 = vand.u32 4294901760, %v816_v0 }
 0x271   : > { %8719 = vmatprep.subr.mxu1 %v16492_v57  ;;  %8693 = vmatpush3.msra.mxu0 %v16529_v31  ;;  %v12470_v57 = vand.u32 4294901760, %v836_v38  ;;  %v12486_v11 = vsub.f32 %v837_v37, %v12458_v7  ;;  %v12547_v33 = vand.u32 4294901760, %v832_v48  ;;  %v16553_v37 = vand.u32 4294901760, %v12279_v9  ;;  %v16557_v9 = vld [vmem:[#allocation50_spill] sm:$0xff] }
 0x272   : > { %8720 = vmatpush3.msra.mxu1 %v16494_v54  ;;  %8694 = vmatprep.subr.mxu0 %v16530_v26  ;;  %v819_v54 = vld [vmem:[%s10552_s15 + $0x368] sm:$0xff]  ;;  %v12516_v40 = vsub.f32 %v820_v23, %v12479_v35  ;;  %16549 = vst [vmem:[#allocation36_spill] sm:$0xff] %v12536_v62  ;;  %16550 = vst [vmem:[#allocation29_spill] sm:$0xff] %v12539_v59  ;;  %v16554_v26 = vld [vmem:[#allocation55_spill] sm:$0xff] }
 0x273   : > { %8721 = vmatprep.subr.mxu1 %v16495_v28  ;;  %8695 = vmatpush3.msra.mxu0 %v16531_v46  ;;  %v16536_v28 = vand.u32 4294901760, %v12184_v30  ;;  %v12492_v30 = vsub.f32 %v821_v51, %v12463_v52  ;;  %16552 = vst [vmem:[#allocation42_spill] sm:$0xff] %v12547_v33  ;;  %v12561_v51 = vand.u32 4294901760, %v831_v14  ;;  %v15853_v46 = vand.u32 4294901760, %v12521_v61 }
 0x274   : > { %8722 = vmatpush3.msra.mxu1 %v16497_v5  ;;  %8696 = vmatprep.subr.mxu0 %v16532_v44  ;;  %v834_v5 = vld [vmem:[%s10552_s15 + $0x3e0] sm:$0xff]  ;;  %v16556_v44 = vand.u32 4294901760, %v12272_v58 }
 0x275   : > { %8723 = vmatprep.subr.mxu1 %v16499_v42  ;;  %8697 = vmatpush3.msra.mxu0 %v16533_v21  ;;  %v16538_v42 = vand.u32 4294901760, %v12155_v36  ;;  %v16541_v36 = vand.u32 4294901760, %v12170_v3  ;;  %v15859_v3 = vand.u32 4294901760, %v12486_v11  ;;  %16555 = vst [vmem:[#allocation46_spill] sm:$0xff] %v12561_v51 }
 0x276   : > { %8724 = vmatpush3.msra.mxu1 %v16501_v27  ;;  %8698 = vmatprep.subr.mxu0 %v16534_v49  ;;  %v12497_v27 = vand.u32 4294901760, %v819_v54  ;;  %v16559_v49 = vand.u32 4294901760, %v16558_v12 }
 0x277   : > { %8725 = vmatprep.subr.mxu1 %v16502_v43  ;;  %8699 = vmatpush3.msra.mxu0 %v16535_v29  ;;  %v833_v43 = vld [vmem:[%s10552_s15 + $0x3d8] sm:$0xff]  ;;  %v12580_v29 = vsub.f32 %v817_v18, %v12536_v62 }
 0x278   : > { %8726 = vmatpush3.msra.mxu1 %v16503_v34  ;;  %8700 = vmatprep.subr.mxu0 %v16536_v28  ;;  %16540 = vst [vmem:[#allocation30_spill] sm:$0xff] %v12497_v27  ;;  %v12501_v34 = vsub.f32 %v836_v38, %v12470_v57  ;;  %v12526_v55 = vand.u32 4294901760, %v833_v43  ;;  %v12534_v1 = vsub.f32 %v819_v54, %v12497_v27  ;;  %v815_v38 = vld [vmem:[%s10552_s15 + $0x348] sm:$0xff] }
 0x279   : > { %8727 = vmatprep.subr.mxu1 %v16504_v22  ;;  %8701 = vmatpush3.msra.mxu0 %v16538_v42  ;;  %v12506_v22 = vand.u32 4294901760, %v834_v5  ;;  %v12588_v54 = vsub.f32 %v816_v0, %v12539_v59  ;;  %v16560_v42 = vld [vmem:[#allocation53_spill] sm:$0xff] }
 0x27a   : > { %8728 = vmatpush3.msra.mxu1 %v16505_v19  ;;  %8702 = vmatprep.subr.mxu0 %v16539_v8  ;;  %v12508_v19 = vand.u32 4294901760, %v818_v4  ;;  %16546 = vst [vmem:[#allocation40_spill] sm:$0xff] %v12526_v55  ;;  %v12574_v23 = vsub.f32 %v833_v43, %v12526_v55  ;;  %v15852_v28 = vand.u32 4294901760, %v12534_v1  ;;  %v16561_v8 = vand.u32 4294901760, %v16560_v42  ;;  %v16562_v43 = vld [vmem:[#allocation41_spill] sm:$0xff] }
 0x27b   : > { %8729 = vmatprep.subr.mxu1 %v16506_v32  ;;  %8703 = vmatpush3.msra.mxu0 %v16541_v36  ;;  %16542 = vst [vmem:[#allocation37_spill] sm:$0xff] %v12506_v22  ;;  %v16544_v32 = vand.u32 4294901760, %v12242_v39  ;;  %v15858_v39 = vand.u32 4294901760, %v12492_v30  ;;  %v12550_v31 = vsub.f32 %v834_v5, %v12506_v22  ;;  %v830_v5 = vld [vmem:[%s10552_s15 + $0x3c0] sm:$0xff]  ;;  %v16564_v0 = vld [vmem:[#allocation49_spill] sm:$0xff]  ;;  %v15861_v42 = vand.u32 4294901760, %v12580_v29 }
 0x27c   : > { %8730 = vmatpush3.msra.mxu1 %v16507_v13  ;;  %16543 = vst [vmem:[#allocation43_spill] sm:$0xff] %v12508_v19  ;;  %v16545_v13 = vand.u32 4294901760, %v12215_v2  ;;  %v15855_v2 = vand.u32 4294901760, %v12501_v34  ;;  %3441 = vmatprep.mubr.f32.mxu0 %v16562_v43  ;;  %v15860_v12 = vand.u32 4294901760, %v12574_v23 }
 0x27d   : > { %8704 = vmatprep.subr.mxu0 %v16544_v32  ;;  %8731 = vmatprep.subr.mxu1 %v16508_v47  ;;  %v16547_v47 = vand.u32 4294901760, %v12262_v60  ;;  %v12545_v60 = vsub.f32 %v818_v4, %v12508_v19  ;;  %v12571_v21 = vsub.f32 %v12492_v30, %v15858_v39  ;;  %v814_v4 = vld [vmem:[%s10552_s15 + $0x340] sm:$0xff]  ;;  %v15856_v36 = vand.u32 4294901760, %v12550_v31  ;;  %v828_v39 = vld [vmem:[%s10552_s15 + $0x3b0] sm:$0xff] }
 0x27e   : > { %8705 = vmatpush3.msra.mxu0 %v16545_v13  ;;  %8732 = vmatpush3.msra.mxu1 %v16509_v25  ;;  %v16551_v25 = vand.u32 4294901760, %v12249_v24  ;;  %v12558_v24 = vsub.f32 %v12486_v11, %v15859_v3  ;;  %v12585_v58 = vsub.f32 %v12501_v34, %v15855_v2  ;;  %v12601_v32 = vsub.f32 %v832_v48, %v12547_v33  ;;  %v16565_v13 = vld [vmem:[#allocation57_spill] sm:$0xff]  ;;  %v811_v3 = vld [vmem:[%s10552_s15 + $0x328] sm:$0xff] }
 0x27f   : > { %8706 = vmatprep.subr.mxu0 %v16547_v47  ;;  %8733 = vmatprep.subr.mxu1 %v16548_v56  ;;  %v15857_v18 = vand.u32 4294901760, %v12545_v60  ;;  %v12617_v48 = vsub.f32 %v831_v14, %v12561_v51  ;;  %v827_v14 = vld [vmem:[%s10552_s15 + $0x3a8] sm:$0xff] }
 0x280   : > { %8707 = vmatpush3.msra.mxu0 %v16551_v25  ;;  %8734 = vmatpush3.msra.mxu1 %v16510_v41  ;;  %v15854_v41 = vand.u32 4294901760, %v12516_v40  ;;  %v12614_v25 = vsub.f32 %v12521_v61, %v15853_v46  ;;  %v15863_v46 = vand.u32 4294901760, %v12601_v32 }
 0x281   : > { %8708 = vmatprep.subr.mxu0 %v16553_v37  ;;  %8735 = vmatprep.subr.mxu1 %v16554_v26  ;;  %v12622_v26 = vand.u32 4294901760, %v830_v5  ;;  %v16579_v37 = vand.u32 4294901760, %v12571_v21  ;;  %v824_v21 = vld [vmem:[%s10552_s15 + $0x390] sm:$0xff] }
 0x282   : > { %8709 = vmatpush3.msra.mxu0 %v16556_v44  ;;  %8736 = vmatpush3.msra.mxu1 %v16557_v9  ;;  %v12609_v56 = vsub.f32 %v12516_v40, %v15854_v41  ;;  %v12624_v44 = vand.u32 4294901760, %v814_v4  ;;  %v829_v9 = vld [vmem:[%s10552_s15 + $0x3b8] sm:$0xff] }
 0x283   : > { %8710 = vmatprep.subr.mxu0 %v16559_v49  ;;  %8737 = vmatprep.subr.mxu1 %v12142_v15  ;;  %v12596_v15 = vand.u32 4294901760, %v815_v38  ;;  %16566 = vst [vmem:[#allocation31_spill] sm:$0xff] %v12622_v26  ;;  %v813_v49 = vld [vmem:[%s10552_s15 + $0x338] sm:$0xff]  ;;  %v12660_v2 = vand.u32 4294901760, %v829_v9  ;;  %v12678_v41 = vsub.f32 %v830_v5, %v12622_v26 }
 0x284   : > { %8711 = vmatpush3.msra.mxu0 %v16561_v8  ;;  %8738 = vmatpush3.msra.mxu1 %v16564_v0  ;;  %16567 = vst [vmem:[#allocation47_spill] sm:$0xff] %v12624_v44  ;;  %v15862_v8 = vand.u32 4294901760, %v12588_v54  ;;  %v12647_v0 = vsub.f32 %v12550_v31, %v15856_v36  ;;  %v15864_v36 = vand.u32 4294901760, %v12617_v48 }
 0x285   : > { %16563 = vst [vmem:[#allocation45_spill] sm:$0xff] %v12596_v15  ;;  %3443 = vmatmul.mubr.f32.vlgmr.msra.gmra.mxu0 %v16565_v13  ;;  %8739 = vmatprep.subr.mxu1 %v12193_v20  ;;  %v12634_v20 = vsub.f32 %v12534_v1, %v15852_v28  ;;  %v12652_v28 = vsub.f32 %v12545_v60, %v15857_v18  ;;  %16569 = vst [vmem:[#allocation35_spill] sm:$0xff] %v12660_v2 }
 0x286   : > { %8750 = vmatprep.subr.mxu0 %v12458_v7  ;;  %8740 = vmatpush3.msra.mxu1 %v12172_v50  ;;  %v12642_v50 = vsub.f32 %v815_v38, %v12596_v15  ;;  %v3676_v38 = vand.u32 4294901760, %v12609_v56  ;;  %v12666_v18 = vsub.f32 %v814_v4, %v12624_v44  ;;  %v12673_v56 = vand.u32 4294901760, %v813_v49 }
 0x287   : > { %8751 = vmatpush3.msra.mxu0 %v12463_v52  ;;  %8741 = vmatprep.subr.mxu1 %v16515_v63  ;;  %v812_v63 = vld [vmem:[%s10552_s15 + $0x330] sm:$0xff]  ;;  %v12686_v4 = vsub.f32 %v12580_v29, %v15861_v42  ;;  %v12693_v5 = vsub.f32 %v12588_v54, %v15862_v8  ;;  %v12702_v42 = vsub.f32 %v12601_v32, %v15863_v46  ;;  %v12708_v8 = vand.u32 4294901760, %v828_v39  ;;  %v810_v46 = vld [vmem:[%s10552_s15 + $0x320] sm:$0xff] }
 0x288   : > { %8752 = vmatprep.subr.mxu0 %v12470_v57  ;;  %16568 = vst [vmem:[#allocation32_spill] sm:$0xff] %v12642_v50  ;;  %8742 = vmatpush3.msra.mxu1 %v12203_v53  ;;  %16570 = vst [vmem:[#allocation33_spill] sm:$0xff] %v12666_v18  ;;  %v12671_v53 = vsub.f32 %v12574_v23, %v15860_v12  ;;  %v12688_v12 = vand.u32 4294901760, %v812_v63  ;;  %v12720_v47 = vsub.f32 %v829_v9, %v12660_v2 }
 0x289   : > { %8753 = vmatpush3.msra.mxu0 %v12479_v35  ;;  %8743 = vmatprep.subr.mxu1 %v12226_v10  ;;  %16571 = vst [vmem:[#allocation34_spill] sm:$0xff] %v12673_v56  ;;  %v3683_v10 = vand.u32 4294901760, %v12634_v20  ;;  %16573 = vst [vmem:[#allocation39_spill] sm:$0xff] %v12708_v8  ;;  %v826_v20 = vld [vmem:[%s10552_s15 + $0x3a0] sm:$0xff]  ;;  %v16576_v9 = vand.u32 4294901760, %v12558_v24  ;;  %v3816_v24 = vand.u32 4294901760, %v12702_v42 }
 0x28a   : > { %8754 = vmatprep.subr.mxu0 %v12481_v16  ;;  %8744 = vmatpush3.msra.mxu1 %v12238_v17  ;;  %16572 = vst [vmem:[#allocation48_spill] sm:$0xff] %v12688_v12  ;;  %v3802_v17 = vand.u32 4294901760, %v12647_v0  ;;  %v12715_v0 = vand.u32 4294901760, %v811_v3  ;;  %16575 = vst [vmem:[#allocation44_spill] sm:$0xff] %v12720_v47  ;;  %v825_v42 = vld [vmem:[%s10552_s15 + $0x398] sm:$0xff]  ;;  %v16583_v16 = vand.u32 4294901760, %v12678_v41 }
 0x28b   : > { %8755 = vmatpush3.msra.mxu0 %v12497_v27  ;;  %8745 = vmatprep.subr.mxu1 %v12256_v45  ;;  %v12713_v45 = vsub.f32 %v12617_v48, %v15864_v36  ;;  %v809_v36 = vld [vmem:[%s10552_s15 + $0x318] sm:$0xff] }
 0x28c   : > { %8756 = vmatprep.subr.mxu0 %v12506_v22  ;;  %8746 = vmatpush3.msra.mxu1 %v12258_v6  ;;  %16574 = vst [vmem:[#allocation38_spill] sm:$0xff] %v12715_v0  ;;  %v3809_v6 = vand.u32 4294901760, %v12671_v53  ;;  %v701_v22 = vld [vmem:[%s10999_s13 + $0x38] sm:$0xff]  ;;  %v12753_v53 = vand.u32 4294901760, %v810_v46  ;;  %v700_v27 = vld [vmem:[%s10999_s13 + $0x30] sm:$0xff] }
 0x28d   : > { %3545 = vmatprep.mubr.f32.mxu1 %v16562_v43  ;;  %8757 = vmatpush3.msra.mxu0 %v12508_v19  ;;  %v12726_v43 = vsub.f32 %v813_v49, %v12673_v56  ;;  %v3697_v19 = vand.u32 4294901760, %v12686_v4  ;;  %v12738_v49 = vand.u32 4294901760, %v827_v14 }
 0x28e   : > { %3547 = vmatmul.mubr.f32.vlgmr.msra.gmra.mxu1 %v16565_v13  ;;  %8758 = vmatprep.subr.mxu0 %v12526_v55  ;;  %v12735_v13 = vsub.f32 %v812_v63, %v12688_v12  ;;  %v12751_v63 = vand.u32 4294901760, %v826_v20  ;;  %16581 = vst [vmem:[#allocation55_spill] sm:$0xff] %v12753_v53  ;;  %v808_v55 = vld [vmem:[%s10552_s15 + $0x310] sm:$0xff] }
 0x28f   : > { %8785 = vmatprep.subr.mxu1 %v16576_v9  ;;  %16578 = vst [vmem:[#allocation51_spill] sm:$0xff] %v12738_v49  ;;  %8759 = vmatpush3.msra.mxu0 %v12536_v62  ;;  %v16580_v9 = vand.u32 4294901760, %v12642_v50  ;;  %v16582_v62 = vand.u32 4294901760, %v12585_v58 }
 0x290   : > { %16577 = vst [vmem:[#allocation56_spill] sm:$0xff] %v12735_v13  ;;  %8786 = vmatpush3.msra.mxu1 %v16579_v37  ;;  %8760 = vmatprep.subr.mxu0 %v12547_v33  ;;  %v12762_v37 = vsub.f32 %v811_v3, %v12715_v0  ;;  %v12773_v33 = vsub.f32 %v12678_v41, %v16583_v16  ;;  %v12780_v3 = vand.u32 4294901760, %v809_v36  ;;  %v12789_v16 = vand.u32 4294901760, %v808_v55 }
 0x291   : > { %v12749_v4 = vsub.f32 %v12642_v50, %v16580_v9  ;;  %8787 = vmatprep.subr.mxu1 %v16582_v62  ;;  %v12767_v50 = vsub.f32 %v828_v39, %v12708_v8  ;;  %8761 = vmatpush3.msra.mxu0 %v12539_v59  ;;  %v16584_v62 = vand.u32 4294901760, %v12666_v18  ;;  %v12783_v9 = vand.u32 4294901760, %v701_v22 }
 0x292   : > { %8788 = vmatpush3.msra.mxu1 %v3676_v38  ;;  %8762 = vmatprep.subr.mxu0 %v12561_v51  ;;  %v16586_v39 = vand.u32 4294901760, %v12614_v25  ;;  %v12792_v59 = vsub.f32 %v827_v14, %v12738_v49  ;;  %v12799_v51 = vsub.f32 %v810_v46, %v12753_v53  ;;  %v12801_v25 = vand.u32 4294901760, %v825_v42  ;;  %v823_v46 = vld [vmem:[%s10552_s15 + $0x388] sm:$0xff] }
 0x293   : > { %v12778_v58 = vsub.f32 %v12666_v18, %v16584_v62  ;;  %16585 = vst [vmem:[#allocation50_spill] sm:$0xff] %v12783_v9  ;;  %v12794_v62 = vand.u32 4294901760, %v700_v27  ;;  %8763 = vmatpush3.msra.mxu0 %v12596_v15  ;;  %v3711_v18 = vand.u32 4294901760, %v12749_v4  ;;  %v16589_v14 = vand.u32 4294901760, %v12720_v47  ;;  %3889 = vmatprep.mubr.f32.mxu1 %v12783_v9 }
 0x294   : > { %8789 = vmatprep.subr.mxu1 %v16586_v39  ;;  %16588 = vst [vmem:[#allocation53_spill] sm:$0xff] %v12799_v51  ;;  %8764 = vmatprep.subr.mxu0 %v12622_v26  ;;  %v12810_v15 = vand.u32 4294901760, %v824_v21  ;;  %v12815_v4 = vsub.f32 %v826_v20, %v12751_v63  ;;  %v16591_v39 = vand.u32 4294901760, %v12652_v28  ;;  %v12823_v26 = vsub.f32 %v809_v36, %v12780_v3 }
 0x295   : > { %16587 = vst [vmem:[#allocation52_spill] sm:$0xff] %v12794_v62  ;;  %8790 = vmatpush3.msra.mxu1 %v3683_v10  ;;  %v12808_v38 = vsub.f32 %v12720_v47, %v16589_v14  ;;  %8765 = vmatpush3.msra.mxu0 %v12624_v44  ;;  %v3718_v14 = vand.u32 4294901760, %v12778_v58  ;;  %v807_v47 = vld [vmem:[%s10552_s15 + $0x308] sm:$0xff]  ;;  %v12827_v10 = vsub.f32 %v701_v22, %v12783_v9  ;;  %v16592_v20 = vand.u32 4294901760, %v12726_v43  ;;  %v822_v58 = vld [vmem:[%s10552_s15 + $0x380] sm:$0xff] }
 0x296   : > { %8791 = vmatprep.subr.mxu1 %v3802_v17  ;;  %16590 = vst [vmem:[#allocation41_spill] sm:$0xff] %v12810_v15  ;;  %v3830_v17 = vand.u32 4294901760, %v12773_v33  ;;  %8766 = vmatprep.subr.mxu0 %v12660_v2  ;;  %v12834_v28 = vsub.f32 %v808_v55, %v12789_v16  ;;  %v12840_v36 = vsub.f32 %v700_v27, %v12794_v62  ;;  %v16593_v22 = vand.u32 4294901760, %v12735_v13  ;;  %v16629_v9 = vld [vmem:[#allocation48_spill] sm:$0xff] }
 0x297   : > { %8792 = vmatpush3.msra.mxu1 %v16591_v39  ;;  %v3724_v44 = vsub.f32 %v12726_v43, %v16592_v20  ;;  %v806_v39 = vld [vmem:[%s10552_s15 + $0x300] sm:$0xff]  ;;  %8767 = vmatpush3.msra.mxu0 %v12673_v56  ;;  %v12846_v2 = vand.u32 4294901760, %v823_v46  ;;  %v12850_v55 = vsub.f32 %v825_v42, %v12801_v25  ;;  %v3837_v27 = vand.u32 4294901760, %v12808_v38 }
 0x298   : > { %8793 = vmatprep.subr.mxu1 %v3809_v6  ;;  %v3731_v6 = vsub.f32 %v12735_v13, %v16593_v22  ;;  %8768 = vmatprep.subr.mxu0 %v12708_v8  ;;  %v16594_v33 = vand.u32 4294901760, %v12767_v50  ;;  %v12857_v56 = vand.u32 4294901760, %v807_v47  ;;  %v16595_v20 = vand.u32 4294901760, %v12693_v5 }
 0x299   : > { %8794 = vmatpush3.msra.mxu1 %v3697_v19  ;;  %8769 = vmatpush3.msra.mxu0 %v12688_v12  ;;  %v12863_v42 = vand.u32 4294901760, %v822_v58  ;;  %v12865_v13 = vand.u32 4294901760, %v806_v39  ;;  %v12869_v38 = vsub.f32 %v824_v21, %v12810_v15  ;;  %v3725_v22 = vand.u32 4294901760, %v3724_v44 }
 0x29a   : > { %8795 = vmatprep.subr.mxu1 %v3816_v24  ;;  %v3843_v19 = vsub.f32 %v12767_v50, %v16594_v33  ;;  %8770 = vmatprep.subr.mxu0 %v12738_v49  ;;  %v16596_v33 = vand.u32 4294901760, %v12713_v45  ;;  %v16597_v12 = vand.u32 4294901760, %v12792_v59  ;;  %v3732_v24 = vand.u32 4294901760, %v3731_v6 }
 0x29b   : > { %8796 = vmatpush3.msra.mxu1 %v16595_v20  ;;  %v15907_v20 = vand.u32 4294901760, %v12799_v51  ;;  %8771 = vmatpush3.msra.mxu0 %v12715_v0  ;;  %v16598_v21 = vand.u32 4294901760, %v12762_v37  ;;  %v12885_v44 = vsub.f32 %v823_v46, %v12846_v2  ;;  %v16599_v8 = vand.u32 4294901760, %v12815_v4 }
 0x29c   : > { %8797 = vmatprep.subr.mxu1 %v16596_v33  ;;  %v3850_v5 = vsub.f32 %v12792_v59, %v16597_v12  ;;  %8772 = vmatprep.subr.mxu0 %v12751_v63  ;;  %v3844_v12 = vand.u32 4294901760, %v3843_v19  ;;  %v12889_v33 = vsub.f32 %v807_v47, %v12857_v56  ;;  %v16601_v46 = vand.u32 4294901760, %v12827_v10 }
 0x29d   : > { %8798 = vmatpush3.msra.mxu1 %v3711_v18  ;;  %v3738_v49 = vsub.f32 %v12762_v37, %v16598_v21  ;;  %v3857_v18 = vsub.f32 %v12815_v4, %v16599_v8  ;;  %8773 = vmatpush3.msra.mxu0 %v12753_v53  ;;  %v12897_v21 = vsub.f32 %v806_v39, %v12865_v13  ;;  %v16603_v39 = vand.u32 4294901760, %v12840_v36 }
 0x29e   : > { %8799 = vmatprep.subr.mxu1 %v3830_v17  ;;  %v3651_v17 = vsub.f32 %v12827_v10, %v16601_v46  ;;  %v12904_v47 = vsub.f32 %v822_v58, %v12863_v42  ;;  %8774 = vmatprep.subr.mxu0 %v12801_v25  ;;  %v3851_v8 = vand.u32 4294901760, %v3850_v5  ;;  %v16604_v58 = vand.u32 4294901760, %v12850_v55 }
 0x29f   : > { %8800 = vmatpush3.msra.mxu1 %v3718_v14  ;;  %16600 = vst [vmem:[#allocation49_spill] sm:$0xff] %v12897_v21  ;;  %v3745_v14 = vsub.f32 %v12799_v51, %v15907_v20  ;;  %v3657_v6 = vsub.f32 %v12840_v36, %v16603_v39  ;;  %8775 = vmatpush3.msra.mxu0 %v12780_v3  ;;  %v3739_v46 = vand.u32 4294901760, %v3738_v49  ;;  %v3858_v5 = vand.u32 4294901760, %v3857_v18 }
 0x2a0   : > { %16602 = vst [vmem:[#allocation57_spill] sm:$0xff] %v12904_v47  ;;  %8801 = vmatprep.subr.mxu1 %v3837_v27  ;;  %v3864_v19 = vsub.f32 %v12850_v55, %v16604_v58  ;;  %8776 = vmatprep.subr.mxu0 %v12810_v15  ;;  %v16605_v20 = vand.u32 4294901760, %v12823_v26  ;;  %v3652_v49 = vand.u32 4294901760, %v3651_v17  ;;  %v15911_v27 = vand.u32 4294901760, %v12904_v47 }
 0x2a1   : > { %8802 = vmatpush3.msra.mxu1 %v3725_v22  ;;  %8777 = vmatpush3.msra.mxu0 %v12789_v16  ;;  %v16606_v22 = vand.u32 4294901760, %v12869_v38  ;;  %v3658_v18 = vand.u32 4294901760, %v3657_v6  ;;  %v16607_v15 = vand.u32 4294901760, %v12834_v28  ;;  %v15910_v45 = vand.u32 4294901760, %v12897_v21 }
 0x2a2   : > { %8803 = vmatprep.subr.mxu1 %v3844_v12  ;;  %v3752_v39 = vsub.f32 %v12823_v26, %v16605_v20  ;;  %8778 = vmatprep.subr.mxu0 %v12846_v2  ;;  %v3746_v12 = vand.u32 4294901760, %v3745_v14  ;;  %v16608_v17 = vand.u32 4294901760, %v12885_v44  ;;  %v16609_v6 = vand.u32 4294901760, %v12889_v33 }
 0x2a3   : > { %8804 = vmatpush3.msra.mxu1 %v3732_v24  ;;  %v3871_v58 = vsub.f32 %v12869_v38, %v16606_v22  ;;  %v3759_v20 = vsub.f32 %v12834_v28, %v16607_v15  ;;  %8779 = vmatpush3.msra.mxu0 %v12857_v56  ;;  %v3865_v24 = vand.u32 4294901760, %v3864_v19  ;;  %v3885_v19 = vsub.f32 %v12904_v47, %v15911_v27  ;;  %v16627_v27 = vld [vmem:[#allocation34_spill] sm:$0xff] }
 0x2a4   : > { %8805 = vmatprep.subr.mxu1 %v3851_v8  ;;  %v3878_v22 = vsub.f32 %v12885_v44, %v16608_v17  ;;  %8780 = vmatprep.subr.mxu0 %v12863_v42  ;;  %v3753_v8 = vand.u32 4294901760, %v3752_v39  ;;  %v3766_v14 = vsub.f32 %v12889_v33, %v16609_v6  ;;  %v16613_v17 = vld [vmem:[#allocation37_spill] sm:$0xff]  ;;  %v16616_v6 = vld [vmem:[#allocation44_spill] sm:$0xff] }
 0x2a5   : > { %8806 = vmatpush3.msra.mxu1 %v3739_v46  ;;  %8781 = vmatpush3.msra.mxu0 %v12865_v13  ;;  %v3872_v15 = vand.u32 4294901760, %v3871_v58  ;;  %v3760_v46 = vand.u32 4294901760, %v3759_v20  ;;  %v3886_v58 = vand.u32 4294901760, %v3885_v19  ;;  %v16611_v20 = vld [vmem:[#allocation32_spill] sm:$0xff]  ;;  %v16619_v19 = vld [vmem:[#allocation42_spill] sm:$0xff] }
 0x2a6   : > { %8807 = vmatprep.subr.mxu1 %v3858_v5  ;;  %3653 = vmatprep.mubr.f32.mxu0 %v3652_v49  ;;  %v3773_v5 = vsub.f32 %v12897_v21, %v15910_v45  ;;  %v3879_v39 = vand.u32 4294901760, %v3878_v22  ;;  %v3767_v49 = vand.u32 4294901760, %v3766_v14  ;;  %v16614_v22 = vld [vmem:[#allocation33_spill] sm:$0xff]  ;;  %v16617_v14 = vld [vmem:[#allocation40_spill] sm:$0xff]  ;;  %v16626_v45 = vld [vmem:[#allocation35_spill] sm:$0xff] }
 0x2a7   : > { %8808 = vmatpush3.msra.mxu1 %v3746_v12  ;;  %3659 = vmatmul.mubr.f32.vlgmr.msra.gmra.mxu0 %v3658_v18  ;;  %v16610_v18 = vld [vmem:[#allocation54_spill] sm:$0xff] }
 0x2a8   : > { %8809 = vmatprep.subr.mxu1 %v3865_v24  ;;  %8820 = vmatprep.subr.mxu0 %v12486_v11  ;;  %v3774_v12 = vand.u32 4294901760, %v3773_v5  ;;  %v16612_v24 = vld [vmem:[#allocation30_spill] sm:$0xff]  ;;  %v16621_v5 = vld [vmem:[#allocation29_spill] sm:$0xff] }
 0x2a9   : > { %8810 = vmatpush3.msra.mxu1 %v3753_v8  ;;  %8821 = vmatpush3.msra.mxu0 %v12492_v30  ;;  %v16615_v8 = vld [vmem:[#allocation43_spill] sm:$0xff] }
 0x2aa   : > { %8811 = vmatprep.subr.mxu1 %v3872_v15  ;;  %8822 = vmatprep.subr.mxu0 %v12501_v34  ;;  %v16618_v15 = vld [vmem:[#allocation36_spill] sm:$0xff] }
 0x2ab   : > { %8812 = vmatpush3.msra.mxu1 %v3760_v46  ;;  %8823 = vmatpush3.msra.mxu0 %v12516_v40  ;;  %v16620_v46 = vld [vmem:[#allocation56_spill] sm:$0xff] }
 0x2ac   : > { %8813 = vmatprep.subr.mxu1 %v3879_v39  ;;  %8824 = vmatprep.subr.mxu0 %v12521_v61  ;;  %v16622_v39 = vld [vmem:[#allocation46_spill] sm:$0xff] }
 0x2ad   : > { %8814 = vmatpush3.msra.mxu1 %v3767_v49  ;;  %8825 = vmatpush3.msra.mxu0 %v12534_v1  ;;  %v16623_v49 = vld [vmem:[#allocation45_spill] sm:$0xff] }
 0x2ae   : > { %8815 = vmatprep.subr.mxu1 %v3886_v58  ;;  %8826 = vmatprep.subr.mxu0 %v12550_v31  ;;  %v16624_v58 = vld [vmem:[#allocation31_spill] sm:$0xff] }
 0x2af   : > { %8816 = vmatpush3.msra.mxu1 %v3774_v12  ;;  %8827 = vmatpush3.msra.mxu0 %v12545_v60  ;;  %v16625_v12 = vld [vmem:[#allocation47_spill] sm:$0xff] }
 0x2b0   : > { %3891 = vmatmul.mubr.f32.vlgmr.msra.gmra.mxu1 %v12794_v62  ;;  %8828 = vmatprep.subr.mxu0 %v12574_v23  ;;  %v16628_v62 = vld [vmem:[#allocation39_spill] sm:$0xff] }
 0x2b1   : > { %8855 = vmatprep.subr.mxu1 %v12458_v7  ;;  %8829 = vmatpush3.msra.mxu0 %v12580_v29 }
 0x2b2   : > { %8856 = vmatpush3.msra.mxu1 %v12463_v52  ;;  %8830 = vmatprep.subr.mxu0 %v12601_v32 }
 0x2b3   : > { %8857 = vmatprep.subr.mxu1 %v12470_v57  ;;  %8831 = vmatpush3.msra.mxu0 %v12588_v54 }
 0x2b4   : > { %8858 = vmatpush3.msra.mxu1 %v12479_v35  ;;  %8832 = vmatprep.subr.mxu0 %v12617_v48 }
 0x2b5   : > { %8859 = vmatprep.subr.mxu1 %v16610_v18  ;;  %8833 = vmatpush3.msra.mxu0 %v16611_v20 }
 0x2b6   : > { %8860 = vmatpush3.msra.mxu1 %v16612_v24  ;;  %8834 = vmatprep.subr.mxu0 %v12678_v41 }
 0x2b7   : > { %8861 = vmatprep.subr.mxu1 %v16613_v17  ;;  %8835 = vmatpush3.msra.mxu0 %v16614_v22 }
 0x2b8   : > { %8862 = vmatpush3.msra.mxu1 %v16615_v8  ;;  %8836 = vmatprep.subr.mxu0 %v16616_v6 }
 0x2b9   : > { %8863 = vmatprep.subr.mxu1 %v16617_v14  ;;  %8837 = vmatpush3.msra.mxu0 %v12726_v43 }
 0x2ba   : > { %8864 = vmatpush3.msra.mxu1 %v16618_v15  ;;  %8838 = vmatprep.subr.mxu0 %v12767_v50 }
 0x2bb   : > { %8865 = vmatprep.subr.mxu1 %v16619_v19  ;;  %8839 = vmatpush3.msra.mxu0 %v16620_v46 }
 0x2bc   : > { %8866 = vmatpush3.msra.mxu1 %v16621_v5  ;;  %8840 = vmatprep.subr.mxu0 %v12792_v59 }
 0x2bd   : > { %8867 = vmatprep.subr.mxu1 %v16622_v39  ;;  %8841 = vmatpush3.msra.mxu0 %v12762_v37 }
 0x2be   : > { %8868 = vmatpush3.msra.mxu1 %v16623_v49  ;;  %8842 = vmatprep.subr.mxu0 %v12815_v4 }
 0x2bf   : > { %8869 = vmatprep.subr.mxu1 %v16624_v58  ;;  %8843 = vmatpush3.msra.mxu0 %v12799_v51  ;;  %v16630_v51 = vld [vmem:[#allocation51_spill] sm:$0xff] }
 0x2c0   : > { %8870 = vmatpush3.msra.mxu1 %v16625_v12  ;;  %8844 = vmatprep.subr.mxu0 %v12850_v55 }
 0x2c1   : > { %8871 = vmatprep.subr.mxu1 %v16626_v45  ;;  %8845 = vmatpush3.msra.mxu0 %v12823_v26 }
 0x2c2   : > { %8872 = vmatpush3.msra.mxu1 %v16627_v27  ;;  %8846 = vmatprep.subr.mxu0 %v12869_v38 }
 0x2c3   : > { %8873 = vmatprep.subr.mxu1 %v16628_v62  ;;  %8847 = vmatpush3.msra.mxu0 %v12834_v28 }
 0x2c4   : > { %8874 = vmatpush3.msra.mxu1 %v16629_v9  ;;  %8848 = vmatprep.subr.mxu0 %v12885_v44 }
 0x2c5   : > { %8875 = vmatprep.subr.mxu1 %v16630_v51  ;;  %8849 = vmatpush3.msra.mxu0 %v12889_v33  ;;  %v16631_v51 = vand.u32 4294901760, %v12486_v11  ;;  %v16636_v11 = vand.u32 4294901760, %v12521_v61  ;;  %v16641_v61 = vand.u32 4294901760, %v12840_v36 }
 0x2c6   : > { %8876 = vmatpush3.msra.mxu1 %v12715_v0  ;;  %8850 = vmatprep.subr.mxu0 %v12904_v47  ;;  %v16632_v0 = vand.u32 4294901760, %v12492_v30  ;;  %v16633_v47 = vld [vmem:[#allocation41_spill] sm:$0xff]  ;;  %v16637_v30 = vand.u32 4294901760, %v12534_v1  ;;  %v16642_v1 = vand.u32 4294901760, %v12574_v23  ;;  %v869_v23 = vld [vmem:[%s10552_s15 + $0x4f8] sm:$0xff] }
 0x2c7   : > { %8877 = vmatprep.subr.mxu1 %v12751_v63  ;;  %8851 = vmatpush3.msra.mxu0 %v12897_v21  ;;  %v16634_v21 = vand.u32 4294901760, %v12501_v34  ;;  %v16638_v34 = vand.u32 4294901760, %v12550_v31  ;;  %v16643_v31 = vand.u32 4294901760, %v12580_v29  ;;  %v16649_v29 = vand.u32 4294901760, %v16614_v22 }
 0x2c8   : > { %4026 = vmatprep.mubr.f32.mxu0 %v12827_v10  ;;  %8878 = vmatpush3.msra.mxu1 %v12753_v53  ;;  %v16635_v53 = vand.u32 4294901760, %v12516_v40  ;;  %v16639_v40 = vand.u32 4294901760, %v12827_v10  ;;  %v852_v10 = vld [vmem:[%s10552_s15 + $0x470] sm:$0xff] }
 0x2c9   : > { %4029 = vmatmul.mubr.f32.vlgmr.msra.gmra.mxu0 %v12840_v36  ;;  %8879 = vmatprep.subr.mxu1 %v12801_v25  ;;  %v16652_v36 = vand.u32 4294901760, %v12767_v50  ;;  %v16654_v50 = vand.u32 4294901760, %v12792_v59  ;;  %v16656_v59 = vand.u32 4294901760, %v12815_v4 }
 0x2ca   : > { %8890 = vmatprep.subr.mxu0 %v16631_v51  ;;  %8880 = vmatpush3.msra.mxu1 %v12780_v3  ;;  %v16640_v51 = vand.u32 4294901760, %v12545_v60  ;;  %v16645_v60 = vand.u32 4294901760, %v12588_v54  ;;  %v16650_v54 = vand.u32 4294901760, %v16616_v6  ;;  %v850_v6 = vld [vmem:[%s10552_s15 + $0x460] sm:$0xff] }
 0x2cb   : > { %8891 = vmatpush3.msra.mxu0 %v16632_v0  ;;  %8881 = vmatprep.subr.mxu1 %v16633_v47  ;;  %v16644_v0 = vand.u32 4294901760, %v12601_v32 }
 0x2cc   : > { %8892 = vmatprep.subr.mxu0 %v16634_v21  ;;  %8882 = vmatpush3.msra.mxu1 %v12789_v16  ;;  %v867_v21 = vld [vmem:[%s10552_s15 + $0x4e8] sm:$0xff] }
 0x2cd   : > { %8893 = vmatpush3.msra.mxu0 %v16635_v53  ;;  %8883 = vmatprep.subr.mxu1 %v12846_v2  ;;  %v16646_v53 = vand.u32 4294901760, %v12617_v48  ;;  %v16651_v48 = vand.u32 4294901760, %v12726_v43 }
 0x2ce   : > { %8894 = vmatprep.subr.mxu0 %v16636_v11  ;;  %8884 = vmatpush3.msra.mxu1 %v12857_v56  ;;  %v849_v11 = vld [vmem:[%s10552_s15 + $0x458] sm:$0xff] }
 0x2cf   : > { %8895 = vmatpush3.msra.mxu0 %v16637_v30  ;;  %8885 = vmatprep.subr.mxu1 %v12863_v42 }
 0x2d0   : > { %8896 = vmatprep.subr.mxu0 %v16638_v34  ;;  %8886 = vmatpush3.msra.mxu1 %v12865_v13  ;;  %v864_v34 = vld [vmem:[%s10552_s15 + $0x4d0] sm:$0xff] }
 0x2d1   : > { %4133 = vmatprep.mubr.f32.mxu1 %v16639_v40  ;;  %8897 = vmatpush3.msra.mxu0 %v16640_v51 }
 0x2d2   : > { %4137 = vmatmul.mubr.f32.vlgmr.msra.gmra.mxu1 %v16641_v61  ;;  %8898 = vmatprep.subr.mxu0 %v16642_v1  ;;  %v13134_v1 = vand.u32 4294901760, %v849_v11 }
 0x2d3   : > { %8925 = vmatprep.subr.mxu1 %v12458_v7  ;;  %8899 = vmatpush3.msra.mxu0 %v16643_v31  ;;  %v16647_v7 = vand.u32 4294901760, %v16611_v20  ;;  %v16653_v20 = vand.u32 4294901760, %v16620_v46  ;;  %v848_v31 = vld [vmem:[%s10552_s15 + $0x450] sm:$0xff] }
 0x2d4   : > { %8926 = vmatpush3.msra.mxu1 %v12463_v52  ;;  %8900 = vmatprep.subr.mxu0 %v16644_v0  ;;  %v853_v52 = vld [vmem:[%s10552_s15 + $0x478] sm:$0xff]  ;;  %16665 = vst [vmem:[#allocation33_spill] sm:$0xff] %v13134_v1 }
 0x2d5   : > { %8927 = vmatprep.subr.mxu1 %v12470_v57  ;;  %8901 = vmatpush3.msra.mxu0 %v16645_v60  ;;  %v16648_v57 = vand.u32 4294901760, %v12678_v41  ;;  %v13068_v32 = vand.u32 4294901760, %v853_v52  ;;  %v868_v41 = vld [vmem:[%s10552_s15 + $0x4f0] sm:$0xff] }
 0x2d6   : > { %8928 = vmatpush3.msra.mxu1 %v12479_v35  ;;  %8902 = vmatprep.subr.mxu0 %v16646_v53  ;;  %v13060_v35 = vand.u32 4294901760, %v869_v23  ;;  %v13085_v43 = vand.u32 4294901760, %v868_v41  ;;  %v16669_v53 = vand.u32 4294901760, %v12885_v44  ;;  %v16672_v44 = vand.u32 4294901760, %v12889_v33 }
 0x2d7   : > { %8929 = vmatprep.subr.mxu1 %v16610_v18  ;;  %8903 = vmatpush3.msra.mxu0 %v16647_v7  ;;  %v13093_v22 = vsub.f32 %v853_v52, %v13068_v32  ;;  %v16670_v7 = vld [vmem:[#allocation51_spill] sm:$0xff] }
 0x2d8   : > { %8930 = vmatpush3.msra.mxu1 %v16612_v24  ;;  %8904 = vmatprep.subr.mxu0 %v16648_v57  ;;  %v13080_v18 = vsub.f32 %v869_v23, %v13060_v35  ;;  %v851_v24 = vld [vmem:[%s10552_s15 + $0x468] sm:$0xff]  ;;  %v13120_v4 = vsub.f32 %v868_v41, %v13085_v43  ;;  %v16673_v41 = vld [vmem:[#allocation38_spill] sm:$0xff] }
 0x2d9   : > { %8931 = vmatprep.subr.mxu1 %v16613_v17  ;;  %8905 = vmatpush3.msra.mxu0 %v16649_v29  ;;  %v866_v17 = vld [vmem:[%s10552_s15 + $0x4e0] sm:$0xff]  ;;  %v13107_v46 = vand.u32 4294901760, %v851_v24  ;;  %v15929_v61 = vand.u32 4294901760, %v13093_v22  ;;  %v863_v57 = vld [vmem:[%s10552_s15 + $0x4c8] sm:$0xff] }
 0x2da   : > { %8932 = vmatpush3.msra.mxu1 %v16615_v8  ;;  %8906 = vmatprep.subr.mxu0 %v16650_v54  ;;  %v13095_v8 = vand.u32 4294901760, %v852_v10  ;;  %v15927_v23 = vand.u32 4294901760, %v13120_v4  ;;  %v847_v29 = vld [vmem:[%s10552_s15 + $0x448] sm:$0xff] }
 0x2db   : > { %8933 = vmatprep.subr.mxu1 %v16617_v14  ;;  %8907 = vmatpush3.msra.mxu0 %v16651_v48  ;;  %v16655_v14 = vand.u32 4294901760, %v12762_v37  ;;  %16657 = vst [vmem:[#allocation54_spill] sm:$0xff] %v13107_v46  ;;  %v16659_v37 = vld [vmem:[#allocation53_spill] sm:$0xff]  ;;  %v13144_v0 = vsub.f32 %v851_v24, %v13107_v46  ;;  %v13169_v52 = vsub.f32 %v13093_v22, %v15929_v61 }
 0x2dc   : > { %8934 = vmatpush3.msra.mxu1 %v16618_v15  ;;  %8908 = vmatprep.subr.mxu0 %v16652_v36  ;;  %v13101_v15 = vand.u32 4294901760, %v867_v21  ;;  %v16660_v30 = vand.u32 4294901760, %v16659_v37  ;;  %v13126_v40 = vsub.f32 %v852_v10, %v13095_v8  ;;  %v13183_v48 = vsub.f32 %v849_v11, %v13134_v1  ;;  %v16674_v36 = vld [vmem:[#allocation57_spill] sm:$0xff] }
 0x2dd   : > { %8935 = vmatprep.subr.mxu1 %v16619_v19  ;;  %8909 = vmatpush3.msra.mxu0 %v16653_v20  ;;  %v865_v19 = vld [vmem:[%s10552_s15 + $0x4d8] sm:$0xff]  ;;  %v15922_v24 = vand.u32 4294901760, %v13144_v0  ;;  %v13205_v11 = vand.u32 4294901760, %v863_v57  ;;  %v13207_v37 = vand.u32 4294901760, %v847_v29 }
 0x2de   : > { %8936 = vmatpush3.msra.mxu1 %v16621_v5  ;;  %8910 = vmatprep.subr.mxu0 %v16654_v50  ;;  %v13109_v5 = vand.u32 4294901760, %v866_v17  ;;  %v13128_v51 = vand.u32 4294901760, %v865_v19  ;;  %v846_v50 = vld [vmem:[%s10552_s15 + $0x440] sm:$0xff] }
 0x2df   : > { %8937 = vmatprep.subr.mxu1 %v16622_v39  ;;  %8911 = vmatpush3.msra.mxu0 %v16655_v14  ;;  %v15931_v39 = vand.u32 4294901760, %v13080_v18  ;;  %v16676_v14 = vld [vmem:[#allocation49_spill] sm:$0xff]  ;;  %16679 = vst [vmem:[#allocation40_spill] sm:$0xff] %v13205_v11  ;;  %16680 = vst [vmem:[#allocation36_spill] sm:$0xff] %v13207_v37 }
 0x2e0   : > { %8938 = vmatpush3.msra.mxu1 %v16623_v49  ;;  %8912 = vmatprep.subr.mxu0 %v16656_v59  ;;  %16658 = vst [vmem:[#allocation32_spill] sm:$0xff] %v13109_v5  ;;  %v13116_v49 = vand.u32 4294901760, %v850_v6  ;;  %16663 = vst [vmem:[#allocation37_spill] sm:$0xff] %v13128_v51  ;;  %v13154_v60 = vsub.f32 %v866_v17, %v13109_v5  ;;  %v13177_v54 = vsub.f32 %v865_v19, %v13128_v51  ;;  %v862_v17 = vld [vmem:[%s10552_s15 + $0x4c0] sm:$0xff]  ;;  %v16678_v59 = vld [vmem:[#allocation50_spill] sm:$0xff] }
 0x2e1   : > { %8939 = vmatprep.subr.mxu1 %v16624_v58  ;;  %8913 = vmatpush3.msra.mxu0 %v16660_v30  ;;  %v16662_v58 = vand.u32 4294901760, %v12850_v55  ;;  %v13138_v55 = vsub.f32 %v867_v21, %v13101_v15  ;;  %v16675_v21 = vand.u32 4294901760, %v16674_v36  ;;  %v16677_v19 = vand.u32 4294901760, %v16676_v14  ;;  %v845_v36 = vld [vmem:[%s10552_s15 + $0x438] sm:$0xff] }
 0x2e2   : > { %8940 = vmatpush3.msra.mxu1 %v16625_v12  ;;  %16661 = vst [vmem:[#allocation30_spill] sm:$0xff] %v13116_v49  ;;  %v16664_v12 = vand.u32 4294901760, %v12823_v26  ;;  %v13149_v26 = vsub.f32 %v13080_v18, %v15931_v39  ;;  %v15923_v33 = vand.u32 4294901760, %v13154_v60  ;;  %4303 = vmatprep.mubr.f32.mxu0 %v16678_v59 }
 0x2e3   : > { %8914 = vmatprep.subr.mxu0 %v16662_v58  ;;  %8941 = vmatprep.subr.mxu1 %v16626_v45  ;;  %v16666_v45 = vand.u32 4294901760, %v12869_v38  ;;  %v16668_v38 = vand.u32 4294901760, %v12834_v28  ;;  %v13171_v28 = vand.u32 4294901760, %v848_v31  ;;  %v15921_v10 = vand.u32 4294901760, %v13138_v55  ;;  %v861_v58 = vld [vmem:[%s10552_s15 + $0x4b8] sm:$0xff] }
 0x2e4   : > { %8915 = vmatpush3.msra.mxu0 %v16664_v12  ;;  %8942 = vmatpush3.msra.mxu1 %v16627_v27  ;;  %v13151_v27 = vand.u32 4294901760, %v864_v34  ;;  %v4643_v20 = vand.u32 4294901760, %v13149_v26  ;;  %v16682_v12 = vld [vmem:[#allocation52_spill] sm:$0xff]  ;;  %v13246_v14 = vsub.f32 %v13154_v60, %v15923_v33  ;;  %v844_v33 = vld [vmem:[%s10552_s15 + $0x430] sm:$0xff] }
 0x2e5   : > { %8916 = vmatprep.subr.mxu0 %v16666_v45  ;;  %8943 = vmatprep.subr.mxu1 %v16628_v62  ;;  %v13160_v62 = vsub.f32 %v850_v6, %v13116_v49  ;;  %16671 = vst [vmem:[#allocation44_spill] sm:$0xff] %v13171_v28 }
 0x2e6   : > { %16667 = vst [vmem:[#allocation43_spill] sm:$0xff] %v13151_v27  ;;  %8917 = vmatpush3.msra.mxu0 %v16668_v38  ;;  %8944 = vmatpush3.msra.mxu1 %v16629_v9  ;;  %v15924_v9 = vand.u32 4294901760, %v13126_v40  ;;  %v13195_v6 = vsub.f32 %v864_v34, %v13151_v27  ;;  %v16681_v34 = vld [vmem:[#allocation55_spill] sm:$0xff]  ;;  %v13215_v38 = vsub.f32 %v848_v31, %v13171_v28  ;;  %v13232_v31 = vand.u32 4294901760, %v846_v50 }
 0x2e7   : > { %8918 = vmatprep.subr.mxu0 %v16669_v53  ;;  %8945 = vmatprep.subr.mxu1 %v16670_v7  ;;  %v15925_v30 = vand.u32 4294901760, %v13160_v62  ;;  %v15926_v7 = vand.u32 4294901760, %v13177_v54 }
 0x2e8   : > { %8919 = vmatpush3.msra.mxu0 %v16672_v44  ;;  %8946 = vmatpush3.msra.mxu1 %v16673_v41  ;;  %v13220_v53 = vsub.f32 %v13126_v40, %v15924_v9  ;;  %v13228_v44 = vsub.f32 %v13138_v55, %v15921_v10  ;;  %v13230_v41 = vand.u32 4294901760, %v862_v17  ;;  %16684 = vst [vmem:[#allocation56_spill] sm:$0xff] %v13232_v31 }
 0x2e9   : > { %8920 = vmatprep.subr.mxu0 %v16675_v21  ;;  %8947 = vmatprep.subr.mxu1 %v12751_v63  ;;  %v13203_v63 = vsub.f32 %v13120_v4, %v15927_v23  ;;  %v15928_v21 = vand.u32 4294901760, %v13183_v48  ;;  %v13255_v10 = vsub.f32 %v847_v29, %v13207_v37  ;;  %v13264_v9 = vsub.f32 %v863_v57, %v13205_v11 }
 0x2ea   : > { %8921 = vmatpush3.msra.mxu0 %v16677_v19  ;;  %8948 = vmatpush3.msra.mxu1 %v16681_v34  ;;  %16683 = vst [vmem:[#allocation42_spill] sm:$0xff] %v13230_v41  ;;  %v13248_v19 = vand.u32 4294901760, %v861_v58  ;;  %v15930_v34 = vand.u32 4294901760, %v13195_v6  ;;  %v13272_v29 = vsub.f32 %v13177_v54, %v15926_v7  ;;  %v13281_v57 = vsub.f32 %v846_v50, %v13232_v31  ;;  %v860_v7 = vld [vmem:[%s10552_s15 + $0x4b0] sm:$0xff] }
 0x2eb   : > { %4305 = vmatmul.mubr.f32.vlgmr.msra.gmra.mxu0 %v16682_v12  ;;  %8949 = vmatprep.subr.mxu1 %v12801_v25  ;;  %v13241_v25 = vsub.f32 %v13144_v0, %v15922_v24  ;;  %16686 = vst [vmem:[#allocation46_spill] sm:$0xff] %v13255_v10  ;;  %v13260_v24 = vsub.f32 %v13160_v62, %v15925_v30  ;;  %v15932_v30 = vand.u32 4294901760, %v13215_v38  ;;  %v13319_v45 = vand.u32 4294901760, %v860_v7 }
 0x2ec   : > { %8960 = vmatprep.subr.mxu0 %v13060_v35  ;;  %8950 = vmatpush3.msra.mxu1 %v12780_v3  ;;  %16685 = vst [vmem:[#allocation29_spill] sm:$0xff] %v13248_v19  ;;  %v4650_v3 = vand.u32 4294901760, %v13203_v63  ;;  %v13274_v63 = vand.u32 4294901760, %v845_v36  ;;  %16688 = vst [vmem:[#allocation31_spill] sm:$0xff] %v13281_v57  ;;  %v13290_v23 = vsub.f32 %v862_v17, %v13230_v41  ;;  %v842_v17 = vld [vmem:[%s10552_s15 + $0x420] sm:$0xff]  ;;  %v16696_v39 = vand.u32 4294901760, %v13264_v9 }
 0x2ed   : > { %8961 = vmatpush3.msra.mxu0 %v13068_v32  ;;  %8951 = vmatprep.subr.mxu1 %v16633_v47  ;;  %v4538_v47 = vand.u32 4294901760, %v13220_v53  ;;  %v13286_v53 = vsub.f32 %v13183_v48, %v15928_v21  ;;  %v13298_v50 = vsub.f32 %v13195_v6, %v15930_v34  ;;  %v843_v21 = vld [vmem:[%s10552_s15 + $0x428] sm:$0xff]  ;;  %v13304_v61 = vsub.f32 %v861_v58, %v13248_v19  ;;  %v841_v34 = vld [vmem:[%s10552_s15 + $0x418] sm:$0xff] }
 0x2ee   : > { %8962 = vmatprep.subr.mxu0 %v13085_v43  ;;  %8952 = vmatpush3.msra.mxu1 %v12789_v16  ;;  %16687 = vst [vmem:[#allocation45_spill] sm:$0xff] %v13274_v63  ;;  %v4657_v16 = vand.u32 4294901760, %v13228_v44  ;;  %16689 = vst [vmem:[#allocation47_spill] sm:$0xff] %v13290_v23  ;;  %v13300_v44 = vand.u32 4294901760, %v844_v33  ;;  %v16695_v58 = vand.u32 4294901760, %v13169_v52  ;;  %v13353_v26 = vsub.f32 %v13264_v9, %v16696_v39 }
 0x2ef   : > { %8963 = vmatpush3.msra.mxu0 %v13095_v8  ;;  %8953 = vmatprep.subr.mxu1 %v12846_v2  ;;  %v4545_v2 = vand.u32 4294901760, %v13241_v25  ;;  %16690 = vst [vmem:[#allocation35_spill] sm:$0xff] %v13304_v61  ;;  %v859_v25 = vld [vmem:[%s10552_s15 + $0x4a8] sm:$0xff]  ;;  %16692 = vst [vmem:[#allocation39_spill] sm:$0xff] %v13319_v45 }
 0x2f0   : > { %8964 = vmatprep.subr.mxu0 %v13101_v15  ;;  %8954 = vmatpush3.msra.mxu1 %v12857_v56  ;;  %v4664_v56 = vand.u32 4294901760, %v13246_v14  ;;  %v13324_v14 = vsub.f32 %v13215_v38, %v15932_v30  ;;  %v13360_v30 = vand.u32 4294901760, %v842_v17 }
 0x2f1   : > { %8965 = vmatpush3.msra.mxu0 %v13107_v46  ;;  %8955 = vmatprep.subr.mxu1 %v12863_v42  ;;  %v13317_v42 = vsub.f32 %v845_v36, %v13274_v63  ;;  %v858_v36 = vld [vmem:[%s10552_s15 + $0x4a0] sm:$0xff]  ;;  %v702_v46 = vld [vmem:[%s10999_s13 + $0x40] sm:$0xff] }
 0x2f2   : > { %8966 = vmatprep.subr.mxu0 %v13109_v5  ;;  %8956 = vmatpush3.msra.mxu1 %v12865_v13  ;;  %v13343_v13 = vand.u32 4294901760, %v859_v25  ;;  %v703_v5 = vld [vmem:[%s10999_s13 + $0x48] sm:$0xff]  ;;  %16698 = vst [vmem:[#allocation53_spill] sm:$0xff] %v13360_v30  ;;  %v4566_v52 = vand.u32 4294901760, %v13324_v14 }
 0x2f3   : > { %4407 = vmatprep.mubr.f32.mxu1 %v16678_v59  ;;  %16691 = vst [vmem:[#allocation34_spill] sm:$0xff] %v13317_v42  ;;  %8967 = vmatpush3.msra.mxu0 %v13116_v49  ;;  %v13331_v59 = vand.u32 4294901760, %v843_v21  ;;  %v13363_v49 = vand.u32 4294901760, %v841_v34  ;;  %v13388_v39 = vand.u32 4294901760, %v703_v5 }
 0x2f4   : > { %4409 = vmatmul.mubr.f32.vlgmr.msra.gmra.mxu1 %v16682_v12  ;;  %8968 = vmatprep.subr.mxu0 %v13128_v51  ;;  %v13341_v12 = vsub.f32 %v844_v33, %v13300_v44  ;;  %16694 = vst [vmem:[#allocation41_spill] sm:$0xff] %v13343_v13  ;;  %v857_v51 = vld [vmem:[%s10552_s15 + $0x498] sm:$0xff] }
 0x2f5   : > { %16693 = vst [vmem:[#allocation48_spill] sm:$0xff] %v13331_v59  ;;  %8995 = vmatprep.subr.mxu1 %v4643_v20  ;;  %8969 = vmatpush3.msra.mxu0 %v13134_v1  ;;  %v16697_v20 = vand.u32 4294901760, %v13255_v10  ;;  %v13372_v1 = vsub.f32 %v860_v7, %v13319_v45  ;;  %16701 = vst [vmem:[#allocation51_spill] sm:$0xff] %v13388_v39  ;;  %v13391_v7 = vand.u32 4294901760, %v857_v51 }
 0x2f6   : > { %8996 = vmatpush3.msra.mxu1 %v16695_v58  ;;  %8970 = vmatprep.subr.mxu0 %v13151_v27  ;;  %v13368_v58 = vand.u32 4294901760, %v858_v36 }
 0x2f7   : > { %v13358_v33 = vsub.f32 %v13255_v10, %v16697_v20  ;;  %8997 = vmatprep.subr.mxu1 %v4650_v3  ;;  %8971 = vmatpush3.msra.mxu0 %v13171_v28  ;;  %v13376_v20 = vsub.f32 %v843_v21, %v13331_v59  ;;  %v16699_v10 = vand.u32 4294901760, %v13290_v23  ;;  %v16700_v3 = vand.u32 4294901760, %v13281_v57 }
 0x2f8   : > { %8998 = vmatpush3.msra.mxu1 %v4538_v47  ;;  %8972 = vmatprep.subr.mxu0 %v13205_v11  ;;  %v16702_v21 = vand.u32 4294901760, %v13304_v61  ;;  %v13400_v28 = vsub.f32 %v859_v25, %v13343_v13  ;;  %v16704_v25 = vand.u32 4294901760, %v13317_v42 }
 0x2f9   : > { %v13381_v27 = vsub.f32 %v13290_v23, %v16699_v10  ;;  %v13386_v14 = vsub.f32 %v13281_v57, %v16700_v3  ;;  %8999 = vmatprep.subr.mxu1 %v4657_v16  ;;  %v856_v10 = vld [vmem:[%s10552_s15 + $0x490] sm:$0xff]  ;;  %v13402_v3 = vand.u32 4294901760, %v702_v46  ;;  %8973 = vmatpush3.msra.mxu0 %v13207_v37  ;;  %v4685_v16 = vand.u32 4294901760, %v13353_v26 }
 0x2fa   : > { %v13396_v47 = vsub.f32 %v13304_v61, %v16702_v21  ;;  %9000 = vmatpush3.msra.mxu1 %v4545_v2  ;;  %v4573_v11 = vand.u32 4294901760, %v13358_v33  ;;  %v13408_v57 = vsub.f32 %v842_v17, %v13360_v30  ;;  %v13411_v21 = vsub.f32 %v841_v34, %v13363_v49  ;;  %v840_v61 = vld [vmem:[%s10552_s15 + $0x410] sm:$0xff]  ;;  %8974 = vmatprep.subr.mxu0 %v13230_v41  ;;  %v855_v17 = vld [vmem:[%s10552_s15 + $0x488] sm:$0xff] }
 0x2fb   : > { %16703 = vst [vmem:[#allocation38_spill] sm:$0xff] %v13402_v3  ;;  %9001 = vmatprep.subr.mxu1 %v4664_v56  ;;  %v13418_v23 = vsub.f32 %v13317_v42, %v16704_v25  ;;  %v839_v33 = vld [vmem:[%s10552_s15 + $0x408] sm:$0xff]  ;;  %v13425_v34 = vsub.f32 %v858_v36, %v13368_v58  ;;  %8975 = vmatpush3.msra.mxu0 %v13232_v31  ;;  %v16705_v56 = vand.u32 4294901760, %v13260_v24  ;;  %v4692_v41 = vand.u32 4294901760, %v13381_v27  ;;  %v838_v27 = vld [vmem:[%s10552_s15 + $0x400] sm:$0xff] }
 0x2fc   : > { %v4580_v25 = vand.u32 4294901760, %v13386_v14  ;;  %v13432_v37 = vand.u32 4294901760, %v856_v10  ;;  %v13435_v2 = vsub.f32 %v703_v5, %v13388_v39  ;;  %8976 = vmatprep.subr.mxu0 %v13248_v19  ;;  %v16707_v26 = vand.u32 4294901760, %v13272_v29  ;;  %4751 = vmatprep.mubr.f32.mxu1 %v13388_v39  ;;  %v16745_v39 = vld [vmem:[#allocation41_spill] sm:$0xff] }
 0x2fd   : > { %9002 = vmatpush3.msra.mxu1 %v16705_v56  ;;  %v4699_v36 = vand.u32 4294901760, %v13396_v47  ;;  %v13441_v31 = vand.u32 4294901760, %v840_v61  ;;  %v854_v56 = vld [vmem:[%s10552_s15 + $0x480] sm:$0xff]  ;;  %v13447_v14 = vsub.f32 %v702_v46, %v13402_v3  ;;  %8977 = vmatpush3.msra.mxu0 %v13274_v63  ;;  %v16708_v5 = vand.u32 4294901760, %v13286_v53 }
 0x2fe   : > { %16706 = vst [vmem:[#allocation57_spill] sm:$0xff] %v13432_v37  ;;  %9003 = vmatprep.subr.mxu1 %v16707_v26  ;;  %v13452_v19 = vand.u32 4294901760, %v855_v17  ;;  %v13454_v29 = vand.u32 4294901760, %v839_v33  ;;  %v13458_v26 = vsub.f32 %v857_v51, %v13391_v7  ;;  %8978 = vmatprep.subr.mxu0 %v13319_v45  ;;  %v16709_v24 = vand.u32 4294901760, %v13298_v50 }
 0x2ff   : > { %9004 = vmatpush3.msra.mxu1 %v16708_v5  ;;  %v4587_v46 = vand.u32 4294901760, %v13418_v23  ;;  %v16710_v63 = vand.u32 4294901760, %v13372_v1  ;;  %v16711_v5 = vand.u32 4294901760, %v13341_v12  ;;  %8979 = vmatpush3.msra.mxu0 %v13300_v44  ;;  %v13472_v51 = vand.u32 4294901760, %v854_v56 }
 0x300   : > { %9005 = vmatprep.subr.mxu1 %v16709_v24  ;;  %v13474_v45 = vand.u32 4294901760, %v838_v27  ;;  %v13478_v23 = vsub.f32 %v856_v10, %v13432_v37  ;;  %8980 = vmatprep.subr.mxu0 %v13343_v13  ;;  %v16712_v24 = vand.u32 4294901760, %v13400_v28  ;;  %v13491_v10 = vsub.f32 %v839_v33, %v13454_v29 }
 0x301   : > { %v4705_v53 = vsub.f32 %v13372_v1, %v16710_v63  ;;  %v4593_v42 = vsub.f32 %v13341_v12, %v16711_v5  ;;  %9006 = vmatpush3.msra.mxu1 %v4566_v52  ;;  %v13482_v63 = vsub.f32 %v840_v61, %v13441_v31  ;;  %8981 = vmatpush3.msra.mxu0 %v13331_v59  ;;  %v16713_v50 = vand.u32 4294901760, %v13376_v20 }
 0x302   : > { %9007 = vmatprep.subr.mxu1 %v4685_v16  ;;  %v4712_v5 = vsub.f32 %v13400_v28, %v16712_v24  ;;  %v13498_v13 = vsub.f32 %v855_v17, %v13452_v19  ;;  %8982 = vmatprep.subr.mxu0 %v13368_v58  ;;  %v16714_v52 = vand.u32 4294901760, %v13425_v34  ;;  %v16716_v17 = vand.u32 4294901760, %v13435_v2 }
 0x303   : > { %9008 = vmatpush3.msra.mxu1 %v4573_v11  ;;  %v4600_v16 = vsub.f32 %v13376_v20, %v16713_v50  ;;  %v4706_v24 = vand.u32 4294901760, %v4705_v53  ;;  %v4594_v47 = vand.u32 4294901760, %v4593_v42  ;;  %8983 = vmatpush3.msra.mxu0 %v13360_v30  ;;  %v13507_v50 = vsub.f32 %v838_v27, %v13474_v45 }
 0x304   : > { %9009 = vmatprep.subr.mxu1 %v4692_v41  ;;  %v4719_v11 = vsub.f32 %v13425_v34, %v16714_v52  ;;  %v4513_v61 = vsub.f32 %v13435_v2, %v16716_v17  ;;  %v13514_v42 = vsub.f32 %v854_v56, %v13472_v51  ;;  %8984 = vmatprep.subr.mxu0 %v13391_v7  ;;  %v4713_v53 = vand.u32 4294901760, %v4712_v5 }
 0x305   : > { %9010 = vmatpush3.msra.mxu1 %v4580_v25  ;;  %16715 = vst [vmem:[#allocation49_spill] sm:$0xff] %v13507_v50  ;;  %v16718_v52 = vand.u32 4294901760, %v13408_v57  ;;  %v16719_v27 = vand.u32 4294901760, %v13447_v14  ;;  %8985 = vmatpush3.msra.mxu0 %v13363_v49  ;;  %v4601_v17 = vand.u32 4294901760, %v4600_v16  ;;  %v16720_v56 = vand.u32 4294901760, %v13458_v26 }
 0x306   : > { %16717 = vst [vmem:[#allocation50_spill] sm:$0xff] %v13514_v42  ;;  %9011 = vmatprep.subr.mxu1 %v4699_v36  ;;  %8986 = vmatprep.subr.mxu0 %v13432_v37  ;;  %v4720_v5 = vand.u32 4294901760, %v4719_v11  ;;  %v16722_v16 = vand.u32 4294901760, %v13478_v23  ;;  %v15978_v36 = vand.u32 4294901760, %v13514_v42  ;;  %v16723_v37 = vand.u32 4294901760, %v13482_v63 }
 0x307   : > { %v4607_v25 = vsub.f32 %v13408_v57, %v16718_v52  ;;  %v4519_v33 = vsub.f32 %v13447_v14, %v16719_v27  ;;  %9012 = vmatpush3.msra.mxu1 %v4587_v46  ;;  %v4726_v41 = vsub.f32 %v13458_v26, %v16720_v56  ;;  %v16721_v52 = vand.u32 4294901760, %v13411_v21  ;;  %8987 = vmatpush3.msra.mxu0 %v13441_v31 }
 0x308   : > { %9013 = vmatprep.subr.mxu1 %v4706_v24  ;;  %v4514_v46 = vand.u32 4294901760, %v4513_v61  ;;  %v4733_v56 = vsub.f32 %v13478_v23, %v16722_v16  ;;  %8988 = vmatprep.subr.mxu0 %v13452_v19  ;;  %v15977_v30 = vand.u32 4294901760, %v13507_v50  ;;  %v16724_v61 = vand.u32 4294901760, %v13498_v13 }
 0x309   : > { %v4614_v27 = vsub.f32 %v13411_v21, %v16721_v52  ;;  %9014 = vmatpush3.msra.mxu1 %v4594_v47  ;;  %v4608_v24 = vand.u32 4294901760, %v4607_v25  ;;  %v4520_v11 = vand.u32 4294901760, %v4519_v33  ;;  %v4621_v52 = vsub.f32 %v13482_v63, %v16723_v37  ;;  %8989 = vmatpush3.msra.mxu0 %v13454_v29 }
 0x30a   : > { %9015 = vmatprep.subr.mxu1 %v4713_v53  ;;  %v4727_v47 = vand.u32 4294901760, %v4726_v41  ;;  %v4740_v16 = vsub.f32 %v13498_v13, %v16724_v61  ;;  %8990 = vmatprep.subr.mxu0 %v13472_v51  ;;  %v16725_v33 = vand.u32 4294901760, %v13491_v10  ;;  %v4734_v37 = vand.u32 4294901760, %v4733_v56  ;;  %v16729_v61 = vld [vmem:[#allocation32_spill] sm:$0xff] }
 0x30b   : > { %9016 = vmatpush3.msra.mxu1 %v4601_v17  ;;  %v4615_v53 = vand.u32 4294901760, %v4614_v27  ;;  %8991 = vmatpush3.msra.mxu0 %v13474_v45  ;;  %v4747_v41 = vsub.f32 %v13514_v42, %v15978_v36  ;;  %v4622_v17 = vand.u32 4294901760, %v4621_v52  ;;  %v16727_v52 = vld [vmem:[#allocation54_spill] sm:$0xff]  ;;  %v16743_v36 = vld [vmem:[#allocation45_spill] sm:$0xff] }
 0x30c   : > { %9017 = vmatprep.subr.mxu1 %v4720_v5  ;;  %v4628_v25 = vsub.f32 %v13491_v10, %v16725_v33  ;;  %4515 = vmatprep.mubr.f32.mxu0 %v4514_v46  ;;  %v4635_v5 = vsub.f32 %v13507_v50, %v15977_v30  ;;  %v4741_v27 = vand.u32 4294901760, %v4740_v16  ;;  %v16730_v16 = vld [vmem:[#allocation31_spill] sm:$0xff]  ;;  %v16742_v30 = vld [vmem:[#allocation29_spill] sm:$0xff] }
 0x30d   : > { %9018 = vmatpush3.msra.mxu1 %v4608_v24  ;;  %4521 = vmatmul.mubr.f32.vlgmr.msra.gmra.mxu0 %v4520_v11  ;;  %v4748_v56 = vand.u32 4294901760, %v4747_v41  ;;  %v16726_v11 = vld [vmem:[#allocation46_spill] sm:$0xff]  ;;  %v16732_v33 = vld [vmem:[#allocation35_spill] sm:$0xff]  ;;  %v16735_v41 = vld [vmem:[#allocation33_spill] sm:$0xff] }
 0x30e   : > { %9019 = vmatprep.subr.mxu1 %v4727_v47  ;;  %9030 = vmatprep.subr.mxu0 %v13080_v18  ;;  %v4629_v46 = vand.u32 4294901760, %v4628_v25  ;;  %v4636_v24 = vand.u32 4294901760, %v4635_v5  ;;  %v16728_v47 = vld [vmem:[#allocation47_spill] sm:$0xff]  ;;  %v16733_v25 = vld [vmem:[#allocation37_spill] sm:$0xff]  ;;  %v16737_v5 = vld [vmem:[#allocation44_spill] sm:$0xff] }
 0x30f   : > { %9020 = vmatpush3.msra.mxu1 %v4615_v53  ;;  %9031 = vmatpush3.msra.mxu0 %v13093_v22  ;;  %v16731_v53 = vld [vmem:[#allocation30_spill] sm:$0xff] }
 0x310   : > { %9021 = vmatprep.subr.mxu1 %v4734_v37  ;;  %9032 = vmatprep.subr.mxu0 %v13120_v4  ;;  %v16734_v37 = vld [vmem:[#allocation34_spill] sm:$0xff] }
 0x311   : > { %9022 = vmatpush3.msra.mxu1 %v4622_v17  ;;  %9033 = vmatpush3.msra.mxu0 %v13126_v40  ;;  %v16736_v17 = vld [vmem:[#allocation43_spill] sm:$0xff] }
 0x312   : > { %9023 = vmatprep.subr.mxu1 %v4741_v27  ;;  %9034 = vmatprep.subr.mxu0 %v13138_v55  ;;  %v16738_v27 = vld [vmem:[#allocation40_spill] sm:$0xff] }
 0x313   : > { %9024 = vmatpush3.msra.mxu1 %v4629_v46  ;;  %9035 = vmatpush3.msra.mxu0 %v13144_v0  ;;  %v16739_v46 = vld [vmem:[#allocation36_spill] sm:$0xff] }
 0x314   : > { %9025 = vmatprep.subr.mxu1 %v4748_v56  ;;  %9036 = vmatprep.subr.mxu0 %v13154_v60  ;;  %v16740_v56 = vld [vmem:[#allocation42_spill] sm:$0xff] }
 0x315   : > { %9026 = vmatpush3.msra.mxu1 %v4636_v24  ;;  %9037 = vmatpush3.msra.mxu0 %v13160_v62  ;;  %v16741_v24 = vld [vmem:[#allocation56_spill] sm:$0xff] }
 0x316   : > { %4753 = vmatmul.mubr.f32.vlgmr.msra.gmra.mxu1 %v13402_v3  ;;  %9038 = vmatprep.subr.mxu0 %v13177_v54  ;;  %v16744_v3 = vld [vmem:[#allocation39_spill] sm:$0xff] }
 0x317   : > { %9065 = vmatprep.subr.mxu1 %v13060_v35  ;;  %9039 = vmatpush3.msra.mxu0 %v13183_v48 }
 0x318   : > { %9066 = vmatpush3.msra.mxu1 %v13068_v32  ;;  %9040 = vmatprep.subr.mxu0 %v13195_v6 }
 0x319   : > { %9067 = vmatprep.subr.mxu1 %v13085_v43  ;;  %9041 = vmatpush3.msra.mxu0 %v13215_v38 }
 0x31a   : > { %9068 = vmatpush3.msra.mxu1 %v13095_v8  ;;  %9042 = vmatprep.subr.mxu0 %v13264_v9 }
 0x31b   : > { %9069 = vmatprep.subr.mxu1 %v13101_v15  ;;  %9043 = vmatpush3.msra.mxu0 %v16726_v11 }
 0x31c   : > { %9070 = vmatpush3.msra.mxu1 %v16727_v52  ;;  %9044 = vmatprep.subr.mxu0 %v16728_v47 }
 0x31d   : > { %9071 = vmatprep.subr.mxu1 %v16729_v61  ;;  %9045 = vmatpush3.msra.mxu0 %v16730_v16 }
 0x31e   : > { %9072 = vmatpush3.msra.mxu1 %v16731_v53  ;;  %9046 = vmatprep.subr.mxu0 %v16732_v33 }
 0x31f   : > { %9073 = vmatprep.subr.mxu1 %v16733_v25  ;;  %9047 = vmatpush3.msra.mxu0 %v16734_v37 }
 0x320   : > { %9074 = vmatpush3.msra.mxu1 %v16735_v41  ;;  %9048 = vmatprep.subr.mxu0 %v13372_v1 }
 0x321   : > { %9075 = vmatprep.subr.mxu1 %v16736_v17  ;;  %9049 = vmatpush3.msra.mxu0 %v13341_v12 }
 0x322   : > { %9076 = vmatpush3.msra.mxu1 %v16737_v5  ;;  %9050 = vmatprep.subr.mxu0 %v13400_v28 }
 0x323   : > { %9077 = vmatprep.subr.mxu1 %v16738_v27  ;;  %9051 = vmatpush3.msra.mxu0 %v13376_v20 }
 0x324   : > { %9078 = vmatpush3.msra.mxu1 %v16739_v46  ;;  %9052 = vmatprep.subr.mxu0 %v13425_v34 }
 0x325   : > { %9079 = vmatprep.subr.mxu1 %v16740_v56  ;;  %9053 = vmatpush3.msra.mxu0 %v13408_v57 }
 0x326   : > { %9080 = vmatpush3.msra.mxu1 %v16741_v24  ;;  %9054 = vmatprep.subr.mxu0 %v13458_v26 }
 0x327   : > { %9081 = vmatprep.subr.mxu1 %v16742_v30  ;;  %9055 = vmatpush3.msra.mxu0 %v13411_v21 }
 0x328   : > { %9082 = vmatpush3.msra.mxu1 %v16743_v36  ;;  %9056 = vmatprep.subr.mxu0 %v13478_v23 }
 0x329   : > { %9083 = vmatprep.subr.mxu1 %v16744_v3  ;;  %9057 = vmatpush3.msra.mxu0 %v13482_v63  ;;  %v16746_v3 = vld [vmem:[#allocation53_spill] sm:$0xff] }
 0x32a   : > { %9084 = vmatpush3.msra.mxu1 %v13300_v44  ;;  %9058 = vmatprep.subr.mxu0 %v13498_v13 }
 0x32b   : > { %9085 = vmatprep.subr.mxu1 %v16745_v39  ;;  %9059 = vmatpush3.msra.mxu0 %v13491_v10  ;;  %v16747_v39 = vand.u32 4294901760, %v13080_v18  ;;  %v16752_v18 = vand.u32 4294901760, %v13138_v55  ;;  %v16757_v55 = vand.u32 4294901760, %v13447_v14 }
 0x32c   : > { %9086 = vmatpush3.msra.mxu1 %v13331_v59  ;;  %9060 = vmatprep.subr.mxu0 %v13514_v42  ;;  %v16748_v59 = vand.u32 4294901760, %v13093_v22  ;;  %v16749_v42 = vld [vmem:[#allocation57_spill] sm:$0xff]  ;;  %v16753_v22 = vand.u32 4294901760, %v13144_v0  ;;  %v16758_v0 = vand.u32 4294901760, %v13177_v54  ;;  %v901_v54 = vld [vmem:[%s10552_s15 + $0x5f8] sm:$0xff] }
 0x32d   : > { %9087 = vmatprep.subr.mxu1 %v13368_v58  ;;  %9061 = vmatpush3.msra.mxu0 %v13507_v50  ;;  %v16750_v50 = vand.u32 4294901760, %v13120_v4  ;;  %v16754_v4 = vand.u32 4294901760, %v13154_v60  ;;  %v16759_v60 = vand.u32 4294901760, %v13183_v48 }
 0x32e   : > { %4888 = vmatprep.mubr.f32.mxu0 %v13435_v2  ;;  %9088 = vmatpush3.msra.mxu1 %v16746_v3  ;;  %v16751_v3 = vand.u32 4294901760, %v13126_v40  ;;  %v16755_v40 = vand.u32 4294901760, %v13435_v2  ;;  %v884_v2 = vld [vmem:[%s10552_s15 + $0x570] sm:$0xff] }
 0x32f   : > { %4891 = vmatmul.mubr.f32.vlgmr.msra.gmra.mxu0 %v13447_v14  ;;  %9089 = vmatprep.subr.mxu1 %v13391_v7  ;;  %v16768_v14 = vand.u32 4294901760, %v13372_v1  ;;  %v16770_v1 = vand.u32 4294901760, %v13400_v28  ;;  %v16772_v28 = vand.u32 4294901760, %v13425_v34 }
 0x330   : > { %9100 = vmatprep.subr.mxu0 %v16747_v39  ;;  %9090 = vmatpush3.msra.mxu1 %v13363_v49  ;;  %v16760_v39 = vand.u32 4294901760, %v13195_v6  ;;  %v900_v6 = vld [vmem:[%s10552_s15 + $0x5f0] sm:$0xff] }
 0x331   : > { %9101 = vmatpush3.msra.mxu0 %v16748_v59  ;;  %9091 = vmatprep.subr.mxu1 %v16749_v42  ;;  %v16756_v59 = vand.u32 4294901760, %v13160_v62  ;;  %v16761_v62 = vand.u32 4294901760, %v13215_v38  ;;  %v16767_v38 = vand.u32 4294901760, %v16734_v37 }
 0x332   : > { %9102 = vmatprep.subr.mxu0 %v16750_v50  ;;  %9092 = vmatpush3.msra.mxu1 %v13441_v31  ;;  %v899_v50 = vld [vmem:[%s10552_s15 + $0x5e8] sm:$0xff] }
 0x333   : > { %9103 = vmatpush3.msra.mxu0 %v16751_v3  ;;  %9093 = vmatprep.subr.mxu1 %v13452_v19  ;;  %v16762_v3 = vand.u32 4294901760, %v13264_v9  ;;  %v16765_v9 = vand.u32 4294901760, %v16730_v16  ;;  %v898_v16 = vld [vmem:[%s10552_s15 + $0x5e0] sm:$0xff]  ;;  %v13711_v37 = vand.u32 4294901760, %v899_v50 }
 0x334   : > { %9104 = vmatprep.subr.mxu0 %v16752_v18  ;;  %9094 = vmatpush3.msra.mxu1 %v13454_v29  ;;  %v881_v18 = vld [vmem:[%s10552_s15 + $0x558] sm:$0xff] }
 0x335   : > { %9105 = vmatpush3.msra.mxu0 %v16753_v22  ;;  %9095 = vmatprep.subr.mxu1 %v13472_v51  ;;  %v896_v22 = vld [vmem:[%s10552_s15 + $0x5d0] sm:$0xff] }
 0x336   : > { %9106 = vmatprep.subr.mxu0 %v16754_v4  ;;  %9096 = vmatpush3.msra.mxu1 %v13474_v45 }
 0x337   : > { %4995 = vmatprep.mubr.f32.mxu1 %v16755_v40  ;;  %9107 = vmatpush3.msra.mxu0 %v16756_v59  ;;  %v13744_v59 = vand.u32 4294901760, %v881_v18 }
 0x338   : > { %4999 = vmatmul.mubr.f32.vlgmr.msra.gmra.mxu1 %v16757_v55  ;;  %9108 = vmatprep.subr.mxu0 %v16758_v0  ;;  %v880_v55 = vld [vmem:[%s10552_s15 + $0x550] sm:$0xff]  ;;  %v16782_v0 = vld [vmem:[#allocation39_spill] sm:$0xff] }
 0x339   : > { %9135 = vmatprep.subr.mxu1 %v13060_v35  ;;  %9109 = vmatpush3.msra.mxu0 %v16759_v60  ;;  %v16763_v35 = vand.u32 4294901760, %v16726_v11  ;;  %16780 = vst [vmem:[#allocation47_spill] sm:$0xff] %v13744_v59 }
 0x33a   : > { %9136 = vmatpush3.msra.mxu1 %v13068_v32  ;;  %9110 = vmatprep.subr.mxu0 %v16760_v39  ;;  %v885_v32 = vld [vmem:[%s10552_s15 + $0x578] sm:$0xff] }
 0x33b   : > { %9137 = vmatprep.subr.mxu1 %v13085_v43  ;;  %9111 = vmatpush3.msra.mxu0 %v16761_v62  ;;  %v16764_v43 = vand.u32 4294901760, %v16728_v47  ;;  %v13678_v48 = vand.u32 4294901760, %v885_v32  ;;  %v13695_v47 = vand.u32 4294901760, %v900_v6 }
 0x33c   : > { %9138 = vmatpush3.msra.mxu1 %v13095_v8  ;;  %9112 = vmatprep.subr.mxu0 %v16762_v3  ;;  %v13670_v8 = vand.u32 4294901760, %v901_v54  ;;  %v16785_v3 = vand.u32 4294901760, %v13498_v13  ;;  %v16788_v13 = vand.u32 4294901760, %v13491_v10 }
 0x33d   : > { %9139 = vmatprep.subr.mxu1 %v13101_v15  ;;  %9113 = vmatpush3.msra.mxu0 %v16763_v35  ;;  %v16766_v15 = vand.u32 4294901760, %v16732_v33  ;;  %v13705_v33 = vand.u32 4294901760, %v884_v2  ;;  %v13730_v34 = vsub.f32 %v900_v6, %v13695_v47  ;;  %v16786_v35 = vld [vmem:[#allocation41_spill] sm:$0xff]  ;;  %v16789_v6 = vld [vmem:[#allocation48_spill] sm:$0xff] }
 0x33e   : > { %9140 = vmatpush3.msra.mxu1 %v16727_v52  ;;  %9114 = vmatprep.subr.mxu0 %v16764_v43  ;;  %v13690_v11 = vsub.f32 %v901_v54, %v13670_v8  ;;  %v16769_v52 = vand.u32 4294901760, %v13341_v12  ;;  %v882_v12 = vld [vmem:[%s10552_s15 + $0x560] sm:$0xff]  ;;  %v895_v43 = vld [vmem:[%s10552_s15 + $0x5c8] sm:$0xff] }
 0x33f   : > { %9141 = vmatprep.subr.mxu1 %v16729_v61  ;;  %9115 = vmatpush3.msra.mxu0 %v16765_v9  ;;  %v883_v61 = vld [vmem:[%s10552_s15 + $0x568] sm:$0xff]  ;;  %v13736_v4 = vsub.f32 %v884_v2, %v13705_v33  ;;  %v15992_v54 = vand.u32 4294901760, %v13730_v34 }
 0x340   : > { %9142 = vmatpush3.msra.mxu1 %v16731_v53  ;;  %9116 = vmatprep.subr.mxu0 %v16766_v15  ;;  %v13703_v53 = vsub.f32 %v885_v32, %v13678_v48  ;;  %v879_v9 = vld [vmem:[%s10552_s15 + $0x548] sm:$0xff] }
 0x341   : > { %9143 = vmatprep.subr.mxu1 %v16733_v25  ;;  %9117 = vmatpush3.msra.mxu0 %v16767_v38  ;;  %v16771_v25 = vand.u32 4294901760, %v13376_v20  ;;  %v16775_v20 = vand.u32 4294901760, %v13408_v57  ;;  %v13793_v38 = vsub.f32 %v881_v18, %v13744_v59  ;;  %v13815_v18 = vand.u32 4294901760, %v895_v43 }
 0x342   : > { %9144 = vmatpush3.msra.mxu1 %v16735_v41  ;;  %9118 = vmatprep.subr.mxu0 %v16768_v14  ;;  %v897_v41 = vld [vmem:[%s10552_s15 + $0x5d8] sm:$0xff]  ;;  %v15994_v57 = vand.u32 4294901760, %v13703_v53 }
 0x343   : > { %9145 = vmatprep.subr.mxu1 %v16736_v17  ;;  %9119 = vmatpush3.msra.mxu0 %v16769_v52  ;;  %v13717_v17 = vand.u32 4294901760, %v883_v61  ;;  %v13738_v40 = vand.u32 4294901760, %v897_v41  ;;  %v16790_v14 = vld [vmem:[#allocation50_spill] sm:$0xff]  ;;  %16795 = vst [vmem:[#allocation30_spill] sm:$0xff] %v13815_v18 }
 0x344   : > { %9146 = vmatpush3.msra.mxu1 %v16737_v5  ;;  %9120 = vmatprep.subr.mxu0 %v16770_v1  ;;  %v13719_v5 = vand.u32 4294901760, %v898_v16  ;;  %v13779_v32 = vsub.f32 %v13703_v53, %v15994_v57  ;;  %v878_v1 = vld [vmem:[%s10552_s15 + $0x540] sm:$0xff] }
 0x345   : > { %9147 = vmatprep.subr.mxu1 %v16738_v27  ;;  %9121 = vmatpush3.msra.mxu0 %v16771_v25  ;;  %16773 = vst [vmem:[#allocation55_spill] sm:$0xff] %v13717_v17  ;;  %v15996_v27 = vand.u32 4294901760, %v13690_v11  ;;  %16778 = vst [vmem:[#allocation54_spill] sm:$0xff] %v13738_v40  ;;  %v13754_v60 = vsub.f32 %v883_v61, %v13717_v17  ;;  %v13787_v15 = vsub.f32 %v897_v41, %v13738_v40  ;;  %v16792_v25 = vld [vmem:[#allocation49_spill] sm:$0xff] }
 0x346   : > { %9148 = vmatpush3.msra.mxu1 %v16739_v46  ;;  %9122 = vmatprep.subr.mxu0 %v16772_v28  ;;  %16774 = vst [vmem:[#allocation52_spill] sm:$0xff] %v13719_v5  ;;  %v13726_v46 = vand.u32 4294901760, %v882_v12  ;;  %v13764_v39 = vsub.f32 %v898_v16, %v13719_v5  ;;  %v894_v16 = vld [vmem:[%s10552_s15 + $0x5c0] sm:$0xff]  ;;  %v16793_v41 = vand.u32 4294901760, %v16792_v25 }
 0x347   : > { %9149 = vmatprep.subr.mxu1 %v16740_v56  ;;  %9123 = vmatpush3.msra.mxu0 %v16775_v20  ;;  %v16777_v56 = vand.u32 4294901760, %v13458_v26  ;;  %v13748_v26 = vsub.f32 %v899_v50, %v13711_v37  ;;  %v16791_v50 = vand.u32 4294901760, %v16790_v14  ;;  %v15987_v61 = vand.u32 4294901760, %v13754_v60  ;;  %v16794_v28 = vld [vmem:[#allocation51_spill] sm:$0xff]  ;;  %v877_v14 = vld [vmem:[%s10552_s15 + $0x538] sm:$0xff] }
 0x348   : > { %9150 = vmatpush3.msra.mxu1 %v16741_v24  ;;  %16776 = vst [vmem:[#allocation46_spill] sm:$0xff] %v13726_v46  ;;  %v16779_v24 = vand.u32 4294901760, %v13411_v21  ;;  %v13759_v21 = vsub.f32 %v13690_v11, %v15996_v27  ;;  %v13770_v62 = vsub.f32 %v882_v12, %v13726_v46  ;;  %v15988_v10 = vand.u32 4294901760, %v13764_v39  ;;  %5165 = vmatprep.mubr.f32.mxu0 %v16794_v28 }
 0x349   : > { %9124 = vmatprep.subr.mxu0 %v16777_v56  ;;  %9151 = vmatprep.subr.mxu1 %v16742_v30  ;;  %v16781_v30 = vand.u32 4294901760, %v13478_v23  ;;  %v16784_v23 = vand.u32 4294901760, %v13482_v63  ;;  %v13781_v63 = vand.u32 4294901760, %v880_v55  ;;  %v15986_v2 = vand.u32 4294901760, %v13748_v26 }
 0x34a   : > { %9125 = vmatpush3.msra.mxu0 %v16779_v24  ;;  %9152 = vmatpush3.msra.mxu1 %v16743_v36  ;;  %v13761_v36 = vand.u32 4294901760, %v896_v22  ;;  %v5505_v52 = vand.u32 4294901760, %v13759_v21  ;;  %v13817_v20 = vand.u32 4294901760, %v879_v9  ;;  %v15990_v56 = vand.u32 4294901760, %v13770_v62  ;;  %v893_v24 = vld [vmem:[%s10552_s15 + $0x5b8] sm:$0xff] }
 0x34b   : > { %9126 = vmatprep.subr.mxu0 %v16781_v30  ;;  %9153 = vmatprep.subr.mxu1 %v16782_v0  ;;  %16787 = vst [vmem:[#allocation31_spill] sm:$0xff] %v13781_v63  ;;  %v16798_v30 = vld [vmem:[#allocation38_spill] sm:$0xff]  ;;  %v13856_v25 = vsub.f32 %v13764_v39, %v15988_v10  ;;  %v876_v10 = vld [vmem:[%s10552_s15 + $0x530] sm:$0xff] }
 0x34c   : > { %16783 = vst [vmem:[#allocation32_spill] sm:$0xff] %v13761_v36  ;;  %9127 = vmatpush3.msra.mxu0 %v16784_v23  ;;  %9154 = vmatpush3.msra.mxu1 %v13300_v44  ;;  %v15989_v44 = vand.u32 4294901760, %v13736_v4  ;;  %v13805_v12 = vsub.f32 %v896_v22, %v13761_v36  ;;  %16796 = vst [vmem:[#allocation35_spill] sm:$0xff] %v13817_v20  ;;  %v16797_v22 = vld [vmem:[#allocation53_spill] sm:$0xff]  ;;  %v13825_v23 = vsub.f32 %v880_v55, %v13781_v63 }
 0x34d   : > { %9128 = vmatprep.subr.mxu0 %v16785_v3  ;;  %9155 = vmatprep.subr.mxu1 %v16786_v35  ;;  %v15991_v35 = vand.u32 4294901760, %v13787_v15  ;;  %v13842_v55 = vand.u32 4294901760, %v878_v1 }
 0x34e   : > { %9129 = vmatpush3.msra.mxu0 %v16788_v13  ;;  %9156 = vmatpush3.msra.mxu1 %v16789_v6  ;;  %v13830_v3 = vsub.f32 %v13736_v4, %v15989_v44  ;;  %v13838_v13 = vsub.f32 %v13748_v26, %v15986_v2  ;;  %v13840_v6 = vand.u32 4294901760, %v894_v16  ;;  %v13865_v2 = vsub.f32 %v879_v9, %v13817_v20 }
 0x34f   : > { %9130 = vmatprep.subr.mxu0 %v16791_v50  ;;  %9157 = vmatprep.subr.mxu1 %v13368_v58  ;;  %v13813_v58 = vsub.f32 %v13730_v34, %v15992_v54  ;;  %16800 = vst [vmem:[#allocation34_spill] sm:$0xff] %v13842_v55  ;;  %v15993_v50 = vand.u32 4294901760, %v13793_v38  ;;  %v13874_v44 = vsub.f32 %v895_v43, %v13815_v18 }
 0x350   : > { %9131 = vmatpush3.msra.mxu0 %v16793_v41  ;;  %9158 = vmatpush3.msra.mxu1 %v16797_v22  ;;  %16799 = vst [vmem:[#allocation37_spill] sm:$0xff] %v13840_v6  ;;  %v13858_v41 = vand.u32 4294901760, %v893_v24  ;;  %v15995_v22 = vand.u32 4294901760, %v13805_v12  ;;  %16802 = vst [vmem:[#allocation43_spill] sm:$0xff] %v13865_v2  ;;  %v13882_v9 = vsub.f32 %v13787_v15, %v15991_v35  ;;  %v892_v35 = vld [vmem:[%s10552_s15 + $0x5b0] sm:$0xff] }
 0x351   : > { %5167 = vmatmul.mubr.f32.vlgmr.msra.gmra.mxu0 %v16798_v30  ;;  %9159 = vmatprep.subr.mxu1 %v13391_v7  ;;  %v13851_v7 = vsub.f32 %v13754_v60, %v15987_v61  ;;  %v13870_v61 = vsub.f32 %v13770_v62, %v15990_v56  ;;  %v15997_v56 = vand.u32 4294901760, %v13825_v23  ;;  %v13891_v43 = vsub.f32 %v878_v1, %v13842_v55 }
 0x352   : > { %9170 = vmatprep.subr.mxu0 %v13670_v8  ;;  %9160 = vmatpush3.msra.mxu1 %v13363_v49  ;;  %16801 = vst [vmem:[#allocation33_spill] sm:$0xff] %v13858_v41  ;;  %v5512_v49 = vand.u32 4294901760, %v13813_v58  ;;  %v13884_v58 = vand.u32 4294901760, %v877_v14  ;;  %v13900_v54 = vsub.f32 %v894_v16, %v13840_v6  ;;  %v13908_v1 = vsub.f32 %v13805_v12, %v15995_v22  ;;  %v874_v16 = vld [vmem:[%s10552_s15 + $0x520] sm:$0xff]  ;;  %v873_v22 = vld [vmem:[%s10552_s15 + $0x518] sm:$0xff] }
 0x353   : > { %9171 = vmatpush3.msra.mxu0 %v13678_v48  ;;  %9161 = vmatprep.subr.mxu1 %v16749_v42  ;;  %v5400_v42 = vand.u32 4294901760, %v13830_v3  ;;  %16804 = vst [vmem:[#allocation40_spill] sm:$0xff] %v13891_v43  ;;  %v13896_v3 = vsub.f32 %v13793_v38, %v15993_v50  ;;  %v875_v50 = vld [vmem:[%s10552_s15 + $0x528] sm:$0xff]  ;;  %v13914_v57 = vsub.f32 %v893_v24, %v13858_v41  ;;  %v13929_v0 = vand.u32 4294901760, %v892_v35 }
 0x354   : > { %9172 = vmatprep.subr.mxu0 %v13695_v47  ;;  %9162 = vmatpush3.msra.mxu1 %v13441_v31  ;;  %16803 = vst [vmem:[#allocation44_spill] sm:$0xff] %v13884_v58  ;;  %v5519_v31 = vand.u32 4294901760, %v13838_v13  ;;  %16805 = vst [vmem:[#allocation36_spill] sm:$0xff] %v13900_v54  ;;  %v13910_v13 = vand.u32 4294901760, %v876_v10  ;;  %v16811_v24 = vand.u32 4294901760, %v13779_v32  ;;  %v16812_v27 = vand.u32 4294901760, %v13874_v44 }
 0x355   : > { %9173 = vmatpush3.msra.mxu0 %v13705_v33  ;;  %9163 = vmatprep.subr.mxu1 %v13452_v19  ;;  %v5407_v19 = vand.u32 4294901760, %v13851_v7  ;;  %16806 = vst [vmem:[#allocation42_spill] sm:$0xff] %v13914_v57  ;;  %v891_v7 = vld [vmem:[%s10552_s15 + $0x5a8] sm:$0xff]  ;;  %16808 = vst [vmem:[#allocation29_spill] sm:$0xff] %v13929_v0 }
 0x356   : > { %9174 = vmatprep.subr.mxu0 %v13711_v37  ;;  %9164 = vmatpush3.msra.mxu1 %v13454_v29  ;;  %v5526_v29 = vand.u32 4294901760, %v13856_v25  ;;  %v13934_v25 = vsub.f32 %v13825_v23, %v15997_v56  ;;  %v13963_v21 = vsub.f32 %v13874_v44, %v16812_v27  ;;  %v13970_v56 = vand.u32 4294901760, %v874_v16 }
 0x357   : > { %9175 = vmatpush3.msra.mxu0 %v13717_v17  ;;  %9165 = vmatprep.subr.mxu1 %v13472_v51  ;;  %v13927_v51 = vsub.f32 %v877_v14, %v13884_v58  ;;  %v890_v14 = vld [vmem:[%s10552_s15 + $0x5a0] sm:$0xff]  ;;  %v704_v17 = vld [vmem:[%s10999_s13 + $0x50] sm:$0xff] }
 0x358   : > { %9176 = vmatprep.subr.mxu0 %v13719_v5  ;;  %9166 = vmatpush3.msra.mxu1 %v13474_v45  ;;  %v13953_v45 = vand.u32 4294901760, %v891_v7  ;;  %v705_v5 = vld [vmem:[%s10999_s13 + $0x58] sm:$0xff]  ;;  %16814 = vst [vmem:[#allocation39_spill] sm:$0xff] %v13970_v56  ;;  %v5428_v32 = vand.u32 4294901760, %v13934_v25 }
 0x359   : > { %5269 = vmatprep.mubr.f32.mxu1 %v16794_v28  ;;  %16807 = vst [vmem:[#allocation56_spill] sm:$0xff] %v13927_v51  ;;  %9177 = vmatpush3.msra.mxu0 %v13726_v46  ;;  %v13941_v28 = vand.u32 4294901760, %v875_v50  ;;  %v13973_v46 = vand.u32 4294901760, %v873_v22  ;;  %v13998_v27 = vand.u32 4294901760, %v705_v5 }
 0x35a   : > { %5271 = vmatmul.mubr.f32.vlgmr.msra.gmra.mxu1 %v16798_v30  ;;  %9178 = vmatprep.subr.mxu0 %v13738_v40  ;;  %v13951_v30 = vsub.f32 %v876_v10, %v13910_v13  ;;  %16810 = vst [vmem:[#allocation57_spill] sm:$0xff] %v13953_v45  ;;  %v889_v40 = vld [vmem:[%s10552_s15 + $0x598] sm:$0xff] }
 0x35b   : > { %16809 = vst [vmem:[#allocation45_spill] sm:$0xff] %v13941_v28  ;;  %9205 = vmatprep.subr.mxu1 %v5505_v52  ;;  %9179 = vmatpush3.msra.mxu0 %v13744_v59  ;;  %v16813_v52 = vand.u32 4294901760, %v13865_v2  ;;  %v13982_v59 = vsub.f32 %v892_v35, %v13929_v0  ;;  %16817 = vst [vmem:[#allocation41_spill] sm:$0xff] %v13998_v27  ;;  %v14001_v35 = vand.u32 4294901760, %v889_v40 }
 0x35c   : > { %9206 = vmatpush3.msra.mxu1 %v16811_v24  ;;  %9180 = vmatprep.subr.mxu0 %v13761_v36  ;;  %v13978_v24 = vand.u32 4294901760, %v890_v14 }
 0x35d   : > { %v13968_v10 = vsub.f32 %v13865_v2, %v16813_v52  ;;  %9207 = vmatprep.subr.mxu1 %v5512_v49  ;;  %9181 = vmatpush3.msra.mxu0 %v13781_v63  ;;  %v13986_v52 = vsub.f32 %v875_v50, %v13941_v28  ;;  %v16815_v2 = vand.u32 4294901760, %v13900_v54  ;;  %v16816_v49 = vand.u32 4294901760, %v13891_v43 }
 0x35e   : > { %9208 = vmatpush3.msra.mxu1 %v5400_v42  ;;  %9182 = vmatprep.subr.mxu0 %v13815_v18  ;;  %v16818_v50 = vand.u32 4294901760, %v13914_v57  ;;  %v14010_v63 = vsub.f32 %v891_v7, %v13953_v45  ;;  %v16820_v7 = vand.u32 4294901760, %v13927_v51 }
 0x35f   : > { %v13991_v36 = vsub.f32 %v13900_v54, %v16815_v2  ;;  %v13996_v25 = vsub.f32 %v13891_v43, %v16816_v49  ;;  %9209 = vmatprep.subr.mxu1 %v5519_v31  ;;  %v888_v2 = vld [vmem:[%s10552_s15 + $0x590] sm:$0xff]  ;;  %v14012_v49 = vand.u32 4294901760, %v704_v17  ;;  %9183 = vmatpush3.msra.mxu0 %v13817_v20  ;;  %v5547_v31 = vand.u32 4294901760, %v13963_v21 }
 0x360   : > { %v14006_v42 = vsub.f32 %v13914_v57, %v16818_v50  ;;  %9210 = vmatpush3.msra.mxu1 %v5407_v19  ;;  %v5435_v18 = vand.u32 4294901760, %v13968_v10  ;;  %v14018_v43 = vsub.f32 %v874_v16, %v13970_v56  ;;  %v14021_v50 = vsub.f32 %v873_v22, %v13973_v46  ;;  %v872_v57 = vld [vmem:[%s10552_s15 + $0x510] sm:$0xff]  ;;  %9184 = vmatprep.subr.mxu0 %v13840_v6  ;;  %v887_v16 = vld [vmem:[%s10552_s15 + $0x588] sm:$0xff] }
 0x361   : > { %16819 = vst [vmem:[#allocation48_spill] sm:$0xff] %v14012_v49  ;;  %9211 = vmatprep.subr.mxu1 %v5526_v29  ;;  %v14028_v54 = vsub.f32 %v13927_v51, %v16820_v7  ;;  %v871_v10 = vld [vmem:[%s10552_s15 + $0x508] sm:$0xff]  ;;  %v14035_v22 = vsub.f32 %v890_v14, %v13978_v24  ;;  %9185 = vmatpush3.msra.mxu0 %v13842_v55  ;;  %v16821_v29 = vand.u32 4294901760, %v13870_v61  ;;  %v5554_v6 = vand.u32 4294901760, %v13991_v36  ;;  %v870_v36 = vld [vmem:[%s10552_s15 + $0x500] sm:$0xff] }
 0x362   : > { %v5442_v7 = vand.u32 4294901760, %v13996_v25  ;;  %v14042_v20 = vand.u32 4294901760, %v888_v2  ;;  %v14045_v19 = vsub.f32 %v705_v5, %v13998_v27  ;;  %9186 = vmatprep.subr.mxu0 %v13858_v41  ;;  %v16823_v21 = vand.u32 4294901760, %v13882_v9  ;;  %5613 = vmatprep.mubr.f32.mxu1 %v13998_v27  ;;  %v16861_v27 = vld [vmem:[#allocation57_spill] sm:$0xff] }
 0x363   : > { %9212 = vmatpush3.msra.mxu1 %v16821_v29  ;;  %v5561_v14 = vand.u32 4294901760, %v14006_v42  ;;  %v14051_v55 = vand.u32 4294901760, %v872_v57  ;;  %v886_v29 = vld [vmem:[%s10552_s15 + $0x580] sm:$0xff]  ;;  %v14057_v25 = vsub.f32 %v704_v17, %v14012_v49  ;;  %9187 = vmatpush3.msra.mxu0 %v13884_v58  ;;  %v16824_v5 = vand.u32 4294901760, %v13896_v3 }
 0x364   : > { %16822 = vst [vmem:[#allocation50_spill] sm:$0xff] %v14042_v20  ;;  %9213 = vmatprep.subr.mxu1 %v16823_v21  ;;  %v14062_v41 = vand.u32 4294901760, %v887_v16  ;;  %v14064_v9 = vand.u32 4294901760, %v871_v10  ;;  %v14068_v21 = vsub.f32 %v889_v40, %v14001_v35  ;;  %9188 = vmatprep.subr.mxu0 %v13929_v0  ;;  %v16825_v61 = vand.u32 4294901760, %v13908_v1 }
 0x365   : > { %9214 = vmatpush3.msra.mxu1 %v16824_v5  ;;  %v5449_v17 = vand.u32 4294901760, %v14028_v54  ;;  %v16826_v58 = vand.u32 4294901760, %v13982_v59  ;;  %v16827_v5 = vand.u32 4294901760, %v13951_v30  ;;  %9189 = vmatpush3.msra.mxu0 %v13910_v13  ;;  %v14082_v40 = vand.u32 4294901760, %v886_v29 }
 0x366   : > { %9215 = vmatprep.subr.mxu1 %v16825_v61  ;;  %v14084_v0 = vand.u32 4294901760, %v870_v36  ;;  %v14088_v54 = vsub.f32 %v888_v2, %v14042_v20  ;;  %9190 = vmatprep.subr.mxu0 %v13953_v45  ;;  %v16828_v61 = vand.u32 4294901760, %v14010_v63  ;;  %v14101_v2 = vsub.f32 %v871_v10, %v14064_v9 }
 0x367   : > { %v5567_v3 = vsub.f32 %v13982_v59, %v16826_v58  ;;  %v5455_v51 = vsub.f32 %v13951_v30, %v16827_v5  ;;  %9216 = vmatpush3.msra.mxu1 %v5428_v32  ;;  %v14092_v58 = vsub.f32 %v872_v57, %v14051_v55  ;;  %9191 = vmatpush3.msra.mxu0 %v13941_v28  ;;  %v16829_v1 = vand.u32 4294901760, %v13986_v52 }
 0x368   : > { %9217 = vmatprep.subr.mxu1 %v5547_v31  ;;  %v5574_v5 = vsub.f32 %v14010_v63, %v16828_v61  ;;  %v14108_v45 = vsub.f32 %v887_v16, %v14062_v41  ;;  %9192 = vmatprep.subr.mxu0 %v13978_v24  ;;  %v16830_v32 = vand.u32 4294901760, %v14035_v22  ;;  %v16832_v16 = vand.u32 4294901760, %v14045_v19 }
 0x369   : > { %9218 = vmatpush3.msra.mxu1 %v5435_v18  ;;  %v5462_v31 = vsub.f32 %v13986_v52, %v16829_v1  ;;  %v5568_v61 = vand.u32 4294901760, %v5567_v3  ;;  %v5456_v42 = vand.u32 4294901760, %v5455_v51  ;;  %9193 = vmatpush3.msra.mxu0 %v13970_v56  ;;  %v14117_v1 = vsub.f32 %v870_v36, %v14084_v0 }
 0x36a   : > { %9219 = vmatprep.subr.mxu1 %v5554_v6  ;;  %v5581_v18 = vsub.f32 %v14035_v22, %v16830_v32  ;;  %v5375_v57 = vsub.f32 %v14045_v19, %v16832_v16  ;;  %v14124_v51 = vsub.f32 %v886_v29, %v14082_v40  ;;  %9194 = vmatprep.subr.mxu0 %v14001_v35  ;;  %v5575_v3 = vand.u32 4294901760, %v5574_v5 }
 0x36b   : > { %9220 = vmatpush3.msra.mxu1 %v5442_v7  ;;  %16831 = vst [vmem:[#allocation49_spill] sm:$0xff] %v14117_v1  ;;  %v16834_v32 = vand.u32 4294901760, %v14018_v43  ;;  %v16835_v36 = vand.u32 4294901760, %v14057_v25  ;;  %9195 = vmatpush3.msra.mxu0 %v13973_v46  ;;  %v5463_v16 = vand.u32 4294901760, %v5462_v31  ;;  %v16836_v29 = vand.u32 4294901760, %v14068_v21 }
 0x36c   : > { %16833 = vst [vmem:[#allocation51_spill] sm:$0xff] %v14124_v51  ;;  %9221 = vmatprep.subr.mxu1 %v5561_v14  ;;  %9196 = vmatprep.subr.mxu0 %v14042_v20  ;;  %v5582_v5 = vand.u32 4294901760, %v5581_v18  ;;  %v16838_v31 = vand.u32 4294901760, %v14088_v54  ;;  %v16043_v14 = vand.u32 4294901760, %v14124_v51  ;;  %v16839_v20 = vand.u32 4294901760, %v14092_v58 }
 0x36d   : > { %v5469_v7 = vsub.f32 %v14018_v43, %v16834_v32  ;;  %v5381_v10 = vsub.f32 %v14057_v25, %v16835_v36  ;;  %9222 = vmatpush3.msra.mxu1 %v5449_v17  ;;  %v5588_v6 = vsub.f32 %v14068_v21, %v16836_v29  ;;  %v16837_v32 = vand.u32 4294901760, %v14021_v50  ;;  %9197 = vmatpush3.msra.mxu0 %v14051_v55 }
 0x36e   : > { %9223 = vmatprep.subr.mxu1 %v5568_v61  ;;  %v5376_v17 = vand.u32 4294901760, %v5375_v57  ;;  %v5595_v29 = vsub.f32 %v14088_v54, %v16838_v31  ;;  %9198 = vmatprep.subr.mxu0 %v14062_v41  ;;  %v16042_v56 = vand.u32 4294901760, %v14117_v1  ;;  %v16840_v57 = vand.u32 4294901760, %v14108_v45 }
 0x36f   : > { %v5476_v36 = vsub.f32 %v14021_v50, %v16837_v32  ;;  %9224 = vmatpush3.msra.mxu1 %v5456_v42  ;;  %v5470_v61 = vand.u32 4294901760, %v5469_v7  ;;  %v5382_v18 = vand.u32 4294901760, %v5381_v10  ;;  %v5483_v32 = vsub.f32 %v14092_v58, %v16839_v20  ;;  %9199 = vmatpush3.msra.mxu0 %v14064_v9 }
 0x370   : > { %9225 = vmatprep.subr.mxu1 %v5575_v3  ;;  %v5589_v42 = vand.u32 4294901760, %v5588_v6  ;;  %v5602_v31 = vsub.f32 %v14108_v45, %v16840_v57  ;;  %9200 = vmatprep.subr.mxu0 %v14082_v40  ;;  %v16841_v10 = vand.u32 4294901760, %v14101_v2  ;;  %v5596_v20 = vand.u32 4294901760, %v5595_v29  ;;  %v16845_v57 = vld [vmem:[#allocation52_spill] sm:$0xff] }
 0x371   : > { %9226 = vmatpush3.msra.mxu1 %v5463_v16  ;;  %v5477_v3 = vand.u32 4294901760, %v5476_v36  ;;  %9201 = vmatpush3.msra.mxu0 %v14084_v0  ;;  %v5609_v6 = vsub.f32 %v14124_v51, %v16043_v14  ;;  %v5484_v16 = vand.u32 4294901760, %v5483_v32  ;;  %v16843_v32 = vld [vmem:[#allocation55_spill] sm:$0xff]  ;;  %v16859_v14 = vld [vmem:[#allocation44_spill] sm:$0xff] }
 0x372   : > { %9227 = vmatprep.subr.mxu1 %v5582_v5  ;;  %v5490_v7 = vsub.f32 %v14101_v2, %v16841_v10  ;;  %5377 = vmatprep.mubr.f32.mxu0 %v5376_v17  ;;  %v5497_v5 = vsub.f32 %v14117_v1, %v16042_v56  ;;  %v5603_v36 = vand.u32 4294901760, %v5602_v31  ;;  %v16846_v31 = vld [vmem:[#allocation40_spill] sm:$0xff]  ;;  %v16848_v10 = vld [vmem:[#allocation42_spill] sm:$0xff]  ;;  %v16858_v56 = vld [vmem:[#allocation33_spill] sm:$0xff] }
 0x373   : > { %9228 = vmatpush3.msra.mxu1 %v5470_v61  ;;  %5383 = vmatmul.mubr.f32.vlgmr.msra.gmra.mxu0 %v5382_v18  ;;  %v5610_v29 = vand.u32 4294901760, %v5609_v6  ;;  %v16842_v18 = vld [vmem:[#allocation43_spill] sm:$0xff] }
 0x374   : > { %9229 = vmatprep.subr.mxu1 %v5589_v42  ;;  %9240 = vmatprep.subr.mxu0 %v13690_v11  ;;  %v5491_v17 = vand.u32 4294901760, %v5490_v7  ;;  %v5498_v61 = vand.u32 4294901760, %v5497_v5  ;;  %v16844_v42 = vld [vmem:[#allocation36_spill] sm:$0xff]  ;;  %v16849_v7 = vld [vmem:[#allocation54_spill] sm:$0xff]  ;;  %v16851_v6 = vld [vmem:[#allocation47_spill] sm:$0xff] }
 0x375   : > { %9230 = vmatpush3.msra.mxu1 %v5477_v3  ;;  %9241 = vmatpush3.msra.mxu0 %v13703_v53  ;;  %v16847_v3 = vld [vmem:[#allocation46_spill] sm:$0xff]  ;;  %v16853_v5 = vld [vmem:[#allocation31_spill] sm:$0xff] }
 0x376   : > { %9231 = vmatprep.subr.mxu1 %v5596_v20  ;;  %9242 = vmatprep.subr.mxu0 %v13730_v34  ;;  %v16850_v20 = vld [vmem:[#allocation56_spill] sm:$0xff] }
 0x377   : > { %9232 = vmatpush3.msra.mxu1 %v5484_v16  ;;  %9243 = vmatpush3.msra.mxu0 %v13736_v4  ;;  %v16852_v16 = vld [vmem:[#allocation32_spill] sm:$0xff] }
 0x378   : > { %9233 = vmatprep.subr.mxu1 %v5603_v36  ;;  %9244 = vmatprep.subr.mxu0 %v13748_v26  ;;  %v16854_v36 = vld [vmem:[#allocation30_spill] sm:$0xff] }
 0x379   : > { %9234 = vmatpush3.msra.mxu1 %v5491_v17  ;;  %9245 = vmatpush3.msra.mxu0 %v13754_v60  ;;  %v16855_v17 = vld [vmem:[#allocation35_spill] sm:$0xff] }
 0x37a   : > { %9235 = vmatprep.subr.mxu1 %v5610_v29  ;;  %9246 = vmatprep.subr.mxu0 %v13764_v39  ;;  %v16856_v29 = vld [vmem:[#allocation37_spill] sm:$0xff] }
 0x37b   : > { %9236 = vmatpush3.msra.mxu1 %v5498_v61  ;;  %9247 = vmatpush3.msra.mxu0 %v13770_v62  ;;  %v16857_v61 = vld [vmem:[#allocation34_spill] sm:$0xff] }
 0x37c   : > { %5615 = vmatmul.mubr.f32.vlgmr.msra.gmra.mxu1 %v14012_v49  ;;  %9248 = vmatprep.subr.mxu0 %v13787_v15  ;;  %v16860_v49 = vld [vmem:[#allocation29_spill] sm:$0xff] }
 0x37d   : > { %9275 = vmatprep.subr.mxu1 %v13670_v8  ;;  %9249 = vmatpush3.msra.mxu0 %v13793_v38 }
 0x37e   : > { %9276 = vmatpush3.msra.mxu1 %v13678_v48  ;;  %9250 = vmatprep.subr.mxu0 %v13805_v12 }
 0x37f   : > { %9277 = vmatprep.subr.mxu1 %v13695_v47  ;;  %9251 = vmatpush3.msra.mxu0 %v13825_v23 }
 0x380   : > { %9278 = vmatpush3.msra.mxu1 %v13705_v33  ;;  %9252 = vmatprep.subr.mxu0 %v13874_v44 }
 0x381   : > { %9279 = vmatprep.subr.mxu1 %v13711_v37  ;;  %9253 = vmatpush3.msra.mxu0 %v16842_v18 }
 0x382   : > { %9280 = vmatpush3.msra.mxu1 %v16843_v32  ;;  %9254 = vmatprep.subr.mxu0 %v16844_v42 }
 0x383   : > { %9281 = vmatprep.subr.mxu1 %v16845_v57  ;;  %9255 = vmatpush3.msra.mxu0 %v16846_v31 }
 0x384   : > { %9282 = vmatpush3.msra.mxu1 %v16847_v3  ;;  %9256 = vmatprep.subr.mxu0 %v16848_v10 }
 0x385   : > { %9283 = vmatprep.subr.mxu1 %v16849_v7  ;;  %9257 = vmatpush3.msra.mxu0 %v16850_v20 }
 0x386   : > { %9284 = vmatpush3.msra.mxu1 %v16851_v6  ;;  %9258 = vmatprep.subr.mxu0 %v13982_v59 }
 0x387   : > { %9285 = vmatprep.subr.mxu1 %v16852_v16  ;;  %9259 = vmatpush3.msra.mxu0 %v13951_v30 }
 0x388   : > { %9286 = vmatpush3.msra.mxu1 %v16853_v5  ;;  %9260 = vmatprep.subr.mxu0 %v14010_v63 }
 0x389   : > { %9287 = vmatprep.subr.mxu1 %v16854_v36  ;;  %9261 = vmatpush3.msra.mxu0 %v13986_v52 }
 0x38a   : > { %9288 = vmatpush3.msra.mxu1 %v16855_v17  ;;  %9262 = vmatprep.subr.mxu0 %v14035_v22 }
 0x38b   : > { %9289 = vmatprep.subr.mxu1 %v16856_v29  ;;  %9263 = vmatpush3.msra.mxu0 %v14018_v43 }
 0x38c   : > { %9290 = vmatpush3.msra.mxu1 %v16857_v61  ;;  %9264 = vmatprep.subr.mxu0 %v14068_v21 }
 0x38d   : > { %9291 = vmatprep.subr.mxu1 %v16858_v56  ;;  %9265 = vmatpush3.msra.mxu0 %v14021_v50 }
 0x38e   : > { %9292 = vmatpush3.msra.mxu1 %v16859_v14  ;;  %9266 = vmatprep.subr.mxu0 %v14088_v54 }
 0x38f   : > { %9293 = vmatprep.subr.mxu1 %v16860_v49  ;;  %9267 = vmatpush3.msra.mxu0 %v14092_v58  ;;  %v16862_v49 = vld [vmem:[#allocation39_spill] sm:$0xff] }
 0x390   : > { %9294 = vmatpush3.msra.mxu1 %v13910_v13  ;;  %9268 = vmatprep.subr.mxu0 %v14108_v45 }
 0x391   : > { %9295 = vmatprep.subr.mxu1 %v16861_v27  ;;  %9269 = vmatpush3.msra.mxu0 %v14101_v2  ;;  %v16863_v27 = vand.u32 4294901760, %v13690_v11  ;;  %v16868_v11 = vand.u32 4294901760, %v13748_v26  ;;  %v16873_v26 = vand.u32 4294901760, %v14057_v25 }
 0x392   : > { %9296 = vmatpush3.msra.mxu1 %v13941_v28  ;;  %9270 = vmatprep.subr.mxu0 %v14124_v51  ;;  %v16864_v28 = vand.u32 4294901760, %v13703_v53  ;;  %v16865_v51 = vld [vmem:[#allocation50_spill] sm:$0xff]  ;;  %v16869_v53 = vand.u32 4294901760, %v13754_v60  ;;  %v16874_v60 = vand.u32 4294901760, %v13787_v15 }
 0x393   : > { %9297 = vmatprep.subr.mxu1 %v13978_v24  ;;  %9271 = vmatpush3.msra.mxu0 %v14117_v1  ;;  %v16866_v1 = vand.u32 4294901760, %v13730_v34  ;;  %v16870_v34 = vand.u32 4294901760, %v13764_v39  ;;  %v16875_v39 = vand.u32 4294901760, %v13793_v38  ;;  %v933_v15 = vld [vmem:[%s10552_s15 + $0x6f8] sm:$0xff] }
 0x394   : > { %5750 = vmatprep.mubr.f32.mxu0 %v14045_v19  ;;  %9298 = vmatpush3.msra.mxu1 %v16862_v49  ;;  %v16867_v49 = vand.u32 4294901760, %v13736_v4  ;;  %v16871_v4 = vand.u32 4294901760, %v14045_v19  ;;  %v916_v19 = vld [vmem:[%s10552_s15 + $0x670] sm:$0xff] }
 0x395   : > { %5753 = vmatmul.mubr.f32.vlgmr.msra.gmra.mxu0 %v14057_v25  ;;  %9299 = vmatprep.subr.mxu1 %v14001_v35  ;;  %v16884_v25 = vand.u32 4294901760, %v13982_v59  ;;  %v16886_v59 = vand.u32 4294901760, %v14010_v63  ;;  %v16888_v63 = vand.u32 4294901760, %v14035_v22 }
 0x396   : > { %9310 = vmatprep.subr.mxu0 %v16863_v27  ;;  %9300 = vmatpush3.msra.mxu1 %v13973_v46  ;;  %v16876_v27 = vand.u32 4294901760, %v13805_v12  ;;  %v932_v12 = vld [vmem:[%s10552_s15 + $0x6f0] sm:$0xff] }
 0x397   : > { %9311 = vmatpush3.msra.mxu0 %v16864_v28  ;;  %9301 = vmatprep.subr.mxu1 %v16865_v51  ;;  %v16872_v28 = vand.u32 4294901760, %v13770_v62  ;;  %v16877_v62 = vand.u32 4294901760, %v13825_v23  ;;  %v16883_v23 = vand.u32 4294901760, %v16850_v20 }
 0x398   : > { %9312 = vmatprep.subr.mxu0 %v16866_v1  ;;  %9302 = vmatpush3.msra.mxu1 %v14051_v55  ;;  %v931_v1 = vld [vmem:[%s10552_s15 + $0x6e8] sm:$0xff] }
 0x399   : > { %9313 = vmatpush3.msra.mxu0 %v16867_v49  ;;  %9303 = vmatprep.subr.mxu1 %v14062_v41  ;;  %v16878_v49 = vand.u32 4294901760, %v13874_v44  ;;  %v16881_v44 = vand.u32 4294901760, %v16846_v31  ;;  %v930_v31 = vld [vmem:[%s10552_s15 + $0x6e0] sm:$0xff]  ;;  %v14321_v20 = vand.u32 4294901760, %v931_v1 }
 0x39a   : > { %9314 = vmatprep.subr.mxu0 %v16868_v11  ;;  %9304 = vmatpush3.msra.mxu1 %v14064_v9  ;;  %v913_v11 = vld [vmem:[%s10552_s15 + $0x658] sm:$0xff] }
 0x39b   : > { %9315 = vmatpush3.msra.mxu0 %v16869_v53  ;;  %9305 = vmatprep.subr.mxu1 %v14082_v40  ;;  %v928_v53 = vld [vmem:[%s10552_s15 + $0x6d0] sm:$0xff] }
 0x39c   : > { %9316 = vmatprep.subr.mxu0 %v16870_v34  ;;  %9306 = vmatpush3.msra.mxu1 %v14084_v0 }
 0x39d   : > { %5857 = vmatprep.mubr.f32.mxu1 %v16871_v4  ;;  %9317 = vmatpush3.msra.mxu0 %v16872_v28  ;;  %v14354_v28 = vand.u32 4294901760, %v913_v11 }
 0x39e   : > { %5861 = vmatmul.mubr.f32.vlgmr.msra.gmra.mxu1 %v16873_v26  ;;  %9318 = vmatprep.subr.mxu0 %v16874_v60  ;;  %v912_v26 = vld [vmem:[%s10552_s15 + $0x650] sm:$0xff] }
 0x39f   : > { %9345 = vmatprep.subr.mxu1 %v13670_v8  ;;  %9319 = vmatpush3.msra.mxu0 %v16875_v39  ;;  %v16879_v8 = vand.u32 4294901760, %v16842_v18  ;;  %16896 = vst [vmem:[#allocation36_spill] sm:$0xff] %v14354_v28  ;;  %v16898_v60 = vld [vmem:[#allocation29_spill] sm:$0xff] }
 0x3a0   : > { %9346 = vmatpush3.msra.mxu1 %v13678_v48  ;;  %9320 = vmatprep.subr.mxu0 %v16876_v27  ;;  %v917_v48 = vld [vmem:[%s10552_s15 + $0x678] sm:$0xff] }
 0x3a1   : > { %9347 = vmatprep.subr.mxu1 %v13695_v47  ;;  %9321 = vmatpush3.msra.mxu0 %v16877_v62  ;;  %v16880_v47 = vand.u32 4294901760, %v16844_v42  ;;  %v14288_v38 = vand.u32 4294901760, %v917_v48  ;;  %v14305_v42 = vand.u32 4294901760, %v932_v12 }
 0x3a2   : > { %9348 = vmatpush3.msra.mxu1 %v13705_v33  ;;  %9322 = vmatprep.subr.mxu0 %v16878_v49  ;;  %v14280_v33 = vand.u32 4294901760, %v933_v15  ;;  %v16901_v49 = vand.u32 4294901760, %v14108_v45  ;;  %v16904_v45 = vand.u32 4294901760, %v14101_v2 }
 0x3a3   : > { %9349 = vmatprep.subr.mxu1 %v13711_v37  ;;  %9323 = vmatpush3.msra.mxu0 %v16879_v8  ;;  %v16882_v37 = vand.u32 4294901760, %v16848_v10  ;;  %v14315_v10 = vand.u32 4294901760, %v916_v19  ;;  %v14340_v22 = vsub.f32 %v932_v12, %v14305_v42  ;;  %v16902_v8 = vld [vmem:[#allocation57_spill] sm:$0xff] }
 0x3a4   : > { %9350 = vmatpush3.msra.mxu1 %v16843_v32  ;;  %9324 = vmatprep.subr.mxu0 %v16880_v47  ;;  %v14300_v18 = vsub.f32 %v933_v15, %v14280_v33  ;;  %v16885_v32 = vand.u32 4294901760, %v13951_v30  ;;  %v914_v30 = vld [vmem:[%s10552_s15 + $0x660] sm:$0xff]  ;;  %v927_v47 = vld [vmem:[%s10552_s15 + $0x6c8] sm:$0xff]  ;;  %v16905_v12 = vld [vmem:[#allocation45_spill] sm:$0xff] }
 0x3a5   : > { %9351 = vmatprep.subr.mxu1 %v16845_v57  ;;  %9325 = vmatpush3.msra.mxu0 %v16881_v44  ;;  %v915_v57 = vld [vmem:[%s10552_s15 + $0x668] sm:$0xff]  ;;  %v14346_v34 = vsub.f32 %v916_v19, %v14315_v10  ;;  %v16057_v15 = vand.u32 4294901760, %v14340_v22 }
 0x3a6   : > { %9352 = vmatpush3.msra.mxu1 %v16847_v3  ;;  %9326 = vmatprep.subr.mxu0 %v16882_v37  ;;  %v14313_v3 = vsub.f32 %v917_v48, %v14288_v38  ;;  %v911_v44 = vld [vmem:[%s10552_s15 + $0x648] sm:$0xff] }
 0x3a7   : > { %9353 = vmatprep.subr.mxu1 %v16849_v7  ;;  %9327 = vmatpush3.msra.mxu0 %v16883_v23  ;;  %v16887_v7 = vand.u32 4294901760, %v13986_v52  ;;  %v16891_v52 = vand.u32 4294901760, %v14018_v43  ;;  %v14403_v23 = vsub.f32 %v913_v11, %v14354_v28  ;;  %v14425_v11 = vand.u32 4294901760, %v927_v47 }
 0x3a8   : > { %9354 = vmatpush3.msra.mxu1 %v16851_v6  ;;  %9328 = vmatprep.subr.mxu0 %v16884_v25  ;;  %v929_v6 = vld [vmem:[%s10552_s15 + $0x6d8] sm:$0xff]  ;;  %v16059_v43 = vand.u32 4294901760, %v14313_v3  ;;  %v16906_v25 = vld [vmem:[#allocation51_spill] sm:$0xff] }
 0x3a9   : > { %9355 = vmatprep.subr.mxu1 %v16852_v16  ;;  %9329 = vmatpush3.msra.mxu0 %v16885_v32  ;;  %v14327_v16 = vand.u32 4294901760, %v915_v57  ;;  %v14348_v4 = vand.u32 4294901760, %v929_v6  ;;  %16911 = vst [vmem:[#allocation46_spill] sm:$0xff] %v14425_v11 }
 0x3aa   : > { %9356 = vmatpush3.msra.mxu1 %v16853_v5  ;;  %9330 = vmatprep.subr.mxu0 %v16886_v59  ;;  %v14329_v5 = vand.u32 4294901760, %v930_v31  ;;  %v14389_v48 = vsub.f32 %v14313_v3, %v16059_v43  ;;  %v910_v59 = vld [vmem:[%s10552_s15 + $0x640] sm:$0xff] }
 0x3ab   : > { %9357 = vmatprep.subr.mxu1 %v16854_v36  ;;  %9331 = vmatpush3.msra.mxu0 %v16887_v7  ;;  %16889 = vst [vmem:[#allocation53_spill] sm:$0xff] %v14327_v16  ;;  %v16061_v36 = vand.u32 4294901760, %v14300_v18  ;;  %16894 = vst [vmem:[#allocation55_spill] sm:$0xff] %v14348_v4  ;;  %v14364_v39 = vsub.f32 %v915_v57, %v14327_v16  ;;  %v14397_v37 = vsub.f32 %v929_v6, %v14348_v4  ;;  %v16908_v7 = vld [vmem:[#allocation49_spill] sm:$0xff] }
 0x3ac   : > { %9358 = vmatpush3.msra.mxu1 %v16855_v17  ;;  %9332 = vmatprep.subr.mxu0 %v16888_v63  ;;  %16890 = vst [vmem:[#allocation38_spill] sm:$0xff] %v14329_v5  ;;  %v14336_v17 = vand.u32 4294901760, %v914_v30  ;;  %v14374_v27 = vsub.f32 %v930_v31, %v14329_v5  ;;  %v926_v31 = vld [vmem:[%s10552_s15 + $0x6c0] sm:$0xff]  ;;  %v16909_v6 = vand.u32 4294901760, %v16908_v7  ;;  %v16910_v63 = vld [vmem:[#allocation41_spill] sm:$0xff] }
 0x3ad   : > { %9359 = vmatprep.subr.mxu1 %v16856_v29  ;;  %9333 = vmatpush3.msra.mxu0 %v16891_v52  ;;  %v16893_v29 = vand.u32 4294901760, %v14068_v21  ;;  %v14358_v21 = vsub.f32 %v931_v1, %v14321_v20  ;;  %v16907_v1 = vand.u32 4294901760, %v16906_v25  ;;  %v16052_v57 = vand.u32 4294901760, %v14364_v39  ;;  %v909_v25 = vld [vmem:[%s10552_s15 + $0x638] sm:$0xff] }
 0x3ae   : > { %9360 = vmatpush3.msra.mxu1 %v16857_v61  ;;  %16892 = vst [vmem:[#allocation43_spill] sm:$0xff] %v14336_v17  ;;  %v16895_v61 = vand.u32 4294901760, %v14021_v50  ;;  %v14369_v50 = vsub.f32 %v14300_v18, %v16061_v36  ;;  %v14380_v62 = vsub.f32 %v914_v30, %v14336_v17  ;;  %v16053_v2 = vand.u32 4294901760, %v14374_v27  ;;  %6027 = vmatprep.mubr.f32.mxu0 %v16910_v63 }
 0x3af   : > { %9334 = vmatprep.subr.mxu0 %v16893_v29  ;;  %9361 = vmatprep.subr.mxu1 %v16858_v56  ;;  %v16897_v56 = vand.u32 4294901760, %v14088_v54  ;;  %v16900_v54 = vand.u32 4294901760, %v14092_v58  ;;  %v14391_v58 = vand.u32 4294901760, %v912_v26  ;;  %v16051_v19 = vand.u32 4294901760, %v14358_v21 }
 0x3b0   : > { %9335 = vmatpush3.msra.mxu0 %v16895_v61  ;;  %9362 = vmatpush3.msra.mxu1 %v16859_v14  ;;  %v14371_v14 = vand.u32 4294901760, %v928_v53  ;;  %v6367_v32 = vand.u32 4294901760, %v14369_v50  ;;  %v14427_v52 = vand.u32 4294901760, %v911_v44  ;;  %v16055_v29 = vand.u32 4294901760, %v14380_v62  ;;  %v925_v61 = vld [vmem:[%s10552_s15 + $0x6b8] sm:$0xff] }
 0x3b1   : > { %9336 = vmatprep.subr.mxu0 %v16897_v56  ;;  %9363 = vmatprep.subr.mxu1 %v16898_v60  ;;  %16903 = vst [vmem:[#allocation40_spill] sm:$0xff] %v14391_v58  ;;  %v16914_v56 = vld [vmem:[#allocation48_spill] sm:$0xff]  ;;  %v14466_v7 = vsub.f32 %v14374_v27, %v16053_v2  ;;  %v908_v2 = vld [vmem:[%s10552_s15 + $0x630] sm:$0xff] }
 0x3b2   : > { %16899 = vst [vmem:[#allocation52_spill] sm:$0xff] %v14371_v14  ;;  %9337 = vmatpush3.msra.mxu0 %v16900_v54  ;;  %9364 = vmatpush3.msra.mxu1 %v13910_v13  ;;  %v16054_v13 = vand.u32 4294901760, %v14346_v34  ;;  %v14415_v30 = vsub.f32 %v928_v53, %v14371_v14  ;;  %16912 = vst [vmem:[#allocation42_spill] sm:$0xff] %v14427_v52  ;;  %v16913_v53 = vld [vmem:[#allocation39_spill] sm:$0xff]  ;;  %v14435_v54 = vsub.f32 %v912_v26, %v14391_v58 }
 0x3b3   : > { %9338 = vmatprep.subr.mxu0 %v16901_v49  ;;  %9365 = vmatprep.subr.mxu1 %v16902_v8  ;;  %v16056_v8 = vand.u32 4294901760, %v14397_v37  ;;  %v14452_v26 = vand.u32 4294901760, %v910_v59 }
 0x3b4   : > { %9339 = vmatpush3.msra.mxu0 %v16904_v45  ;;  %9366 = vmatpush3.msra.mxu1 %v16905_v12  ;;  %v14440_v49 = vsub.f32 %v14346_v34, %v16054_v13  ;;  %v14448_v45 = vsub.f32 %v14358_v21, %v16051_v19  ;;  %v14450_v12 = vand.u32 4294901760, %v926_v31  ;;  %v14475_v19 = vsub.f32 %v911_v44, %v14427_v52 }
 0x3b5   : > { %9340 = vmatprep.subr.mxu0 %v16907_v1  ;;  %9367 = vmatprep.subr.mxu1 %v13978_v24  ;;  %v14423_v24 = vsub.f32 %v14340_v22, %v16057_v15  ;;  %16916 = vst [vmem:[#allocation56_spill] sm:$0xff] %v14452_v26  ;;  %v16058_v1 = vand.u32 4294901760, %v14403_v23  ;;  %v14484_v13 = vsub.f32 %v927_v47, %v14425_v11 }
 0x3b6   : > { %9341 = vmatpush3.msra.mxu0 %v16909_v6  ;;  %9368 = vmatpush3.msra.mxu1 %v16913_v53  ;;  %16915 = vst [vmem:[#allocation54_spill] sm:$0xff] %v14450_v12  ;;  %v14468_v6 = vand.u32 4294901760, %v925_v61  ;;  %v16060_v53 = vand.u32 4294901760, %v14415_v30  ;;  %16918 = vst [vmem:[#allocation32_spill] sm:$0xff] %v14475_v19  ;;  %v14492_v44 = vsub.f32 %v14397_v37, %v16056_v8  ;;  %v924_v8 = vld [vmem:[%s10552_s15 + $0x6b0] sm:$0xff] }
 0x3b7   : > { %6029 = vmatmul.mubr.f32.vlgmr.msra.gmra.mxu0 %v16914_v56  ;;  %9369 = vmatprep.subr.mxu1 %v14001_v35  ;;  %v14461_v35 = vsub.f32 %v14364_v39, %v16052_v57  ;;  %v14480_v57 = vsub.f32 %v14380_v62, %v16055_v29  ;;  %v16062_v29 = vand.u32 4294901760, %v14435_v54  ;;  %v14501_v47 = vsub.f32 %v910_v59, %v14452_v26 }
 0x3b8   : > { %9380 = vmatprep.subr.mxu0 %v14280_v33  ;;  %9370 = vmatpush3.msra.mxu1 %v13973_v46  ;;  %16917 = vst [vmem:[#allocation47_spill] sm:$0xff] %v14468_v6  ;;  %v6374_v46 = vand.u32 4294901760, %v14423_v24  ;;  %v14494_v24 = vand.u32 4294901760, %v909_v25  ;;  %v14510_v15 = vsub.f32 %v926_v31, %v14450_v12  ;;  %v14518_v59 = vsub.f32 %v14415_v30, %v16060_v53  ;;  %v906_v31 = vld [vmem:[%s10552_s15 + $0x620] sm:$0xff]  ;;  %v905_v53 = vld [vmem:[%s10552_s15 + $0x618] sm:$0xff] }
 0x3b9   : > { %9381 = vmatpush3.msra.mxu0 %v14288_v38  ;;  %9371 = vmatprep.subr.mxu1 %v16865_v51  ;;  %v6262_v51 = vand.u32 4294901760, %v14440_v49  ;;  %16920 = vst [vmem:[#allocation30_spill] sm:$0xff] %v14501_v47  ;;  %v14506_v49 = vsub.f32 %v14403_v23, %v16058_v1  ;;  %v907_v1 = vld [vmem:[%s10552_s15 + $0x628] sm:$0xff]  ;;  %v14524_v43 = vsub.f32 %v925_v61, %v14468_v6  ;;  %v14539_v60 = vand.u32 4294901760, %v924_v8 }
 0x3ba   : > { %9382 = vmatprep.subr.mxu0 %v14305_v42  ;;  %9372 = vmatpush3.msra.mxu1 %v14051_v55  ;;  %16919 = vst [vmem:[#allocation31_spill] sm:$0xff] %v14494_v24  ;;  %v6381_v55 = vand.u32 4294901760, %v14448_v45  ;;  %16921 = vst [vmem:[#allocation35_spill] sm:$0xff] %v14510_v15  ;;  %v14520_v45 = vand.u32 4294901760, %v908_v2  ;;  %v16927_v61 = vand.u32 4294901760, %v14389_v48  ;;  %v16928_v36 = vand.u32 4294901760, %v14484_v13 }
 0x3bb   : > { %9383 = vmatpush3.msra.mxu0 %v14315_v10  ;;  %9373 = vmatprep.subr.mxu1 %v14062_v41  ;;  %v6269_v41 = vand.u32 4294901760, %v14461_v35  ;;  %16922 = vst [vmem:[#allocation37_spill] sm:$0xff] %v14524_v43  ;;  %v923_v35 = vld [vmem:[%s10552_s15 + $0x6a8] sm:$0xff]  ;;  %16924 = vst [vmem:[#allocation33_spill] sm:$0xff] %v14539_v60 }
 0x3bc   : > { %9384 = vmatprep.subr.mxu0 %v14321_v20  ;;  %9374 = vmatpush3.msra.mxu1 %v14064_v9  ;;  %v6388_v9 = vand.u32 4294901760, %v14466_v7  ;;  %v14544_v7 = vsub.f32 %v14435_v54, %v16062_v29  ;;  %v14573_v50 = vsub.f32 %v14484_v13, %v16928_v36  ;;  %v14580_v29 = vand.u32 4294901760, %v906_v31 }
 0x3bd   : > { %9385 = vmatpush3.msra.mxu0 %v14327_v16  ;;  %9375 = vmatprep.subr.mxu1 %v14082_v40  ;;  %v14537_v40 = vsub.f32 %v909_v25, %v14494_v24  ;;  %v922_v25 = vld [vmem:[%s10552_s15 + $0x6a0] sm:$0xff]  ;;  %v706_v16 = vld [vmem:[%s10999_s13 + $0x60] sm:$0xff] }
 0x3be   : > { %9386 = vmatprep.subr.mxu0 %v14329_v5  ;;  %9376 = vmatpush3.msra.mxu1 %v14084_v0  ;;  %v14563_v0 = vand.u32 4294901760, %v923_v35  ;;  %v707_v5 = vld [vmem:[%s10999_s13 + $0x68] sm:$0xff]  ;;  %16930 = vst [vmem:[#allocation29_spill] sm:$0xff] %v14580_v29  ;;  %v6290_v48 = vand.u32 4294901760, %v14544_v7 }
 0x3bf   : > { %6131 = vmatprep.mubr.f32.mxu1 %v16910_v63  ;;  %16923 = vst [vmem:[#allocation34_spill] sm:$0xff] %v14537_v40  ;;  %9387 = vmatpush3.msra.mxu0 %v14336_v17  ;;  %v14551_v63 = vand.u32 4294901760, %v907_v1  ;;  %v14583_v17 = vand.u32 4294901760, %v905_v53  ;;  %v14608_v36 = vand.u32 4294901760, %v707_v5 }
 0x3c0   : > { %6133 = vmatmul.mubr.f32.vlgmr.msra.gmra.mxu1 %v16914_v56  ;;  %9388 = vmatprep.subr.mxu0 %v14348_v4  ;;  %v14561_v56 = vsub.f32 %v908_v2, %v14520_v45  ;;  %16926 = vst [vmem:[#allocation50_spill] sm:$0xff] %v14563_v0  ;;  %v921_v4 = vld [vmem:[%s10552_s15 + $0x698] sm:$0xff] }
 0x3c1   : > { %16925 = vst [vmem:[#allocation44_spill] sm:$0xff] %v14551_v63  ;;  %9415 = vmatprep.subr.mxu1 %v6367_v32  ;;  %9389 = vmatpush3.msra.mxu0 %v14354_v28  ;;  %v16929_v32 = vand.u32 4294901760, %v14475_v19  ;;  %v14592_v28 = vsub.f32 %v924_v8, %v14539_v60  ;;  %16933 = vst [vmem:[#allocation57_spill] sm:$0xff] %v14608_v36  ;;  %v14611_v8 = vand.u32 4294901760, %v921_v4 }
 0x3c2   : > { %9416 = vmatpush3.msra.mxu1 %v16927_v61  ;;  %9390 = vmatprep.subr.mxu0 %v14371_v14  ;;  %v14588_v61 = vand.u32 4294901760, %v922_v25 }
 0x3c3   : > { %v14578_v2 = vsub.f32 %v14475_v19, %v16929_v32  ;;  %9417 = vmatprep.subr.mxu1 %v6374_v46  ;;  %9391 = vmatpush3.msra.mxu0 %v14391_v58  ;;  %v14596_v32 = vsub.f32 %v907_v1, %v14551_v63  ;;  %v16931_v19 = vand.u32 4294901760, %v14510_v15  ;;  %v16932_v46 = vand.u32 4294901760, %v14501_v47 }
 0x3c4   : > { %9418 = vmatpush3.msra.mxu1 %v6262_v51  ;;  %9392 = vmatprep.subr.mxu0 %v14425_v11  ;;  %v16934_v1 = vand.u32 4294901760, %v14524_v43  ;;  %v14620_v58 = vsub.f32 %v923_v35, %v14563_v0  ;;  %v16936_v35 = vand.u32 4294901760, %v14537_v40 }
 0x3c5   : > { %v14601_v14 = vsub.f32 %v14510_v15, %v16931_v19  ;;  %v14606_v7 = vsub.f32 %v14501_v47, %v16932_v46  ;;  %9419 = vmatprep.subr.mxu1 %v6381_v55  ;;  %v920_v19 = vld [vmem:[%s10552_s15 + $0x690] sm:$0xff]  ;;  %v14622_v46 = vand.u32 4294901760, %v706_v16  ;;  %9393 = vmatpush3.msra.mxu0 %v14427_v52  ;;  %v6409_v55 = vand.u32 4294901760, %v14573_v50 }
 0x3c6   : > { %v14616_v51 = vsub.f32 %v14524_v43, %v16934_v1  ;;  %9420 = vmatpush3.msra.mxu1 %v6269_v41  ;;  %v6297_v11 = vand.u32 4294901760, %v14578_v2  ;;  %v14628_v47 = vsub.f32 %v906_v31, %v14580_v29  ;;  %v14631_v1 = vsub.f32 %v905_v53, %v14583_v17  ;;  %v904_v43 = vld [vmem:[%s10552_s15 + $0x610] sm:$0xff]  ;;  %9394 = vmatprep.subr.mxu0 %v14450_v12  ;;  %v919_v31 = vld [vmem:[%s10552_s15 + $0x688] sm:$0xff] }
 0x3c7   : > { %16935 = vst [vmem:[#allocation45_spill] sm:$0xff] %v14622_v46  ;;  %9421 = vmatprep.subr.mxu1 %v6388_v9  ;;  %v14638_v15 = vsub.f32 %v14537_v40, %v16936_v35  ;;  %v903_v2 = vld [vmem:[%s10552_s15 + $0x608] sm:$0xff]  ;;  %v14645_v53 = vsub.f32 %v922_v25, %v14588_v61  ;;  %9395 = vmatpush3.msra.mxu0 %v14452_v26  ;;  %v16937_v9 = vand.u32 4294901760, %v14480_v57  ;;  %v6416_v12 = vand.u32 4294901760, %v14601_v14  ;;  %v902_v14 = vld [vmem:[%s10552_s15 + $0x600] sm:$0xff] }
 0x3c8   : > { %v6304_v35 = vand.u32 4294901760, %v14606_v7  ;;  %v14652_v52 = vand.u32 4294901760, %v920_v19  ;;  %v14655_v41 = vsub.f32 %v707_v5, %v14608_v36  ;;  %9396 = vmatprep.subr.mxu0 %v14468_v6  ;;  %v16939_v50 = vand.u32 4294901760, %v14492_v44  ;;  %6475 = vmatprep.mubr.f32.mxu1 %v14608_v36  ;;  %v16977_v36 = vld [vmem:[#allocation50_spill] sm:$0xff] }
 0x3c9   : > { %9422 = vmatpush3.msra.mxu1 %v16937_v9  ;;  %v6423_v25 = vand.u32 4294901760, %v14616_v51  ;;  %v14661_v26 = vand.u32 4294901760, %v904_v43  ;;  %v918_v9 = vld [vmem:[%s10552_s15 + $0x680] sm:$0xff]  ;;  %v14667_v7 = vsub.f32 %v706_v16, %v14622_v46  ;;  %9397 = vmatpush3.msra.mxu0 %v14494_v24  ;;  %v16940_v5 = vand.u32 4294901760, %v14506_v49 }
 0x3ca   : > { %16938 = vst [vmem:[#allocation51_spill] sm:$0xff] %v14652_v52  ;;  %9423 = vmatprep.subr.mxu1 %v16939_v50  ;;  %v14672_v6 = vand.u32 4294901760, %v919_v31  ;;  %v14674_v44 = vand.u32 4294901760, %v903_v2  ;;  %v14678_v50 = vsub.f32 %v921_v4, %v14611_v8  ;;  %9398 = vmatprep.subr.mxu0 %v14539_v60  ;;  %v16941_v57 = vand.u32 4294901760, %v14518_v59 }
 0x3cb   : > { %9424 = vmatpush3.msra.mxu1 %v16940_v5  ;;  %v6311_v16 = vand.u32 4294901760, %v14638_v15  ;;  %v16942_v24 = vand.u32 4294901760, %v14592_v28  ;;  %v16943_v5 = vand.u32 4294901760, %v14561_v56  ;;  %9399 = vmatpush3.msra.mxu0 %v14520_v45  ;;  %v14692_v4 = vand.u32 4294901760, %v918_v9 }
 0x3cc   : > { %9425 = vmatprep.subr.mxu1 %v16941_v57  ;;  %v14694_v60 = vand.u32 4294901760, %v902_v14  ;;  %v14698_v15 = vsub.f32 %v920_v19, %v14652_v52  ;;  %9400 = vmatprep.subr.mxu0 %v14563_v0  ;;  %v16944_v57 = vand.u32 4294901760, %v14620_v58  ;;  %v14711_v19 = vsub.f32 %v903_v2, %v14674_v44 }
 0x3cd   : > { %v6429_v49 = vsub.f32 %v14592_v28, %v16942_v24  ;;  %v6317_v40 = vsub.f32 %v14561_v56, %v16943_v5  ;;  %9426 = vmatpush3.msra.mxu1 %v6290_v48  ;;  %v14702_v24 = vsub.f32 %v904_v43, %v14661_v26  ;;  %9401 = vmatpush3.msra.mxu0 %v14551_v63  ;;  %v16945_v59 = vand.u32 4294901760, %v14596_v32 }
 0x3ce   : > { %9427 = vmatprep.subr.mxu1 %v6409_v55  ;;  %v6436_v5 = vsub.f32 %v14620_v58, %v16944_v57  ;;  %v14718_v0 = vsub.f32 %v919_v31, %v14672_v6  ;;  %9402 = vmatprep.subr.mxu0 %v14588_v61  ;;  %v16946_v48 = vand.u32 4294901760, %v14645_v53  ;;  %v16948_v31 = vand.u32 4294901760, %v14655_v41 }
 0x3cf   : > { %9428 = vmatpush3.msra.mxu1 %v6297_v11  ;;  %v6324_v55 = vsub.f32 %v14596_v32, %v16945_v59  ;;  %v6430_v57 = vand.u32 4294901760, %v6429_v49  ;;  %v6318_v51 = vand.u32 4294901760, %v6317_v40  ;;  %9403 = vmatpush3.msra.mxu0 %v14580_v29  ;;  %v14727_v59 = vsub.f32 %v902_v14, %v14694_v60 }
 0x3d0   : > { %9429 = vmatprep.subr.mxu1 %v6416_v12  ;;  %v6443_v11 = vsub.f32 %v14645_v53, %v16946_v48  ;;  %v6237_v43 = vsub.f32 %v14655_v41, %v16948_v31  ;;  %v14734_v40 = vsub.f32 %v918_v9, %v14692_v4  ;;  %9404 = vmatprep.subr.mxu0 %v14611_v8  ;;  %v6437_v49 = vand.u32 4294901760, %v6436_v5 }
 0x3d1   : > { %9430 = vmatpush3.msra.mxu1 %v6304_v35  ;;  %16947 = vst [vmem:[#allocation49_spill] sm:$0xff] %v14727_v59  ;;  %v16950_v48 = vand.u32 4294901760, %v14628_v47  ;;  %v16951_v14 = vand.u32 4294901760, %v14667_v7  ;;  %9405 = vmatpush3.msra.mxu0 %v14583_v17  ;;  %v6325_v31 = vand.u32 4294901760, %v6324_v55  ;;  %v16952_v9 = vand.u32 4294901760, %v14678_v50 }
 0x3d2   : > { %16949 = vst [vmem:[#allocation41_spill] sm:$0xff] %v14734_v40  ;;  %9431 = vmatprep.subr.mxu1 %v6423_v25  ;;  %9406 = vmatprep.subr.mxu0 %v14652_v52  ;;  %v6444_v5 = vand.u32 4294901760, %v6443_v11  ;;  %v16954_v55 = vand.u32 4294901760, %v14698_v15  ;;  %v16108_v25 = vand.u32 4294901760, %v14734_v40  ;;  %v16955_v52 = vand.u32 4294901760, %v14702_v24 }
 0x3d3   : > { %v6331_v35 = vsub.f32 %v14628_v47, %v16950_v48  ;;  %v6243_v2 = vsub.f32 %v14667_v7, %v16951_v14  ;;  %9432 = vmatpush3.msra.mxu1 %v6311_v16  ;;  %v6450_v12 = vsub.f32 %v14678_v50, %v16952_v9  ;;  %v16953_v48 = vand.u32 4294901760, %v14631_v1  ;;  %9407 = vmatpush3.msra.mxu0 %v14661_v26 }
 0x3d4   : > { %9433 = vmatprep.subr.mxu1 %v6430_v57  ;;  %v6238_v16 = vand.u32 4294901760, %v6237_v43  ;;  %v6457_v9 = vsub.f32 %v14698_v15, %v16954_v55  ;;  %9408 = vmatprep.subr.mxu0 %v14672_v6  ;;  %v16107_v29 = vand.u32 4294901760, %v14727_v59  ;;  %v16956_v43 = vand.u32 4294901760, %v14718_v0 }
 0x3d5   : > { %v6338_v14 = vsub.f32 %v14631_v1, %v16953_v48  ;;  %9434 = vmatpush3.msra.mxu1 %v6318_v51  ;;  %v6332_v57 = vand.u32 4294901760, %v6331_v35  ;;  %v6244_v11 = vand.u32 4294901760, %v6243_v2  ;;  %v6345_v48 = vsub.f32 %v14702_v24, %v16955_v52  ;;  %9409 = vmatpush3.msra.mxu0 %v14674_v44 }
 0x3d6   : > { %9435 = vmatprep.subr.mxu1 %v6437_v49  ;;  %v6451_v51 = vand.u32 4294901760, %v6450_v12  ;;  %v6464_v55 = vsub.f32 %v14718_v0, %v16956_v43  ;;  %9410 = vmatprep.subr.mxu0 %v14692_v4  ;;  %v16957_v2 = vand.u32 4294901760, %v14711_v19  ;;  %v6458_v52 = vand.u32 4294901760, %v6457_v9  ;;  %v16961_v43 = vld [vmem:[#allocation38_spill] sm:$0xff] }
 0x3d7   : > { %9436 = vmatpush3.msra.mxu1 %v6325_v31  ;;  %v6339_v49 = vand.u32 4294901760, %v6338_v14  ;;  %9411 = vmatpush3.msra.mxu0 %v14694_v60  ;;  %v6471_v12 = vsub.f32 %v14734_v40, %v16108_v25  ;;  %v6346_v31 = vand.u32 4294901760, %v6345_v48  ;;  %v16959_v48 = vld [vmem:[#allocation53_spill] sm:$0xff]  ;;  %v16975_v25 = vld [vmem:[#allocation31_spill] sm:$0xff] }
 0x3d8   : > { %9437 = vmatprep.subr.mxu1 %v6444_v5  ;;  %v6352_v35 = vsub.f32 %v14711_v19, %v16957_v2  ;;  %6239 = vmatprep.mubr.f32.mxu0 %v6238_v16  ;;  %v6359_v5 = vsub.f32 %v14727_v59, %v16107_v29  ;;  %v6465_v14 = vand.u32 4294901760, %v6464_v55  ;;  %v16962_v55 = vld [vmem:[#allocation30_spill] sm:$0xff]  ;;  %v16964_v2 = vld [vmem:[#allocation37_spill] sm:$0xff]  ;;  %v16974_v29 = vld [vmem:[#allocation47_spill] sm:$0xff] }
 0x3d9   : > { %9438 = vmatpush3.msra.mxu1 %v6332_v57  ;;  %6245 = vmatmul.mubr.f32.vlgmr.msra.gmra.mxu0 %v6244_v11  ;;  %v6472_v9 = vand.u32 4294901760, %v6471_v12  ;;  %v16958_v11 = vld [vmem:[#allocation32_spill] sm:$0xff] }
 0x3da   : > { %9439 = vmatprep.subr.mxu1 %v6451_v51  ;;  %9450 = vmatprep.subr.mxu0 %v14300_v18  ;;  %v6353_v16 = vand.u32 4294901760, %v6352_v35  ;;  %v6360_v57 = vand.u32 4294901760, %v6359_v5  ;;  %v16960_v51 = vld [vmem:[#allocation35_spill] sm:$0xff]  ;;  %v16967_v12 = vld [vmem:[#allocation36_spill] sm:$0xff] }
 0x3db   : > { %9440 = vmatpush3.msra.mxu1 %v6339_v49  ;;  %9451 = vmatpush3.msra.mxu0 %v14313_v3  ;;  %v16963_v49 = vld [vmem:[#allocation43_spill] sm:$0xff]  ;;  %v16969_v5 = vld [vmem:[#allocation40_spill] sm:$0xff] }
 0x3dc   : > { %9441 = vmatprep.subr.mxu1 %v6458_v52  ;;  %9452 = vmatprep.subr.mxu0 %v14340_v22  ;;  %v16965_v35 = vld [vmem:[#allocation55_spill] sm:$0xff]  ;;  %v16966_v52 = vld [vmem:[#allocation34_spill] sm:$0xff] }
 0x3dd   : > { %9442 = vmatpush3.msra.mxu1 %v6346_v31  ;;  %9453 = vmatpush3.msra.mxu0 %v14346_v34  ;;  %v16968_v31 = vld [vmem:[#allocation52_spill] sm:$0xff] }
 0x3de   : > { %9443 = vmatprep.subr.mxu1 %v6465_v14  ;;  %9454 = vmatprep.subr.mxu0 %v14358_v21  ;;  %v16970_v14 = vld [vmem:[#allocation46_spill] sm:$0xff] }
 0x3df   : > { %9444 = vmatpush3.msra.mxu1 %v6353_v16  ;;  %9455 = vmatpush3.msra.mxu0 %v14364_v39  ;;  %v16971_v16 = vld [vmem:[#allocation42_spill] sm:$0xff] }
 0x3e0   : > { %9445 = vmatprep.subr.mxu1 %v6472_v9  ;;  %9456 = vmatprep.subr.mxu0 %v14374_v27  ;;  %v16972_v9 = vld [vmem:[#allocation54_spill] sm:$0xff] }
 0x3e1   : > { %9446 = vmatpush3.msra.mxu1 %v6360_v57  ;;  %9457 = vmatpush3.msra.mxu0 %v14380_v62  ;;  %v16973_v57 = vld [vmem:[#allocation56_spill] sm:$0xff] }
 0x3e2   : > { %6477 = vmatmul.mubr.f32.vlgmr.msra.gmra.mxu1 %v14622_v46  ;;  %9458 = vmatprep.subr.mxu0 %v14397_v37  ;;  %v16976_v46 = vld [vmem:[#allocation33_spill] sm:$0xff] }
 0x3e3   : > { %9485 = vmatprep.subr.mxu1 %v14280_v33  ;;  %9459 = vmatpush3.msra.mxu0 %v14403_v23 }
 0x3e4   : > { %9486 = vmatpush3.msra.mxu1 %v14288_v38  ;;  %9460 = vmatprep.subr.mxu0 %v14415_v30 }
 0x3e5   : > { %9487 = vmatprep.subr.mxu1 %v14305_v42  ;;  %9461 = vmatpush3.msra.mxu0 %v14435_v54 }
 0x3e6   : > { %9488 = vmatpush3.msra.mxu1 %v14315_v10  ;;  %9462 = vmatprep.subr.mxu0 %v14484_v13 }
 0x3e7   : > { %9489 = vmatprep.subr.mxu1 %v14321_v20  ;;  %9463 = vmatpush3.msra.mxu0 %v16958_v11 }
 0x3e8   : > { %9490 = vmatpush3.msra.mxu1 %v16959_v48  ;;  %9464 = vmatprep.subr.mxu0 %v16960_v51 }
 0x3e9   : > { %9491 = vmatprep.subr.mxu1 %v16961_v43  ;;  %9465 = vmatpush3.msra.mxu0 %v16962_v55 }
 0x3ea   : > { %9492 = vmatpush3.msra.mxu1 %v16963_v49  ;;  %9466 = vmatprep.subr.mxu0 %v16964_v2 }
 0x3eb   : > { %9493 = vmatprep.subr.mxu1 %v16965_v35  ;;  %9467 = vmatpush3.msra.mxu0 %v16966_v52 }
 0x3ec   : > { %9494 = vmatpush3.msra.mxu1 %v16967_v12  ;;  %9468 = vmatprep.subr.mxu0 %v14592_v28 }
 0x3ed   : > { %9495 = vmatprep.subr.mxu1 %v16968_v31  ;;  %9469 = vmatpush3.msra.mxu0 %v14561_v56 }
 0x3ee   : > { %9496 = vmatpush3.msra.mxu1 %v16969_v5  ;;  %9470 = vmatprep.subr.mxu0 %v14620_v58 }
 0x3ef   : > { %9497 = vmatprep.subr.mxu1 %v16970_v14  ;;  %9471 = vmatpush3.msra.mxu0 %v14596_v32 }
 0x3f0   : > { %9498 = vmatpush3.msra.mxu1 %v16971_v16  ;;  %9472 = vmatprep.subr.mxu0 %v14645_v53 }
 0x3f1   : > { %9499 = vmatprep.subr.mxu1 %v16972_v9  ;;  %9473 = vmatpush3.msra.mxu0 %v14628_v47 }
 0x3f2   : > { %9500 = vmatpush3.msra.mxu1 %v16973_v57  ;;  %9474 = vmatprep.subr.mxu0 %v14678_v50 }
 0x3f3   : > { %9501 = vmatprep.subr.mxu1 %v16974_v29  ;;  %9475 = vmatpush3.msra.mxu0 %v14631_v1 }
 0x3f4   : > { %9502 = vmatpush3.msra.mxu1 %v16975_v25  ;;  %9476 = vmatprep.subr.mxu0 %v14698_v15 }
 0x3f5   : > { %9503 = vmatprep.subr.mxu1 %v16976_v46  ;;  %9477 = vmatpush3.msra.mxu0 %v14702_v24  ;;  %v16978_v46 = vld [vmem:[#allocation29_spill] sm:$0xff] }
 0x3f6   : > { %9504 = vmatpush3.msra.mxu1 %v14520_v45  ;;  %9478 = vmatprep.subr.mxu0 %v14718_v0 }
 0x3f7   : > { %9505 = vmatprep.subr.mxu1 %v16977_v36  ;;  %9479 = vmatpush3.msra.mxu0 %v14711_v19  ;;  %v16979_v36 = vand.u32 4294901760, %v14300_v18  ;;  %v16984_v18 = vand.u32 4294901760, %v14358_v21  ;;  %v16989_v21 = vand.u32 4294901760, %v14667_v7 }
 0x3f8   : > { %9506 = vmatpush3.msra.mxu1 %v14551_v63  ;;  %9480 = vmatprep.subr.mxu0 %v14734_v40  ;;  %v16980_v63 = vand.u32 4294901760, %v14313_v3  ;;  %v16981_v40 = vld [vmem:[#allocation51_spill] sm:$0xff]  ;;  %v16985_v3 = vand.u32 4294901760, %v14364_v39  ;;  %v16990_v39 = vand.u32 4294901760, %v14397_v37  ;;  %v965_v37 = vld [vmem:[%s10552_s15 + $0x7f8] sm:$0xff] }
 0x3f9   : > { %9507 = vmatprep.subr.mxu1 %v14588_v61  ;;  %9481 = vmatpush3.msra.mxu0 %v14727_v59  ;;  %v16982_v59 = vand.u32 4294901760, %v14340_v22  ;;  %v16986_v22 = vand.u32 4294901760, %v14374_v27  ;;  %v16991_v27 = vand.u32 4294901760, %v14403_v23 }
 0x3fa   : > { %6612 = vmatprep.mubr.f32.mxu0 %v14655_v41  ;;  %9508 = vmatpush3.msra.mxu1 %v16978_v46  ;;  %v16983_v46 = vand.u32 4294901760, %v14346_v34  ;;  %v16987_v34 = vand.u32 4294901760, %v14655_v41  ;;  %v948_v41 = vld [vmem:[%s10552_s15 + $0x770] sm:$0xff] }
 0x3fb   : > { %6615 = vmatmul.mubr.f32.vlgmr.msra.gmra.mxu0 %v14667_v7  ;;  %9509 = vmatprep.subr.mxu1 %v14611_v8  ;;  %v17000_v7 = vand.u32 4294901760, %v14592_v28  ;;  %v17002_v28 = vand.u32 4294901760, %v14620_v58  ;;  %v17004_v58 = vand.u32 4294901760, %v14645_v53 }
 0x3fc   : > { %9520 = vmatprep.subr.mxu0 %v16979_v36  ;;  %9510 = vmatpush3.msra.mxu1 %v14583_v17  ;;  %v16992_v36 = vand.u32 4294901760, %v14415_v30  ;;  %v964_v30 = vld [vmem:[%s10552_s15 + $0x7f0] sm:$0xff] }
 0x3fd   : > { %9521 = vmatpush3.msra.mxu0 %v16980_v63  ;;  %9511 = vmatprep.subr.mxu1 %v16981_v40  ;;  %v16988_v63 = vand.u32 4294901760, %v14380_v62  ;;  %v16993_v62 = vand.u32 4294901760, %v14435_v54  ;;  %v16999_v54 = vand.u32 4294901760, %v16966_v52 }
 0x3fe   : > { %9522 = vmatprep.subr.mxu0 %v16982_v59  ;;  %9512 = vmatpush3.msra.mxu1 %v14661_v26  ;;  %v963_v59 = vld [vmem:[%s10552_s15 + $0x7e8] sm:$0xff] }
 0x3ff   : > { %9523 = vmatpush3.msra.mxu0 %v16983_v46  ;;  %9513 = vmatprep.subr.mxu1 %v14672_v6  ;;  %v16994_v46 = vand.u32 4294901760, %v14484_v13  ;;  %v16997_v13 = vand.u32 4294901760, %v16962_v55  ;;  %v962_v55 = vld [vmem:[%s10552_s15 + $0x7e0] sm:$0xff]  ;;  %v14931_v52 = vand.u32 4294901760, %v963_v59 }
 0x400   : > { %9524 = vmatprep.subr.mxu0 %v16984_v18  ;;  %9514 = vmatpush3.msra.mxu1 %v14674_v44  ;;  %v945_v18 = vld [vmem:[%s10552_s15 + $0x758] sm:$0xff] }
 0x401   : > { %9525 = vmatpush3.msra.mxu0 %v16985_v3  ;;  %9515 = vmatprep.subr.mxu1 %v14692_v4  ;;  %v960_v3 = vld [vmem:[%s10552_s15 + $0x7d0] sm:$0xff] }
 0x402   : > { %9526 = vmatprep.subr.mxu0 %v16986_v22  ;;  %9516 = vmatpush3.msra.mxu1 %v14694_v60 }
 0x403   : > { %6719 = vmatprep.mubr.f32.mxu1 %v16987_v34  ;;  %9527 = vmatpush3.msra.mxu0 %v16988_v63  ;;  %v14964_v63 = vand.u32 4294901760, %v945_v18 }
 0x404   : > { %6723 = vmatmul.mubr.f32.vlgmr.msra.gmra.mxu1 %v16989_v21  ;;  %9528 = vmatprep.subr.mxu0 %v16990_v39  ;;  %v944_v21 = vld [vmem:[%s10552_s15 + $0x750] sm:$0xff] }
 0x405   : > { %9555 = vmatprep.subr.mxu1 %v14280_v33  ;;  %9529 = vmatpush3.msra.mxu0 %v16991_v27  ;;  %v16995_v33 = vand.u32 4294901760, %v16958_v11  ;;  %17012 = vst [vmem:[#allocation35_spill] sm:$0xff] %v14964_v63  ;;  %v17014_v39 = vld [vmem:[#allocation33_spill] sm:$0xff] }
 0x406   : > { %9556 = vmatpush3.msra.mxu1 %v14288_v38  ;;  %9530 = vmatprep.subr.mxu0 %v16992_v36  ;;  %v949_v38 = vld [vmem:[%s10552_s15 + $0x778] sm:$0xff] }
 0x407   : > { %9557 = vmatprep.subr.mxu1 %v14305_v42  ;;  %9531 = vmatpush3.msra.mxu0 %v16993_v62  ;;  %v16996_v42 = vand.u32 4294901760, %v16960_v51  ;;  %v14898_v23 = vand.u32 4294901760, %v949_v38  ;;  %v14915_v51 = vand.u32 4294901760, %v964_v30 }
 0x408   : > { %9558 = vmatpush3.msra.mxu1 %v14315_v10  ;;  %9532 = vmatprep.subr.mxu0 %v16994_v46  ;;  %v14890_v10 = vand.u32 4294901760, %v965_v37  ;;  %v17017_v46 = vand.u32 4294901760, %v14718_v0  ;;  %v17020_v0 = vand.u32 4294901760, %v14711_v19 }
 0x409   : > { %9559 = vmatprep.subr.mxu1 %v14321_v20  ;;  %9533 = vmatpush3.msra.mxu0 %v16995_v33  ;;  %v16998_v20 = vand.u32 4294901760, %v16964_v2  ;;  %v14925_v2 = vand.u32 4294901760, %v948_v41  ;;  %v14950_v53 = vsub.f32 %v964_v30, %v14915_v51  ;;  %v17018_v33 = vld [vmem:[#allocation50_spill] sm:$0xff]  ;;  %v17021_v30 = vld [vmem:[#allocation44_spill] sm:$0xff] }
 0x40a   : > { %9560 = vmatpush3.msra.mxu1 %v16959_v48  ;;  %9534 = vmatprep.subr.mxu0 %v16996_v42  ;;  %v14910_v11 = vsub.f32 %v965_v37, %v14890_v10  ;;  %v17001_v48 = vand.u32 4294901760, %v14561_v56  ;;  %v946_v56 = vld [vmem:[%s10552_s15 + $0x760] sm:$0xff]  ;;  %v959_v42 = vld [vmem:[%s10552_s15 + $0x7c8] sm:$0xff] }
 0x40b   : > { %9561 = vmatprep.subr.mxu1 %v16961_v43  ;;  %9535 = vmatpush3.msra.mxu0 %v16997_v13  ;;  %v947_v43 = vld [vmem:[%s10552_s15 + $0x768] sm:$0xff]  ;;  %v14956_v22 = vsub.f32 %v948_v41, %v14925_v2  ;;  %v16122_v37 = vand.u32 4294901760, %v14950_v53 }
 0x40c   : > { %9562 = vmatpush3.msra.mxu1 %v16963_v49  ;;  %9536 = vmatprep.subr.mxu0 %v16998_v20  ;;  %v14923_v49 = vsub.f32 %v949_v38, %v14898_v23  ;;  %v943_v13 = vld [vmem:[%s10552_s15 + $0x748] sm:$0xff] }
 0x40d   : > { %9563 = vmatprep.subr.mxu1 %v16965_v35  ;;  %9537 = vmatpush3.msra.mxu0 %v16999_v54  ;;  %v17003_v35 = vand.u32 4294901760, %v14596_v32  ;;  %v17007_v32 = vand.u32 4294901760, %v14628_v47  ;;  %v15013_v54 = vsub.f32 %v945_v18, %v14964_v63  ;;  %v15035_v18 = vand.u32 4294901760, %v959_v42 }
 0x40e   : > { %9564 = vmatpush3.msra.mxu1 %v16967_v12  ;;  %9538 = vmatprep.subr.mxu0 %v17000_v7  ;;  %v961_v12 = vld [vmem:[%s10552_s15 + $0x7d8] sm:$0xff]  ;;  %v16124_v47 = vand.u32 4294901760, %v14923_v49  ;;  %v17022_v7 = vld [vmem:[#allocation41_spill] sm:$0xff] }
 0x40f   : > { %9565 = vmatprep.subr.mxu1 %v16968_v31  ;;  %9539 = vmatpush3.msra.mxu0 %v17001_v48  ;;  %v14937_v31 = vand.u32 4294901760, %v947_v43  ;;  %v14958_v34 = vand.u32 4294901760, %v961_v12  ;;  %17027 = vst [vmem:[#allocation43_spill] sm:$0xff] %v15035_v18 }
 0x410   : > { %9566 = vmatpush3.msra.mxu1 %v16969_v5  ;;  %9540 = vmatprep.subr.mxu0 %v17002_v28  ;;  %v14939_v5 = vand.u32 4294901760, %v962_v55  ;;  %v14999_v38 = vsub.f32 %v14923_v49, %v16124_v47  ;;  %v942_v28 = vld [vmem:[%s10552_s15 + $0x740] sm:$0xff] }
 0x411   : > { %9567 = vmatprep.subr.mxu1 %v16970_v14  ;;  %9541 = vmatpush3.msra.mxu0 %v17003_v35  ;;  %17005 = vst [vmem:[#allocation39_spill] sm:$0xff] %v14937_v31  ;;  %v16126_v14 = vand.u32 4294901760, %v14910_v11  ;;  %17010 = vst [vmem:[#allocation53_spill] sm:$0xff] %v14958_v34  ;;  %v14974_v27 = vsub.f32 %v947_v43, %v14937_v31  ;;  %v15007_v20 = vsub.f32 %v961_v12, %v14958_v34  ;;  %v17024_v35 = vld [vmem:[#allocation49_spill] sm:$0xff] }
 0x412   : > { %9568 = vmatpush3.msra.mxu1 %v16971_v16  ;;  %9542 = vmatprep.subr.mxu0 %v17004_v58  ;;  %17006 = vst [vmem:[#allocation48_spill] sm:$0xff] %v14939_v5  ;;  %v14946_v16 = vand.u32 4294901760, %v946_v56  ;;  %v14984_v36 = vsub.f32 %v962_v55, %v14939_v5  ;;  %v958_v55 = vld [vmem:[%s10552_s15 + $0x7c0] sm:$0xff]  ;;  %v17025_v12 = vand.u32 4294901760, %v17024_v35  ;;  %v17026_v58 = vld [vmem:[#allocation57_spill] sm:$0xff] }
 0x413   : > { %9569 = vmatprep.subr.mxu1 %v16972_v9  ;;  %9543 = vmatpush3.msra.mxu0 %v17007_v32  ;;  %v17009_v9 = vand.u32 4294901760, %v14678_v50  ;;  %v14968_v50 = vsub.f32 %v963_v59, %v14931_v52  ;;  %v17023_v59 = vand.u32 4294901760, %v17022_v7  ;;  %v16117_v43 = vand.u32 4294901760, %v14974_v27  ;;  %v941_v7 = vld [vmem:[%s10552_s15 + $0x738] sm:$0xff] }
 0x414   : > { %9570 = vmatpush3.msra.mxu1 %v16973_v57  ;;  %17008 = vst [vmem:[#allocation32_spill] sm:$0xff] %v14946_v16  ;;  %v17011_v57 = vand.u32 4294901760, %v14631_v1  ;;  %v14979_v1 = vsub.f32 %v14910_v11, %v16126_v14  ;;  %v14990_v62 = vsub.f32 %v946_v56, %v14946_v16  ;;  %v16118_v19 = vand.u32 4294901760, %v14984_v36  ;;  %6889 = vmatprep.mubr.f32.mxu0 %v17026_v58 }
 0x415   : > { %9544 = vmatprep.subr.mxu0 %v17009_v9  ;;  %9571 = vmatprep.subr.mxu1 %v16974_v29  ;;  %v17013_v29 = vand.u32 4294901760, %v14698_v15  ;;  %v17016_v15 = vand.u32 4294901760, %v14702_v24  ;;  %v15001_v24 = vand.u32 4294901760, %v944_v21  ;;  %v16116_v41 = vand.u32 4294901760, %v14968_v50 }
 0x416   : > { %9545 = vmatpush3.msra.mxu0 %v17011_v57  ;;  %9572 = vmatpush3.msra.mxu1 %v16975_v25  ;;  %v14981_v25 = vand.u32 4294901760, %v960_v3  ;;  %v7229_v48 = vand.u32 4294901760, %v14979_v1  ;;  %v15037_v32 = vand.u32 4294901760, %v943_v13  ;;  %v16120_v9 = vand.u32 4294901760, %v14990_v62  ;;  %v957_v57 = vld [vmem:[%s10552_s15 + $0x7b8] sm:$0xff] }
 0x417   : > { %9546 = vmatprep.subr.mxu0 %v17013_v29  ;;  %9573 = vmatprep.subr.mxu1 %v17014_v39  ;;  %17019 = vst [vmem:[#allocation30_spill] sm:$0xff] %v15001_v24  ;;  %v17030_v29 = vld [vmem:[#allocation45_spill] sm:$0xff]  ;;  %v15076_v35 = vsub.f32 %v14984_v36, %v16118_v19 }
 0x418   : > { %17015 = vst [vmem:[#allocation38_spill] sm:$0xff] %v14981_v25  ;;  %9547 = vmatpush3.msra.mxu0 %v17016_v15  ;;  %9574 = vmatpush3.msra.mxu1 %v14520_v45  ;;  %v16119_v45 = vand.u32 4294901760, %v14956_v22  ;;  %v15025_v56 = vsub.f32 %v960_v3, %v14981_v25  ;;  %17028 = vst [vmem:[#allocation37_spill] sm:$0xff] %v15037_v32  ;;  %v17029_v3 = vld [vmem:[#allocation29_spill] sm:$0xff]  ;;  %v15045_v15 = vsub.f32 %v944_v21, %v15001_v24 }
 0x419   : > { %9548 = vmatprep.subr.mxu0 %v17017_v46  ;;  %9575 = vmatprep.subr.mxu1 %v17018_v33  ;;  %v16121_v33 = vand.u32 4294901760, %v15007_v20  ;;  %v15062_v21 = vand.u32 4294901760, %v942_v28  ;;  %v940_v19 = vld [vmem:[%s10552_s15 + $0x730] sm:$0xff] }
 0x41a   : > { %9549 = vmatpush3.msra.mxu0 %v17020_v0  ;;  %9576 = vmatpush3.msra.mxu1 %v17021_v30  ;;  %v15050_v46 = vsub.f32 %v14956_v22, %v16119_v45  ;;  %v15058_v0 = vsub.f32 %v14968_v50, %v16116_v41  ;;  %v15060_v30 = vand.u32 4294901760, %v958_v55  ;;  %v15085_v41 = vsub.f32 %v943_v13, %v15037_v32 }
 0x41b   : > { %9550 = vmatprep.subr.mxu0 %v17023_v59  ;;  %9577 = vmatprep.subr.mxu1 %v14588_v61  ;;  %v15033_v61 = vsub.f32 %v14950_v53, %v16122_v37  ;;  %17032 = vst [vmem:[#allocation34_spill] sm:$0xff] %v15062_v21  ;;  %v16123_v59 = vand.u32 4294901760, %v15013_v54  ;;  %v15094_v45 = vsub.f32 %v959_v42, %v15035_v18 }
 0x41c   : > { %9551 = vmatpush3.msra.mxu0 %v17025_v12  ;;  %9578 = vmatpush3.msra.mxu1 %v17029_v3  ;;  %17031 = vst [vmem:[#allocation55_spill] sm:$0xff] %v15060_v30  ;;  %v15078_v12 = vand.u32 4294901760, %v957_v57  ;;  %v16125_v3 = vand.u32 4294901760, %v15025_v56  ;;  %17034 = vst [vmem:[#allocation52_spill] sm:$0xff] %v15085_v41  ;;  %v15102_v13 = vsub.f32 %v15007_v20, %v16121_v33  ;;  %v956_v33 = vld [vmem:[%s10552_s15 + $0x7b0] sm:$0xff] }
 0x41d   : > { %6891 = vmatmul.mubr.f32.vlgmr.msra.gmra.mxu0 %v17030_v29  ;;  %9579 = vmatprep.subr.mxu1 %v14611_v8  ;;  %v15071_v8 = vsub.f32 %v14974_v27, %v16117_v43  ;;  %v15090_v43 = vsub.f32 %v14990_v62, %v16120_v9  ;;  %v16127_v9 = vand.u32 4294901760, %v15045_v15  ;;  %v15111_v42 = vsub.f32 %v942_v28, %v15062_v21 }
 0x41e   : > { %9590 = vmatprep.subr.mxu0 %v14890_v10  ;;  %9580 = vmatpush3.msra.mxu1 %v14583_v17  ;;  %17033 = vst [vmem:[#allocation36_spill] sm:$0xff] %v15078_v12  ;;  %v7236_v17 = vand.u32 4294901760, %v15033_v61  ;;  %v15104_v61 = vand.u32 4294901760, %v941_v7  ;;  %v15120_v37 = vsub.f32 %v958_v55, %v15060_v30  ;;  %v15128_v28 = vsub.f32 %v15025_v56, %v16125_v3  ;;  %v938_v55 = vld [vmem:[%s10552_s15 + $0x720] sm:$0xff]  ;;  %v937_v3 = vld [vmem:[%s10552_s15 + $0x718] sm:$0xff] }
 0x41f   : > { %9591 = vmatpush3.msra.mxu0 %v14898_v23  ;;  %9581 = vmatprep.subr.mxu1 %v16981_v40  ;;  %v7124_v40 = vand.u32 4294901760, %v15050_v46  ;;  %17036 = vst [vmem:[#allocation46_spill] sm:$0xff] %v15111_v42  ;;  %v15116_v46 = vsub.f32 %v15013_v54, %v16123_v59  ;;  %v939_v59 = vld [vmem:[%s10552_s15 + $0x728] sm:$0xff]  ;;  %v15134_v47 = vsub.f32 %v957_v57, %v15078_v12  ;;  %v15149_v39 = vand.u32 4294901760, %v956_v33 }
 0x420   : > { %9592 = vmatprep.subr.mxu0 %v14915_v51  ;;  %9582 = vmatpush3.msra.mxu1 %v14661_v26  ;;  %17035 = vst [vmem:[#allocation40_spill] sm:$0xff] %v15104_v61  ;;  %v7243_v26 = vand.u32 4294901760, %v15058_v0  ;;  %17037 = vst [vmem:[#allocation42_spill] sm:$0xff] %v15120_v37  ;;  %v15130_v0 = vand.u32 4294901760, %v940_v19  ;;  %v17043_v57 = vand.u32 4294901760, %v14999_v38  ;;  %v17044_v14 = vand.u32 4294901760, %v15094_v45 }
 0x421   : > { %9593 = vmatpush3.msra.mxu0 %v14925_v2  ;;  %9583 = vmatprep.subr.mxu1 %v14672_v6  ;;  %v7131_v6 = vand.u32 4294901760, %v15071_v8  ;;  %17038 = vst [vmem:[#allocation54_spill] sm:$0xff] %v15134_v47  ;;  %v955_v8 = vld [vmem:[%s10552_s15 + $0x7a8] sm:$0xff]  ;;  %17040 = vst [vmem:[#allocation47_spill] sm:$0xff] %v15149_v39 }
 0x422   : > { %9594 = vmatprep.subr.mxu0 %v14931_v52  ;;  %9584 = vmatpush3.msra.mxu1 %v14674_v44  ;;  %v7250_v44 = vand.u32 4294901760, %v15076_v35  ;;  %v15154_v35 = vsub.f32 %v15045_v15, %v16127_v9  ;;  %v15183_v1 = vsub.f32 %v15094_v45, %v17044_v14  ;;  %v15190_v9 = vand.u32 4294901760, %v938_v55 }
 0x423   : > { %9595 = vmatpush3.msra.mxu0 %v14937_v31  ;;  %9585 = vmatprep.subr.mxu1 %v14692_v4  ;;  %v15147_v4 = vsub.f32 %v941_v7, %v15104_v61  ;;  %v954_v7 = vld [vmem:[%s10552_s15 + $0x7a0] sm:$0xff]  ;;  %v708_v31 = vld [vmem:[%s10999_s13 + $0x70] sm:$0xff] }
 0x424   : > { %9596 = vmatprep.subr.mxu0 %v14939_v5  ;;  %9586 = vmatpush3.msra.mxu1 %v14694_v60  ;;  %v15173_v60 = vand.u32 4294901760, %v955_v8  ;;  %v709_v5 = vld [vmem:[%s10999_s13 + $0x78] sm:$0xff]  ;;  %17046 = vst [vmem:[#allocation33_spill] sm:$0xff] %v15190_v9  ;;  %v7152_v38 = vand.u32 4294901760, %v15154_v35 }
 0x425   : > { %6993 = vmatprep.mubr.f32.mxu1 %v17026_v58  ;;  %17039 = vst [vmem:[#allocation56_spill] sm:$0xff] %v15147_v4  ;;  %9597 = vmatpush3.msra.mxu0 %v14946_v16  ;;  %v15161_v58 = vand.u32 4294901760, %v939_v59  ;;  %v15193_v16 = vand.u32 4294901760, %v937_v3  ;;  %v15218_v14 = vand.u32 4294901760, %v709_v5 }
 0x426   : > { %6995 = vmatmul.mubr.f32.vlgmr.msra.gmra.mxu1 %v17030_v29  ;;  %9598 = vmatprep.subr.mxu0 %v14958_v34  ;;  %v15171_v29 = vsub.f32 %v940_v19, %v15130_v0  ;;  %17042 = vst [vmem:[#allocation51_spill] sm:$0xff] %v15173_v60  ;;  %v953_v34 = vld [vmem:[%s10552_s15 + $0x798] sm:$0xff] }
 0x427   : > { %17041 = vst [vmem:[#allocation31_spill] sm:$0xff] %v15161_v58  ;;  %9625 = vmatprep.subr.mxu1 %v7229_v48  ;;  %9599 = vmatpush3.msra.mxu0 %v14964_v63  ;;  %v17045_v48 = vand.u32 4294901760, %v15085_v41  ;;  %v15202_v63 = vsub.f32 %v956_v33, %v15149_v39  ;;  %17049 = vst [vmem:[#allocation50_spill] sm:$0xff] %v15218_v14  ;;  %v15221_v33 = vand.u32 4294901760, %v953_v34 }
 0x428   : > { %9626 = vmatpush3.msra.mxu1 %v17043_v57  ;;  %9600 = vmatprep.subr.mxu0 %v14981_v25  ;;  %v15198_v57 = vand.u32 4294901760, %v954_v7 }
 0x429   : > { %v15188_v19 = vsub.f32 %v15085_v41, %v17045_v48  ;;  %9627 = vmatprep.subr.mxu1 %v7236_v17  ;;  %9601 = vmatpush3.msra.mxu0 %v15001_v24  ;;  %v15206_v48 = vsub.f32 %v939_v59, %v15161_v58  ;;  %v17047_v41 = vand.u32 4294901760, %v15120_v37  ;;  %v17048_v17 = vand.u32 4294901760, %v15111_v42 }
 0x42a   : > { %9628 = vmatpush3.msra.mxu1 %v7124_v40  ;;  %9602 = vmatprep.subr.mxu0 %v15035_v18  ;;  %v17050_v59 = vand.u32 4294901760, %v15134_v47  ;;  %v15230_v24 = vsub.f32 %v955_v8, %v15173_v60  ;;  %v17052_v8 = vand.u32 4294901760, %v15147_v4 }
 0x42b   : > { %v15211_v25 = vsub.f32 %v15120_v37, %v17047_v41  ;;  %v15216_v35 = vsub.f32 %v15111_v42, %v17048_v17  ;;  %9629 = vmatprep.subr.mxu1 %v7243_v26  ;;  %v952_v41 = vld [vmem:[%s10552_s15 + $0x790] sm:$0xff]  ;;  %v15232_v17 = vand.u32 4294901760, %v708_v31  ;;  %9603 = vmatpush3.msra.mxu0 %v15037_v32  ;;  %v7271_v26 = vand.u32 4294901760, %v15183_v1 }
 0x42c   : > { %v15226_v40 = vsub.f32 %v15134_v47, %v17050_v59  ;;  %9630 = vmatpush3.msra.mxu1 %v7131_v6  ;;  %v7159_v18 = vand.u32 4294901760, %v15188_v19  ;;  %v15238_v42 = vsub.f32 %v938_v55, %v15190_v9  ;;  %v15241_v59 = vsub.f32 %v937_v3, %v15193_v16  ;;  %v936_v47 = vld [vmem:[%s10552_s15 + $0x710] sm:$0xff]  ;;  %9604 = vmatprep.subr.mxu0 %v15060_v30  ;;  %v951_v55 = vld [vmem:[%s10552_s15 + $0x788] sm:$0xff] }
 0x42d   : > { %17051 = vst [vmem:[#allocation44_spill] sm:$0xff] %v15232_v17  ;;  %9631 = vmatprep.subr.mxu1 %v7250_v44  ;;  %v15248_v37 = vsub.f32 %v15147_v4, %v17052_v8  ;;  %v935_v19 = vld [vmem:[%s10552_s15 + $0x708] sm:$0xff]  ;;  %v15255_v3 = vsub.f32 %v954_v7, %v15198_v57  ;;  %9605 = vmatpush3.msra.mxu0 %v15062_v21  ;;  %v17053_v44 = vand.u32 4294901760, %v15090_v43  ;;  %v7278_v30 = vand.u32 4294901760, %v15211_v25  ;;  %v934_v25 = vld [vmem:[%s10552_s15 + $0x700] sm:$0xff] }
 0x42e   : > { %v7166_v8 = vand.u32 4294901760, %v15216_v35  ;;  %v15262_v32 = vand.u32 4294901760, %v952_v41  ;;  %v15265_v6 = vsub.f32 %v709_v5, %v15218_v14  ;;  %9606 = vmatprep.subr.mxu0 %v15078_v12  ;;  %v17055_v1 = vand.u32 4294901760, %v15102_v13  ;;  %7337 = vmatprep.mubr.f32.mxu1 %v15218_v14  ;;  %v17093_v14 = vld [vmem:[#allocation51_spill] sm:$0xff] }
 0x42f   : > { %9632 = vmatpush3.msra.mxu1 %v17053_v44  ;;  %v7285_v7 = vand.u32 4294901760, %v15226_v40  ;;  %v15271_v21 = vand.u32 4294901760, %v936_v47  ;;  %v950_v44 = vld [vmem:[%s10552_s15 + $0x780] sm:$0xff]  ;;  %v15277_v35 = vsub.f32 %v708_v31, %v15232_v17  ;;  %9607 = vmatpush3.msra.mxu0 %v15104_v61  ;;  %v17056_v5 = vand.u32 4294901760, %v15116_v46 }
 0x430   : > { %17054 = vst [vmem:[#allocation41_spill] sm:$0xff] %v15262_v32  ;;  %9633 = vmatprep.subr.mxu1 %v17055_v1  ;;  %v15282_v12 = vand.u32 4294901760, %v951_v55  ;;  %v15284_v13 = vand.u32 4294901760, %v935_v19  ;;  %v15288_v1 = vsub.f32 %v953_v34, %v15221_v33  ;;  %9608 = vmatprep.subr.mxu0 %v15149_v39  ;;  %v17057_v43 = vand.u32 4294901760, %v15128_v28 }
 0x431   : > { %9634 = vmatpush3.msra.mxu1 %v17056_v5  ;;  %v7173_v31 = vand.u32 4294901760, %v15248_v37  ;;  %v17058_v61 = vand.u32 4294901760, %v15202_v63  ;;  %v17059_v5 = vand.u32 4294901760, %v15171_v29  ;;  %9609 = vmatpush3.msra.mxu0 %v15130_v0  ;;  %v15302_v34 = vand.u32 4294901760, %v950_v44 }
 0x432   : > { %9635 = vmatprep.subr.mxu1 %v17057_v43  ;;  %v15304_v39 = vand.u32 4294901760, %v934_v25  ;;  %v15308_v37 = vsub.f32 %v952_v41, %v15262_v32  ;;  %9610 = vmatprep.subr.mxu0 %v15173_v60  ;;  %v17060_v43 = vand.u32 4294901760, %v15230_v24  ;;  %v15321_v41 = vsub.f32 %v935_v19, %v15284_v13 }
 0x433   : > { %v7291_v46 = vsub.f32 %v15202_v63, %v17058_v61  ;;  %v7179_v4 = vsub.f32 %v15171_v29, %v17059_v5  ;;  %9636 = vmatpush3.msra.mxu1 %v7152_v38  ;;  %v15312_v61 = vsub.f32 %v936_v47, %v15271_v21  ;;  %9611 = vmatpush3.msra.mxu0 %v15161_v58  ;;  %v17061_v28 = vand.u32 4294901760, %v15206_v48 }
 0x434   : > { %9637 = vmatprep.subr.mxu1 %v7271_v26  ;;  %v7298_v5 = vsub.f32 %v15230_v24, %v17060_v43  ;;  %v15328_v60 = vsub.f32 %v951_v55, %v15282_v12  ;;  %9612 = vmatprep.subr.mxu0 %v15198_v57  ;;  %v17062_v38 = vand.u32 4294901760, %v15255_v3  ;;  %v17064_v55 = vand.u32 4294901760, %v15265_v6 }
 0x435   : > { %9638 = vmatpush3.msra.mxu1 %v7159_v18  ;;  %v7186_v26 = vsub.f32 %v15206_v48, %v17061_v28  ;;  %v7292_v43 = vand.u32 4294901760, %v7291_v46  ;;  %v7180_v40 = vand.u32 4294901760, %v7179_v4  ;;  %9613 = vmatpush3.msra.mxu0 %v15190_v9  ;;  %v15337_v28 = vsub.f32 %v934_v25, %v15304_v39 }
 0x436   : > { %9639 = vmatprep.subr.mxu1 %v7278_v30  ;;  %v7305_v18 = vsub.f32 %v15255_v3, %v17062_v38  ;;  %v7099_v47 = vsub.f32 %v15265_v6, %v17064_v55  ;;  %v15344_v4 = vsub.f32 %v950_v44, %v15302_v34  ;;  %9614 = vmatprep.subr.mxu0 %v15221_v33  ;;  %v7299_v46 = vand.u32 4294901760, %v7298_v5 }
 0x437   : > { %9640 = vmatpush3.msra.mxu1 %v7166_v8  ;;  %17063 = vst [vmem:[#allocation49_spill] sm:$0xff] %v15337_v28  ;;  %v17066_v38 = vand.u32 4294901760, %v15238_v42  ;;  %v17067_v25 = vand.u32 4294901760, %v15277_v35  ;;  %9615 = vmatpush3.msra.mxu0 %v15193_v16  ;;  %v7187_v55 = vand.u32 4294901760, %v7186_v26  ;;  %v17068_v44 = vand.u32 4294901760, %v15288_v1 }
 0x438   : > { %17065 = vst [vmem:[#allocation57_spill] sm:$0xff] %v15344_v4  ;;  %9641 = vmatprep.subr.mxu1 %v7285_v7  ;;  %9616 = vmatprep.subr.mxu0 %v15262_v32  ;;  %v7306_v5 = vand.u32 4294901760, %v7305_v18  ;;  %v17070_v26 = vand.u32 4294901760, %v15308_v37  ;;  %v16173_v7 = vand.u32 4294901760, %v15344_v4  ;;  %v17071_v32 = vand.u32 4294901760, %v15312_v61 }
 0x439   : > { %v7193_v8 = vsub.f32 %v15238_v42, %v17066_v38  ;;  %v7105_v19 = vsub.f32 %v15277_v35, %v17067_v25  ;;  %9642 = vmatpush3.msra.mxu1 %v7173_v31  ;;  %v7312_v30 = vsub.f32 %v15288_v1, %v17068_v44  ;;  %v17069_v38 = vand.u32 4294901760, %v15241_v59  ;;  %9617 = vmatpush3.msra.mxu0 %v15271_v21 }
 0x43a   : > { %9643 = vmatprep.subr.mxu1 %v7292_v43  ;;  %v7100_v31 = vand.u32 4294901760, %v7099_v47  ;;  %v7319_v44 = vsub.f32 %v15308_v37, %v17070_v26  ;;  %9618 = vmatprep.subr.mxu0 %v15282_v12  ;;  %v16172_v9 = vand.u32 4294901760, %v15337_v28  ;;  %v17072_v47 = vand.u32 4294901760, %v15328_v60 }
 0x43b   : > { %v7200_v25 = vsub.f32 %v15241_v59, %v17069_v38  ;;  %9644 = vmatpush3.msra.mxu1 %v7180_v40  ;;  %v7194_v43 = vand.u32 4294901760, %v7193_v8  ;;  %v7106_v18 = vand.u32 4294901760, %v7105_v19  ;;  %v7207_v38 = vsub.f32 %v15312_v61, %v17071_v32  ;;  %9619 = vmatpush3.msra.mxu0 %v15284_v13 }
 0x43c   : > { %9645 = vmatprep.subr.mxu1 %v7299_v46  ;;  %v7313_v40 = vand.u32 4294901760, %v7312_v30  ;;  %v7326_v26 = vsub.f32 %v15328_v60, %v17072_v47  ;;  %9620 = vmatprep.subr.mxu0 %v15302_v34  ;;  %v17073_v19 = vand.u32 4294901760, %v15321_v41  ;;  %v7320_v32 = vand.u32 4294901760, %v7319_v44  ;;  %v17077_v47 = vld [vmem:[#allocation48_spill] sm:$0xff] }
 0x43d   : > { %9646 = vmatpush3.msra.mxu1 %v7187_v55  ;;  %v7201_v46 = vand.u32 4294901760, %v7200_v25  ;;  %9621 = vmatpush3.msra.mxu0 %v15304_v39  ;;  %v7333_v30 = vsub.f32 %v15344_v4, %v16173_v7  ;;  %v7208_v55 = vand.u32 4294901760, %v7207_v38  ;;  %v17075_v38 = vld [vmem:[#allocation39_spill] sm:$0xff]  ;;  %v17091_v7 = vld [vmem:[#allocation40_spill] sm:$0xff] }
 0x43e   : > { %9647 = vmatprep.subr.mxu1 %v7306_v5  ;;  %v7214_v8 = vsub.f32 %v15321_v41, %v17073_v19  ;;  %7101 = vmatprep.mubr.f32.mxu0 %v7100_v31  ;;  %v7221_v5 = vsub.f32 %v15337_v28, %v16172_v9  ;;  %v7327_v25 = vand.u32 4294901760, %v7326_v26  ;;  %v17078_v26 = vld [vmem:[#allocation46_spill] sm:$0xff]  ;;  %v17090_v9 = vld [vmem:[#allocation36_spill] sm:$0xff] }
 0x43f   : > { %9648 = vmatpush3.msra.mxu1 %v7194_v43  ;;  %7107 = vmatmul.mubr.f32.vlgmr.msra.gmra.mxu0 %v7106_v18  ;;  %v7334_v44 = vand.u32 4294901760, %v7333_v30  ;;  %v17074_v18 = vld [vmem:[#allocation52_spill] sm:$0xff]  ;;  %v17080_v19 = vld [vmem:[#allocation54_spill] sm:$0xff]  ;;  %v17083_v30 = vld [vmem:[#allocation35_spill] sm:$0xff] }
 0x440   : > { %9649 = vmatprep.subr.mxu1 %v7313_v40  ;;  %9660 = vmatprep.subr.mxu0 %v14910_v11  ;;  %v7215_v31 = vand.u32 4294901760, %v7214_v8  ;;  %v7222_v43 = vand.u32 4294901760, %v7221_v5  ;;  %v17076_v40 = vld [vmem:[#allocation42_spill] sm:$0xff]  ;;  %v17081_v8 = vld [vmem:[#allocation53_spill] sm:$0xff] }
 0x441   : > { %9650 = vmatpush3.msra.mxu1 %v7201_v46  ;;  %9661 = vmatpush3.msra.mxu0 %v14923_v49  ;;  %v17079_v46 = vld [vmem:[#allocation32_spill] sm:$0xff]  ;;  %v17085_v5 = vld [vmem:[#allocation30_spill] sm:$0xff] }
 0x442   : > { %9651 = vmatprep.subr.mxu1 %v7320_v32  ;;  %9662 = vmatprep.subr.mxu0 %v14950_v53  ;;  %v17082_v32 = vld [vmem:[#allocation56_spill] sm:$0xff] }
 0x443   : > { %9652 = vmatpush3.msra.mxu1 %v7208_v55  ;;  %9663 = vmatpush3.msra.mxu0 %v14956_v22  ;;  %v17084_v55 = vld [vmem:[#allocation38_spill] sm:$0xff] }
 0x444   : > { %9653 = vmatprep.subr.mxu1 %v7327_v25  ;;  %9664 = vmatprep.subr.mxu0 %v14968_v50  ;;  %v17086_v25 = vld [vmem:[#allocation43_spill] sm:$0xff] }
 0x445   : > { %9654 = vmatpush3.msra.mxu1 %v7215_v31  ;;  %9665 = vmatpush3.msra.mxu0 %v14974_v27  ;;  %v17087_v31 = vld [vmem:[#allocation37_spill] sm:$0xff] }
 0x446   : > { %9655 = vmatprep.subr.mxu1 %v7334_v44  ;;  %9666 = vmatprep.subr.mxu0 %v14984_v36  ;;  %v17088_v44 = vld [vmem:[#allocation55_spill] sm:$0xff] }
 0x447   : > { %9656 = vmatpush3.msra.mxu1 %v7222_v43  ;;  %9667 = vmatpush3.msra.mxu0 %v14990_v62  ;;  %v17089_v43 = vld [vmem:[#allocation34_spill] sm:$0xff] }
 0x448   : > { %7339 = vmatmul.mubr.f32.vlgmr.msra.gmra.mxu1 %v15232_v17  ;;  %9668 = vmatprep.subr.mxu0 %v15007_v20  ;;  %v17092_v17 = vld [vmem:[#allocation47_spill] sm:$0xff] }
 0x449   : > { %9695 = vmatprep.subr.mxu1 %v14890_v10  ;;  %9669 = vmatpush3.msra.mxu0 %v15013_v54 }
 0x44a   : > { %9696 = vmatpush3.msra.mxu1 %v14898_v23  ;;  %9670 = vmatprep.subr.mxu0 %v15025_v56 }
 0x44b   : > { %9697 = vmatprep.subr.mxu1 %v14915_v51  ;;  %9671 = vmatpush3.msra.mxu0 %v15045_v15 }
 0x44c   : > { %9698 = vmatpush3.msra.mxu1 %v14925_v2  ;;  %9672 = vmatprep.subr.mxu0 %v15094_v45 }
 0x44d   : > { %9699 = vmatprep.subr.mxu1 %v14931_v52  ;;  %9673 = vmatpush3.msra.mxu0 %v17074_v18 }
 0x44e   : > { %9700 = vmatpush3.msra.mxu1 %v17075_v38  ;;  %9674 = vmatprep.subr.mxu0 %v17076_v40 }
 0x44f   : > { %9701 = vmatprep.subr.mxu1 %v17077_v47  ;;  %9675 = vmatpush3.msra.mxu0 %v17078_v26 }
 0x450   : > { %9702 = vmatpush3.msra.mxu1 %v17079_v46  ;;  %9676 = vmatprep.subr.mxu0 %v17080_v19 }
 0x451   : > { %9703 = vmatprep.subr.mxu1 %v17081_v8  ;;  %9677 = vmatpush3.msra.mxu0 %v17082_v32 }
 0x452   : > { %9704 = vmatpush3.msra.mxu1 %v17083_v30  ;;  %9678 = vmatprep.subr.mxu0 %v15202_v63 }
 0x453   : > { %9705 = vmatprep.subr.mxu1 %v17084_v55  ;;  %9679 = vmatpush3.msra.mxu0 %v15171_v29 }
 0x454   : > { %9706 = vmatpush3.msra.mxu1 %v17085_v5  ;;  %9680 = vmatprep.subr.mxu0 %v15230_v24 }
 0x455   : > { %9707 = vmatprep.subr.mxu1 %v17086_v25  ;;  %9681 = vmatpush3.msra.mxu0 %v15206_v48 }
 0x456   : > { %9708 = vmatpush3.msra.mxu1 %v17087_v31  ;;  %9682 = vmatprep.subr.mxu0 %v15255_v3 }
 0x457   : > { %9709 = vmatprep.subr.mxu1 %v17088_v44  ;;  %9683 = vmatpush3.msra.mxu0 %v15238_v42 }
 0x458   : > { %9710 = vmatpush3.msra.mxu1 %v17089_v43  ;;  %9684 = vmatprep.subr.mxu0 %v15288_v1 }
 0x459   : > { %9711 = vmatprep.subr.mxu1 %v17090_v9  ;;  %9685 = vmatpush3.msra.mxu0 %v15241_v59 }
 0x45a   : > { %9712 = vmatpush3.msra.mxu1 %v17091_v7  ;;  %9686 = vmatprep.subr.mxu0 %v15308_v37 }
 0x45b   : > { %9713 = vmatprep.subr.mxu1 %v17092_v17  ;;  %9687 = vmatpush3.msra.mxu0 %v15312_v61  ;;  %v17094_v17 = vld [vmem:[#allocation33_spill] sm:$0xff] }
 0x45c   : > { %9714 = vmatpush3.msra.mxu1 %v15130_v0  ;;  %9688 = vmatprep.subr.mxu0 %v15328_v60 }
 0x45d   : > { %9715 = vmatprep.subr.mxu1 %v17093_v14  ;;  %9689 = vmatpush3.msra.mxu0 %v15321_v41  ;;  %v17095_v14 = vand.u32 4294901760, %v14910_v11  ;;  %v17100_v11 = vand.u32 4294901760, %v14968_v50  ;;  %v17105_v50 = vand.u32 4294901760, %v15277_v35 }
 0x45e   : > { %9716 = vmatpush3.msra.mxu1 %v15161_v58  ;;  %9690 = vmatprep.subr.mxu0 %v15344_v4  ;;  %v17096_v58 = vand.u32 4294901760, %v14923_v49  ;;  %v17097_v4 = vld [vmem:[#allocation41_spill] sm:$0xff]  ;;  %v17101_v49 = vand.u32 4294901760, %v14974_v27  ;;  %v17107_v27 = vand.u32 4294901760, %v15013_v54  ;;  %v17117_v54 = vand.u32 4294901760, %v15171_v29 }
 0x45f   : > { %9717 = vmatprep.subr.mxu1 %v15198_v57  ;;  %9691 = vmatpush3.msra.mxu0 %v15337_v28  ;;  %v17098_v28 = vand.u32 4294901760, %v14950_v53  ;;  %v17102_v53 = vand.u32 4294901760, %v14984_v36  ;;  %v17108_v36 = vand.u32 4294901760, %v15025_v56  ;;  %v17118_v56 = vand.u32 4294901760, %v15230_v24 }
 0x460   : > { %7474 = vmatprep.mubr.f32.mxu0 %v15265_v6  ;;  %9718 = vmatpush3.msra.mxu1 %v17094_v17  ;;  %v17099_v17 = vand.u32 4294901760, %v14956_v22  ;;  %v17103_v22 = vand.u32 4294901760, %v15265_v6  ;;  %v17121_v29 = vand.u32 4294901760, %v15238_v42  ;;  %v17122_v24 = vand.u32 4294901760, %v15288_v1  ;;  %v17125_v6 = vld [vmem:[#allocation47_spill] sm:$0xff]  ;;  %v17131_v1 = vld [vmem:[#allocation57_spill] sm:$0xff] }
 0x461   : > { %7477 = vmatmul.mubr.f32.vlgmr.msra.gmra.mxu0 %v15277_v35  ;;  %9719 = vmatprep.subr.mxu1 %v15221_v33  ;;  %v17126_v42 = vand.u32 4294901760, %v15312_v61  ;;  %v17128_v35 = vld [vmem:[#allocation51_spill] sm:$0xff] }
 0x462   : > { %9730 = vmatprep.subr.mxu0 %v17095_v14  ;;  %9720 = vmatpush3.msra.mxu1 %v15193_v16  ;;  %v17106_v14 = vand.u32 4294901760, %v15007_v20  ;;  %v17110_v20 = vand.u32 4294901760, %v15094_v45  ;;  %v17116_v45 = vand.u32 4294901760, %v15202_v63  ;;  %v17120_v63 = vand.u32 4294901760, %v15255_v3 }
 0x463   : > { %9731 = vmatpush3.msra.mxu0 %v17096_v58  ;;  %9721 = vmatprep.subr.mxu1 %v17097_v4  ;;  %v17104_v58 = vand.u32 4294901760, %v14990_v62  ;;  %v17109_v62 = vand.u32 4294901760, %v15045_v15  ;;  %v17119_v15 = vand.u32 4294901760, %v15206_v48  ;;  %v17123_v48 = vand.u32 4294901760, %v15241_v59  ;;  %v17130_v59 = vld [vmem:[#allocation31_spill] sm:$0xff] }
 0x464   : > { %9732 = vmatprep.subr.mxu0 %v17098_v28  ;;  %9722 = vmatpush3.msra.mxu1 %v15271_v21  ;;  %v17127_v3 = vand.u32 4294901760, %v15328_v60  ;;  %v17133_v28 = vld [vmem:[#allocation49_spill] sm:$0xff]  ;;  %v17137_v60 = vld [vmem:[#allocation44_spill] sm:$0xff] }
 0x465   : > { %9733 = vmatpush3.msra.mxu0 %v17099_v17  ;;  %9723 = vmatprep.subr.mxu1 %v15282_v12  ;;  %v17124_v17 = vand.u32 4294901760, %v15308_v37  ;;  %v17132_v37 = vand.u32 4294901760, %v17131_v1  ;;  %v17134_v61 = vand.u32 4294901760, %v17133_v28 }
 0x466   : > { %9734 = vmatprep.subr.mxu0 %v17100_v11  ;;  %9724 = vmatpush3.msra.mxu1 %v15284_v13 }
 0x467   : > { %9735 = vmatpush3.msra.mxu0 %v17101_v49  ;;  %9725 = vmatprep.subr.mxu1 %v15302_v34 }
 0x468   : > { %9736 = vmatprep.subr.mxu0 %v17102_v53  ;;  %9726 = vmatpush3.msra.mxu1 %v15304_v39 }
 0x469   : > { %7581 = vmatprep.mubr.f32.mxu1 %v17103_v22  ;;  %9737 = vmatpush3.msra.mxu0 %v17104_v58 }
 0x46a   : > { %7585 = vmatmul.mubr.f32.vlgmr.msra.gmra.mxu1 %v17105_v50  ;;  %9738 = vmatprep.subr.mxu0 %v17106_v14 }
 0x46b   : > { %9765 = vmatprep.subr.mxu1 %v14890_v10  ;;  %9739 = vmatpush3.msra.mxu0 %v17107_v27  ;;  %v17111_v10 = vand.u32 4294901760, %v17074_v18 }
 0x46c   : > { %9766 = vmatpush3.msra.mxu1 %v14898_v23  ;;  %9740 = vmatprep.subr.mxu0 %v17108_v36  ;;  %v17112_v23 = vand.u32 4294901760, %v17076_v40 }
 0x46d   : > { %9767 = vmatprep.subr.mxu1 %v14915_v51  ;;  %9741 = vmatpush3.msra.mxu0 %v17109_v62  ;;  %v17113_v51 = vand.u32 4294901760, %v17078_v26 }
 0x46e   : > { %9768 = vmatpush3.msra.mxu1 %v14925_v2  ;;  %9742 = vmatprep.subr.mxu0 %v17110_v20  ;;  %v17114_v2 = vand.u32 4294901760, %v17080_v19 }
 0x46f   : > { %9769 = vmatprep.subr.mxu1 %v14931_v52  ;;  %9743 = vmatpush3.msra.mxu0 %v17111_v10  ;;  %v17115_v52 = vand.u32 4294901760, %v17082_v32 }
 0x470   : > { %9770 = vmatpush3.msra.mxu1 %v17075_v38  ;;  %9744 = vmatprep.subr.mxu0 %v17112_v23 }
 0x471   : > { %9771 = vmatprep.subr.mxu1 %v17077_v47  ;;  %9745 = vmatpush3.msra.mxu0 %v17113_v51 }
 0x472   : > { %9772 = vmatpush3.msra.mxu1 %v17079_v46  ;;  %9746 = vmatprep.subr.mxu0 %v17114_v2 }
 0x473   : > { %9773 = vmatprep.subr.mxu1 %v17081_v8  ;;  %9747 = vmatpush3.msra.mxu0 %v17115_v52 }
 0x474   : > { %9774 = vmatpush3.msra.mxu1 %v17083_v30  ;;  %9748 = vmatprep.subr.mxu0 %v17116_v45 }
 0x475   : > { %9775 = vmatprep.subr.mxu1 %v17084_v55  ;;  %9749 = vmatpush3.msra.mxu0 %v17117_v54 }
 0x476   : > { %9776 = vmatpush3.msra.mxu1 %v17085_v5  ;;  %9750 = vmatprep.subr.mxu0 %v17118_v56 }
 0x477   : > { %9777 = vmatprep.subr.mxu1 %v17086_v25  ;;  %9751 = vmatpush3.msra.mxu0 %v17119_v15 }
 0x478   : > { %9778 = vmatpush3.msra.mxu1 %v17087_v31  ;;  %9752 = vmatprep.subr.mxu0 %v17120_v63 }
 0x479   : > { %9779 = vmatprep.subr.mxu1 %v17088_v44  ;;  %9753 = vmatpush3.msra.mxu0 %v17121_v29 }
 0x47a   : > { %9780 = vmatpush3.msra.mxu1 %v17089_v43  ;;  %9754 = vmatprep.subr.mxu0 %v17122_v24 }
 0x47b   : > { %9781 = vmatprep.subr.mxu1 %v17090_v9  ;;  %9755 = vmatpush3.msra.mxu0 %v17123_v48  ;;  %v17129_v9 = vand.u32 4294901760, %v15321_v41  ;;  %v8187_v41 = vpop.f32.mrf.mxu1 }
 0x47c   : > { %9782 = vmatpush3.msra.mxu1 %v17091_v7  ;;  %9756 = vmatprep.subr.mxu0 %v17124_v17  ;;  %v17135_v7 = vld [vmem:[#allocation50_spill] sm:$0xff] }
 0x47d   : > { %9783 = vmatprep.subr.mxu1 %v17125_v6  ;;  %9757 = vmatpush3.msra.mxu0 %v17126_v42  ;;  %v8188_v38 = vpop.f32.mrf.mxu1 }
 0x47e   : > { %9784 = vmatpush3.msra.mxu1 %v15130_v0  ;;  %9758 = vmatprep.subr.mxu0 %v17127_v3  ;;  %v17136_v0 = vld [vmem:[#allocation33_spill] sm:$0xff]  ;;  %v8189_v20 = vadd.f32 %v8188_v38, %v8187_v41 }
 0x47f   : > { %9785 = vmatprep.subr.mxu1 %v17128_v35  ;;  %9759 = vmatpush3.msra.mxu0 %v17129_v9  ;;  %v8257_v40 = vpop.f32.mrf.mxu1 }
 0x480   : > { %9786 = vmatpush3.msra.mxu1 %v17130_v59  ;;  %9760 = vmatprep.subr.mxu0 %v17132_v37 }
 0x481   : > { %9787 = vmatprep.subr.mxu1 %v15198_v57  ;;  %9761 = vmatpush3.msra.mxu0 %v17134_v61  ;;  %v8152_v57 = vpop.f32.mrf.mxu0  ;;  %v8258_v47 = vpop.f32.mrf.mxu1 }
 0x482   : > { %7751 = vmatprep.mubr.f32.mxu0 %v17135_v7  ;;  %9788 = vmatpush3.msra.mxu1 %v17136_v0  ;;  %v8259_v54 = vadd.f32 %v8258_v47, %v8257_v40 }
 0x483   : > { %7753 = vmatmul.mubr.f32.vlgmr.msra.gmra.mxu0 %v17137_v60  ;;  %9789 = vmatprep.subr.mxu1 %v15221_v33  ;;  %v8153_v33 = vpop.f32.mrf.mxu0  ;;  %v8327_v26 = vpop.f32.mrf.mxu1 }
 0x484   : > { %7855 = vmatprep.mubr.f32.mxu1 %v17135_v7  ;;  %9790 = vmatpush3.msra.mxu1 %v15193_v16  ;;  %v8154_v23 = vadd.f32 %v8153_v33, %v8152_v57 }
 0x485   : > { %9791 = vmatprep.subr.mxu1 %v17097_v4  ;;  %v8222_v18 = vpop.f32.mrf.mxu0  ;;  %v8328_v46 = vpop.f32.mrf.mxu1 }
 0x486   : > { %9792 = vmatpush3.msra.mxu1 %v15271_v21  ;;  %v1307_v45 = vadd.f32 %v8189_v20, %v8154_v23  ;;  %v8329_v48 = vadd.f32 %v8328_v46, %v8327_v26 }
 0x487   : > { %9793 = vmatprep.subr.mxu1 %v15282_v12  ;;  %v8223_v16 = vpop.f32.mrf.mxu0  ;;  %v8397_v19 = vpop.f32.mrf.mxu1 }
 0x488   : > { %9794 = vmatpush3.msra.mxu1 %v15284_v13  ;;  %v8224_v51 = vadd.f32 %v8223_v16, %v8222_v18 }
 0x489   : > { %9795 = vmatprep.subr.mxu1 %v15302_v34  ;;  %v8292_v4 = vpop.f32.mrf.mxu0  ;;  %v8398_v8 = vpop.f32.mrf.mxu1 }
 0x48a   : > { %9796 = vmatpush3.msra.mxu1 %v15304_v39  ;;  %v1445_v15 = vadd.f32 %v8224_v51, %v1307_v45  ;;  %v8399_v59 = vadd.f32 %v8398_v8, %v8397_v19 }
 0x48b   : > { %7857 = vmatmul.mubr.f32.vlgmr.msra.gmra.mxu1 %v17137_v60  ;;  %v8293_v21 = vpop.f32.mrf.mxu0  ;;  %v8467_v32 = vpop.f32.mrf.mxu1 }
 0x48c   : > { %v8294_v63 = vadd.f32 %v8293_v21, %v8292_v4  ;;  %v1553_v24 = vadd.f32 %v8259_v54, %v1445_v15 }
 0x48d   : > { %v8362_v12 = vpop.f32.mrf.mxu0  ;;  %v8468_v55 = vpop.f32.mrf.mxu1 }
 0x48e   : > { %v1721_v42 = vadd.f32 %v8294_v63, %v1553_v24  ;;  %v8469_v60 = vadd.f32 %v8468_v55, %v8467_v32 }
 0x48f   : > { %v8363_v13 = vpop.f32.mrf.mxu0  ;;  %v8537_v25 = vpop.f32.mrf.mxu1 }
 0x490   : > { %v8364_v3 = vadd.f32 %v8363_v13, %v8362_v12  ;;  %v1825_v9 = vadd.f32 %v8329_v48, %v1721_v42 }
 0x491   : > { %v8432_v34 = vpop.f32.mrf.mxu0  ;;  %v8538_v44 = vpop.f32.mrf.mxu1 }
 0x492   : > { %v1937_v37 = vadd.f32 %v8364_v3, %v1825_v9  ;;  %v8539_v16 = vadd.f32 %v8538_v44, %v8537_v25 }
 0x493   : > { %v8433_v39 = vpop.f32.mrf.mxu0  ;;  %v8607_v11 = vpop.f32.mrf.mxu1 }
 0x494   : > { %v8434_v28 = vadd.f32 %v8433_v39, %v8432_v34  ;;  %v2169_v0 = vadd.f32 %v8399_v59, %v1937_v37 }
 0x495   : > { %v8502_v30 = vpop.f32.mrf.mxu0  ;;  %v8608_v53 = vpop.f32.mrf.mxu1 }
 0x496   : > { %v2307_v33 = vadd.f32 %v8434_v28, %v2169_v0  ;;  %v8609_v46 = vadd.f32 %v8608_v53, %v8607_v11 }
 0x497   : > { %v8503_v5 = vpop.f32.mrf.mxu0  ;;  %v8677_v58 = vpop.f32.mrf.mxu1 }
 0x498   : > { %v8504_v41 = vadd.f32 %v8503_v5, %v8502_v30  ;;  %v2415_v38 = vadd.f32 %v8469_v60, %v2307_v33 }
 0x499   : > { %v8572_v31 = vpop.f32.mrf.mxu0  ;;  %v8678_v14 = vpop.f32.mrf.mxu1 }
 0x49a   : > { %v2583_v47 = vadd.f32 %v8504_v41, %v2415_v38  ;;  %v8679_v32 = vadd.f32 %v8678_v14, %v8677_v58 }
 0x49b   : > { %v8573_v43 = vpop.f32.mrf.mxu0  ;;  %v8747_v36 = vpop.f32.mrf.mxu1 }
 0x49c   : > { %v8574_v21 = vadd.f32 %v8573_v43, %v8572_v31  ;;  %v2687_v12 = vadd.f32 %v8539_v16, %v2583_v47 }
 0x49d   : > { %v8642_v49 = vpop.f32.mrf.mxu0  ;;  %v8748_v10 = vpop.f32.mrf.mxu1 }
 0x49e   : > { %v2799_v19 = vadd.f32 %v8574_v21, %v2687_v12  ;;  %v8749_v25 = vadd.f32 %v8748_v10, %v8747_v36 }
 0x49f   : > { %v8643_v22 = vpop.f32.mrf.mxu0  ;;  %v8817_v52 = vpop.f32.mrf.mxu1 }
 0x4a0   : > { %v8644_v34 = vadd.f32 %v8643_v22, %v8642_v49  ;;  %v3031_v20 = vadd.f32 %v8609_v46, %v2799_v19 }
 0x4a1   : > { %v8712_v50 = vpop.f32.mrf.mxu0  ;;  %v8818_v29 = vpop.f32.mrf.mxu1 }
 0x4a2   : > { %v3169_v23 = vadd.f32 %v8644_v34, %v3031_v20  ;;  %v8819_v11 = vadd.f32 %v8818_v29, %v8817_v52 }
 0x4a3   : > { %v8713_v27 = vpop.f32.mrf.mxu0  ;;  %v8887_v6 = vpop.f32.mrf.mxu1 }
 0x4a4   : > { %v8714_v30 = vadd.f32 %v8713_v27, %v8712_v50  ;;  %v3277_v51 = vadd.f32 %v8679_v32, %v3169_v23 }
 0x4a5   : > { %v8782_v62 = vpop.f32.mrf.mxu0  ;;  %v8888_v1 = vpop.f32.mrf.mxu1 }
 0x4a6   : > { %v3445_v54 = vadd.f32 %v8714_v30, %v3277_v51  ;;  %v8889_v58 = vadd.f32 %v8888_v1, %v8887_v6 }
 0x4a7   : > { %v8783_v2 = vpop.f32.mrf.mxu0  ;;  %v8957_v7 = vpop.f32.mrf.mxu1 }
 0x4a8   : > { %v8784_v31 = vadd.f32 %v8783_v2, %v8782_v62  ;;  %v3549_v15 = vadd.f32 %v8749_v25, %v3445_v54 }
 0x4a9   : > { %v8852_v56 = vpop.f32.mrf.mxu0  ;;  %v8958_v18 = vpop.f32.mrf.mxu1 }
 0x4aa   : > { %v3661_v63 = vadd.f32 %v8784_v31, %v3549_v15  ;;  %v8959_v36 = vadd.f32 %v8958_v18, %v8957_v7 }
 0x4ab   : > { %v8853_v17 = vpop.f32.mrf.mxu0  ;;  %v9027_v4 = vpop.f32.mrf.mxu1 }
 0x4ac   : > { %v8854_v49 = vadd.f32 %v8853_v17, %v8852_v56  ;;  %v3893_v48 = vadd.f32 %v8819_v11, %v3661_v63 }
 0x4ad   : > { %v8922_v35 = vpop.f32.mrf.mxu0  ;;  %v9028_v13 = vpop.f32.mrf.mxu1 }
 0x4ae   : > { %v4031_v42 = vadd.f32 %v8854_v49, %v3893_v48  ;;  %v9029_v52 = vadd.f32 %v9028_v13, %v9027_v4 }
 0x4af   : > { %v8923_v61 = vpop.f32.mrf.mxu0  ;;  %v9097_v39 = vpop.f32.mrf.mxu1 }
 0x4b0   : > { %v8924_v50 = vadd.f32 %v8923_v61, %v8922_v35  ;;  %v4139_v3 = vadd.f32 %v8889_v58, %v4031_v42 }
 0x4b1   : > { %v8992_v57 = vpop.f32.mrf.mxu0  ;;  %v9098_v5 = vpop.f32.mrf.mxu1 }
 0x4b2   : > { %v4307_v59 = vadd.f32 %v8924_v50, %v4139_v3  ;;  %v9099_v6 = vadd.f32 %v9098_v5, %v9097_v39 }
 0x4b3   : > { %v8993_v40 = vpop.f32.mrf.mxu0  ;;  %v9167_v45 = vpop.f32.mrf.mxu1 }
 0x4b4   : > { %v8994_v62 = vadd.f32 %v8993_v40, %v8992_v57  ;;  %v4411_v37 = vadd.f32 %v8959_v36, %v4307_v59 }
 0x4b5   : > { %v9062_v26 = vpop.f32.mrf.mxu0  ;;  %v9168_v53 = vpop.f32.mrf.mxu1 }
 0x4b6   : > { %v4523_v28 = vadd.f32 %v8994_v62, %v4411_v37  ;;  %v9169_v7 = vadd.f32 %v9168_v53, %v9167_v45 }
 0x4b7   : > { %v9063_v8 = vpop.f32.mrf.mxu0  ;;  %v9237_v24 = vpop.f32.mrf.mxu1 }
 0x4b8   : > { %v9064_v56 = vadd.f32 %v9063_v8, %v9062_v26  ;;  %v4755_v60 = vadd.f32 %v9029_v52, %v4523_v28 }
 0x4b9   : > { %v9132_v55 = vpop.f32.mrf.mxu0  ;;  %v9238_v27 = vpop.f32.mrf.mxu1 }
 0x4ba   : > { %v4893_v33 = vadd.f32 %v9064_v56, %v4755_v60  ;;  %v9239_v4 = vadd.f32 %v9238_v27, %v9237_v24 }
 0x4bb   : > { %v9133_v44 = vpop.f32.mrf.mxu0  ;;  %v9307_v9 = vpop.f32.mrf.mxu1 }
 0x4bc   : > { %v9134_v35 = vadd.f32 %v9133_v44, %v9132_v55  ;;  %v5001_v41 = vadd.f32 %v9099_v6, %v4893_v33 }
 0x4bd   : > { %v9202_v43 = vpop.f32.mrf.mxu0  ;;  %v9308_v29 = vpop.f32.mrf.mxu1 }
 0x4be   : > { %v5169_v16 = vadd.f32 %v9134_v35, %v5001_v41  ;;  %v9309_v34 = vadd.f32 %v9308_v29, %v9307_v9  ;;  %v690_v35 = vld [vmem:[%s10559_s19] sm:$0xff] }
 0x4bf   : > { %v9203_v22 = vpop.f32.mrf.mxu0  ;;  %v9377_v0 = vpop.f32.mrf.mxu1 }
 0x4c0   : > { %v9204_v57 = vadd.f32 %v9203_v22, %v9202_v43  ;;  %v5273_v47 = vadd.f32 %v9169_v7, %v5169_v16 }
 0x4c1   : > { %v9272_v14 = vpop.f32.mrf.mxu0  ;;  %v9378_v61 = vpop.f32.mrf.mxu1 }
 0x4c2   : > { %v5385_v12 = vadd.f32 %v9204_v57, %v5273_v47  ;;  %v9379_v23 = vadd.f32 %v9378_v61, %v9377_v0 }
 0x4c3   : > { %v9273_v10 = vpop.f32.mrf.mxu0  ;;  %v9447_v38 = vpop.f32.mrf.mxu1 }
 0x4c4   : > { %v9274_v26 = vadd.f32 %v9273_v10, %v9272_v14  ;;  %v5617_v19 = vadd.f32 %v9239_v4, %v5385_v12 }
 0x4c5   : > { %v9342_v2 = vpop.f32.mrf.mxu0  ;;  %v9448_v21 = vpop.f32.mrf.mxu1 }
 0x4c6   : > { %v5755_v39 = vadd.f32 %v9274_v26, %v5617_v19  ;;  %v9449_v54 = vadd.f32 %v9448_v21, %v9447_v38 }
 0x4c7   : > { %v9343_v17 = vpop.f32.mrf.mxu0  ;;  %v9517_v13 = vpop.f32.mrf.mxu1 }
 0x4c8   : > { %v9344_v20 = vadd.f32 %v9343_v17, %v9342_v2  ;;  %v5863_v55 = vadd.f32 %v9309_v34, %v5755_v39 }
 0x4c9   : > { %v9412_v1 = vpop.f32.mrf.mxu0  ;;  %v9518_v32 = vpop.f32.mrf.mxu1 }
 0x4ca   : > { %v6031_v51 = vadd.f32 %v9344_v20, %v5863_v55  ;;  %v9519_v49 = vadd.f32 %v9518_v32, %v9517_v13 }
 0x4cb   : > { %v9413_v18 = vpop.f32.mrf.mxu0 }
 0x4cc   : > { %v9414_v25 = vadd.f32 %v9413_v18, %v9412_v1  ;;  %v6135_v45 = vadd.f32 %v9379_v23, %v6031_v51 }
 0x4cd   : > { %v9482_v40 = vpop.f32.mrf.mxu0 }
 0x4ce   : > { %v6247_v43 = vadd.f32 %v9414_v25, %v6135_v45 }
 0x4cf   : > { %v9483_v46 = vpop.f32.mrf.mxu0 }
 0x4d0   : > { %v9484_v15 = vadd.f32 %v9483_v46, %v9482_v40  ;;  %v6479_v63 = vadd.f32 %v9449_v54, %v6247_v43 }
 0x4d2   : > { %v6617_v24 = vadd.f32 %v9484_v15, %v6479_v63 }
 0x4d4   : > { %v6725_v14 = vadd.f32 %v9519_v49, %v6617_v24 }
 0x4dd   : > { %v9552_v8 = vpop.f32.mrf.mxu0 }
 0x4df   : > { %v9553_v30 = vpop.f32.mrf.mxu0 }
 0x4e0   : > { %v9554_v48 = vadd.f32 %v9553_v30, %v9552_v8 }
 0x4e2   : > { %v6893_v3 = vadd.f32 %v9554_v48, %v6725_v14 }
 0x4e6   : > { %v9587_v5 = vpop.f32.mrf.mxu1 }
 0x4e8   : > { %v9588_v31 = vpop.f32.mrf.mxu1 }
 0x4e9   : > { %v9589_v42 = vadd.f32 %v9588_v31, %v9587_v5 }
 0x4eb   : > { %v6997_v9 = vadd.f32 %v9589_v42, %v6893_v3 }
 0x4ff   : > { %v9622_v44 = vpop.f32.mrf.mxu0 }
 0x501   : > { %v9623_v11 = vpop.f32.mrf.mxu0 }
 0x502   : > { %v9624_v36 = vadd.f32 %v9623_v11, %v9622_v44 }
 0x504   : > { %v7109_v2 = vadd.f32 %v9624_v36, %v6997_v9 }
 0x508   : > { %v9657_v53 = vpop.f32.mrf.mxu1 }
 0x50a   : > { %v9658_v58 = vpop.f32.mrf.mxu1 }
 0x50b   : > { %v9659_v59 = vadd.f32 %v9658_v58, %v9657_v53 }
 0x50d   : > { %v7341_v29 = vadd.f32 %v9659_v59, %v7109_v2 }
 0x521   : > { %v9692_v22 = vpop.f32.mrf.mxu0 }
 0x523   : > { %v9693_v50 = vpop.f32.mrf.mxu0 }
 0x524   : > { %v9694_v37 = vadd.f32 %v9693_v50, %v9692_v22 }
 0x526   : > { %v7479_v56 = vadd.f32 %v9694_v37, %v7341_v29 }
 0x52a   : > { %v9727_v27 = vpop.f32.mrf.mxu1 }
 0x52c   : > { %v9728_v62 = vpop.f32.mrf.mxu1 }
 0x52d   : > { %v9729_v28 = vadd.f32 %v9728_v62, %v9727_v27 }
 0x52f   : > { %v7587_v60 = vadd.f32 %v9729_v28, %v7479_v56 }
 0x543   : > { %v9762_v10 = vpop.f32.mrf.mxu0 }
 0x545   : > { %v9763_v52 = vpop.f32.mrf.mxu0 }
 0x546   : > { %v9764_v17 = vadd.f32 %v9763_v52, %v9762_v10 }
 0x548   : > { %v7755_v1 = vadd.f32 %v9764_v17, %v7587_v60 }
 0x54b   : > { %v9797_v0 = vpop.f32.mrf.mxu1 }
 0x54d   : > { %v9798_v6 = vpop.f32.mrf.mxu1 }
 0x54e   : > { %v9799_v33 = vadd.f32 %v9798_v6, %v9797_v0 }
 0x550   : > { %v7859_v61 = vadd.f32 %v9799_v33, %v7755_v1  ;;  %7867 = sbr.rel (%p8112_p0) target bundleno = 1423 (0x58f), region = 80 }
 0x552   : > { %v7862_v41 = vadd.f32 %v7859_v61, %v690_v35 }
 0x554   : > { %7863 = vst [vmem:[%s10559_s19] sm:$0xff] %v7862_v41 }
 0x555   : > { %v7870_v7 = vrot.slane %v7862_v41, 4  ;;  %v7868_v16 = vlaneseq  ;;  %v7888_v23 = vld [vmem:[%s360_s2] sm:$0x1] }
 0x556   : > { %v8113_v44 = vld [vmem:[%s368_s4] ss:$0 sm:$0xff] }
 0x557   : > { %v7871_v18 = vadd.f32 %v7870_v7, %v7862_v41  ;;  %v7869_v47 = vshrl.u32 %v7868_v16, 7 }
 0x559   : > { %v7872_v38 = vrot.slane %v7871_v18, 2  ;;  %vm7877_vm1 = vcmp.lt.s32.totalorder %v7869_v47, 6  ;;  %v7895_v30 = vsub.s32 0, %v7869_v47 }
 0x55b   : > { %v7873_v57 = vadd.f32 %v7872_v38, %v7871_v18 }
 0x55d   : > { %v7874_v40 = vrot.slane %v7873_v57, 1 }
 0x55f   : > { %v7875_v4 = vadd.f32 %v7874_v40, %v7873_v57 }
 0x561   : > { %v7876_v21 = vmul.f32 0.16666667, %v7875_v4 }
 0x563   : > { %v7878_v12 = vsub.f32 %v7862_v41, %v7876_v21 }
 0x565   : > { %v7879_v26 = vsel %vm7877_vm1, %v7878_v12, 0.0 }
 0x566   : > { %v7880_v46 = vmul.f32 %v7879_v26, %v7879_v26 }
 0x568   : > { %v7881_v13 = vrot.slane %v7880_v46, 4 }
 0x56a   : > { %v7882_v19 = vadd.f32 %v7881_v13, %v7880_v46 }
 0x56c   : > { %v7883_v34 = vrot.slane %v7882_v19, 2 }
 0x56e   : > { %v7884_v8 = vadd.f32 %v7883_v34, %v7882_v19 }
 0x570   : > { %v7885_v39 = vrot.slane %v7884_v8, 1 }
 0x572   : > { %v7886_v20 = vadd.f32 %v7885_v39, %v7884_v8 }
 0x574   : > { %v7887_v32 = vmul.f32 0.16666667, %v7886_v20 }
 0x576   : > { %v7889_v55 = vadd.f32 1e-05, %v7887_v32 }
 0x578   : > { %9955 = vrsqrt.f32 %v7889_v55 }
 0x585   : > { %v9956_v5 = vpop.eup %9955 }
 0x586   : > { %v7891_v51 = vmul.f32 %v9956_v5, %v7888_v23 }
 0x588   : > { %v7896_v25 = vrot.slane %v7891_v51, %v7895_v30 }
 0x58a   : > { %v7898_v45 = vmul.f32 %v7896_v25, %v7879_v26 }
 0x58c   : > { %v7906_v54 = vadd.f32 %v8113_v44, %v7898_v45 }
 0x58e   : > { %7907 = vst [vmem:[%s10559_s19] sm:$0xff] %v7906_v54 }
 0x58f PF: > { %s17138_s15 = sld [smem:[#allocation22_spill]]  ;;  %s7922_s2 = sshll.u32 %s10559_s19, 4  ;;  %s7923_s2 = int_to_ptr.vmem [resolvable:$true] %s7922_s2 }
 0x590   : > { %s17140_s1 = sld [smem:[#allocation62_spill]]  ;;  %s7909_s22 = scalar_lea.sflag [#allocation5], %s10543_s30 }
 0x591   : > { %s10119_s12 = scalar_lea.vmem %s7923_s2, 128  ;;  %s10265_s4 = smov [#allocation14]  }
 0x592   : > { %p10120_p8 = scmp.ne.s32.totalorder %s7923_s2, %s10119_s12  ;;  %s10123_s18 = sshll.u32 %s10265_s4, 4  ;;  %s10124_s18 = int_to_ptr.vmem [resolvable:$false] %s10123_s18 }
 0x593   : > { %s10125_s7 = scalar_lea.vmem %s10124_s18, 256  ;;  %p10126_p5 = scmp.lt.s32.totalorder %s7923_s2, %s10124_s18 }
 0x594   : > { %p10121_p3 = pnand %p10120_p8, %p10449_p11  ;;  %p10127_p12 = scmp.lt.s32.totalorder %s10125_s7, %s10119_s12 }
 0x595   : > { %s8115_s16 = sshll.u32 %s17138_s15, 7 }
 0x596   : > { %s7920_s20 = scalar_lea.hbm %s17140_s1, %s8115_s16  ;;  %p10122_p1 = pneg %p10121_p3 }
 0x597   : > { %p10128_p13 = por %p10127_p12, %p10126_p5 }
 0x599   : > { %p10129_p6 = pnand %p10128_p13, %p10122_p1 }
 0x59b   : > { %10132 = shalt.err (!%p10129_p6)
}
 0x59c   : > { %s10133_s24 = scalar_lea.hbm %s7920_s20, 128  ;;  %s10137_s8 = scalar_lea.hbm %s17140_s1, 256 }
 0x59d   : > { %p10134_p9 = scmp.ne.s32.totalorder %s7920_s20, %s10133_s24  ;;  %p10138_p10 = scmp.lt.s32.totalorder %s7920_s20, %s17140_s1 }
 0x59e   : > { %p10139_p2 = scmp.lt.s32.totalorder %s10137_s8, %s10133_s24 }
 0x59f   : > { %p10135_p7 = pnand %p10134_p9, %p10449_p11 }
 0x5a0   : > { %p10140_p0 = por %p10139_p2, %p10138_p10 }
 0x5a1   : > { %p10136_p4 = pneg %p10135_p7 }
 0x5a3   : > { %p10141_p8 = pnand %p10140_p0, %p10136_p4 }
 0x5a5   : > { %10144 = shalt.err (!%p10141_p8)
}
 0x5a6   : > { %9818 = dma.vmem_to_hbm [thread:$0]  (%p10449_p11), %s7923_s2, 128, %s7920_s20, %s7909_s22  }
 0x5a7 PF: > { %s17141_s13 = sld [smem:[#allocation20_spill]]  ;;  %p9851_p3 = scmp.ge.s32.totalorder %s10251_s11, 2 }
 0x5a8   : > { %s17142_s15 = sld [smem:[#allocation28_spill]] }
 0x5ad   : > { %s7934_s16 = sand.u32 1, %s17141_s13  }
 0x5ae   : > { %p17143_p1 = scmp.ne.s32.totalorder %s17142_s15, 0  ;;  %s7935_s0 = scalar_lea.sflag [#allocation5], %s7934_s16 }
 0x5b0   : > { %p9841_p5 = pnand %p9851_p3, %p17143_p1 }
 0x5b2   : > { %p9842_p12 = pneg %p9841_p5 }
 0x5b4   : > { %10206 = dma.done.wait (%p9842_p12), %s7935_s0, 128  }
 0x5b5   : > { %10208 = vsyncadd (%p9842_p12), %s7935_s0, 4294967168  ;;  %s28_s11 = sadd.s32 1, %s10251_s11   ;;  %s17144_s14 = sld [smem:[#allocation26_spill]] }
 0x5b6   : > { %p25_p13 = scmp.ge.s32.totalorder %s28_s11, 6   ;;  %s17145_s17 = sld [smem:[#allocation25_spill]] }
 0x5b7   : > { %s17146_s20 = sld [smem:[#allocation23_spill]]  ;;  %s17148_s24 = smov %s10215_s25 }
 0x5b8   : > { %s17147_s2 = sld [smem:[#allocation24_spill]]  ;;  %s17149_s25 = smov %s10219_s26 }
 0x5b9   : > { %s17151_s27 = smov %s10227_s28  ;;  %s17152_s28 = smov %s10231_s29 }
 0x5ba   : > { %s17154_s30 = smov %s10243_s9  ;;  %s17155_s8 = smov %s10247_s10 }
 0x5bb   : > { %s17150_s26 = smov %s17144_s14  ;;  %27 = sbr.rel (!%p25_p13) target bundleno = 19 (0x13), region = 155 }
 0x5bc   : > { %s17153_s29 = smov %s17145_s17 }
 0x5bd   : > { %s17156_s9 = smov %s17146_s20 }
 0x5be   : > { %s17157_s10 = smov %s17147_s2 }
 0x5c0   :  { %7940 = vsyncpa [#allocation4], 1 }
 0x5c1   :  { %7942 = vsyncpa [#allocation4 + $0x1], 1 }
 0x5c2   :  { %7943 = vsyncpa [#allocation7], 1 }
 0x5c3   :  { %7944 = vsyncpa [#allocation10], 1 }
 0x5c4   :  { %7946 = vsyncpa [#allocation10 + $0x1], 1 }
 0x5c5   :  { %7947 = vsyncpa [#allocation13], 1 }
 0x5c6   :  { %7949 = vsyncpa [#allocation13 + $0x1], 1 }
 0x5c7   :  { %7950 = vsyncpa [#allocation5], 1 }
 0x5c8   :  { %7952 = vsyncpa [#allocation5 + $0x1], 1 }

</bundles_post_ra>
